<compile_context>
chip_gen: v5e
topology: v5e:2x2
jax: 0.10.0
libtpu: 0.0.40
codegen_flags: <defaults>
</compile_context>

<pallas_src>
import numpy as np

import jax
import jax.numpy as jnp
from jax.experimental import pallas as pl
from jax.experimental.pallas import tpu as pltpu

# ------------------------------ architecture -------------------------------
C_IN, H_IN, W_IN = 3, 84, 84          # frame_stack_len=3, 84x84 frames (NCHW)
C1, K1, S1 = 6, 7, 3                  # conv1: 3->6, 7x7, stride 3
H1 = (H_IN - K1) // S1 + 1            # 26
P1 = H1 // 2                          # 13  (2x2 max-pool, floor mode)
C2, K2, S2 = 12, 4, 1                 # conv2: 6->12, 4x4, stride 1
H2 = P1 - K2 + 1                      # 10
P2 = H2 // 2                          # 5
N_FLAT = C2 * P2 * P2                 # 300
N_HID = 128


# ------------------------------ fused kernel -------------------------------
def _dqn_fused_kernel(x_ref, u1_ref, t1_ref, b1_ref, e1_ref, f1_ref,
                      u2_ref, t2_ref, b2_ref, e2_ref, f2_ref,
                      w1v_ref, bl1_ref, w2c_ref, bl2_ref, o_ref):
    f32 = jnp.float32

    def dot(a, b):
        return jnp.dot(a, b, preferred_element_type=f32)

    x = x_ref[0]                                           # (C_IN*H_IN, W_IN)

    # ---- conv1 (7x7, stride 3) + bias + ReLU; rows=(co,ho), lanes=wo ----
    y1 = dot(x, u1_ref[...])                               # (252, K1*H1)
    acc1 = dot(t1_ref[0], y1[:, 0:H1])
    for kj in range(1, K1):
        acc1 = acc1 + dot(t1_ref[kj], y1[:, kj * H1:(kj + 1) * H1])
    h1 = jnp.maximum(acc1 + b1_ref[...], 0.0)              # (C1*H1, H1) = (156, 26)

    # ---- 2x2 max-pool via 0/1 selection matmuls (max on VPU) ----
    r0 = dot(e1_ref[0], h1)                                # rows 2u+0
    r1 = dot(e1_ref[1], h1)                                # rows 2u+1
    p1 = jnp.maximum(
        jnp.maximum(dot(r0, f1_ref[0]), dot(r0, f1_ref[1])),
        jnp.maximum(dot(r1, f1_ref[0]), dot(r1, f1_ref[1])))   # (78, 13)

    # ---- conv2 (4x4, stride 1) + bias + ReLU ----
    y2 = dot(p1, u2_ref[...])                              # (78, K2*H2)
    acc2 = dot(t2_ref[0], y2[:, 0:H2])
    for kj in range(1, K2):
        acc2 = acc2 + dot(t2_ref[kj], y2[:, kj * H2:(kj + 1) * H2])
    h2 = jnp.maximum(acc2 + b2_ref[...], 0.0)              # (120, 10)

    # ---- 2x2 max-pool ----
    s0 = dot(e2_ref[0], h2)
    s1 = dot(e2_ref[1], h2)
    p2 = jnp.maximum(
        jnp.maximum(dot(s0, f2_ref[0]), dot(s0, f2_ref[1])),
        jnp.maximum(dot(s1, f2_ref[0]), dot(s1, f2_ref[1])))   # (60, 5)

    # ---- lin1 (PyTorch NCHW flatten folded into P2 matmuls) + ReLU ----
    hcol = bl1_ref[...]                                    # (128, 1)
    for v in range(P2):
        tmp = dot(w1v_ref[v], p2)                          # (128, P2)
        hcol = hcol + tmp[:, v:v + 1]
    hcol = jnp.maximum(hcol, 0.0)

    # ---- lin2 (128 -> 1) on the VPU ----
    q = jnp.sum(hcol * w2c_ref[...], axis=0, keepdims=True) + bl2_ref[...]
    o_ref[0] = q.astype(o_ref.dtype)                       # (1, 1)


# ----------------------- one-time operand preparation -----------------------
def _unfold_matrix(w_in, k, stride, w_out):
    """U[w, kj*w_out + wo] = 1 iff w == stride*wo + kj."""
    u = np.zeros((w_in, k * w_out), np.float32)
    for kj in range(k):
        for wo in range(w_out):
            u[stride * wo + kj, kj * w_out + wo] = 1.0
    return jnp.asarray(u)


def _pool_row_select(c, h_in, h_out, a):
    e = np.zeros((c * h_out, c * h_in), np.float32)
    for ci in range(c):
        for u in range(h_out):
            e[ci * h_out + u, ci * h_in + 2 * u + a] = 1.0
    return e


def _pool_col_select(w_in, w_out, b):
    f = np.zeros((w_in, w_out), np.float32)
    for v in range(w_out):
        f[2 * v + b, v] = 1.0
    return f


def _toeplitz_weight(w, h_out, stride, h_in):
    """w:(Co,Ci,kh,kw) -> T:(kw, Co*h_out, Ci*h_in) with
       T[kj, co*h_out+ho, ci*h_in + stride*ho + ki] = w[co, ci, ki, kj]."""
    co_n, ci_n, kh, kw = w.shape
    co, ho, ci, ki = np.meshgrid(np.arange(co_n), np.arange(h_out),
                                 np.arange(ci_n), np.arange(kh), indexing="ij")
    rows = co * h_out + ho
    cols = ci * h_in + stride * ho + ki
    t = jnp.zeros((kw, co_n * h_out, ci_n * h_in), jnp.float32)
    for kj in range(kw):
        t = t.at[kj, rows, cols].set(w[co, ci, ki, kj])
    return t


def prepare_params(params):
    """One-time re-arrangement of PyTorch-style params into kernel operands
    (all weight transposes/reshapes hoisted out of the per-call path)."""
    w1, b1 = params["conv1_w"], params["conv1_b"]
    w2, b2 = params["conv2_w"], params["conv2_b"]
    l1w, l1b = params["lin1_w"], params["lin1_b"]
    l2w, l2b = params["lin2_w"], params["lin2_b"]

    # w1v[v, k, c*P2+u] = l1w[k, c*P2*P2 + u*P2 + v]  (folds NCHW flatten)
    w1v = l1w.reshape(N_HID, C2, P2, P2).transpose(3, 0, 1, 2).reshape(
        P2, N_HID, C2 * P2)

    return {
        "u1": _unfold_matrix(W_IN, K1, S1, H1),                     # (84, 182)
        "t1": _toeplitz_weight(w1, H1, S1, H_IN),                   # (7, 156, 252)
        "b1e": jnp.repeat(b1, H1).reshape(C1 * H1, 1),              # (156, 1)
        "e1": jnp.asarray(np.stack([_pool_row_select(C1, H1, P1, a) for a in (0, 1)])),
        "f1": jnp.asarray(np.stack([_pool_col_select(H1, P1, b) for b in (0, 1)])),
        "u2": _unfold_matrix(P1, K2, S2, H2),                       # (13, 40)
        "t2": _toeplitz_weight(w2, H2, S2, P1),                     # (4, 120, 78)
        "b2e": jnp.repeat(b2, H2).reshape(C2 * H2, 1),              # (120, 1)
        "e2": jnp.asarray(np.stack([_pool_row_select(C2, H2, P2, a) for a in (0, 1)])),
        "f2": jnp.asarray(np.stack([_pool_col_select(H2, P2, b) for b in (0, 1)])),
        "w1v": w1v,                                                 # (5, 128, 60)
        "bl1": l1b.reshape(N_HID, 1),                               # (128, 1)
        "w2c": l2w.reshape(N_HID, 1),                               # (128, 1)
        "bl2": l2b.reshape(1, 1),                                   # (1, 1)
    }


_OPERAND_KEYS = ("u1", "t1", "b1e", "e1", "f1", "u2", "t2", "b2e",
                 "e2", "f2", "w1v", "bl1", "w2c", "bl2")


def _full_spec(arr):
    nd = arr.ndim
    return pl.BlockSpec(arr.shape, lambda b, _n=nd: (0,) * _n)


# ------------------------------- forward pass -------------------------------
def dqn_forward(x, prep):
    """Matches DQN.forward for NCHW float32 input x of shape (B, 3, 84, 84)."""
    B = x.shape[0]
    x2 = x.reshape(B, C_IN * H_IN, W_IN)          # free reshape (leading dims)
    consts = [prep[k] for k in _OPERAND_KEYS]

    matmuls = (
        [(C_IN * H_IN, W_IN, K1 * H1)] + [(C1 * H1, C_IN * H_IN, H1)] * K1 +
        [(C1 * P1, C1 * H1, H1)] * 2 + [(C1 * P1, H1, P1)] * 4 +
        [(C1 * P1, P1, K2 * H2)] + [(C2 * H2, C1 * P1, H2)] * K2 +
        [(C2 * P2, C2 * H2, H2)] * 2 + [(C2 * P2, H2, P2)] * 4 +
        [(N_HID, C2 * P2, P2)] * P2)
    flops = int(B * (sum(2 * m * k * n for m, k, n in matmuls) + 2 * N_HID))
    bytes_accessed = int(
        (x2.size + sum(int(np.prod(c.shape)) for c in consts) + B) * 4)

    out = pl.pallas_call(
        _dqn_fused_kernel,
        out_shape=jax.ShapeDtypeStruct((B, 1, 1), jnp.float32),
        grid=(B,),
        in_specs=[pl.BlockSpec((1, C_IN * H_IN, W_IN), lambda b: (b, 0, 0))]
                 + [_full_spec(c) for c in consts],
        out_specs=pl.BlockSpec((1, 1, 1), lambda b: (b, 0, 0)),
        compiler_params=pltpu.CompilerParams(
            dimension_semantics=("parallel",)),
        cost_estimate=pl.CostEstimate(flops=flops, transcendentals=0,
                                      bytes_accessed=bytes_accessed),
    )(x2, *consts)
    return out.reshape(B, 1)


# ------------------------- deterministic parameters -------------------------
def init_params(key):
    ks = jax.random.split(key, 8)

    def u(k, shape, fan_in):
        bound = 1.0 / jnp.sqrt(jnp.float32(fan_in))
        return jax.random.uniform(k, shape, jnp.float32, -bound, bound)

    return {
        "conv1_w": u(ks[0], (C1, C_IN, K1, K1), C_IN * K1 * K1),
        "conv1_b": u(ks[1], (C1,), C_IN * K1 * K1),
        "conv2_w": u(ks[2], (C2, C1, K2, K2), C1 * K2 * K2),
        "conv2_b": u(ks[3], (C2,), C1 * K2 * K2),
        "lin1_w": u(ks[4], (N_HID, N_FLAT), N_FLAT),
        "lin1_b": u(ks[5], (N_HID,), N_FLAT),
        "lin2_w": u(ks[6], (1, N_HID), N_HID),
        "lin2_b": u(ks[7], (1,), N_HID),
    }


# --------------------------- pure-JAX reference -----------------------------
def _reference_forward(x, params):
    hi = jax.lax.Precision.HIGHEST
    out = jax.lax.conv_general_dilated(
        x, params["conv1_w"], window_strides=(S1, S1), padding="VALID",
        dimension_numbers=("NCHW", "OIHW", "NCHW"), precision=hi)
    out = jnp.maximum(out + params["conv1_b"][None, :, None, None], 0.0)
    out = jax.lax.reduce_window(out, -jnp.inf, jax.lax.max,
                                (1, 1, 2, 2), (1, 1, 2, 2), "VALID")
    out = jax.lax.conv_general_dilated(
        out, params["conv2_w"], window_strides=(S2, S2), padding="VALID",
        dimension_numbers=("NCHW", "OIHW", "NCHW"), precision=hi)
    out = jnp.maximum(out + params["conv2_b"][None, :, None, None], 0.0)
    out = jax.lax.reduce_window(out, -jnp.inf, jax.lax.max,
                                (1, 1, 2, 2), (1, 1, 2, 2), "VALID")
    flat = out.reshape(x.shape[0], -1)
    h = jnp.maximum(jnp.dot(flat, params["lin1_w"].T, precision=hi)
                    + params["lin1_b"], 0.0)
    return jnp.dot(h, params["lin2_w"].T, precision=hi) + params["lin2_b"]


if __name__ == "__main__":
    key = jax.random.PRNGKey(0)
    pkey, xkey = jax.random.split(key)
    params = init_params(pkey)
    prep = prepare_params(params)

    # Input implied by the module: 3 stacked 84x84 grayscale frames, NCHW.
    x = jax.random.uniform(xkey, (2, C_IN, H_IN, W_IN), jnp.float32)

    q = jax.jit(dqn_forward)(x, prep)
    q = jax.block_until_ready(q)
    assert q.shape == (2, 1) and q.dtype == jnp.float32

    ref = jax.block_until_ready(jax.jit(_reference_forward)(x, params))
    assert bool(jnp.allclose(q, ref, rtol=1e-3, atol=1e-3)), (q, ref)

    print("KERNEL_OK")
</pallas_src>

<mosaic_0001>
module attributes {stable_mosaic.version = 11 : i64} {
  func.func @_dqn_fused_kernel(%arg0: i32, %arg1: memref<1x252x84xf32, #tpu.memory_space<vmem>>, %arg2: memref<84x182xf32, #tpu.memory_space<vmem>>, %arg3: memref<7x156x252xf32, #tpu.memory_space<vmem>>, %arg4: memref<156x1xf32, #tpu.memory_space<vmem>>, %arg5: memref<2x78x156xf32, #tpu.memory_space<vmem>>, %arg6: memref<2x26x13xf32, #tpu.memory_space<vmem>>, %arg7: memref<13x40xf32, #tpu.memory_space<vmem>>, %arg8: memref<4x120x78xf32, #tpu.memory_space<vmem>>, %arg9: memref<120x1xf32, #tpu.memory_space<vmem>>, %arg10: memref<2x60x120xf32, #tpu.memory_space<vmem>>, %arg11: memref<2x10x5xf32, #tpu.memory_space<vmem>>, %arg12: memref<5x128x60xf32, #tpu.memory_space<vmem>>, %arg13: memref<128x1xf32, #tpu.memory_space<vmem>>, %arg14: memref<128x1xf32, #tpu.memory_space<vmem>>, %arg15: memref<1x1xf32, #tpu.memory_space<vmem>>, %arg16: memref<1x1x1xf32, #tpu.memory_space<vmem>>) attributes {dimension_semantics = [#tpu.dimension_semantics<parallel>], iteration_bounds = array<i64: 2>, scalar_prefetch = 0 : i64, scratch_operands = 0 : i64, tpu.core_type = #tpu.core_type<tc>, window_params = [{transform_indices = @transform_0, window_bounds = array<i64: 1, 252, 84>}, {pipeline_mode = #tpu.pipeline_mode<synchronous>, transform_indices = @transform_1, window_bounds = array<i64: 84, 182>}, {pipeline_mode = #tpu.pipeline_mode<synchronous>, transform_indices = @transform_2, window_bounds = array<i64: 7, 156, 252>}, {pipeline_mode = #tpu.pipeline_mode<synchronous>, transform_indices = @transform_3, window_bounds = array<i64: 156, 1>}, {pipeline_mode = #tpu.pipeline_mode<synchronous>, transform_indices = @transform_4, window_bounds = array<i64: 2, 78, 156>}, {pipeline_mode = #tpu.pipeline_mode<synchronous>, transform_indices = @transform_5, window_bounds = array<i64: 2, 26, 13>}, {pipeline_mode = #tpu.pipeline_mode<synchronous>, transform_indices = @transform_6, window_bounds = array<i64: 13, 40>}, {pipeline_mode = #tpu.pipeline_mode<synchronous>, transform_indices = @transform_7, window_bounds = array<i64: 4, 120, 78>}, {pipeline_mode = #tpu.pipeline_mode<synchronous>, transform_indices = @transform_8, window_bounds = array<i64: 120, 1>}, {pipeline_mode = #tpu.pipeline_mode<synchronous>, transform_indices = @transform_9, window_bounds = array<i64: 2, 60, 120>}, {pipeline_mode = #tpu.pipeline_mode<synchronous>, transform_indices = @transform_10, window_bounds = array<i64: 2, 10, 5>}, {pipeline_mode = #tpu.pipeline_mode<synchronous>, transform_indices = @transform_11, window_bounds = array<i64: 5, 128, 60>}, {pipeline_mode = #tpu.pipeline_mode<synchronous>, transform_indices = @transform_12, window_bounds = array<i64: 128, 1>}, {pipeline_mode = #tpu.pipeline_mode<synchronous>, transform_indices = @transform_13, window_bounds = array<i64: 128, 1>}, {pipeline_mode = #tpu.pipeline_mode<synchronous>, transform_indices = @transform_14, window_bounds = array<i64: 1, 1>}, {transform_indices = @transform_15, window_bounds = array<i64: 1, 1, 1>}]} {
    %c0 = arith.constant 0 : index
    %c0_0 = arith.constant 0 : index
    %c0_1 = arith.constant 0 : index
    %0 = vector.load %arg1[%c0, %c0_0, %c0_1] : memref<1x252x84xf32, #tpu.memory_space<vmem>>, vector<1x252x84xf32>
    %1 = vector.shape_cast %0 : vector<1x252x84xf32> to vector<252x84xf32>
    %c0_2 = arith.constant 0 : index
    %c0_3 = arith.constant 0 : index
    %2 = vector.load %arg2[%c0_2, %c0_3] : memref<84x182xf32, #tpu.memory_space<vmem>>, vector<84x182xf32>
    %cst = arith.constant dense<0.000000e+00> : vector<252x182xf32>
    %3 = tpu.matmul %1, %2, %cst {dimension_numbers = #tpu.dot_dimension_numbers<[1], [0], [0], [1], [0, 0, 1, 1], [], []>} : vector<252x84xf32>, vector<84x182xf32>, vector<252x182xf32> -> vector<252x182xf32>
    %c0_4 = arith.constant 0 : index
    %c0_5 = arith.constant 0 : index
    %c0_6 = arith.constant 0 : index
    %4 = vector.load %arg3[%c0_4, %c0_5, %c0_6] : memref<7x156x252xf32, #tpu.memory_space<vmem>>, vector<1x156x252xf32>
    %5 = vector.shape_cast %4 : vector<1x156x252xf32> to vector<156x252xf32>
    %6 = vector.extract_strided_slice %3 {offsets = [0, 0], sizes = [252, 26], strides = [1, 1]} : vector<252x182xf32> to vector<252x26xf32>
    %cst_7 = arith.constant dense<0.000000e+00> : vector<156x26xf32>
    %7 = tpu.matmul %5, %6, %cst_7 {dimension_numbers = #tpu.dot_dimension_numbers<[1], [0], [0], [1], [0, 0, 1, 1], [], []>} : vector<156x252xf32>, vector<252x26xf32>, vector<156x26xf32> -> vector<156x26xf32>
    %c1 = arith.constant 1 : index
    %c0_8 = arith.constant 0 : index
    %c0_9 = arith.constant 0 : index
    %8 = vector.load %arg3[%c1, %c0_8, %c0_9] : memref<7x156x252xf32, #tpu.memory_space<vmem>>, vector<1x156x252xf32>
    %9 = vector.shape_cast %8 : vector<1x156x252xf32> to vector<156x252xf32>
    %10 = vector.extract_strided_slice %3 {offsets = [0, 26], sizes = [252, 26], strides = [1, 1]} : vector<252x182xf32> to vector<252x26xf32>
    %cst_10 = arith.constant dense<0.000000e+00> : vector<156x26xf32>
    %11 = tpu.matmul %9, %10, %cst_10 {dimension_numbers = #tpu.dot_dimension_numbers<[1], [0], [0], [1], [0, 0, 1, 1], [], []>} : vector<156x252xf32>, vector<252x26xf32>, vector<156x26xf32> -> vector<156x26xf32>
    %12 = arith.addf %7, %11 : vector<156x26xf32>
    %c2 = arith.constant 2 : index
    %c0_11 = arith.constant 0 : index
    %c0_12 = arith.constant 0 : index
    %13 = vector.load %arg3[%c2, %c0_11, %c0_12] : memref<7x156x252xf32, #tpu.memory_space<vmem>>, vector<1x156x252xf32>
    %14 = vector.shape_cast %13 : vector<1x156x252xf32> to vector<156x252xf32>
    %15 = vector.extract_strided_slice %3 {offsets = [0, 52], sizes = [252, 26], strides = [1, 1]} : vector<252x182xf32> to vector<252x26xf32>
    %cst_13 = arith.constant dense<0.000000e+00> : vector<156x26xf32>
    %16 = tpu.matmul %14, %15, %cst_13 {dimension_numbers = #tpu.dot_dimension_numbers<[1], [0], [0], [1], [0, 0, 1, 1], [], []>} : vector<156x252xf32>, vector<252x26xf32>, vector<156x26xf32> -> vector<156x26xf32>
    %17 = arith.addf %12, %16 : vector<156x26xf32>
    %c3 = arith.constant 3 : index
    %c0_14 = arith.constant 0 : index
    %c0_15 = arith.constant 0 : index
    %18 = vector.load %arg3[%c3, %c0_14, %c0_15] : memref<7x156x252xf32, #tpu.memory_space<vmem>>, vector<1x156x252xf32>
    %19 = vector.shape_cast %18 : vector<1x156x252xf32> to vector<156x252xf32>
    %20 = vector.extract_strided_slice %3 {offsets = [0, 78], sizes = [252, 26], strides = [1, 1]} : vector<252x182xf32> to vector<252x26xf32>
    %cst_16 = arith.constant dense<0.000000e+00> : vector<156x26xf32>
    %21 = tpu.matmul %19, %20, %cst_16 {dimension_numbers = #tpu.dot_dimension_numbers<[1], [0], [0], [1], [0, 0, 1, 1], [], []>} : vector<156x252xf32>, vector<252x26xf32>, vector<156x26xf32> -> vector<156x26xf32>
    %22 = arith.addf %17, %21 : vector<156x26xf32>
    %c4 = arith.constant 4 : index
    %c0_17 = arith.constant 0 : index
    %c0_18 = arith.constant 0 : index
    %23 = vector.load %arg3[%c4, %c0_17, %c0_18] : memref<7x156x252xf32, #tpu.memory_space<vmem>>, vector<1x156x252xf32>
    %24 = vector.shape_cast %23 : vector<1x156x252xf32> to vector<156x252xf32>
    %25 = vector.extract_strided_slice %3 {offsets = [0, 104], sizes = [252, 26], strides = [1, 1]} : vector<252x182xf32> to vector<252x26xf32>
    %cst_19 = arith.constant dense<0.000000e+00> : vector<156x26xf32>
    %26 = tpu.matmul %24, %25, %cst_19 {dimension_numbers = #tpu.dot_dimension_numbers<[1], [0], [0], [1], [0, 0, 1, 1], [], []>} : vector<156x252xf32>, vector<252x26xf32>, vector<156x26xf32> -> vector<156x26xf32>
    %27 = arith.addf %22, %26 : vector<156x26xf32>
    %c5 = arith.constant 5 : index
    %c0_20 = arith.constant 0 : index
    %c0_21 = arith.constant 0 : index
    %28 = vector.load %arg3[%c5, %c0_20, %c0_21] : memref<7x156x252xf32, #tpu.memory_space<vmem>>, vector<1x156x252xf32>
    %29 = vector.shape_cast %28 : vector<1x156x252xf32> to vector<156x252xf32>
    %30 = vector.extract_strided_slice %3 {offsets = [0, 130], sizes = [252, 26], strides = [1, 1]} : vector<252x182xf32> to vector<252x26xf32>
    %cst_22 = arith.constant dense<0.000000e+00> : vector<156x26xf32>
    %31 = tpu.matmul %29, %30, %cst_22 {dimension_numbers = #tpu.dot_dimension_numbers<[1], [0], [0], [1], [0, 0, 1, 1], [], []>} : vector<156x252xf32>, vector<252x26xf32>, vector<156x26xf32> -> vector<156x26xf32>
    %32 = arith.addf %27, %31 : vector<156x26xf32>
    %c6 = arith.constant 6 : index
    %c0_23 = arith.constant 0 : index
    %c0_24 = arith.constant 0 : index
    %33 = vector.load %arg3[%c6, %c0_23, %c0_24] : memref<7x156x252xf32, #tpu.memory_space<vmem>>, vector<1x156x252xf32>
    %34 = vector.shape_cast %33 : vector<1x156x252xf32> to vector<156x252xf32>
    %35 = vector.extract_strided_slice %3 {offsets = [0, 156], sizes = [252, 26], strides = [1, 1]} : vector<252x182xf32> to vector<252x26xf32>
    %cst_25 = arith.constant dense<0.000000e+00> : vector<156x26xf32>
    %36 = tpu.matmul %34, %35, %cst_25 {dimension_numbers = #tpu.dot_dimension_numbers<[1], [0], [0], [1], [0, 0, 1, 1], [], []>} : vector<156x252xf32>, vector<252x26xf32>, vector<156x26xf32> -> vector<156x26xf32>
    %37 = arith.addf %32, %36 : vector<156x26xf32>
    %c0_26 = arith.constant 0 : index
    %c0_27 = arith.constant 0 : index
    %38 = vector.load %arg4[%c0_26, %c0_27] : memref<156x1xf32, #tpu.memory_space<vmem>>, vector<156x1xf32>
    %39 = vector.broadcast %38 : vector<156x1xf32> to vector<156x26xf32>
    %40 = arith.addf %37, %39 : vector<156x26xf32>
    %cst_28 = arith.constant 0.000000e+00 : f32
    %41 = vector.broadcast %cst_28 : f32 to vector<156x26xf32>
    %42 = arith.maximumf %40, %41 : vector<156x26xf32>
    %c0_29 = arith.constant 0 : index
    %c0_30 = arith.constant 0 : index
    %c0_31 = arith.constant 0 : index
    %43 = vector.load %arg5[%c0_29, %c0_30, %c0_31] : memref<2x78x156xf32, #tpu.memory_space<vmem>>, vector<1x78x156xf32>
    %44 = vector.shape_cast %43 : vector<1x78x156xf32> to vector<78x156xf32>
    %cst_32 = arith.constant dense<0.000000e+00> : vector<78x26xf32>
    %45 = tpu.matmul %44, %42, %cst_32 {dimension_numbers = #tpu.dot_dimension_numbers<[1], [0], [0], [1], [0, 0, 1, 1], [], []>} : vector<78x156xf32>, vector<156x26xf32>, vector<78x26xf32> -> vector<78x26xf32>
    %c1_33 = arith.constant 1 : index
    %c0_34 = arith.constant 0 : index
    %c0_35 = arith.constant 0 : index
    %46 = vector.load %arg5[%c1_33, %c0_34, %c0_35] : memref<2x78x156xf32, #tpu.memory_space<vmem>>, vector<1x78x156xf32>
    %47 = vector.shape_cast %46 : vector<1x78x156xf32> to vector<78x156xf32>
    %cst_36 = arith.constant dense<0.000000e+00> : vector<78x26xf32>
    %48 = tpu.matmul %47, %42, %cst_36 {dimension_numbers = #tpu.dot_dimension_numbers<[1], [0], [0], [1], [0, 0, 1, 1], [], []>} : vector<78x156xf32>, vector<156x26xf32>, vector<78x26xf32> -> vector<78x26xf32>
    %c0_37 = arith.constant 0 : index
    %c0_38 = arith.constant 0 : index
    %c0_39 = arith.constant 0 : index
    %49 = vector.load %arg6[%c0_37, %c0_38, %c0_39] : memref<2x26x13xf32, #tpu.memory_space<vmem>>, vector<1x26x13xf32>
    %50 = vector.shape_cast %49 : vector<1x26x13xf32> to vector<26x13xf32>
    %cst_40 = arith.constant dense<0.000000e+00> : vector<78x13xf32>
    %51 = tpu.matmul %45, %50, %cst_40 {dimension_numbers = #tpu.dot_dimension_numbers<[1], [0], [0], [1], [0, 0, 1, 1], [], []>} : vector<78x26xf32>, vector<26x13xf32>, vector<78x13xf32> -> vector<78x13xf32>
    %c1_41 = arith.constant 1 : index
    %c0_42 = arith.constant 0 : index
    %c0_43 = arith.constant 0 : index
    %52 = vector.load %arg6[%c1_41, %c0_42, %c0_43] : memref<2x26x13xf32, #tpu.memory_space<vmem>>, vector<1x26x13xf32>
    %53 = vector.shape_cast %52 : vector<1x26x13xf32> to vector<26x13xf32>
    %cst_44 = arith.constant dense<0.000000e+00> : vector<78x13xf32>
    %54 = tpu.matmul %45, %53, %cst_44 {dimension_numbers = #tpu.dot_dimension_numbers<[1], [0], [0], [1], [0, 0, 1, 1], [], []>} : vector<78x26xf32>, vector<26x13xf32>, vector<78x13xf32> -> vector<78x13xf32>
    %55 = arith.maximumf %51, %54 : vector<78x13xf32>
    %c0_45 = arith.constant 0 : index
    %c0_46 = arith.constant 0 : index
    %c0_47 = arith.constant 0 : index
    %56 = vector.load %arg6[%c0_45, %c0_46, %c0_47] : memref<2x26x13xf32, #tpu.memory_space<vmem>>, vector<1x26x13xf32>
    %57 = vector.shape_cast %56 : vector<1x26x13xf32> to vector<26x13xf32>
    %cst_48 = arith.constant dense<0.000000e+00> : vector<78x13xf32>
    %58 = tpu.matmul %48, %57, %cst_48 {dimension_numbers = #tpu.dot_dimension_numbers<[1], [0], [0], [1], [0, 0, 1, 1], [], []>} : vector<78x26xf32>, vector<26x13xf32>, vector<78x13xf32> -> vector<78x13xf32>
    %c1_49 = arith.constant 1 : index
    %c0_50 = arith.constant 0 : index
    %c0_51 = arith.constant 0 : index
    %59 = vector.load %arg6[%c1_49, %c0_50, %c0_51] : memref<2x26x13xf32, #tpu.memory_space<vmem>>, vector<1x26x13xf32>
    %60 = vector.shape_cast %59 : vector<1x26x13xf32> to vector<26x13xf32>
    %cst_52 = arith.constant dense<0.000000e+00> : vector<78x13xf32>
    %61 = tpu.matmul %48, %60, %cst_52 {dimension_numbers = #tpu.dot_dimension_numbers<[1], [0], [0], [1], [0, 0, 1, 1], [], []>} : vector<78x26xf32>, vector<26x13xf32>, vector<78x13xf32> -> vector<78x13xf32>
    %62 = arith.maximumf %58, %61 : vector<78x13xf32>
    %63 = arith.maximumf %55, %62 : vector<78x13xf32>
    %c0_53 = arith.constant 0 : index
    %c0_54 = arith.constant 0 : index
    %64 = vector.load %arg7[%c0_53, %c0_54] : memref<13x40xf32, #tpu.memory_space<vmem>>, vector<13x40xf32>
    %cst_55 = arith.constant dense<0.000000e+00> : vector<78x40xf32>
    %65 = tpu.matmul %63, %64, %cst_55 {dimension_numbers = #tpu.dot_dimension_numbers<[1], [0], [0], [1], [0, 0, 1, 1], [], []>} : vector<78x13xf32>, vector<13x40xf32>, vector<78x40xf32> -> vector<78x40xf32>
    %c0_56 = arith.constant 0 : index
    %c0_57 = arith.constant 0 : index
    %c0_58 = arith.constant 0 : index
    %66 = vector.load %arg8[%c0_56, %c0_57, %c0_58] : memref<4x120x78xf32, #tpu.memory_space<vmem>>, vector<1x120x78xf32>
    %67 = vector.shape_cast %66 : vector<1x120x78xf32> to vector<120x78xf32>
    %68 = vector.extract_strided_slice %65 {offsets = [0, 0], sizes = [78, 10], strides = [1, 1]} : vector<78x40xf32> to vector<78x10xf32>
    %cst_59 = arith.constant dense<0.000000e+00> : vector<120x10xf32>
    %69 = tpu.matmul %67, %68, %cst_59 {dimension_numbers = #tpu.dot_dimension_numbers<[1], [0], [0], [1], [0, 0, 1, 1], [], []>} : vector<120x78xf32>, vector<78x10xf32>, vector<120x10xf32> -> vector<120x10xf32>
    %c1_60 = arith.constant 1 : index
    %c0_61 = arith.constant 0 : index
    %c0_62 = arith.constant 0 : index
    %70 = vector.load %arg8[%c1_60, %c0_61, %c0_62] : memref<4x120x78xf32, #tpu.memory_space<vmem>>, vector<1x120x78xf32>
    %71 = vector.shape_cast %70 : vector<1x120x78xf32> to vector<120x78xf32>
    %72 = vector.extract_strided_slice %65 {offsets = [0, 10], sizes = [78, 10], strides = [1, 1]} : vector<78x40xf32> to vector<78x10xf32>
    %cst_63 = arith.constant dense<0.000000e+00> : vector<120x10xf32>
    %73 = tpu.matmul %71, %72, %cst_63 {dimension_numbers = #tpu.dot_dimension_numbers<[1], [0], [0], [1], [0, 0, 1, 1], [], []>} : vector<120x78xf32>, vector<78x10xf32>, vector<120x10xf32> -> vector<120x10xf32>
    %74 = arith.addf %69, %73 : vector<120x10xf32>
    %c2_64 = arith.constant 2 : index
    %c0_65 = arith.constant 0 : index
    %c0_66 = arith.constant 0 : index
    %75 = vector.load %arg8[%c2_64, %c0_65, %c0_66] : memref<4x120x78xf32, #tpu.memory_space<vmem>>, vector<1x120x78xf32>
    %76 = vector.shape_cast %75 : vector<1x120x78xf32> to vector<120x78xf32>
    %77 = vector.extract_strided_slice %65 {offsets = [0, 20], sizes = [78, 10], strides = [1, 1]} : vector<78x40xf32> to vector<78x10xf32>
    %cst_67 = arith.constant dense<0.000000e+00> : vector<120x10xf32>
    %78 = tpu.matmul %76, %77, %cst_67 {dimension_numbers = #tpu.dot_dimension_numbers<[1], [0], [0], [1], [0, 0, 1, 1], [], []>} : vector<120x78xf32>, vector<78x10xf32>, vector<120x10xf32> -> vector<120x10xf32>
    %79 = arith.addf %74, %78 : vector<120x10xf32>
    %c3_68 = arith.constant 3 : index
    %c0_69 = arith.constant 0 : index
    %c0_70 = arith.constant 0 : index
    %80 = vector.load %arg8[%c3_68, %c0_69, %c0_70] : memref<4x120x78xf32, #tpu.memory_space<vmem>>, vector<1x120x78xf32>
    %81 = vector.shape_cast %80 : vector<1x120x78xf32> to vector<120x78xf32>
    %82 = vector.extract_strided_slice %65 {offsets = [0, 30], sizes = [78, 10], strides = [1, 1]} : vector<78x40xf32> to vector<78x10xf32>
    %cst_71 = arith.constant dense<0.000000e+00> : vector<120x10xf32>
    %83 = tpu.matmul %81, %82, %cst_71 {dimension_numbers = #tpu.dot_dimension_numbers<[1], [0], [0], [1], [0, 0, 1, 1], [], []>} : vector<120x78xf32>, vector<78x10xf32>, vector<120x10xf32> -> vector<120x10xf32>
    %84 = arith.addf %79, %83 : vector<120x10xf32>
    %c0_72 = arith.constant 0 : index
    %c0_73 = arith.constant 0 : index
    %85 = vector.load %arg9[%c0_72, %c0_73] : memref<120x1xf32, #tpu.memory_space<vmem>>, vector<120x1xf32>
    %86 = vector.broadcast %85 : vector<120x1xf32> to vector<120x10xf32>
    %87 = arith.addf %84, %86 : vector<120x10xf32>
    %cst_74 = arith.constant 0.000000e+00 : f32
    %88 = vector.broadcast %cst_74 : f32 to vector<120x10xf32>
    %89 = arith.maximumf %87, %88 : vector<120x10xf32>
    %c0_75 = arith.constant 0 : index
    %c0_76 = arith.constant 0 : index
    %c0_77 = arith.constant 0 : index
    %90 = vector.load %arg10[%c0_75, %c0_76, %c0_77] : memref<2x60x120xf32, #tpu.memory_space<vmem>>, vector<1x60x120xf32>
    %91 = vector.shape_cast %90 : vector<1x60x120xf32> to vector<60x120xf32>
    %cst_78 = arith.constant dense<0.000000e+00> : vector<60x10xf32>
    %92 = tpu.matmul %91, %89, %cst_78 {dimension_numbers = #tpu.dot_dimension_numbers<[1], [0], [0], [1], [0, 0, 1, 1], [], []>} : vector<60x120xf32>, vector<120x10xf32>, vector<60x10xf32> -> vector<60x10xf32>
    %c1_79 = arith.constant 1 : index
    %c0_80 = arith.constant 0 : index
    %c0_81 = arith.constant 0 : index
    %93 = vector.load %arg10[%c1_79, %c0_80, %c0_81] : memref<2x60x120xf32, #tpu.memory_space<vmem>>, vector<1x60x120xf32>
    %94 = vector.shape_cast %93 : vector<1x60x120xf32> to vector<60x120xf32>
    %cst_82 = arith.constant dense<0.000000e+00> : vector<60x10xf32>
    %95 = tpu.matmul %94, %89, %cst_82 {dimension_numbers = #tpu.dot_dimension_numbers<[1], [0], [0], [1], [0, 0, 1, 1], [], []>} : vector<60x120xf32>, vector<120x10xf32>, vector<60x10xf32> -> vector<60x10xf32>
    %c0_83 = arith.constant 0 : index
    %c0_84 = arith.constant 0 : index
    %c0_85 = arith.constant 0 : index
    %96 = vector.load %arg11[%c0_83, %c0_84, %c0_85] : memref<2x10x5xf32, #tpu.memory_space<vmem>>, vector<1x10x5xf32>
    %97 = vector.shape_cast %96 : vector<1x10x5xf32> to vector<10x5xf32>
    %cst_86 = arith.constant dense<0.000000e+00> : vector<60x5xf32>
    %98 = tpu.matmul %92, %97, %cst_86 {dimension_numbers = #tpu.dot_dimension_numbers<[1], [0], [0], [1], [0, 0, 1, 1], [], []>} : vector<60x10xf32>, vector<10x5xf32>, vector<60x5xf32> -> vector<60x5xf32>
    %c1_87 = arith.constant 1 : index
    %c0_88 = arith.constant 0 : index
    %c0_89 = arith.constant 0 : index
    %99 = vector.load %arg11[%c1_87, %c0_88, %c0_89] : memref<2x10x5xf32, #tpu.memory_space<vmem>>, vector<1x10x5xf32>
    %100 = vector.shape_cast %99 : vector<1x10x5xf32> to vector<10x5xf32>
    %cst_90 = arith.constant dense<0.000000e+00> : vector<60x5xf32>
    %101 = tpu.matmul %92, %100, %cst_90 {dimension_numbers = #tpu.dot_dimension_numbers<[1], [0], [0], [1], [0, 0, 1, 1], [], []>} : vector<60x10xf32>, vector<10x5xf32>, vector<60x5xf32> -> vector<60x5xf32>
    %102 = arith.maximumf %98, %101 : vector<60x5xf32>
    %c0_91 = arith.constant 0 : index
    %c0_92 = arith.constant 0 : index
    %c0_93 = arith.constant 0 : index
    %103 = vector.load %arg11[%c0_91, %c0_92, %c0_93] : memref<2x10x5xf32, #tpu.memory_space<vmem>>, vector<1x10x5xf32>
    %104 = vector.shape_cast %103 : vector<1x10x5xf32> to vector<10x5xf32>
    %cst_94 = arith.constant dense<0.000000e+00> : vector<60x5xf32>
    %105 = tpu.matmul %95, %104, %cst_94 {dimension_numbers = #tpu.dot_dimension_numbers<[1], [0], [0], [1], [0, 0, 1, 1], [], []>} : vector<60x10xf32>, vector<10x5xf32>, vector<60x5xf32> -> vector<60x5xf32>
    %c1_95 = arith.constant 1 : index
    %c0_96 = arith.constant 0 : index
    %c0_97 = arith.constant 0 : index
    %106 = vector.load %arg11[%c1_95, %c0_96, %c0_97] : memref<2x10x5xf32, #tpu.memory_space<vmem>>, vector<1x10x5xf32>
    %107 = vector.shape_cast %106 : vector<1x10x5xf32> to vector<10x5xf32>
    %cst_98 = arith.constant dense<0.000000e+00> : vector<60x5xf32>
    %108 = tpu.matmul %95, %107, %cst_98 {dimension_numbers = #tpu.dot_dimension_numbers<[1], [0], [0], [1], [0, 0, 1, 1], [], []>} : vector<60x10xf32>, vector<10x5xf32>, vector<60x5xf32> -> vector<60x5xf32>
    %109 = arith.maximumf %105, %108 : vector<60x5xf32>
    %110 = arith.maximumf %102, %109 : vector<60x5xf32>
    %c0_99 = arith.constant 0 : index
    %c0_100 = arith.constant 0 : index
    %111 = vector.load %arg13[%c0_99, %c0_100] : memref<128x1xf32, #tpu.memory_space<vmem>>, vector<128x1xf32>
    %c0_101 = arith.constant 0 : index
    %c0_102 = arith.constant 0 : index
    %c0_103 = arith.constant 0 : index
    %112 = vector.load %arg12[%c0_101, %c0_102, %c0_103] : memref<5x128x60xf32, #tpu.memory_space<vmem>>, vector<1x128x60xf32>
    %113 = vector.shape_cast %112 : vector<1x128x60xf32> to vector<128x60xf32>
    %cst_104 = arith.constant dense<0.000000e+00> : vector<128x5xf32>
    %114 = tpu.matmul %113, %110, %cst_104 {dimension_numbers = #tpu.dot_dimension_numbers<[1], [0], [0], [1], [0, 0, 1, 1], [], []>} : vector<128x60xf32>, vector<60x5xf32>, vector<128x5xf32> -> vector<128x5xf32>
    %115 = vector.extract_strided_slice %114 {offsets = [0, 0], sizes = [128, 1], strides = [1, 1]} : vector<128x5xf32> to vector<128x1xf32>
    %116 = arith.addf %111, %115 : vector<128x1xf32>
    %c1_105 = arith.constant 1 : index
    %c0_106 = arith.constant 0 : index
    %c0_107 = arith.constant 0 : index
    %117 = vector.load %arg12[%c1_105, %c0_106, %c0_107] : memref<5x128x60xf32, #tpu.memory_space<vmem>>, vector<1x128x60xf32>
    %118 = vector.shape_cast %117 : vector<1x128x60xf32> to vector<128x60xf32>
    %cst_108 = arith.constant dense<0.000000e+00> : vector<128x5xf32>
    %119 = tpu.matmul %118, %110, %cst_108 {dimension_numbers = #tpu.dot_dimension_numbers<[1], [0], [0], [1], [0, 0, 1, 1], [], []>} : vector<128x60xf32>, vector<60x5xf32>, vector<128x5xf32> -> vector<128x5xf32>
    %120 = vector.extract_strided_slice %119 {offsets = [0, 1], sizes = [128, 1], strides = [1, 1]} : vector<128x5xf32> to vector<128x1xf32>
    %121 = arith.addf %116, %120 : vector<128x1xf32>
    %c2_109 = arith.constant 2 : index
    %c0_110 = arith.constant 0 : index
    %c0_111 = arith.constant 0 : index
    %122 = vector.load %arg12[%c2_109, %c0_110, %c0_111] : memref<5x128x60xf32, #tpu.memory_space<vmem>>, vector<1x128x60xf32>
    %123 = vector.shape_cast %122 : vector<1x128x60xf32> to vector<128x60xf32>
    %cst_112 = arith.constant dense<0.000000e+00> : vector<128x5xf32>
    %124 = tpu.matmul %123, %110, %cst_112 {dimension_numbers = #tpu.dot_dimension_numbers<[1], [0], [0], [1], [0, 0, 1, 1], [], []>} : vector<128x60xf32>, vector<60x5xf32>, vector<128x5xf32> -> vector<128x5xf32>
    %125 = vector.extract_strided_slice %124 {offsets = [0, 2], sizes = [128, 1], strides = [1, 1]} : vector<128x5xf32> to vector<128x1xf32>
    %126 = arith.addf %121, %125 : vector<128x1xf32>
    %c3_113 = arith.constant 3 : index
    %c0_114 = arith.constant 0 : index
    %c0_115 = arith.constant 0 : index
    %127 = vector.load %arg12[%c3_113, %c0_114, %c0_115] : memref<5x128x60xf32, #tpu.memory_space<vmem>>, vector<1x128x60xf32>
    %128 = vector.shape_cast %127 : vector<1x128x60xf32> to vector<128x60xf32>
    %cst_116 = arith.constant dense<0.000000e+00> : vector<128x5xf32>
    %129 = tpu.matmul %128, %110, %cst_116 {dimension_numbers = #tpu.dot_dimension_numbers<[1], [0], [0], [1], [0, 0, 1, 1], [], []>} : vector<128x60xf32>, vector<60x5xf32>, vector<128x5xf32> -> vector<128x5xf32>
    %130 = vector.extract_strided_slice %129 {offsets = [0, 3], sizes = [128, 1], strides = [1, 1]} : vector<128x5xf32> to vector<128x1xf32>
    %131 = arith.addf %126, %130 : vector<128x1xf32>
    %c4_117 = arith.constant 4 : index
    %c0_118 = arith.constant 0 : index
    %c0_119 = arith.constant 0 : index
    %132 = vector.load %arg12[%c4_117, %c0_118, %c0_119] : memref<5x128x60xf32, #tpu.memory_space<vmem>>, vector<1x128x60xf32>
    %133 = vector.shape_cast %132 : vector<1x128x60xf32> to vector<128x60xf32>
    %cst_120 = arith.constant dense<0.000000e+00> : vector<128x5xf32>
    %134 = tpu.matmul %133, %110, %cst_120 {dimension_numbers = #tpu.dot_dimension_numbers<[1], [0], [0], [1], [0, 0, 1, 1], [], []>} : vector<128x60xf32>, vector<60x5xf32>, vector<128x5xf32> -> vector<128x5xf32>
    %135 = vector.extract_strided_slice %134 {offsets = [0, 4], sizes = [128, 1], strides = [1, 1]} : vector<128x5xf32> to vector<128x1xf32>
    %136 = arith.addf %131, %135 : vector<128x1xf32>
    %cst_121 = arith.constant 0.000000e+00 : f32
    %137 = vector.broadcast %cst_121 : f32 to vector<128x1xf32>
    %138 = arith.maximumf %136, %137 : vector<128x1xf32>
    %c0_122 = arith.constant 0 : index
    %c0_123 = arith.constant 0 : index
    %139 = vector.load %arg14[%c0_122, %c0_123] : memref<128x1xf32, #tpu.memory_space<vmem>>, vector<128x1xf32>
    %140 = arith.mulf %138, %139 : vector<128x1xf32>
    %cst_124 = arith.constant dense<0.000000e+00> : vector<1xf32>
    %141 = vector.multi_reduction <add>, %140, %cst_124 [0] : vector<128x1xf32> to vector<1xf32>
    %142 = vector.shape_cast %141 : vector<1xf32> to vector<1x1xf32>
    %c0_125 = arith.constant 0 : index
    %c0_126 = arith.constant 0 : index
    %143 = vector.load %arg15[%c0_125, %c0_126] : memref<1x1xf32, #tpu.memory_space<vmem>>, vector<1x1xf32>
    %144 = arith.addf %142, %143 : vector<1x1xf32>
    %c0_127 = arith.constant 0 : index
    %c0_128 = arith.constant 0 : index
    %c0_129 = arith.constant 0 : index
    %145 = vector.load %arg16[%c0_127, %c0_128, %c0_129] : memref<1x1x1xf32, #tpu.memory_space<vmem>>, vector<1x1x1xf32>
    %146 = vector.shape_cast %145 : vector<1x1x1xf32> to vector<1x1xf32>
    %147 = vector.shape_cast %144 : vector<1x1xf32> to vector<1x1x1xf32>
    tpu.vector_store %arg16[%c0_127, %c0_128, %c0_129], %147 {strides = array<i32>} : memref<1x1x1xf32, #tpu.memory_space<vmem>>, vector<1x1x1xf32>,
    return
  }
  func.func @transform_0(%arg0: i32) -> (i32, i32, i32) {
    %c0_i32 = arith.constant 0 : i32
    %c0_i32_0 = arith.constant 0 : i32
    %c0_i32_1 = arith.constant 0 : i32
    return %arg0, %c0_i32, %c0_i32_0 : i32, i32, i32
  }
  func.func @transform_1(%arg0: i32) -> (i32, i32) {
    %c0_i32 = arith.constant 0 : i32
    %c0_i32_0 = arith.constant 0 : i32
    %c0_i32_1 = arith.constant 0 : i32
    return %c0_i32, %c0_i32_0 : i32, i32
  }
  func.func @transform_2(%arg0: i32) -> (i32, i32, i32) {
    %c0_i32 = arith.constant 0 : i32
    %c0_i32_0 = arith.constant 0 : i32
    %c0_i32_1 = arith.constant 0 : i32
    %c0_i32_2 = arith.constant 0 : i32
    return %c0_i32, %c0_i32_0, %c0_i32_1 : i32, i32, i32
  }
  func.func @transform_3(%arg0: i32) -> (i32, i32) {
    %c0_i32 = arith.constant 0 : i32
    %c0_i32_0 = arith.constant 0 : i32
    %c0_i32_1 = arith.constant 0 : i32
    return %c0_i32, %c0_i32_0 : i32, i32
  }
  func.func @transform_4(%arg0: i32) -> (i32, i32, i32) {
    %c0_i32 = arith.constant 0 : i32
    %c0_i32_0 = arith.constant 0 : i32
    %c0_i32_1 = arith.constant 0 : i32
    %c0_i32_2 = arith.constant 0 : i32
    return %c0_i32, %c0_i32_0, %c0_i32_1 : i32, i32, i32
  }
  func.func @transform_5(%arg0: i32) -> (i32, i32, i32) {
    %c0_i32 = arith.constant 0 : i32
    %c0_i32_0 = arith.constant 0 : i32
    %c0_i32_1 = arith.constant 0 : i32
    %c0_i32_2 = arith.constant 0 : i32
    return %c0_i32, %c0_i32_0, %c0_i32_1 : i32, i32, i32
  }
  func.func @transform_6(%arg0: i32) -> (i32, i32) {
    %c0_i32 = arith.constant 0 : i32
    %c0_i32_0 = arith.constant 0 : i32
    %c0_i32_1 = arith.constant 0 : i32
    return %c0_i32, %c0_i32_0 : i32, i32
  }
  func.func @transform_7(%arg0: i32) -> (i32, i32, i32) {
    %c0_i32 = arith.constant 0 : i32
    %c0_i32_0 = arith.constant 0 : i32
    %c0_i32_1 = arith.constant 0 : i32
    %c0_i32_2 = arith.constant 0 : i32
    return %c0_i32, %c0_i32_0, %c0_i32_1 : i32, i32, i32
  }
  func.func @transform_8(%arg0: i32) -> (i32, i32) {
    %c0_i32 = arith.constant 0 : i32
    %c0_i32_0 = arith.constant 0 : i32
    %c0_i32_1 = arith.constant 0 : i32
    return %c0_i32, %c0_i32_0 : i32, i32
  }
  func.func @transform_9(%arg0: i32) -> (i32, i32, i32) {
    %c0_i32 = arith.constant 0 : i32
    %c0_i32_0 = arith.constant 0 : i32
    %c0_i32_1 = arith.constant 0 : i32
    %c0_i32_2 = arith.constant 0 : i32
    return %c0_i32, %c0_i32_0, %c0_i32_1 : i32, i32, i32
  }
  func.func @transform_10(%arg0: i32) -> (i32, i32, i32) {
    %c0_i32 = arith.constant 0 : i32
    %c0_i32_0 = arith.constant 0 : i32
    %c0_i32_1 = arith.constant 0 : i32
    %c0_i32_2 = arith.constant 0 : i32
    return %c0_i32, %c0_i32_0, %c0_i32_1 : i32, i32, i32
  }
  func.func @transform_11(%arg0: i32) -> (i32, i32, i32) {
    %c0_i32 = arith.constant 0 : i32
    %c0_i32_0 = arith.constant 0 : i32
    %c0_i32_1 = arith.constant 0 : i32
    %c0_i32_2 = arith.constant 0 : i32
    return %c0_i32, %c0_i32_0, %c0_i32_1 : i32, i32, i32
  }
  func.func @transform_12(%arg0: i32) -> (i32, i32) {
    %c0_i32 = arith.constant 0 : i32
    %c0_i32_0 = arith.constant 0 : i32
    %c0_i32_1 = arith.constant 0 : i32
    return %c0_i32, %c0_i32_0 : i32, i32
  }
  func.func @transform_13(%arg0: i32) -> (i32, i32) {
    %c0_i32 = arith.constant 0 : i32
    %c0_i32_0 = arith.constant 0 : i32
    %c0_i32_1 = arith.constant 0 : i32
    return %c0_i32, %c0_i32_0 : i32, i32
  }
  func.func @transform_14(%arg0: i32) -> (i32, i32) {
    %c0_i32 = arith.constant 0 : i32
    %c0_i32_0 = arith.constant 0 : i32
    %c0_i32_1 = arith.constant 0 : i32
    return %c0_i32, %c0_i32_0 : i32, i32
  }
  func.func @transform_15(%arg0: i32) -> (i32, i32, i32) {
    %c0_i32 = arith.constant 0 : i32
    %c0_i32_0 = arith.constant 0 : i32
    %c0_i32_1 = arith.constant 0 : i32
    return %arg0, %c0_i32, %c0_i32_0 : i32, i32, i32
  }
}

</mosaic_0001>

<bundles_post_ra>
// kernel: dqn_forward.1
= control target key start
LH: loop header
LB: loop body
LE: loop exit
PB: predicated region body
PF: predicated region fallthrough
CT: control target
= control target key end

     0   :  { %s8247_s20 = smov 0   ;;  %s12229_s0 = inlined_call_operand.vmem [shape: f32[2,252,84], index: 0, kind: input, shape index: {}]   ;;  %s12230_s1 = inlined_call_operand.vmem [shape: f32[84,182], index: 1, kind: input, shape index: {}]   ;;  %s12231_s2 = inlined_call_operand.vmem [shape: f32[7,156,252], index: 2, kind: input, shape index: {}]   ;;  %s12232_s3 = inlined_call_operand.vmem [shape: f32[156,1], index: 3, kind: input, shape index: {}]   ;;  %s12233_s4 = inlined_call_operand.vmem [shape: f32[2,78,156], index: 4, kind: input, shape index: {}]   ;;  %s12234_s5 = inlined_call_operand.vmem [shape: f32[2,26,13], index: 5, kind: input, shape index: {}]   ;;  %s12235_s6 = inlined_call_operand.vmem [shape: f32[13,40], index: 6, kind: input, shape index: {}]   ;;  %s12236_s7 = inlined_call_operand.vmem [shape: f32[4,120,78], index: 7, kind: input, shape index: {}]   ;;  %s12237_s8 = inlined_call_operand.vmem [shape: f32[120,1], index: 8, kind: input, shape index: {}]   ;;  %s12238_s9 = inlined_call_operand.vmem [shape: f32[2,60,120], index: 9, kind: input, shape index: {}]   ;;  %s12239_s10 = inlined_call_operand.vmem [shape: f32[2,10,5], index: 10, kind: input, shape index: {}]   ;;  %s12240_s11 = inlined_call_operand.vmem [shape: f32[5,128,60], index: 11, kind: input, shape index: {}]   ;;  %s12241_s12 = inlined_call_operand.vmem [shape: f32[128,1], index: 12, kind: input, shape index: {}]   ;;  %s12242_s13 = inlined_call_operand.vmem [shape: f32[128,1], index: 13, kind: input, shape index: {}]   ;;  %s12243_s14 = inlined_call_operand.<no memory space> [shape: f32[1,1], index: 14, kind: input, shape index: {}]   ;;  %s12244_s15 = inlined_call_operand.vmem [shape: f32[2,1,1], index: 15, kind: output, shape index: {}]  }
   0x1   :  { %v20_v0 = vstv %s12243_s14 }
   0x2   :  { %21 = vst [vmem:[#allocation2] sm:$0x1] %v20_v0 }
   0x3 LB: > { %s6625_s21 = sadd.s32 4294967295, %s8149_s20   ;;  %p6629_p0 = scmp.ge.s32.totalorder %s8149_s20, 1  ;;  %s8149_s20 = sphi %s8247_s20, %s27_s20  }
   0x4   : > { %p439_p1 = scmp.lt.s32.totalorder %s8149_s20, 3 }
   0x6   : > { %p440_p2 = pnand %p6629_p0, %p439_p1 }
   0x8   : > { %443 = sbr.rel (%p440_p2) target bundleno = 3223 (0xc97), region = 80 }
   0xd   : > { %v545_v1 = vld [vmem:[%s12230_s1 + $0xa0] sm:$0xf]  ;;  %vm644_vm0 = vcmask 1043456   ;;  %v546_v2 = vld [vmem:[%s12230_s1 + $0xa8] sm:$0xf]  ;;  %v543_v3 = vld [vmem:[%s12230_s1 + $0x90] sm:$0xff] }
   0xe   : > { %6632 = vmatpush.msk.msra.mxu0 %vm644_vm0, %v545_v1  ;;  %6665 = vmatpush.msk.msra.mxu1 %vm644_vm0, %v546_v2  ;;  %v544_v4 = vld [vmem:[%s12230_s1 + $0x98] sm:$0xff]  ;;  %v541_v5 = vld [vmem:[%s12230_s1 + $0x80] sm:$0xff]  ;;  %v542_v6 = vld [vmem:[%s12230_s1 + $0x88] sm:$0xff]  ;;  %p485_p3 = scmp.lt.s32.totalorder %s6625_s21, 1  ;;  %vm547_vm1 = vcmask 687104   ;;  %s8152_s28 = smov 76  }
   0xf   : > { %v539_v7 = vld [vmem:[%s12230_s1 + $0x70] sm:$0xff]  ;;  %v540_v8 = vld [vmem:[%s12230_s1 + $0x78] sm:$0xff]  ;;  %v537_v9 = vld [vmem:[%s12230_s1 + $0x60] sm:$0xff]  ;;  %s8153_s29 = smov 50   ;;  %s8154_s30 = smov 24   ;;  %vm1085_vm2 = vcmask 1014784  }
  0x10   : > { %657 = vmatpush.msra.mxu0 %v543_v3  ;;  %770 = vmatpush.msra.mxu1 %v544_v4  ;;  %v538_v10 = vld [vmem:[%s12230_s1 + $0x68] sm:$0xff]  ;;  %v535_v11 = vld [vmem:[%s12230_s1 + $0x50] sm:$0xff]  ;;  %v536_v12 = vld [vmem:[%s12230_s1 + $0x58] sm:$0xff]  ;;  %s12492_s21 = smov (!%p485_p3, %s6625_s21), 1  ;;  %s8155_s16 = smov 126   ;;  %vm2463_vm3 = vcmask 195584  }
  0x11   : > { %v533_v13 = vld [vmem:[%s12230_s1 + $0x40] sm:$0xff]  ;;  %v534_v14 = vld [vmem:[%s12230_s1 + $0x48] sm:$0xff]  ;;  %v531_v15 = vld [vmem:[%s12230_s1 + $0x30] sm:$0xff]  ;;  %s7508_s25 = sshll.u32 %s12492_s21, 8  ;;  %vm3687_vm4 = vcmask 228352   ;;  %vm3995_vm5 = vcmask 1041408  }
  0x12   : > { %658 = vmatpush.msra.mxu0 %v541_v5  ;;  %771 = vmatpush.msra.mxu1 %v542_v6  ;;  %v532_v16 = vld [vmem:[%s12230_s1 + $0x38] sm:$0xff]  ;;  %v529_v17 = vld [vmem:[%s12230_s1 + $0x20] sm:$0xff]  ;;  %v530_v18 = vld [vmem:[%s12230_s1 + $0x28] sm:$0xff]  ;;  %s8323_s23 = scalar_lea.vmem %s12229_s0, %s7508_s25  ;;  %s8151_s25 = smov 102   ;;  %vm3964_vm6 = vcmask 211968   ;;  %vm4288_vm7 = vcmask 1044480  }
  0x13   : > { %v527_v19 = vld [vmem:[%s12230_s1 + $0x10] sm:$0xff]  ;;  %v528_v20 = vld [vmem:[%s12230_s1 + $0x18] sm:$0xff]  ;;  %v525_v21 = vld [vmem:[%s12230_s1] sm:$0xff]  ;;  %vm4257_vm8 = vcmask 105472   ;;  %s8159_s14 = smov 118   ;;  %s8160_s24 = smov 98  }
  0x14   : > { %659 = vmatpush.msra.mxu0 %v539_v7  ;;  %772 = vmatpush.msra.mxu1 %v540_v8  ;;  %v526_v22 = vld [vmem:[%s12230_s1 + $0x8] sm:$0xff]  ;;  %v493_v23 = vld [vmem:[%s8323_s23] sm:$0xff]  ;;  %v495_v25 = vld [vmem:[%s8323_s23 + $0x10] sm:$0xff]  ;;  %vm4455_vm9 = vcmask 1045504   ;;  %vm4409_vm10 = vcmask 637952   ;;  %vm5095_vm11 = vcmask 982016  }
  0x15   : > { %v494_v24 = vld [vmem:[%s8323_s23 + $0x8] sm:$0xff]  ;;  %v496_v26 = vld [vmem:[%s8323_s23 + $0x18] sm:$0xff]  ;;  %v497_v27 = vld [vmem:[%s8323_s23 + $0x20] sm:$0xff]  ;;  %vm5237_vm12 = vcmask 80896   ;;  %vm5515_vm13 = vcmask 490496   ;;  %s8161_s18 = smov 125  }
  0x16   : > { %660 = vmatpush.msra.mxu0 %v537_v9  ;;  %773 = vmatpush.msra.mxu1 %v538_v10  ;;  %v498_v28 = vld [vmem:[%s8323_s23 + $0x28] sm:$0xff]  ;;  %v499_v29 = vld [vmem:[%s8323_s23 + $0x30] sm:$0xff]  ;;  %v500_v30 = vld [vmem:[%s8323_s23 + $0x38] sm:$0xff]  ;;  %s8162_s22 = smov 127   ;;  %vm6536_vm14 = vcmask 7168   ;;  %vm6576_vm15 = vcmask 0  }
  0x17   : > { %v501_v31 = vld [vmem:[%s8323_s23 + $0x40] sm:$0xff]  ;;  %v502_v32 = vld [vmem:[%s8323_s23 + $0x48] sm:$0xff]  ;;  %v503_v33 = vld [vmem:[%s8323_s23 + $0x50] sm:$0xff] }
  0x18   : > { %661 = vmatpush.msra.mxu0 %v535_v11  ;;  %774 = vmatpush.msra.mxu1 %v536_v12  ;;  %v504_v34 = vld [vmem:[%s8323_s23 + $0x58] sm:$0xff]  ;;  %v505_v35 = vld [vmem:[%s8323_s23 + $0x60] sm:$0xff]  ;;  %v506_v36 = vld [vmem:[%s8323_s23 + $0x68] sm:$0xff] }
  0x19   : > { %v507_v37 = vld [vmem:[%s8323_s23 + $0x70] sm:$0xff]  ;;  %v508_v38 = vld [vmem:[%s8323_s23 + $0x78] sm:$0xff]  ;;  %v509_v40 = vld [vmem:[%s8323_s23 + $0x80] sm:$0xff] }
  0x1a   : > { %662 = vmatpush.msra.mxu0 %v533_v13  ;;  %775 = vmatpush.msra.mxu1 %v534_v14  ;;  %v510_v42 = vld [vmem:[%s8323_s23 + $0x88] sm:$0xff]  ;;  %v511_v45 = vld [vmem:[%s8323_s23 + $0x90] sm:$0xff]  ;;  %v512_v48 = vld [vmem:[%s8323_s23 + $0x98] sm:$0xff] }
  0x1b   : > { %v513_v51 = vld [vmem:[%s8323_s23 + $0xa0] sm:$0xff]  ;;  %v514_v54 = vld [vmem:[%s8323_s23 + $0xa8] sm:$0xff]  ;;  %v515_v56 = vld [vmem:[%s8323_s23 + $0xb0] sm:$0xff] }
  0x1c   : > { %663 = vmatpush.msra.mxu0 %v531_v15  ;;  %776 = vmatpush.msra.mxu1 %v532_v16  ;;  %v516_v59 = vld [vmem:[%s8323_s23 + $0xb8] sm:$0xff]  ;;  %v517_v62 = vld [vmem:[%s8323_s23 + $0xc0] sm:$0xff]  ;;  %v518_v1 = vld [vmem:[%s8323_s23 + $0xc8] sm:$0xff] }
  0x1d   : > { %v519_v4 = vld [vmem:[%s8323_s23 + $0xd0] sm:$0xff]  ;;  %v520_v6 = vld [vmem:[%s8323_s23 + $0xd8] sm:$0xff]  ;;  %v521_v9 = vld [vmem:[%s8323_s23 + $0xe0] sm:$0xff] }
  0x1e   : > { %664 = vmatpush.msra.mxu0 %v529_v17  ;;  %777 = vmatpush.msra.mxu1 %v530_v18  ;;  %v522_v12 = vld [vmem:[%s8323_s23 + $0xe8] sm:$0xff]  ;;  %v523_v15 = vld [vmem:[%s8323_s23 + $0xf0] sm:$0xff]  ;;  %v524_v18 = vld [vmem:[%s8323_s23 + $0xf8] sm:$0xf]  ;;  %s8158_s23 = smov 108  }
  0x20   : > { %665 = vmatpush.msra.mxu0 %v527_v19  ;;  %778 = vmatpush.msra.mxu1 %v528_v20 }
  0x22   : > { %666 = vmatpush.msra.mxu0 %v525_v21  ;;  %779 = vmatpush.msra.mxu1 %v526_v22 }
  0x23   : > { %6633 = vmatmul.msk.f32.vlgmr.msra.gmra.mxu0 %vm547_vm1, %v493_v23  ;;  %6666 = vmatmul.msk.f32.vlgmr.msra.gmra.mxu1 %vm547_vm1, %v493_v23 }
  0x2b   : > { %6634 = vmatmul.msk.f32.gmra.mxu0 %vm547_vm1, %v494_v24  ;;  %6667 = vmatmul.msk.f32.gmra.mxu1 %vm547_vm1, %v494_v24 }
  0x33   : > { %6635 = vmatmul.msk.f32.gmra.mxu0 %vm547_vm1, %v495_v25  ;;  %6668 = vmatmul.msk.f32.gmra.mxu1 %vm547_vm1, %v495_v25 }
  0x3b   : > { %6636 = vmatmul.msk.f32.gmra.mxu0 %vm547_vm1, %v496_v26  ;;  %6669 = vmatmul.msk.f32.gmra.mxu1 %vm547_vm1, %v496_v26 }
  0x43   : > { %6637 = vmatmul.msk.f32.gmra.mxu0 %vm547_vm1, %v497_v27  ;;  %6670 = vmatmul.msk.f32.gmra.mxu1 %vm547_vm1, %v497_v27 }
  0x4b   : > { %6638 = vmatmul.msk.f32.gmra.mxu0 %vm547_vm1, %v498_v28  ;;  %6671 = vmatmul.msk.f32.gmra.mxu1 %vm547_vm1, %v498_v28 }
  0x53   : > { %6639 = vmatmul.msk.f32.gmra.mxu0 %vm547_vm1, %v499_v29  ;;  %6672 = vmatmul.msk.f32.gmra.mxu1 %vm547_vm1, %v499_v29 }
  0x5b   : > { %6640 = vmatmul.msk.f32.gmra.mxu0 %vm547_vm1, %v500_v30  ;;  %6673 = vmatmul.msk.f32.gmra.mxu1 %vm547_vm1, %v500_v30 }
  0x63   : > { %6641 = vmatmul.msk.f32.gmra.mxu0 %vm547_vm1, %v501_v31  ;;  %6674 = vmatmul.msk.f32.gmra.mxu1 %vm547_vm1, %v501_v31 }
  0x6b   : > { %6642 = vmatmul.msk.f32.gmra.mxu0 %vm547_vm1, %v502_v32  ;;  %6675 = vmatmul.msk.f32.gmra.mxu1 %vm547_vm1, %v502_v32 }
  0x73   : > { %6643 = vmatmul.msk.f32.gmra.mxu0 %vm547_vm1, %v503_v33  ;;  %6676 = vmatmul.msk.f32.gmra.mxu1 %vm547_vm1, %v503_v33 }
  0x7b   : > { %6644 = vmatmul.msk.f32.gmra.mxu0 %vm547_vm1, %v504_v34  ;;  %6677 = vmatmul.msk.f32.gmra.mxu1 %vm547_vm1, %v504_v34 }
  0x83   : > { %6645 = vmatmul.msk.f32.gmra.mxu0 %vm547_vm1, %v505_v35  ;;  %6678 = vmatmul.msk.f32.gmra.mxu1 %vm547_vm1, %v505_v35 }
  0x8b   : > { %6646 = vmatmul.msk.f32.gmra.mxu0 %vm547_vm1, %v506_v36  ;;  %6679 = vmatmul.msk.f32.gmra.mxu1 %vm547_vm1, %v506_v36 }
  0x93   : > { %6647 = vmatmul.msk.f32.gmra.mxu0 %vm547_vm1, %v507_v37  ;;  %6680 = vmatmul.msk.f32.gmra.mxu1 %vm547_vm1, %v507_v37 }
  0x9b   : > { %6648 = vmatmul.msk.f32.gmra.mxu0 %vm547_vm1, %v508_v38  ;;  %6681 = vmatmul.msk.f32.gmra.mxu1 %vm547_vm1, %v508_v38 }
  0xa0   : > { %v8379_v39 = vpop.f32.mrf.mxu0  ;;  %v8387_v43 = vpop.f32.mrf.mxu1 }
  0xa1   : > { %12279 = vst [vmem:[#allocation3_spill] sm:$0xff] %v8379_v39 }
  0xa2   : > { %12281 = vst [vmem:[#allocation5_spill] sm:$0xff] %v8387_v43 }
  0xa3   : > { %6649 = vmatmul.msk.f32.gmra.mxu0 %vm547_vm1, %v509_v40  ;;  %6682 = vmatmul.msk.f32.gmra.mxu1 %vm547_vm1, %v509_v40 }
  0xa8   : > { %v8384_v41 = vpop.f32.mrf.mxu0  ;;  %v8396_v46 = vpop.f32.mrf.mxu1 }
  0xa9   : > { %12280 = vst [vmem:[#allocation4_spill] sm:$0xff] %v8384_v41 }
  0xaa   : > { %12283 = vst [vmem:[#allocation7_spill] sm:$0xff] %v8396_v46 }
  0xab   : > { %6650 = vmatmul.msk.f32.gmra.mxu0 %vm547_vm1, %v510_v42  ;;  %6683 = vmatmul.msk.f32.gmra.mxu1 %vm547_vm1, %v510_v42 }
  0xb0   : > { %v8391_v44 = vpop.f32.mrf.mxu0  ;;  %v8403_v49 = vpop.f32.mrf.mxu1 }
  0xb1   : > { %12282 = vst [vmem:[#allocation6_spill] sm:$0xff] %v8391_v44 }
  0xb2   : > { %12285 = vst [vmem:[#allocation9_spill] sm:$0xff] %v8403_v49 }
  0xb3   : > { %6651 = vmatmul.msk.f32.gmra.mxu0 %vm547_vm1, %v511_v45  ;;  %6684 = vmatmul.msk.f32.gmra.mxu1 %vm547_vm1, %v511_v45 }
  0xb8   : > { %v8398_v47 = vpop.f32.mrf.mxu0  ;;  %v8410_v52 = vpop.f32.mrf.mxu1 }
  0xb9   : > { %12284 = vst [vmem:[#allocation8_spill] sm:$0xff] %v8398_v47 }
  0xba   : > { %12287 = vst [vmem:[#allocation11_spill] sm:$0xff] %v8410_v52 }
  0xbb   : > { %6652 = vmatmul.msk.f32.gmra.mxu0 %vm547_vm1, %v512_v48  ;;  %6685 = vmatmul.msk.f32.gmra.mxu1 %vm547_vm1, %v512_v48 }
  0xc0   : > { %v8405_v50 = vpop.f32.mrf.mxu0  ;;  %v8420_v57 = vpop.f32.mrf.mxu1 }
  0xc1   : > { %12286 = vst [vmem:[#allocation10_spill] sm:$0xff] %v8405_v50 }
  0xc2   : > { %12288 = vst [vmem:[#allocation12_spill] sm:$0xff] %v8420_v57 }
  0xc3   : > { %6653 = vmatmul.msk.f32.gmra.mxu0 %vm547_vm1, %v513_v51  ;;  %6686 = vmatmul.msk.f32.gmra.mxu1 %vm547_vm1, %v513_v51 }
  0xc8   : > { %v8412_v53 = vpop.f32.mrf.mxu0  ;;  %v8429_v60 = vpop.f32.mrf.mxu1 }
  0xcb   : > { %6654 = vmatmul.msk.f32.gmra.mxu0 %vm547_vm1, %v514_v54  ;;  %6687 = vmatmul.msk.f32.gmra.mxu1 %vm547_vm1, %v514_v54 }
  0xd0   : > { %v8417_v55 = vpop.f32.mrf.mxu0  ;;  %v8436_v63 = vpop.f32.mrf.mxu1 }
  0xd3   : > { %6655 = vmatmul.msk.f32.gmra.mxu0 %vm547_vm1, %v515_v56  ;;  %6688 = vmatmul.msk.f32.gmra.mxu1 %vm547_vm1, %v515_v56 }
  0xd8   : > { %v8424_v58 = vpop.f32.mrf.mxu0  ;;  %v8443_v2 = vpop.f32.mrf.mxu1 }
  0xdb   : > { %6656 = vmatmul.msk.f32.gmra.mxu0 %vm547_vm1, %v516_v59  ;;  %6689 = vmatmul.msk.f32.gmra.mxu1 %vm547_vm1, %v516_v59 }
  0xe0   : > { %v8431_v61 = vpop.f32.mrf.mxu0  ;;  %v8453_v7 = vpop.f32.mrf.mxu1 }
  0xe3   : > { %6657 = vmatmul.msk.f32.gmra.mxu0 %vm547_vm1, %v517_v62  ;;  %6690 = vmatmul.msk.f32.gmra.mxu1 %vm547_vm1, %v517_v62 }
  0xe8   : > { %v8438_v0 = vpop.f32.mrf.mxu0  ;;  %v8462_v10 = vpop.f32.mrf.mxu1 }
  0xeb   : > { %6658 = vmatmul.msk.f32.gmra.mxu0 %vm547_vm1, %v518_v1  ;;  %6691 = vmatmul.msk.f32.gmra.mxu1 %vm547_vm1, %v518_v1 }
  0xf0   : > { %v8445_v3 = vpop.f32.mrf.mxu0  ;;  %v8469_v13 = vpop.f32.mrf.mxu1 }
  0xf3   : > { %6659 = vmatmul.msk.f32.gmra.mxu0 %vm547_vm1, %v519_v4  ;;  %6692 = vmatmul.msk.f32.gmra.mxu1 %vm547_vm1, %v519_v4 }
  0xf8   : > { %v8450_v5 = vpop.f32.mrf.mxu0  ;;  %v8476_v16 = vpop.f32.mrf.mxu1 }
  0xfb   : > { %6660 = vmatmul.msk.f32.gmra.mxu0 %vm547_vm1, %v520_v6  ;;  %6693 = vmatmul.msk.f32.gmra.mxu1 %vm547_vm1, %v520_v6 }
 0x100   : > { %v8457_v8 = vpop.f32.mrf.mxu0  ;;  %v8491_v21 = vpop.f32.mrf.mxu1 }
 0x101   : > { %12289 = vst [vmem:[#allocation13_spill] sm:$0xff] %v8491_v21 }
 0x103   : > { %6661 = vmatmul.msk.f32.gmra.mxu0 %vm547_vm1, %v521_v9  ;;  %6694 = vmatmul.msk.f32.gmra.mxu1 %vm547_vm1, %v521_v9 }
 0x108   : > { %v8464_v11 = vpop.f32.mrf.mxu0  ;;  %v8495_v23 = vpop.f32.mrf.mxu1 }
 0x10b   : > { %6662 = vmatmul.msk.f32.gmra.mxu0 %vm547_vm1, %v522_v12  ;;  %6695 = vmatmul.msk.f32.gmra.mxu1 %vm547_vm1, %v522_v12 }
 0x110   : > { %v8471_v14 = vpop.f32.mrf.mxu0  ;;  %v8499_v25 = vpop.f32.mrf.mxu1 }
 0x111   : > { %12292 = vst [vmem:[#allocation16_spill] sm:$0xff] %v8499_v25 }
 0x113   : > { %6663 = vmatmul.msk.f32.gmra.mxu0 %vm547_vm1, %v523_v15  ;;  %6696 = vmatmul.msk.f32.gmra.mxu1 %vm547_vm1, %v523_v15 }
 0x118   : > { %v8478_v17 = vpop.f32.mrf.mxu0  ;;  %v8503_v27 = vpop.f32.mrf.mxu1 }
 0x119   : > { %v8483_v19 = vpack.i.bf16 %v8471_v14, %v8478_v17  ;;  %12294 = vst [vmem:[#allocation18_spill] sm:$0xff] %v8503_v27 }
 0x11b   : > { %6664 = vmatmul.msk.f32.gmra.mxu0 %vm547_vm1, %v524_v18  ;;  %7551 = vrot.lane.b32.xlu0 %v8483_v19, %s8151_s25 }
 0x11c   : > { %6697 = vmatmul.msk.f32.gmra.mxu1 %vm547_vm1, %v524_v18 }
 0x120   : > { %v8489_v20 = vpop.f32.mrf.mxu0  ;;  %v8509_v30 = vpop.f32.mrf.mxu1 }
 0x121   : > { %12295 = vst [vmem:[#allocation19_spill] sm:$0xff] %v8509_v30 }
 0x128   : > { %v8493_v22 = vpop.f32.mrf.mxu0  ;;  %v8513_v32 = vpop.f32.mrf.mxu1 }
 0x129   : > { %12290 = vst [vmem:[#allocation14_spill] sm:$0xff] %v8493_v22  ;;  %v8635_v57 = vpack.i.bf16 %v8379_v39, %v8493_v22 }
 0x12a   : > { %12296 = vst [vmem:[#allocation20_spill] sm:$0xff] %v8513_v32 }
 0x12b   : > { %12301 = vst [vmem:[#allocation25_spill] sm:$0xff] %v8635_v57 }
 0x130   : > { %v8497_v24 = vpop.f32.mrf.mxu0  ;;  %v8517_v34 = vpop.f32.mrf.mxu1 }
 0x131   : > { %12291 = vst [vmem:[#allocation15_spill] sm:$0xff] %v8497_v24 }
 0x132   : > { %12297 = vst [vmem:[#allocation21_spill] sm:$0xff] %v8517_v34 }
 0x138   : > { %v8501_v26 = vpop.f32.mrf.mxu0  ;;  %v8521_v36 = vpop.f32.mrf.mxu1 }
 0x139   : > { %12293 = vst [vmem:[#allocation17_spill] sm:$0xff] %v8501_v26 }
 0x13a   : > { %12298 = vst [vmem:[#allocation22_spill] sm:$0xff] %v8521_v36 }
 0x140   : > { %v8505_v28 = vpop.f32.mrf.mxu0  ;;  %v8527_v40 = vpop.f32.mrf.mxu1 }
 0x148   : > { %v8507_v29 = vpop.f32.mrf.mxu0  ;;  %v8537_v48 = vpop.f32.mrf.mxu1 }
 0x149   : > { %v8566_v18 = vpack.i.bf16 %v8405_v50, %v8507_v29 }
 0x150   : > { %v8511_v31 = vpop.f32.mrf.mxu0  ;;  %v8544_v56 = vpop.f32.mrf.mxu1 }
 0x151   : > { %v8599_v34 = vpack.i.bf16 %v8412_v53, %v8511_v31 }
 0x158   : > { %v8515_v33 = vpop.f32.mrf.mxu0  ;;  %v8560_v9 = vpop.f32.mrf.mxu1 }
 0x159   : > { %v8609_v52 = vpack.i.bf16 %v8417_v55, %v8515_v33 }
 0x160   : > { %v8519_v35 = vpop.f32.mrf.mxu0  ;;  %v8585_v49 = vpop.f32.mrf.mxu1 }
 0x161   : > { %v8550_v62 = vpack.i.bf16 %v8424_v58, %v8519_v35  ;;  %12299 = vst [vmem:[#allocation23_spill] sm:$0xff] %v8585_v49 }
 0x168   : > { %v8523_v37 = vpop.f32.mrf.mxu0  ;;  %v8605_v30 = vpop.f32.mrf.mxu1 }
 0x170   : > { %v8525_v38 = vpop.f32.mrf.mxu0  ;;  %v8621_v46 = vpop.f32.mrf.mxu1 }
 0x171   : > { %12300 = vst [vmem:[#allocation24_spill] sm:$0xff] %v8621_v46 }
 0x178   : > { %v8529_v42 = vpop.f32.mrf.mxu0 }
 0x179   : > { %v8533_v45 = vpack.i.bf16 %v8445_v3, %v8529_v42 }
 0x17b   : > { %7556 = vrot.lane.b32.xlu2 %v8533_v45, %s8151_s25 }
 0x180   : > { %v8539_v51 = vpop.f32.mrf.mxu0 }
 0x181   : > { %v7560_v54 = vpack.i.bf16 %v8450_v5, %v8539_v51 }
 0x183   : > { %7561 = vrot.lane.b32.xlu2 %v7560_v54, %s8151_s25 }
 0x188   : > { %v8546_v59 = vpop.f32.mrf.mxu0 }
 0x189   : > { %v8554_v1 = vpack.i.bf16 %v8457_v8, %v8546_v59 }
 0x18b   : > { %7586 = vrot.lane.b32.xlu2 %v8550_v62, %s8151_s25  ;;  %7566 = vrot.lane.b32.xlu1 %v8554_v1, %s8151_s25 }
 0x18d   : > { %v7552_v4 = vpop.permute.xlu0 %7551 }
 0x18e   : > { %v7553_v6 = vunpack.i.l.bf16 %v7552_v4  ;;  %v7554_v15 = vunpack.i.h.bf16 %v7552_v4  ;;  %v8579_v4 = vpack.i.bf16 %v8384_v41, %v8497_v24  ;;  %v8615_v24 = vpack.i.bf16 %v8391_v44, %v8501_v26  ;;  %v8637_v44 = vpop.f32.mrf.mxu1 }
 0x18f   : > { %v8625_v41 = vpack.i.bf16 %v8398_v47, %v8505_v28 }
 0x190   : > { %v8562_v12 = vpop.f32.mrf.mxu0  ;;  %1148 = vmatpush.msra.mxu2 %v7553_v6  ;;  %v8583_v6 = vpack.i.bf16 %v8431_v61, %v8523_v37 }
 0x191   : > { %v7570_v32 = vpack.i.bf16 %v8464_v11, %v8562_v12 }
 0x192   : > { %1149 = vmatpush.msra.mxu2 %v7554_v15  ;;  %v8593_v15 = vpack.i.bf16 %v8438_v0, %v8525_v38 }
 0x193   : > { %7601 = vrot.lane.b32.xlu2 %v8566_v18, %s8151_s25  ;;  %7571 = vrot.lane.b32.xlu1 %v7570_v32, %s8151_s25 }
 0x196   : > { %v8645_v47 = vpop.f32.mrf.mxu1 }
 0x197   : > { %12302 = vst [vmem:[#allocation26_spill] sm:$0xff] %v8645_v47 }
 0x198   : > { %v8573_v43 = vpop.f32.mrf.mxu0 }
 0x199   : > { %1052 = vrot.lane.b32.xlu0 %v8573_v43, %s8151_s25 }
 0x19b   : > { %7616 = vrot.lane.b32.xlu2 %v8579_v4, %s8151_s25  ;;  %7581 = vrot.lane.b32.xlu1 %v8583_v6, %s8151_s25 }
 0x19e   : > { %v8657_v22 = vpop.f32.mrf.mxu1 }
 0x19f   : > { %12303 = vst [vmem:[#allocation27_spill] sm:$0xff] %v8657_v22  ;;  %v7750_v36 = vpack.i.bf16 %v8657_v22, %v8546_v59 }
 0x1a1   : > { %7576 = vrot.lane.b32.xlu0 %v8593_v15, %s8151_s25 }
 0x1a3   : > { %7626 = vrot.lane.b32.xlu2 %v8483_v19, %s8152_s28  ;;  %7596 = vrot.lane.b32.xlu1 %v8599_v34, %s8151_s25 }
 0x1a6   : > { %v8666_v50 = vpop.f32.mrf.mxu1 }
 0x1a7   : > { %12304 = vst [vmem:[#allocation28_spill] sm:$0xff] %v8666_v50 }
 0x1a9   : > { %7591 = vrot.lane.b32.xlu0 %v8609_v52, %s8151_s25 }
 0x1ab   : > { %7636 = vrot.lane.b32.xlu2 %v8554_v1, %s8152_s28  ;;  %7611 = vrot.lane.b32.xlu1 %v8615_v24, %s8151_s25 }
 0x1b1   : > { %7606 = vrot.lane.b32.xlu0 %v8625_v41, %s8151_s25 }
 0x1b3   : > { %7651 = vrot.lane.b32.xlu2 %v8593_v15, %s8152_s28  ;;  %1022 = vrot.lane.b32.xlu1 %v8489_v20, %s8151_s25 }
 0x1b9   : > { %7621 = vrot.lane.b32.xlu0 %v8635_v57, %s8151_s25 }
 0x1bb   : > { %7666 = vrot.lane.b32.xlu2 %v8609_v52, %s8152_s28  ;;  %7631 = vrot.lane.b32.xlu1 %v7570_v32, %s8152_s28 }
 0x1c1   : > { %7641 = vrot.lane.b32.xlu0 %v7560_v54, %s8152_s28 }
 0x1c3   : > { %7681 = vrot.lane.b32.xlu2 %v8625_v41, %s8152_s28  ;;  %7646 = vrot.lane.b32.xlu1 %v8533_v45, %s8152_s28 }
 0x1c9   : > { %1621 = vrot.lane.b32.xlu0 %v8573_v43, %s8152_s28 }
 0x1cb   : > { %7696 = vrot.lane.b32.xlu2 %v8635_v57, %s8152_s28  ;;  %7661 = vrot.lane.b32.xlu1 %v8550_v62, %s8152_s28  ;;  %v7735_v57 = vpack.i.bf16 %v8666_v50, %v8562_v12 }
 0x1d1   : > { %7656 = vrot.lane.b32.xlu0 %v8583_v6, %s8152_s28 }
 0x1d3   : > { %7716 = vrot.lane.b32.xlu2 %v7560_v54, %s8153_s29  ;;  %7676 = vrot.lane.b32.xlu1 %v8566_v18, %s8152_s28 }
 0x1d5   : > { %v8664_v39 = vpop.permute.xlu2 %7556 }
 0x1d9   : > { %7671 = vrot.lane.b32.xlu0 %v8599_v34, %s8152_s28 }
 0x1db   : > { %7736 = vrot.lane.b32.xlu2 %v7735_v57, %s8154_s30  ;;  %7691 = vrot.lane.b32.xlu1 %v8579_v4, %s8152_s28  ;;  %v7765_v57 = vpack.i.bf16 %v8645_v47, %v8539_v51 }
 0x1dd   : > { %v7562_v54 = vpop.permute.xlu2 %7561 }
 0x1e1   : > { %7686 = vrot.lane.b32.xlu0 %v8615_v24, %s8152_s28 }
 0x1e3   : > { %7751 = vrot.lane.b32.xlu2 %v7750_v36, %s8154_s30  ;;  %7701 = vrot.lane.b32.xlu1 %v8483_v19, %s8153_s29  ;;  %v7780_v19 = vpack.i.bf16 %v8637_v44, %v8529_v42  ;;  %v7730_v36 = vpack.i.bf16 %v8499_v25, %v8471_v14 }
 0x1e5   : > { %v8682_v26 = vpop.permute.xlu2 %7586 }
 0x1e9   : > { %1591 = vrot.lane.b32.xlu0 %v8489_v20, %s8152_s28  ;;  %s8156_s28 = smov 100  }
 0x1eb   : > { %7766 = vrot.lane.b32.xlu2 %v7765_v57, %s8154_s30  ;;  %7711 = vrot.lane.b32.xlu1 %v8554_v1, %s8153_s29  ;;  %v7720_v57 = vpack.i.bf16 %v8503_v27, %v8478_v17  ;;  %v7745_v1 = vpack.i.bf16 %v8495_v23, %v8464_v11  ;;  %v7760_v27 = vpack.i.bf16 %v8491_v21, %v8457_v8 }
 0x1ed   : > { %v8691_v50 = vpop.permute.xlu2 %7601 }
 0x1f1   : > { %7706 = vrot.lane.b32.xlu0 %v7570_v32, %s8153_s29  ;;  %v7795_v32 = vpack.i.bf16 %v8621_v46, %v8525_v38 }
 0x1f3   : > { %7781 = vrot.lane.b32.xlu2 %v7780_v19, %s8154_s30  ;;  %7731 = vrot.lane.b32.xlu1 %v7730_v36, %s8154_s30 }
 0x1f5   : > { %v8700_v22 = vpop.permute.xlu2 %7616 }
 0x1f9   : > { %7721 = vrot.lane.b32.xlu0 %v7720_v57, %s8154_s30  ;;  %v7810_v57 = vpack.i.bf16 %v8605_v30, %v8523_v37 }
 0x1fb   : > { %7796 = vrot.lane.b32.xlu2 %v7795_v32, %s8154_s30  ;;  %7746 = vrot.lane.b32.xlu1 %v7745_v1, %s8154_s30 }
 0x1fd   : > { %v7627_v19 = vpop.permute.xlu2 %7626  ;;  %v7567_v25 = vpop.permute.xlu1 %7566 }
 0x1fe   : > { %v7628_v36 = vunpack.i.l.bf16 %v7627_v19  ;;  %v7629_v47 = vunpack.i.h.bf16 %v7627_v19  ;;  %v7569_v19 = vunpack.i.h.bf16 %v7567_v25 }
 0x200   : > { %1716 = vmatpush.msrb.mxu0 %v7628_v36  ;;  %v7775_v36 = vpack.i.bf16 %v8476_v16, %v8450_v5 }
 0x201   : > { %7726 = vrot.lane.b32.xlu0 %v8533_v45, %s8153_s29  ;;  %v7825_v45 = vpack.i.bf16 %v8585_v49, %v8519_v35  ;;  %v7568_v49 = vunpack.i.l.bf16 %v7567_v25 }
 0x202   : > { %1717 = vmatpush.msrb.mxu0 %v7629_v47  ;;  %v7564_v47 = vunpack.i.h.bf16 %v7562_v54 }
 0x203   : > { %7811 = vrot.lane.b32.xlu2 %v7810_v57, %s8154_s30  ;;  %7761 = vrot.lane.b32.xlu1 %v7760_v27, %s8154_s30 }
 0x205   : > { %v8719_v32 = vpop.permute.xlu2 %7636  ;;  %v7572_v1 = vpop.permute.xlu1 %7571 }
 0x206   : > { %v7574_v46 = vunpack.i.h.bf16 %v7572_v1  ;;  %v7573_v57 = vunpack.i.l.bf16 %v7572_v1  ;;  %v7558_v1 = vunpack.i.l.bf16 %v8664_v39 }
 0x208   : > { %1150 = vmatpush.msra.mxu2 %v7574_v46  ;;  %v7559_v46 = vunpack.i.h.bf16 %v8664_v39  ;;  %v7588_v39 = vunpack.i.l.bf16 %v8682_v26 }
 0x209   : > { %7741 = vrot.lane.b32.xlu0 %v8593_v15, %s8153_s29 }
 0x20a   : > { %1151 = vmatpush.msra.mxu2 %v7569_v19  ;;  %v7563_v19 = vunpack.i.l.bf16 %v7562_v54 }
 0x20b   : > { %7826 = vrot.lane.b32.xlu2 %v7825_v45, %s8154_s30  ;;  %7776 = vrot.lane.b32.xlu1 %v7775_v36, %s8154_s30  ;;  %v1053_v27 = vpop.permute.xlu0 %1052  ;;  %v7840_v45 = vpack.i.bf16 %v8560_v9, %v8515_v33  ;;  %v7790_v36 = vpack.i.bf16 %v8469_v13, %v8445_v3 }
 0x20c   : > { %1152 = vmatpush.msra.mxu2 %v7564_v47  ;;  %6738 = vmatpush.msk.msra.mxu3 %vm644_vm0, %v1053_v27 }
 0x20d   : > { %v8731_v15 = vpop.permute.xlu2 %7651  ;;  %v7582_v21 = vpop.permute.xlu1 %7581 }
 0x20e   : > { %1153 = vmatpush.msra.mxu2 %v7559_v46  ;;  %1226 = vmatpush.msra.mxu3 %v7573_v57  ;;  %v7584_v27 = vunpack.i.h.bf16 %v7582_v21  ;;  %v7583_v46 = vunpack.i.l.bf16 %v7582_v21  ;;  %v7589_v57 = vunpack.i.h.bf16 %v8682_v26 }
 0x210   : > { %1227 = vmatpush.msra.mxu3 %v7568_v49 }
 0x211   : > { %7756 = vrot.lane.b32.xlu0 %v8583_v6, %s8153_s29 }
 0x212   : > { %1228 = vmatpush.msra.mxu3 %v7563_v19  ;;  %v7855_v19 = vpack.i.bf16 %v8544_v56, %v8511_v31 }
 0x213   : > { %7841 = vrot.lane.b32.xlu2 %v7840_v45, %s8154_s30  ;;  %7791 = vrot.lane.b32.xlu1 %v7790_v36, %s8154_s30  ;;  %v7577_v47 = vpop.permute.xlu0 %7576  ;;  %v7805_v45 = vpack.i.bf16 %v8462_v10, %v8438_v0 }
 0x214   : > { %1229 = vmatpush.msra.mxu3 %v7558_v1  ;;  %v7579_v49 = vunpack.i.h.bf16 %v7577_v47  ;;  %v7578_v25 = vunpack.i.l.bf16 %v7577_v47 }
 0x215   : > { %v8742_v54 = vpop.permute.xlu2 %7666  ;;  %v7597_v6 = vpop.permute.xlu1 %7596 }
 0x216   : > { %1154 = vmatpush.msra.mxu2 %v7579_v49  ;;  %1230 = vmatpush.msra.mxu3 %v7578_v25  ;;  %v7598_v49 = vunpack.i.l.bf16 %v7597_v6  ;;  %v7604_v25 = vunpack.i.h.bf16 %v8691_v50 }
 0x218   : > { %1155 = vmatpush.msra.mxu2 %v7584_v27  ;;  %1231 = vmatpush.msra.mxu3 %v7583_v46  ;;  %v7603_v27 = vunpack.i.l.bf16 %v8691_v50  ;;  %v7870_v46 = vpack.i.bf16 %v8537_v48, %v8507_v29 }
 0x219   : > { %7771 = vrot.lane.b32.xlu0 %v8550_v62, %s8153_s29  ;;  %v7599_v62 = vunpack.i.h.bf16 %v7597_v6 }
 0x21a   : > { %1156 = vmatpush.msra.mxu2 %v7589_v57  ;;  %1232 = vmatpush.msra.mxu3 %v7588_v39  ;;  %v7820_v57 = vpack.i.bf16 %v8453_v7, %v8431_v61 }
 0x21b   : > { %7856 = vrot.lane.b32.xlu2 %v7855_v19, %s8154_s30  ;;  %7806 = vrot.lane.b32.xlu1 %v7805_v45, %s8154_s30  ;;  %v7592_v21 = vpop.permute.xlu0 %7591 }
 0x21c   : > { %v7594_v36 = vunpack.i.h.bf16 %v7592_v21  ;;  %v7593_v1 = vunpack.i.l.bf16 %v7592_v21 }
 0x21d   : > { %v8754_v47 = vpop.permute.xlu2 %7681  ;;  %v7612_v26 = vpop.permute.xlu1 %7611 }
 0x21e   : > { %1157 = vmatpush.msra.mxu2 %v7594_v36  ;;  %1233 = vmatpush.msra.mxu3 %v7593_v1  ;;  %v7613_v21 = vunpack.i.l.bf16 %v7612_v26  ;;  %v7619_v36 = vunpack.i.h.bf16 %v8700_v22  ;;  %v7618_v1 = vunpack.i.l.bf16 %v8700_v22  ;;  %v6698_v22 = vld [vmem:[%s12231_s2 + $0x140] sm:$0xff] }
 0x220   : > { %1158 = vmatpush.msra.mxu2 %v7599_v62  ;;  %1234 = vmatpush.msra.mxu3 %v7598_v49  ;;  %v7835_v62 = vpack.i.bf16 %v8443_v2, %v8424_v58 }
 0x221   : > { %7786 = vrot.lane.b32.xlu0 %v8609_v52, %s8153_s29  ;;  %v7614_v52 = vunpack.i.h.bf16 %v7612_v26 }
 0x222   : > { %1159 = vmatpush.msra.mxu2 %v7604_v25  ;;  %1235 = vmatpush.msra.mxu3 %v7603_v27 }
 0x223   : > { %7871 = vrot.lane.b32.xlu2 %v7870_v46, %s8154_s30  ;;  %7821 = vrot.lane.b32.xlu1 %v7820_v57, %s8154_s30  ;;  %v7607_v6 = vpop.permute.xlu0 %7606  ;;  %v6699_v57 = vld [vmem:[%s12231_s2 + $0x148] sm:$0xff] }
 0x224   : > { %v7609_v39 = vunpack.i.h.bf16 %v7607_v6  ;;  %v7608_v19 = vunpack.i.l.bf16 %v7607_v6  ;;  %v8788_v6 = vpop.f32.mrf.mxu1 }
 0x225   : > { %v8766_v45 = vpop.permute.xlu2 %7696  ;;  %v1023_v50 = vpop.permute.xlu1 %1022 }
 0x226   : > { %1160 = vmatpush.msra.mxu2 %v7609_v39  ;;  %1236 = vmatpush.msra.mxu3 %v7608_v19  ;;  %v7639_v39 = vunpack.i.h.bf16 %v8719_v32  ;;  %v7850_v19 = vpack.i.bf16 %v8436_v63, %v8417_v55 }
 0x228   : > { %1161 = vmatpush.msra.mxu2 %v7614_v52  ;;  %1237 = vmatpush.msra.mxu3 %v7613_v21  ;;  %v6700_v52 = vld [vmem:[%s12231_s2 + $0x150] sm:$0xff] }
 0x229   : > { %7801 = vrot.lane.b32.xlu0 %v8599_v34, %s8153_s29 }
 0x22a   : > { %1162 = vmatpush.msra.mxu2 %v7619_v36  ;;  %1238 = vmatpush.msra.mxu3 %v7618_v1  ;;  %v6701_v36 = vld [vmem:[%s12231_s2 + $0x158] sm:$0xff] }
 0x22b   : > { %7836 = vrot.lane.b32.xlu1 %v7835_v62, %s8154_s30  ;;  %1993 = vrot.lane.b32.xlu2 %v8573_v43, %s8153_s29  ;;  %v7622_v26 = vpop.permute.xlu0 %7621 }
 0x22c   : > { %v7624_v49 = vunpack.i.h.bf16 %v7622_v26  ;;  %v7623_v25 = vunpack.i.l.bf16 %v7622_v26  ;;  %v12307_v26 = vld [vmem:[#allocation10_spill] sm:$0xff] }
 0x22d   : > { %v8780_v27 = vpop.permute.xlu2 %7716  ;;  %v7632_v34 = vpop.permute.xlu1 %7631 }
 0x22e   : > { %1163 = vmatpush.msra.mxu2 %v7624_v49  ;;  %1239 = vmatpush.msra.mxu3 %v7623_v25  ;;  %v7634_v46 = vunpack.i.h.bf16 %v7632_v34 }
 0x22f   : > { %1164 = vmatmul.f32.vlgmr.msra.gmra.mxu2 %v6698_v22 }
 0x230   : > { %1364 = vmatpush.msrb.mxu2 %v8478_v17  ;;  %1240 = vmatpush.msra.mxu3 %v1023_v50 }
 0x231   : > { %1718 = vmatpush.msrb.mxu0 %v7634_v46  ;;  %7816 = vrot.lane.b32.xlu0 %v8566_v18, %s8153_s29  ;;  %v12309_v46 = vld [vmem:[#allocation6_spill] sm:$0xff] }
 0x232   : > { %6739 = vmatmul.msk.f32.vlgmr.msra.gmra.mxu3 %vm1085_vm2, %v6699_v57  ;;  %1365 = vmatpush.msrb.mxu2 %v8471_v14 }
 0x233   : > { %6759 = vmatpush.msk.msrb.mxu3 %vm644_vm0, %v8573_v43  ;;  %1719 = vmatpush.msrb.mxu0 %v7639_v39  ;;  %v7642_v17 = vpop.permute.xlu0 %7641  ;;  %v12311_v39 = vld [vmem:[#allocation4_spill] sm:$0xff] }
 0x234   : > { %7851 = vrot.lane.b32.xlu1 %v7850_v19, %s8154_s30  ;;  %2461 = vrot.lane.b32.xlu2 %v8788_v6, %s8154_s30  ;;  %v7644_v18 = vunpack.i.h.bf16 %v7642_v17  ;;  %v12312_v19 = vld [vmem:[#allocation7_spill] sm:$0xff] }
 0x235   : > { %1366 = vmatpush.msrb.mxu2 %v8464_v11  ;;  %1442 = vmatpush.msrb.mxu3 %v8562_v12  ;;  %v8802_v50 = vpop.permute.xlu2 %7736  ;;  %v7647_v14 = vpop.permute.xlu1 %7646  ;;  %v7654_v11 = vunpack.i.h.bf16 %v8731_v15  ;;  %v6703_v12 = vld [vmem:[%s12231_s2 + $0x168] sm:$0xff] }
 0x236   : > { %1720 = vmatpush.msrb.mxu0 %v7644_v18  ;;  %v7649_v21 = vunpack.i.h.bf16 %v7647_v14 }
 0x237   : > { %1367 = vmatpush.msrb.mxu2 %v8457_v8  ;;  %1443 = vmatpush.msrb.mxu3 %v8546_v59  ;;  %v7865_v8 = vpack.i.bf16 %v8429_v60, %v8412_v53  ;;  %v7885_v59 = vpack.i.bf16 %v8527_v40, %v8505_v28 }
 0x238   : > { %1167 = vmatmul.f32.gmra.mxu2 %v6700_v52  ;;  %1721 = vmatpush.msrb.mxu0 %v7649_v21  ;;  %v12313_v52 = vld [vmem:[#allocation15_spill] sm:$0xff] }
 0x239   : > { %1368 = vmatpush.msrb.mxu2 %v8450_v5  ;;  %1444 = vmatpush.msrb.mxu3 %v8539_v51  ;;  %v6706_v21 = vld [vmem:[%s12231_s2 + $0x180] sm:$0xff] }
 0x23a   : > { %7831 = vrot.lane.b32.xlu0 %v8625_v41, %s8153_s29  ;;  %6740 = vmatmul.msk.f32.gmra.mxu3 %vm1085_vm2, %v6701_v36  ;;  %v12314_v36 = vld [vmem:[#allocation3_spill] sm:$0xff] }
 0x23b   : > { %1369 = vmatpush.msrb.mxu2 %v8445_v3  ;;  %1445 = vmatpush.msrb.mxu3 %v8529_v42  ;;  %v1622_v5 = vpop.permute.xlu0 %1621  ;;  %v7633_v3 = vunpack.i.l.bf16 %v7632_v34  ;;  %v6702_v42 = vld [vmem:[%s12231_s2 + $0x160] sm:$0xff] }
 0x23c   : > { %1722 = vmatpush.msrb.mxu0 %v7654_v11  ;;  %7866 = vrot.lane.b32.xlu1 %v7865_v8, %s8154_s30  ;;  %v12315_v11 = vld [vmem:[#allocation14_spill] sm:$0xff] }
 0x23d   : > { %7886 = vrot.lane.b32.xlu2 %v7885_v59, %s8154_s30  ;;  %1370 = vmatpush.msrb.mxu2 %v8438_v0  ;;  %v8827_v41 = vpop.permute.xlu2 %7751  ;;  %v7662_v51 = vpop.permute.xlu1 %7661  ;;  %v7638_v0 = vunpack.i.l.bf16 %v8719_v32  ;;  %v12306_v32 = vld [vmem:[#allocation22_spill] sm:$0xff] }
 0x23e   : > { %1446 = vmatpush.msrb.mxu3 %v8525_v38  ;;  %6820 = vmatpush.msk.msrb.mxu1 %vm644_vm0, %v1622_v5  ;;  %v7643_v38 = vunpack.i.l.bf16 %v7642_v17  ;;  %v7910_v17 = vpack.i.bf16 %v12312_v19, %v12311_v39  ;;  %v6707_v5 = vld [vmem:[%s12231_s2 + $0x188] sm:$0xff] }
 0x23f   : > { %1371 = vmatpush.msrb.mxu2 %v8431_v61 }
 0x240   : > { %1447 = vmatpush.msrb.mxu3 %v8523_v37  ;;  %1794 = vmatpush.msrb.mxu1 %v7633_v3  ;;  %v12305_v37 = vld [vmem:[#allocation17_spill] sm:$0xff] }
 0x241   : > { %1170 = vmatmul.f32.gmra.mxu2 %v6702_v42  ;;  %v7895_v1 = vpack.i.bf16 %v12306_v32, %v12305_v37 }
 0x242   : > { %1372 = vmatpush.msrb.mxu2 %v8424_v58  ;;  %1448 = vmatpush.msrb.mxu3 %v8519_v35 }
 0x243   : > { %1795 = vmatpush.msrb.mxu1 %v7638_v0  ;;  %7846 = vrot.lane.b32.xlu0 %v8615_v24, %s8153_s29  ;;  %v7657_v61 = vpop.permute.xlu0 %7656  ;;  %v7648_v24 = vunpack.i.l.bf16 %v7647_v14 }
 0x244   : > { %6741 = vmatmul.msk.f32.gmra.mxu3 %vm1085_vm2, %v6703_v12  ;;  %1373 = vmatpush.msrb.mxu2 %v8417_v55  ;;  %v7659_v62 = vunpack.i.h.bf16 %v7657_v61  ;;  %v6704_v55 = vld [vmem:[%s12231_s2 + $0x170] sm:$0xff]  ;;  %v7658_v49 = vunpack.i.l.bf16 %v7657_v61  ;;  %v12317_v61 = vld [vmem:[#allocation11_spill] sm:$0xff] }
 0x245   : > { %1449 = vmatpush.msrb.mxu3 %v8515_v33  ;;  %1796 = vmatpush.msrb.mxu1 %v7643_v38  ;;  %v8849_v58 = vpop.permute.xlu2 %7766  ;;  %v7677_v35 = vpop.permute.xlu1 %7676  ;;  %v7653_v33 = vunpack.i.l.bf16 %v8731_v15  ;;  %v7663_v15 = vunpack.i.l.bf16 %v7662_v51  ;;  %v12316_v12 = vld [vmem:[#allocation25_spill] sm:$0xff]  ;;  %v7683_v38 = vunpack.i.l.bf16 %v8754_v47 }
 0x246   : > { %2459 = vrot.lane.b32.xlu1 %v8573_v43, %s8154_s30  ;;  %7896 = vrot.lane.b32.xlu2 %v7895_v1, %s8154_s30  ;;  %v7664_v43 = vunpack.i.h.bf16 %v7662_v51  ;;  %v7679_v8 = vunpack.i.h.bf16 %v7677_v35  ;;  %v7684_v51 = vunpack.i.h.bf16 %v8754_v47  ;;  %v6708_v47 = vld [vmem:[%s12231_s2 + $0x190] sm:$0xff] }
 0x247   : > { %1374 = vmatpush.msrb.mxu2 %v8412_v53  ;;  %1450 = vmatpush.msrb.mxu3 %v8511_v31  ;;  %v6705_v53 = vld [vmem:[%s12231_s2 + $0x178] sm:$0xff]  ;;  %v12308_v31 = vld [vmem:[#allocation8_spill] sm:$0xff] }
 0x248   : > { %1797 = vmatpush.msrb.mxu1 %v7648_v24  ;;  %1723 = vmatpush.msrb.mxu0 %v7659_v62 }
 0x249   : > { %1375 = vmatpush.msrb.mxu2 %v12307_v26  ;;  %1451 = vmatpush.msrb.mxu3 %v8507_v29  ;;  %v7669_v29 = vunpack.i.h.bf16 %v8742_v54 }
 0x24a   : > { %1798 = vmatpush.msrb.mxu1 %v7653_v33  ;;  %1173 = vmatmul.f32.gmra.mxu2 %v6704_v55 }
 0x24b   : > { %1376 = vmatpush.msrb.mxu2 %v12308_v31  ;;  %1452 = vmatpush.msrb.mxu3 %v8505_v28  ;;  %v7672_v25 = vpop.permute.xlu0 %7671  ;;  %v12310_v28 = vld [vmem:[#allocation12_spill] sm:$0xff] }
 0x24c   : > { %1724 = vmatpush.msrb.mxu0 %v7664_v43  ;;  %1799 = vmatpush.msrb.mxu1 %v7658_v49  ;;  %v7880_v57 = vpack.i.bf16 %v12310_v28, %v12307_v26  ;;  %v7674_v18 = vunpack.i.h.bf16 %v7672_v25  ;;  %v7673_v14 = vunpack.i.l.bf16 %v7672_v25  ;;  %v7699_v43 = vunpack.i.h.bf16 %v8766_v45 }
 0x24d   : > { %7861 = vrot.lane.b32.xlu0 %v8579_v4, %s8153_s29  ;;  %6742 = vmatmul.msk.f32.gmra.mxu3 %vm1085_vm2, %v6705_v53  ;;  %v8871_v22 = vpop.permute.xlu2 %7781  ;;  %v7692_v34 = vpop.permute.xlu1 %7691  ;;  %v7668_v4 = vunpack.i.l.bf16 %v8742_v54  ;;  %v7678_v54 = vunpack.i.l.bf16 %v7677_v35  ;;  %v12318_v35 = vld [vmem:[#allocation19_spill] sm:$0xff]  ;;  %v6709_v53 = vld [vmem:[%s12231_s2 + $0x198] sm:$0xff] }
 0x24e   : > { %1377 = vmatpush.msrb.mxu2 %v12309_v46  ;;  %1453 = vmatpush.msrb.mxu3 %v12305_v37  ;;  %v7890_v37 = vpack.i.bf16 %v12317_v61, %v12308_v31  ;;  %v7925_v24 = vpack.i.bf16 %v12318_v35, %v8489_v20  ;;  %v7694_v55 = vunpack.i.h.bf16 %v7692_v34  ;;  %v7693_v33 = vunpack.i.l.bf16 %v7692_v34 }
 0x24f   : > { %1725 = vmatpush.msrb.mxu0 %v7669_v29  ;;  %1800 = vmatpush.msrb.mxu1 %v7663_v15  ;;  %v7698_v31 = vunpack.i.l.bf16 %v8766_v45  ;;  %v12319_v15 = vld [vmem:[#allocation21_spill] sm:$0xff] }
 0x250   : > { %7881 = vrot.lane.b32.xlu1 %v7880_v57, %s8154_s30  ;;  %7911 = vrot.lane.b32.xlu2 %v7910_v17, %s8154_s30  ;;  %v7905_v34 = vpack.i.bf16 %v12319_v15, %v12313_v52  ;;  %v12320_v57 = vld [vmem:[#allocation28_spill] sm:$0xff]  ;;  %v12321_v17 = vld [vmem:[#allocation9_spill] sm:$0xff] }
 0x251   : > { %1378 = vmatpush.msrb.mxu2 %v12311_v39  ;;  %1454 = vmatpush.msrb.mxu3 %v12313_v52  ;;  %v8925_v39 = vpack.i.bf16 %v8495_v23, %v12320_v57  ;;  %v6711_v23 = vld [vmem:[%s12231_s2 + $0x1a8] sm:$0xff] }
 0x252   : > { %1801 = vmatpush.msrb.mxu1 %v7668_v4  ;;  %1726 = vmatpush.msrb.mxu0 %v7674_v18  ;;  %v7900_v18 = vpack.i.bf16 %v12321_v17, %v12309_v46  ;;  %v8950_v46 = vpack.i.bf16 %v8469_v13, %v8637_v44  ;;  %v6713_v44 = vld [vmem:[%s12231_s2 + $0x1b8] sm:$0xff]  ;;  %v6715_v57 = vld [vmem:[%s12231_s2 + $0x1c8] sm:$0xff] }
 0x253   : > { %1379 = vmatpush.msrb.mxu2 %v12314_v36  ;;  %1455 = vmatpush.msrb.mxu3 %v12315_v11  ;;  %v7687_v59 = vpop.permute.xlu0 %7686 }
 0x254   : > { %1802 = vmatpush.msrb.mxu1 %v7673_v14  ;;  %1176 = vmatmul.f32.gmra.mxu2 %v6706_v21  ;;  %v7689_v0 = vunpack.i.h.bf16 %v7687_v59  ;;  %v7688_v62 = vunpack.i.l.bf16 %v7687_v59 }
 0x255   : > { %1456 = vmatpush.msrb.mxu3 %v8489_v20  ;;  %1727 = vmatpush.msrb.mxu0 %v7679_v8  ;;  %v8894_v3 = vpop.permute.xlu2 %7796  ;;  %v7702_v42 = vpop.permute.xlu1 %7701  ;;  %v12322_v8 = vld [vmem:[#allocation5_spill] sm:$0xff] }
 0x256   : > { %1803 = vmatpush.msrb.mxu1 %v7678_v54  ;;  %7876 = vrot.lane.b32.xlu0 %v12316_v12, %s8153_s29  ;;  %v7703_v1 = vunpack.i.l.bf16 %v7702_v42  ;;  %v7704_v26 = vunpack.i.h.bf16 %v7702_v42  ;;  %v7920_v59 = vpack.i.bf16 %v12322_v8, %v12314_v36  ;;  %v7719_v54 = vunpack.i.h.bf16 %v8780_v27 }
 0x257   : > { %6743 = vmatmul.msk.f32.gmra.mxu3 %vm1085_vm2, %v6707_v5  ;;  %1728 = vmatpush.msrb.mxu0 %v7684_v51  ;;  %v6712_v5 = vld [vmem:[%s12231_s2 + $0x1b0] sm:$0xff] }
 0x258   : > { %1804 = vmatpush.msrb.mxu1 %v7683_v38  ;;  %7891 = vrot.lane.b32.xlu1 %v7890_v37, %s8154_s30  ;;  %v12323_v51 = vld [vmem:[#allocation20_spill] sm:$0xff] }
 0x259   : > { %7926 = vrot.lane.b32.xlu2 %v7925_v24, %s8154_s30  ;;  %1729 = vmatpush.msrb.mxu0 %v7689_v0  ;;  %v7915_v42 = vpack.i.bf16 %v12323_v51, %v12315_v11  ;;  %v12325_v11 = vld [vmem:[#allocation24_spill] sm:$0xff] }
 0x25a   : > { %1805 = vmatpush.msrb.mxu1 %v7688_v62  ;;  %2088 = vmatpush.msra.mxu2 %v7703_v1  ;;  %v12324_v62 = vld [vmem:[#allocation26_spill] sm:$0xff] }
 0x25b   : > { %1730 = vmatpush.msrb.mxu0 %v7694_v55  ;;  %v1592_v49 = vpop.permute.xlu0 %1591  ;;  %v7945_v24 = vpack.i.bf16 %v8476_v16, %v12324_v62  ;;  %v6714_v16 = vld [vmem:[%s12231_s2 + $0x1c0] sm:$0xff] }
 0x25c   : > { %1179 = vmatmul.f32.gmra.mxu2 %v6708_v47  ;;  %1806 = vmatpush.msrb.mxu1 %v7693_v33  ;;  %v8972_v47 = vpack.i.bf16 %v8462_v10, %v12325_v11  ;;  %v6718_v11 = vld [vmem:[%s12231_s2 + $0x1e0] sm:$0xff] }
 0x25d   : > { %1731 = vmatpush.msrb.mxu0 %v7699_v43  ;;  %2089 = vmatpush.msra.mxu2 %v7704_v26  ;;  %v8914_v25 = vpop.permute.xlu2 %7811  ;;  %v8916_v29 = vpop.permute.xlu1 %7711 }
 0x25e   : > { %1963 = vrot.lane.b32.xlu0 %v8489_v20, %s8153_s29  ;;  %1807 = vmatpush.msrb.mxu1 %v7698_v31  ;;  %v6710_v20 = vld [vmem:[%s12231_s2 + $0x1a0] sm:$0xff]  ;;  %v7714_v21 = vunpack.i.h.bf16 %v8916_v29  ;;  %v12327_v31 = vld [vmem:[#allocation16_spill] sm:$0xff] }
 0x25f   : > { %6744 = vmatmul.msk.f32.gmra.mxu3 %vm1085_vm2, %v6709_v53  ;;  %v12326_v53 = vld [vmem:[#allocation18_spill] sm:$0xff] }
 0x260   : > { %7906 = vrot.lane.b32.xlu1 %v7905_v34, %s8154_s30  ;;  %1808 = vmatpush.msrb.mxu1 %v1592_v49  ;;  %v7930_v34 = vpack.i.bf16 %v12327_v31, %v12326_v53 }
 0x261   : > { %7936 = vrot.lane.b32.xlu2 %v8925_v39, %s8155_s16 }
 0x263   : > { %v8933_v45 = vpop.permute.xlu0 %7706 }
 0x264   : > { %1182 = vmatmul.f32.gmra.mxu2 %v6710_v20  ;;  %v7709_v4 = vunpack.i.h.bf16 %v8933_v45 }
 0x265   : > { %v8941_v14 = vpop.permute.xlu2 %7826  ;;  %v7732_v52 = vpop.permute.xlu1 %7731 }
 0x266   : > { %7901 = vrot.lane.b32.xlu0 %v7900_v18, %s8154_s30  ;;  %2090 = vmatpush.msra.mxu2 %v7709_v4  ;;  %v7734_v12 = vunpack.i.h.bf16 %v7732_v52  ;;  %v7733_v38 = vunpack.i.l.bf16 %v7732_v52  ;;  %v8996_v4 = vpack.i.bf16 %v8453_v7, %v8605_v30  ;;  %v6716_v7 = vld [vmem:[%s12231_s2 + $0x1d0] sm:$0xff] }
 0x267   : > { %6745 = vmatmul.msk.f32.gmra.mxu3 %vm1085_vm2, %v6711_v23 }
 0x268   : > { %7921 = vrot.lane.b32.xlu1 %v7920_v59, %s8154_s30  ;;  %2091 = vmatpush.msra.mxu2 %v7714_v21  ;;  %v2478_v43 = vsel %vm2463_vm3, %v7733_v38, %v7734_v12  ;;  %v12328_v59 = vld [vmem:[#allocation27_spill] sm:$0xff] }
 0x269   : > { %7951 = vrot.lane.b32.xlu2 %v8950_v46, %s8155_s16 }
 0x26a   : > { %2092 = vmatpush.msra.mxu2 %v7719_v54  ;;  %v12329_v54 = vld [vmem:[#allocation13_spill] sm:$0xff] }
 0x26b   : > { %v7722_v36 = vpop.permute.xlu0 %7721 }
 0x26c   : > { %1185 = vmatmul.f32.gmra.mxu2 %v6712_v5  ;;  %v7724_v13 = vunpack.i.h.bf16 %v7722_v36  ;;  %v7723_v0 = vunpack.i.l.bf16 %v7722_v36  ;;  %v7975_v5 = vpack.i.bf16 %v12329_v54, %v12328_v59  ;;  %v12330_v59 = vld [vmem:[#allocation23_spill] sm:$0xff] }
 0x26d   : > { %v8964_v37 = vpop.permute.xlu2 %7841  ;;  %v7747_v1 = vpop.permute.xlu1 %7746  ;;  %v7980_v54 = vpack.i.bf16 %v8443_v2, %v12330_v59 }
 0x26e   : > { %7916 = vrot.lane.b32.xlu0 %v7915_v42, %s8154_s30  ;;  %v7749_v55 = vunpack.i.h.bf16 %v7747_v1  ;;  %v7748_v33 = vunpack.i.l.bf16 %v7747_v1  ;;  %v2479_v26 = vsel %vm2463_vm3, %v7723_v0, %v7724_v13  ;;  %v6717_v42 = vld [vmem:[%s12231_s2 + $0x1d8] sm:$0xff]  ;;  %v9017_v1 = vpack.i.bf16 %v8436_v63, %v8560_v9  ;;  %s8163_s30 = smov 124  }
 0x26f   : > { %6746 = vmatmul.msk.f32.gmra.mxu3 %vm1085_vm2, %v6713_v44  ;;  %2589 = vmatpush.msra.mxu0 %v2479_v26 }
 0x270   : > { %7946 = vrot.lane.b32.xlu1 %v7945_v24, %s8155_s16  ;;  %v2477_v10 = vsel %vm2463_vm3, %v7748_v33, %v7749_v55  ;;  %v6719_v33 = vld [vmem:[%s12231_s2 + $0x1e8] sm:$0xff] }
 0x271   : > { %7961 = vrot.lane.b32.xlu2 %v8972_v47, %s8155_s16  ;;  %2590 = vmatpush.msra.mxu0 %v2478_v43 }
 0x273   : > { %v8982_v49 = vpop.permute.xlu0 %7726  ;;  %2591 = vmatpush.msra.mxu0 %v2477_v10  ;;  %v7708_v10 = vunpack.i.l.bf16 %v8933_v45  ;;  %v7718_v45 = vunpack.i.l.bf16 %v8780_v27  ;;  %v9056_v27 = vpack.i.bf16 %v12317_v61, %v8527_v40 }
 0x274   : > { %1188 = vmatmul.f32.gmra.mxu2 %v6714_v16  ;;  %v7729_v20 = vunpack.i.h.bf16 %v8982_v49 }
 0x275   : > { %v8991_v18 = vpop.permute.xlu2 %7856  ;;  %v7762_v23 = vpop.permute.xlu1 %7761 }
 0x276   : > { %7931 = vrot.lane.b32.xlu0 %v7930_v34, %s8155_s16  ;;  %v7764_v52 = vunpack.i.h.bf16 %v7762_v23  ;;  %v7763_v21 = vunpack.i.l.bf16 %v7762_v23  ;;  %2093 = vmatpush.msra.mxu2 %v7729_v20 }
 0x277   : > { %6747 = vmatmul.msk.f32.gmra.mxu3 %vm1085_vm2, %v6715_v57 }
 0x278   : > { %7971 = vrot.lane.b32.xlu1 %v8996_v4, %s8155_s16  ;;  %v2476_v36 = vsel %vm2463_vm3, %v7763_v21, %v7764_v52 }
 0x279   : > { %7976 = vrot.lane.b32.xlu2 %v7975_v5, %s8156_s28  ;;  %2592 = vmatpush.msra.mxu0 %v2476_v36 }
 0x27b   : > { %v7742_v30 = vpop.permute.xlu0 %7741 }
 0x27c   : > { %1191 = vmatmul.f32.gmra.mxu2 %v6716_v7  ;;  %v7744_v44 = vunpack.i.h.bf16 %v7742_v30  ;;  %v7743_v52 = vunpack.i.l.bf16 %v7742_v30 }
 0x27d   : > { %v9011_v13 = vpop.permute.xlu2 %7871  ;;  %v7777_v0 = vpop.permute.xlu1 %7776 }
 0x27e   : > { %7941 = vrot.lane.b32.xlu0 %v7975_v5, %s8155_s16  ;;  %v7779_v12 = vunpack.i.h.bf16 %v7777_v0  ;;  %v7778_v38 = vunpack.i.l.bf16 %v7777_v0  ;;  %2094 = vmatpush.msra.mxu2 %v7744_v44  ;;  %v6724_v44 = vld [vmem:[%s12231_s2 + $0x210] sm:$0xff] }
 0x27f   : > { %6748 = vmatmul.msk.f32.gmra.mxu3 %vm1085_vm2, %v6717_v42 }
 0x280   : > { %7986 = vrot.lane.b32.xlu1 %v7945_v24, %s8156_s28  ;;  %v2475_v62 = vsel %vm2463_vm3, %v7778_v38, %v7779_v12  ;;  %v9032_v24 = vpack.i.bf16 %v8429_v60, %v8544_v56  ;;  %v6720_v60 = vld [vmem:[%s12231_s2 + $0x1f0] sm:$0xff]  ;;  %v7713_v56 = vunpack.i.l.bf16 %v8916_v29  ;;  %v6725_v12 = vld [vmem:[%s12231_s2 + $0x218] sm:$0xff] }
 0x281   : > { %7991 = vrot.lane.b32.xlu2 %v9017_v1, %s8155_s16  ;;  %2593 = vmatpush.msra.mxu0 %v2475_v62 }
 0x283   : > { %v7757_v55 = vpop.permute.xlu0 %7756 }
 0x284   : > { %1194 = vmatmul.f32.gmra.mxu2 %v6718_v11  ;;  %v7759_v63 = vunpack.i.h.bf16 %v7757_v55  ;;  %v7758_v21 = vunpack.i.l.bf16 %v7757_v55 }
 0x285   : > { %v7792_v9 = vpop.permute.xlu1 %7791  ;;  %v1994_v26 = vpop.permute.xlu2 %1993 }
 0x286   : > { %7956 = vrot.lane.b32.xlu0 %v7930_v34, %s8156_s28  ;;  %v7794_v16 = vunpack.i.h.bf16 %v7792_v9  ;;  %v7793_v43 = vunpack.i.l.bf16 %v7792_v9  ;;  %2095 = vmatpush.msra.mxu2 %v7759_v63  ;;  %v6721_v34 = vld [vmem:[%s12231_s2 + $0x1f8] sm:$0xff] }
 0x287   : > { %6749 = vmatmul.msk.f32.gmra.mxu3 %vm1085_vm2, %v6719_v33 }
 0x288   : > { %8001 = vrot.lane.b32.xlu1 %v9032_v24, %s8155_s16  ;;  %6881 = vmatpush.msk.msra.mxu3 %vm644_vm0, %v1994_v26  ;;  %v2474_v53 = vsel %vm2463_vm3, %v7793_v43, %v7794_v16  ;;  %v9098_v16 = vpack.i.bf16 %v12310_v28, %v8537_v48  ;;  %v9107_v43 = vpack.i.bf16 %v12321_v17, %v12306_v32  ;;  %v6728_v28 = vld [vmem:[%s12231_s2 + $0x230] sm:$0xff]  ;;  %v6729_v17 = vld [vmem:[%s12231_s2 + $0x238] sm:$0xff] }
 0x289   : > { %8006 = vrot.lane.b32.xlu2 %v8972_v47, %s8156_s28  ;;  %2594 = vmatpush.msra.mxu0 %v2474_v53  ;;  %v7728_v47 = vunpack.i.l.bf16 %v8982_v49 }
 0x28a   : > { %2166 = vmatpush.msra.mxu3 %v7708_v10 }
 0x28b   : > { %v7772_v31 = vpop.permute.xlu0 %7771 }
 0x28c   : > { %1197 = vmatmul.f32.gmra.mxu2 %v6720_v60  ;;  %2167 = vmatpush.msra.mxu3 %v7713_v56  ;;  %v7774_v57 = vunpack.i.h.bf16 %v7772_v31  ;;  %v7773_v61 = vunpack.i.l.bf16 %v7772_v31 }
 0x28d   : > { %v7807_v20 = vpop.permute.xlu1 %7806 }
 0x28e   : > { %7966 = vrot.lane.b32.xlu0 %v8925_v39, %s8156_s28  ;;  %2168 = vmatpush.msra.mxu3 %v7718_v45  ;;  %v7809_v23 = vunpack.i.h.bf16 %v7807_v20  ;;  %v7808_v29 = vunpack.i.l.bf16 %v7807_v20  ;;  %v6722_v39 = vld [vmem:[%s12231_s2 + $0x200] sm:$0xff]  ;;  %v2462_v9 = vpop.permute.xlu2 %2461 }
 0x28f   : > { %6750 = vmatmul.msk.f32.gmra.mxu3 %vm1085_vm2, %v6721_v34  ;;  %2096 = vmatpush.msra.mxu2 %v7774_v57 }
 0x290   : > { %8016 = vrot.lane.b32.xlu1 %v8996_v4, %s8156_s28  ;;  %2169 = vmatpush.msra.mxu3 %v7728_v47  ;;  %v2473_v49 = vsel %vm2463_vm3, %v7808_v29, %v7809_v23  ;;  %v6723_v4 = vld [vmem:[%s12231_s2 + $0x208] sm:$0xff]  ;;  %v6730_v47 = vld [vmem:[%s12231_s2 + $0x240] sm:$0xff] }
 0x291   : > { %8021 = vrot.lane.b32.xlu2 %v9056_v27, %s8155_s16  ;;  %2595 = vmatpush.msra.mxu0 %v2473_v49 }
 0x292   : > { %2170 = vmatpush.msra.mxu3 %v7743_v52 }
 0x293   : > { %v7787_v40 = vpop.permute.xlu0 %7786 }
 0x294   : > { %1200 = vmatmul.f32.gmra.mxu2 %v6722_v39  ;;  %2171 = vmatpush.msra.mxu3 %v7758_v21  ;;  %v7789_v5 = vunpack.i.h.bf16 %v7787_v40  ;;  %v7788_v36 = vunpack.i.l.bf16 %v7787_v40  ;;  %v7739_v40 = vunpack.i.h.bf16 %v8802_v50 }
 0x295   : > { %v7822_v7 = vpop.permute.xlu1 %7821 }
 0x296   : > { %7981 = vrot.lane.b32.xlu0 %v7980_v54, %s8155_s16  ;;  %2172 = vmatpush.msra.mxu3 %v7773_v61  ;;  %v7824_v30 = vunpack.i.h.bf16 %v7822_v7  ;;  %v7823_v42 = vunpack.i.l.bf16 %v7822_v7  ;;  %v7738_v61 = vunpack.i.l.bf16 %v8802_v50  ;;  %v6732_v50 = vld [vmem:[%s12231_s2 + $0x250] sm:$0xff] }
 0x297   : > { %6751 = vmatmul.msk.f32.gmra.mxu3 %vm1085_vm2, %v6723_v4  ;;  %2097 = vmatpush.msra.mxu2 %v7789_v5  ;;  %v9121_v56 = vpop.permute.xlu2 %7886  ;;  %v7769_v5 = vunpack.i.h.bf16 %v8849_v58 }
 0x298   : > { %2866 = vrot.lane.b32.xlu1 %v8788_v6, %s8155_s16  ;;  %2173 = vmatpush.msra.mxu3 %v7788_v36  ;;  %v2472_v2 = vsel %vm2463_vm3, %v7823_v42, %v7824_v30  ;;  %v7768_v36 = vunpack.i.l.bf16 %v8849_v58  ;;  %v2494_v7 = vsel %vm2463_vm3, %v7738_v61, %v7739_v40  ;;  %v6780_v42 = vld [vmem:[%s12231_s2 + $0x280] sm:$0xff]  ;;  %v7874_v40 = vunpack.i.h.bf16 %v9011_v13 }
 0x299   : > { %8036 = vrot.lane.b32.xlu2 %v9017_v1, %s8156_s28  ;;  %2596 = vmatpush.msra.mxu0 %v2472_v2  ;;  %v8050_v1 = vpack.i.bf16 %v12322_v8, %v12323_v51  ;;  %v6781_v2 = vld [vmem:[%s12231_s2 + $0x288] sm:$0xff]  ;;  %v7873_v61 = vunpack.i.l.bf16 %v9011_v13  ;;  %v7889_v13 = vunpack.i.h.bf16 %v9121_v56 }
 0x29a   : > { %1732 = vmatmul.f32.vlgmr.msrb.gmra.mxu0 %v6780_v42  ;;  %6821 = vmatmul.msk.f32.vlgmr.msrb.gmra.mxu1 %vm1085_vm2, %v6781_v2 }
 0x29b   : > { %v7802_v0 = vpop.permute.xlu0 %7801  ;;  %v2485_v42 = vsel %vm2463_vm3, %v7873_v61, %v7874_v40  ;;  %v6791_v61 = vld [vmem:[%s12231_s2 + $0x2d8] sm:$0xff] }
 0x29c   : > { %1203 = vmatmul.f32.gmra.mxu2 %v6724_v44  ;;  %v7804_v38 = vunpack.i.h.bf16 %v7802_v0  ;;  %v7803_v62 = vunpack.i.l.bf16 %v7802_v0  ;;  %v7784_v0 = vunpack.i.h.bf16 %v8871_v22 }
 0x29d   : > { %v7837_v11 = vpop.permute.xlu1 %7836 }
 0x29e   : > { %7996 = vrot.lane.b32.xlu0 %v8950_v46, %s8156_s28  ;;  %v7839_v55 = vunpack.i.h.bf16 %v7837_v11  ;;  %v7838_v33 = vunpack.i.l.bf16 %v7837_v11  ;;  %2098 = vmatpush.msra.mxu2 %v7804_v38  ;;  %v6726_v46 = vld [vmem:[%s12231_s2 + $0x220] sm:$0xff]  ;;  %v7799_v11 = vunpack.i.h.bf16 %v8894_v3 }
 0x29f   : > { %6752 = vmatmul.msk.f32.gmra.mxu3 %vm1085_vm2, %v6725_v12  ;;  %v7783_v12 = vunpack.i.l.bf16 %v8871_v22  ;;  %v6734_v22 = vld [vmem:[%s12231_s2 + $0x260] sm:$0xff] }
 0x2a0   : > { %3238 = vrot.lane.b32.xlu1 %v8788_v6, %s8156_s28  ;;  %2174 = vmatpush.msra.mxu3 %v7803_v62  ;;  %v2471_v63 = vsel %vm2463_vm3, %v7838_v33, %v7839_v55  ;;  %v6727_v6 = vld [vmem:[%s12231_s2 + $0x228] sm:$0xff]  ;;  %v9144_v59 = vpop.permute.xlu2 %7896  ;;  %v2492_v62 = vsel %vm2463_vm3, %v7768_v36, %v7769_v5  ;;  %v7798_v55 = vunpack.i.l.bf16 %v8894_v3 }
 0x2a1   : > { %8051 = vrot.lane.b32.xlu2 %v8050_v1, %s8155_s16  ;;  %2597 = vmatpush.msra.mxu0 %v2471_v63  ;;  %v2491_v3 = vsel %vm2463_vm3, %v7783_v12, %v7784_v0  ;;  %v7899_v36 = vunpack.i.h.bf16 %v9144_v59 }
 0x2a3   : > { %v7817_v26 = vpop.permute.xlu0 %7816 }
 0x2a4   : > { %1206 = vmatmul.f32.gmra.mxu2 %v6726_v46  ;;  %v7819_v8 = vunpack.i.h.bf16 %v7817_v26  ;;  %v7818_v51 = vunpack.i.l.bf16 %v7817_v26  ;;  %v7814_v46 = vunpack.i.h.bf16 %v8914_v25 }
 0x2a6   : > { %8011 = vrot.lane.b32.xlu0 %v9098_v16, %s8155_s16  ;;  %v7852_v10 = vpop.permute.xlu1 %7851  ;;  %2099 = vmatpush.msra.mxu2 %v7819_v8  ;;  %v7829_v8 = vunpack.i.h.bf16 %v8941_v14 }
 0x2a7   : > { %6753 = vmatmul.msk.f32.gmra.mxu3 %vm1085_vm2, %v6727_v6  ;;  %v7854_v53 = vunpack.i.h.bf16 %v7852_v10  ;;  %v7853_v48 = vunpack.i.l.bf16 %v7852_v10  ;;  %v6735_v10 = vld [vmem:[%s12231_s2 + $0x268] sm:$0xff] }
 0x2a8   : > { %8031 = vrot.lane.b32.xlu1 %v9107_v43, %s8155_s16  ;;  %2175 = vmatpush.msra.mxu3 %v7818_v51  ;;  %v7828_v51 = vunpack.i.l.bf16 %v8941_v14  ;;  %v6783_v14 = vld [vmem:[%s12231_s2 + $0x298] sm:$0xff] }
 0x2a9   : > { %8061 = vrot.lane.b32.xlu2 %v9056_v27, %s8156_s28  ;;  %v2470_v32 = vsel %vm2463_vm3, %v7853_v48, %v7854_v53  ;;  %v8040_v27 = vpack.i.bf16 %v12312_v19, %v12319_v15  ;;  %v7754_v15 = vunpack.i.h.bf16 %v8827_v41  ;;  %v2490_v53 = vsel %vm2463_vm3, %v7798_v55, %v7799_v11  ;;  %v6782_v48 = vld [vmem:[%s12231_s2 + $0x290] sm:$0xff]  ;;  %6822 = vmatmul.msk.f32.gmra.mxu1 %vm1085_vm2, %v6783_v14 }
 0x2aa   : > { %2598 = vmatpush.msra.mxu0 %v2470_v32  ;;  %v9183_v63 = vpop.permute.xlu2 %7911  ;;  %v6786_v11 = vld [vmem:[%s12231_s2 + $0x2b0] sm:$0xff] }
 0x2ab   : > { %1735 = vmatmul.f32.gmra.mxu0 %v6782_v48 }
 0x2ac   : > { %1209 = vmatmul.f32.gmra.mxu2 %v6728_v28  ;;  %v7832_v60 = vpop.permute.xlu0 %7831 }
 0x2ad   : > { %v7834_v31 = vunpack.i.h.bf16 %v7832_v60  ;;  %v7833_v45 = vunpack.i.l.bf16 %v7832_v60  ;;  %v7843_v60 = vunpack.i.l.bf16 %v8964_v37 }
 0x2ae   : > { %8026 = vrot.lane.b32.xlu0 %v7980_v54, %s8156_s28  ;;  %v7867_v34 = vpop.permute.xlu1 %7866  ;;  %v7753_v54 = vunpack.i.l.bf16 %v8827_v41  ;;  %v6733_v41 = vld [vmem:[%s12231_s2 + $0x258] sm:$0xff] }
 0x2af   : > { %6754 = vmatmul.msk.f32.gmra.mxu3 %vm1085_vm2, %v6729_v17  ;;  %v7869_v57 = vunpack.i.h.bf16 %v7867_v34  ;;  %v7868_v20 = vunpack.i.l.bf16 %v7867_v34  ;;  %2100 = vmatpush.msra.mxu2 %v7834_v31  ;;  %v7844_v17 = vunpack.i.h.bf16 %v8964_v37  ;;  %v7859_v37 = vunpack.i.h.bf16 %v8991_v18 }
 0x2b0   : > { %8046 = vrot.lane.b32.xlu1 %v9032_v24, %s8156_s28  ;;  %2176 = vmatpush.msra.mxu3 %v7833_v45  ;;  %v6731_v24 = vld [vmem:[%s12231_s2 + $0x248] sm:$0xff]  ;;  %v2493_v58 = vsel %vm2463_vm3, %v7753_v54, %v7754_v15 }
 0x2b1   : > { %8076 = vrot.lane.b32.xlu2 %v8050_v1, %s8156_s28  ;;  %v2469_v23 = vsel %vm2463_vm3, %v7868_v20, %v7869_v57  ;;  %v2488_v57 = vsel %vm2463_vm3, %v7828_v51, %v7829_v8 }
 0x2b2   : > { %2599 = vmatpush.msra.mxu0 %v2469_v23  ;;  %v9132_v29 = vpop.f32.mrf.mxu2  ;;  %v7858_v23 = vunpack.i.l.bf16 %v8991_v18  ;;  %v6784_v18 = vld [vmem:[%s12231_s2 + $0x2a0] sm:$0xff] }
 0x2b3   : > { %1738 = vmatmul.f32.gmra.mxu0 %v6784_v18 }
 0x2b4   : > { %1212 = vmatmul.f32.gmra.mxu2 %v6730_v47  ;;  %v6736_v47 = vld [vmem:[%s12231_s2 + $0x270] sm:$0xf]  ;;  %v2486_v5 = vsel %vm2463_vm3, %v7858_v23, %v7859_v37  ;;  %v881_v37 = vld [vmem:[%s12231_s2 + $0x20] sm:$0xff] }
 0x2b5   : > { %v7847_v52 = vpop.permute.xlu0 %7846  ;;  %v9139_v49 = vpop.f32.mrf.mxu3 }
 0x2b6   : > { %8041 = vrot.lane.b32.xlu0 %v8040_v27, %s8155_s16  ;;  %v7849_v39 = vunpack.i.h.bf16 %v7847_v52  ;;  %v7848_v21 = vunpack.i.l.bf16 %v7847_v52 }
 0x2b7   : > { %6755 = vmatmul.msk.f32.gmra.mxu3 %vm1085_vm2, %v6731_v24  ;;  %v9219_v24 = vpop.permute.xlu2 %7926 }
 0x2b8   : > { %2836 = vrot.lane.b32.xlu1 %v12318_v35, %s8155_s16  ;;  %v2460_v19 = vpop.permute.xlu1 %2459  ;;  %2101 = vmatpush.msra.mxu2 %v7849_v39 }
 0x2b9   : > { %v2495_v4 = vsel %vm2463_vm3, %v2460_v19, %v2462_v9  ;;  %2177 = vmatpush.msra.mxu3 %v7848_v21  ;;  %v7813_v9 = vunpack.i.l.bf16 %v8914_v25  ;;  %v2487_v21 = vsel %vm2463_vm3, %v7843_v60, %v7844_v17  ;;  %v6737_v19 = vld [vmem:[%s12231_s2 + $0x278] sm:$0xf] }
 0x2ba   : > { %6942 = vmatpush.msk.msra.mxu1 %vm644_vm0, %v2495_v4  ;;  %v6785_v4 = vld [vmem:[%s12231_s2 + $0x2a8] sm:$0xff] }
 0x2bb   : > { %v9159_v30 = vpop.f32.mrf.mxu2  ;;  %v2489_v32 = vsel %vm2463_vm3, %v7813_v9, %v7814_v46  ;;  %6823 = vmatmul.msk.f32.gmra.mxu1 %vm1085_vm2, %v6785_v4  ;;  %1741 = vmatmul.f32.gmra.mxu0 %v6786_v11  ;;  %v7914_v9 = vunpack.i.h.bf16 %v9183_v63  ;;  %v883_v4 = vld [vmem:[%s12231_s2 + $0x30] sm:$0xff] }
 0x2bc   : > { %1215 = vmatmul.f32.gmra.mxu2 %v6732_v50  ;;  %2667 = vmatpush.msra.mxu1 %v2494_v7  ;;  %v7888_v50 = vunpack.i.l.bf16 %v9121_v56  ;;  %v7898_v7 = vunpack.i.l.bf16 %v9144_v59 }
 0x2bd   : > { %v9171_v44 = vpop.f32.mrf.mxu3 }
 0x2be   : > { %8056 = vrot.lane.b32.xlu0 %v9098_v16, %s8156_s28  ;;  %2668 = vmatpush.msra.mxu1 %v2493_v58  ;;  %v2484_v0 = vsel %vm2463_vm3, %v7888_v50, %v7889_v13  ;;  %v2483_v59 = vsel %vm2463_vm3, %v7898_v7, %v7899_v36  ;;  %v884_v7 = vld [vmem:[%s12231_s2 + $0x38] sm:$0xff] }
 0x2bf   : > { %6756 = vmatmul.msk.f32.gmra.mxu3 %vm1085_vm2, %v6733_v41  ;;  %v7862_v38 = vpop.permute.xlu0 %7861  ;;  %v9257_v55 = vpop.permute.xlu2 %7936 }
 0x2c0   : > { %8071 = vrot.lane.b32.xlu1 %v8040_v27, %s8156_s28  ;;  %v7864_v33 = vunpack.i.h.bf16 %v7862_v38  ;;  %v7863_v1 = vunpack.i.l.bf16 %v7862_v38  ;;  %2669 = vmatpush.msra.mxu1 %v2492_v62  ;;  %v878_v62 = vld [vmem:[%s12231_s2 + $0x8] sm:$0xff] }
 0x2c2   : > { %v7882_v26 = vpop.permute.xlu1 %7881  ;;  %2102 = vmatpush.msra.mxu2 %v7864_v33  ;;  %2178 = vmatpush.msra.mxu3 %v7863_v1  ;;  %v6787_v1 = vld [vmem:[%s12231_s2 + $0x2b8] sm:$0xff] }
 0x2c3   : > { %v7884_v16 = vunpack.i.h.bf16 %v7882_v26  ;;  %v7883_v6 = vunpack.i.l.bf16 %v7882_v26  ;;  %2670 = vmatpush.msra.mxu1 %v2491_v3  ;;  %v7913_v26 = vunpack.i.l.bf16 %v9183_v63  ;;  %v880_v63 = vld [vmem:[%s12231_s2 + $0x18] sm:$0xff] }
 0x2c4   : > { %1218 = vmatmul.f32.gmra.mxu2 %v6734_v22  ;;  %v1171_v25 = vpop.f32.mrf.mxu2  ;;  %6824 = vmatmul.msk.f32.gmra.mxu1 %vm1085_vm2, %v6787_v1  ;;  %v886_v1 = vld [vmem:[%s12231_s2 + $0x48] sm:$0xff] }
 0x2c5   : > { %v2468_v28 = vsel %vm2463_vm3, %v7883_v6, %v7884_v16  ;;  %2671 = vmatpush.msra.mxu1 %v2490_v53  ;;  %v879_v6 = vld [vmem:[%s12231_s2 + $0x10] sm:$0xff]  ;;  %v2465_v14 = vsel %vm2463_vm3, %v7913_v26, %v7914_v9  ;;  %v6795_v9 = vld [vmem:[%s12231_s2 + $0x2f8] sm:$0xff] }
 0x2c6   : > { %8066 = vrot.lane.b32.xlu0 %v9107_v43, %s8156_s28  ;;  %2600 = vmatpush.msra.mxu0 %v2468_v28  ;;  %v6788_v28 = vld [vmem:[%s12231_s2 + $0x2c0] sm:$0xff] }
 0x2c7   : > { %6757 = vmatmul.msk.f32.gmra.mxu3 %vm1085_vm2, %v6735_v10  ;;  %2672 = vmatpush.msra.mxu1 %v2489_v32  ;;  %v1248_v31 = vpop.f32.mrf.mxu3  ;;  %v6789_v32 = vld [vmem:[%s12231_s2 + $0x2c8] sm:$0xff]  ;;  %v9283_v17 = vpop.permute.xlu2 %7951 }
 0x2c8   : > { %v7877_v45 = vpop.permute.xlu0 %7876  ;;  %v9210_v34 = vadd.f32 %v1248_v31, %v1171_v25  ;;  %1744 = vmatmul.f32.gmra.mxu0 %v6788_v28  ;;  %v888_v28 = vld [vmem:[%s12231_s2 + $0x58] sm:$0xff] }
 0x2c9   : > { %v7879_v20 = vunpack.i.h.bf16 %v7877_v45  ;;  %v7878_v43 = vunpack.i.l.bf16 %v7877_v45  ;;  %2673 = vmatpush.msra.mxu1 %v2488_v57  ;;  %v7929_v57 = vunpack.i.h.bf16 %v9219_v24 }
 0x2ca   : > { %v7892_v27 = vpop.permute.xlu1 %7891 }
 0x2cb   : > { %v7894_v52 = vunpack.i.h.bf16 %v7892_v27  ;;  %v7893_v39 = vunpack.i.l.bf16 %v7892_v27  ;;  %2103 = vmatpush.msra.mxu2 %v7879_v20  ;;  %2179 = vmatpush.msra.mxu3 %v7878_v43  ;;  %v7928_v20 = vunpack.i.l.bf16 %v9219_v24  ;;  %v6790_v24 = vld [vmem:[%s12231_s2 + $0x2d0] sm:$0xff] }
 0x2cc   : > { %1221 = vmatmul.f32.gmra.mxu2 %v6736_v47  ;;  %2674 = vmatpush.msra.mxu1 %v2487_v21  ;;  %v882_v21 = vld [vmem:[%s12231_s2 + $0x28] sm:$0xff] }
 0x2cd   : > { %v2467_v15 = vsel %vm2463_vm3, %v7893_v39, %v7894_v52  ;;  %v1174_v54 = vpop.f32.mrf.mxu2  ;;  %6825 = vmatmul.msk.f32.gmra.mxu1 %vm1085_vm2, %v6789_v32  ;;  %v2480_v40 = vsel %vm2463_vm3, %v7928_v20, %v7929_v57  ;;  %v889_v20 = vld [vmem:[%s12231_s2 + $0x60] sm:$0xff] }
 0x2ce   : > { %3208 = vrot.lane.b32.xlu0 %v12318_v35, %s8156_s28  ;;  %2601 = vmatpush.msra.mxu0 %v2467_v15  ;;  %v877_v35 = vld [vmem:[%s12231_s2] sm:$0xff] }
 0x2cf   : > { %6758 = vmatmul.msk.f32.gmra.mxu3 %vm1085_vm2, %v6737_v19  ;;  %2675 = vmatpush.msra.mxu1 %v2486_v5  ;;  %v9310_v15 = vpop.permute.xlu2 %7961 }
 0x2d0   : > { %v1964_v41 = vpop.permute.xlu0 %1963  ;;  %v1251_v2 = vpop.f32.mrf.mxu3  ;;  %1747 = vmatmul.f32.gmra.mxu0 %v6790_v24  ;;  %v7964_v26 = vunpack.i.h.bf16 %v9310_v15  ;;  %v6798_v24 = vld [vmem:[%s12231_s2 + $0x310] sm:$0xff] }
 0x2d1   : > { %2676 = vmatpush.msra.mxu1 %v2485_v42  ;;  %v9244_v56 = vadd.f32 %v1251_v2, %v1174_v54  ;;  %2180 = vmatpush.msra.mxu3 %v1964_v41  ;;  %v6792_v41 = vld [vmem:[%s12231_s2 + $0x2e0] sm:$0xff]  ;;  %v7939_v42 = vunpack.i.h.bf16 %v9257_v55  ;;  %v6793_v2 = vld [vmem:[%s12231_s2 + $0x2e8] sm:$0xff] }
 0x2d2   : > { %v7907_v58 = vpop.permute.xlu1 %7906 }
 0x2d3   : > { %v7909_v12 = vunpack.i.h.bf16 %v7907_v58  ;;  %v7908_v38 = vunpack.i.l.bf16 %v7907_v58  ;;  %2677 = vmatpush.msra.mxu1 %v2484_v0 }
 0x2d4   : > { %1380 = vmatmul.f32.vlgmr.msrb.gmra.mxu2 %v877_v35 }
 0x2d5   : > { %2678 = vmatpush.msra.mxu1 %v2483_v59  ;;  %v2482_v33 = vsel %vm2463_vm3, %v7908_v38, %v7909_v12  ;;  %v885_v12 = vld [vmem:[%s12231_s2 + $0x40] sm:$0xff] }
 0x2d6   : > { %6826 = vmatmul.msk.f32.gmra.mxu1 %vm1085_vm2, %v6791_v61 }
 0x2d7   : > { %6760 = vmatmul.msk.f32.vlgmr.msrb.gmra.mxu3 %vm1085_vm2, %v878_v62  ;;  %2679 = vmatpush.msra.mxu1 %v2482_v33  ;;  %v1177_v22 = vpop.f32.mrf.mxu2  ;;  %v9339_v62 = vpop.permute.xlu2 %7976 }
 0x2d8   : > { %v7902_v46 = vpop.permute.xlu0 %7901  ;;  %1750 = vmatmul.f32.gmra.mxu0 %v6792_v41 }
 0x2d9   : > { %v7904_v3 = vunpack.i.h.bf16 %v7902_v46  ;;  %v7903_v16 = vunpack.i.l.bf16 %v7902_v46  ;;  %v7954_v46 = vunpack.i.h.bf16 %v9283_v17 }
 0x2da   : > { %v1254_v8 = vpop.f32.mrf.mxu3  ;;  %v7922_v51 = vpop.permute.xlu1 %7921 }
 0x2db   : > { %v9270_v10 = vadd.f32 %v1254_v8, %v1177_v22  ;;  %v7924_v53 = vunpack.i.h.bf16 %v7922_v51  ;;  %v7923_v25 = vunpack.i.l.bf16 %v7922_v51  ;;  %v2466_v48 = vsel %vm2463_vm3, %v7903_v16, %v7904_v3  ;;  %v6794_v22 = vld [vmem:[%s12231_s2 + $0x2f0] sm:$0xff] }
 0x2dc   : > { %1383 = vmatmul.f32.gmra.mxu2 %v879_v6  ;;  %2602 = vmatpush.msra.mxu0 %v2466_v48  ;;  %v887_v51 = vld [vmem:[%s12231_s2 + $0x50] sm:$0xff] }
 0x2dd   : > { %v2464_v31 = vsel %vm2463_vm3, %v7923_v25, %v7924_v53 }
 0x2de   : > { %2603 = vmatpush.msra.mxu0 %v2465_v14  ;;  %6827 = vmatmul.msk.f32.gmra.mxu1 %vm1085_vm2, %v6793_v2  ;;  %v6796_v14 = vld [vmem:[%s12231_s2 + $0x300] sm:$0xff]  ;;  %v892_v2 = vld [vmem:[%s12231_s2 + $0x78] sm:$0xff] }
 0x2df   : > { %6761 = vmatmul.msk.f32.gmra.mxu3 %vm1085_vm2, %v880_v63  ;;  %v1180_v60 = vpop.f32.mrf.mxu2  ;;  %v9371_v32 = vpop.permute.xlu2 %7991 }
 0x2e0   : > { %v7917_v45 = vpop.permute.xlu0 %7916  ;;  %2604 = vmatpush.msra.mxu0 %v2464_v31  ;;  %v7994_v41 = vunpack.i.h.bf16 %v9371_v32 }
 0x2e1   : > { %v7919_v43 = vunpack.i.h.bf16 %v7917_v45  ;;  %v7918_v47 = vunpack.i.l.bf16 %v7917_v45  ;;  %1753 = vmatmul.f32.gmra.mxu0 %v6794_v22 }
 0x2e2   : > { %v1257_v23 = vpop.f32.mrf.mxu3  ;;  %v9293_v27 = vpop.permute.xlu1 %7946 }
 0x2e3   : > { %v9295_v52 = vadd.f32 %v1257_v23, %v1180_v60  ;;  %v2481_v39 = vsel %vm2463_vm3, %v7918_v47, %v7919_v43  ;;  %v7949_v11 = vunpack.i.h.bf16 %v9293_v27  ;;  %v6797_v60 = vld [vmem:[%s12231_s2 + $0x308] sm:$0xff] }
 0x2e4   : > { %1386 = vmatmul.f32.gmra.mxu2 %v881_v37  ;;  %2680 = vmatpush.msra.mxu1 %v2481_v39  ;;  %v7979_v37 = vunpack.i.h.bf16 %v9339_v62  ;;  %v890_v39 = vld [vmem:[%s12231_s2 + $0x68] sm:$0xff] }
 0x2e6   : > { %2681 = vmatpush.msra.mxu1 %v2480_v40  ;;  %v6799_v40 = vld [vmem:[%s12231_s2 + $0x318] sm:$0xff] }
 0x2e7   : > { %6762 = vmatmul.msk.f32.gmra.mxu3 %vm1085_vm2, %v882_v21  ;;  %v1183_v19 = vpop.f32.mrf.mxu2  ;;  %6828 = vmatmul.msk.f32.gmra.mxu1 %vm1085_vm2, %v6795_v9  ;;  %v9399_v61 = vpop.permute.xlu2 %8006  ;;  %v893_v9 = vld [vmem:[%s12231_s2 + $0x80] sm:$0xff] }
 0x2e8   : > { %v7932_v18 = vpop.permute.xlu0 %7931 }
 0x2e9   : > { %v7933_v54 = vunpack.i.l.bf16 %v7932_v18  ;;  %v7934_v5 = vunpack.i.h.bf16 %v7932_v18  ;;  %1756 = vmatmul.f32.gmra.mxu0 %v6796_v14 }
 0x2ea   : > { %v1260_v13 = vpop.f32.mrf.mxu3  ;;  %v9315_v50 = vpop.permute.xlu1 %7971 }
 0x2eb   : > { %v9317_v36 = vadd.f32 %v1260_v13, %v1183_v19  ;;  %2961 = vmatpush.msrb.mxu2 %v7933_v54  ;;  %v7974_v6 = vunpack.i.h.bf16 %v9315_v50 }
 0x2ec   : > { %1389 = vmatmul.f32.gmra.mxu2 %v883_v4  ;;  %v891_v4 = vld [vmem:[%s12231_s2 + $0x70] sm:$0xff] }
 0x2ed   : > { %2962 = vmatpush.msrb.mxu2 %v7934_v5 }
 0x2ef   : > { %6763 = vmatmul.msk.f32.gmra.mxu3 %vm1085_vm2, %v884_v7  ;;  %v1186_v35 = vpop.f32.mrf.mxu2  ;;  %2963 = vmatpush.msrb.mxu2 %v7939_v42  ;;  %v7938_v7 = vunpack.i.l.bf16 %v9257_v55  ;;  %v6800_v55 = vld [vmem:[%s12231_s2 + $0x320] sm:$0xff]  ;;  %v9428_v22 = vpop.permute.xlu2 %8021 }
 0x2f0   : > { %v9330_v58 = vpop.permute.xlu0 %7941  ;;  %6829 = vmatmul.msk.f32.gmra.mxu1 %vm1085_vm2, %v6797_v60 }
 0x2f1   : > { %v7944_v0 = vunpack.i.h.bf16 %v9330_v58  ;;  %1759 = vmatmul.f32.gmra.mxu0 %v6798_v24 }
 0x2f2   : > { %v1263_v38 = vpop.f32.mrf.mxu3  ;;  %v9337_v59 = vpop.permute.xlu1 %7986 }
 0x2f3   : > { %v9342_v33 = vadd.f32 %v1263_v38, %v1186_v35  ;;  %2964 = vmatpush.msrb.mxu2 %v7944_v0  ;;  %v7989_v21 = vunpack.i.h.bf16 %v9337_v59  ;;  %v6801_v0 = vld [vmem:[%s12231_s2 + $0x328] sm:$0xff]  ;;  %v7988_v60 = vunpack.i.l.bf16 %v9337_v59 }
 0x2f4   : > { %1392 = vmatmul.f32.gmra.mxu2 %v885_v12  ;;  %v7943_v12 = vunpack.i.l.bf16 %v9330_v58  ;;  %v7953_v58 = vunpack.i.l.bf16 %v9283_v17  ;;  %v894_v17 = vld [vmem:[%s12231_s2 + $0x88] sm:$0xff] }
 0x2f5   : > { %2965 = vmatpush.msrb.mxu2 %v7949_v11  ;;  %v7948_v11 = vunpack.i.l.bf16 %v9293_v27 }
 0x2f7   : > { %6764 = vmatmul.msk.f32.gmra.mxu3 %vm1085_vm2, %v886_v1  ;;  %v1189_v3 = vpop.f32.mrf.mxu2  ;;  %2966 = vmatpush.msrb.mxu2 %v7954_v46 }
 0x2f8   : > { %v7957_v16 = vpop.permute.xlu0 %7956  ;;  %6830 = vmatmul.msk.f32.gmra.mxu1 %vm1085_vm2, %v6799_v40  ;;  %v8008_v40 = vunpack.i.l.bf16 %v9399_v61 }
 0x2f9   : > { %v7958_v8 = vunpack.i.l.bf16 %v7957_v16  ;;  %2967 = vmatpush.msrb.mxu2 %v7964_v26  ;;  %v7959_v48 = vunpack.i.h.bf16 %v7957_v16  ;;  %1762 = vmatmul.f32.gmra.mxu0 %v6800_v55  ;;  %v8009_v16 = vunpack.i.h.bf16 %v9399_v61  ;;  %v8023_v61 = vunpack.i.l.bf16 %v9428_v22  ;;  %v897_v55 = vld [vmem:[%s12231_s2 + $0xa0] sm:$0xff] }
 0x2fa   : > { %v1266_v53 = vpop.f32.mrf.mxu3  ;;  %v9361_v25 = vpop.permute.xlu1 %8001 }
 0x2fb   : > { %v9363_v63 = vadd.f32 %v1266_v53, %v1189_v3  ;;  %2968 = vmatpush.msrb.mxu2 %v7974_v6  ;;  %3333 = vmatpush.msrb.mxu0 %v7958_v8  ;;  %v8004_v35 = vunpack.i.h.bf16 %v9361_v25  ;;  %v7963_v8 = vunpack.i.l.bf16 %v9310_v15  ;;  %v6802_v53 = vld [vmem:[%s12231_s2 + $0x330] sm:$0xff]  ;;  %v6803_v15 = vld [vmem:[%s12231_s2 + $0x338] sm:$0xff]  ;;  %v8003_v24 = vunpack.i.l.bf16 %v9361_v25 }
 0x2fc   : > { %1395 = vmatmul.f32.gmra.mxu2 %v887_v51 }
 0x2fd   : > { %3334 = vmatpush.msrb.mxu0 %v7959_v48  ;;  %v7978_v48 = vunpack.i.l.bf16 %v9339_v62 }
 0x2ff   : > { %6765 = vmatmul.msk.f32.gmra.mxu3 %vm1085_vm2, %v888_v28  ;;  %v1192_v31 = vpop.f32.mrf.mxu2  ;;  %v7973_v28 = vunpack.i.l.bf16 %v9315_v50  ;;  %v7993_v50 = vunpack.i.l.bf16 %v9371_v32  ;;  %v896_v32 = vld [vmem:[%s12231_s2 + $0x98] sm:$0xff] }
 0x300   : > { %v9377_v45 = vpop.permute.xlu0 %7966  ;;  %6831 = vmatmul.msk.f32.gmra.mxu1 %vm1085_vm2, %v6801_v0 }
 0x301   : > { %v7969_v57 = vunpack.i.h.bf16 %v9377_v45  ;;  %v7968_v27 = vunpack.i.l.bf16 %v9377_v45  ;;  %1765 = vmatmul.f32.gmra.mxu0 %v6802_v53 }
 0x302   : > { %v1269_v43 = vpop.f32.mrf.mxu3  ;;  %v9384_v47 = vpop.permute.xlu1 %8016 }
 0x303   : > { %v9387_v23 = vadd.f32 %v1269_v43, %v1192_v31  ;;  %3335 = vmatpush.msrb.mxu0 %v7969_v57  ;;  %v8019_v51 = vunpack.i.h.bf16 %v9384_v47 }
 0x304   : > { %1398 = vmatmul.f32.gmra.mxu2 %v889_v20 }
 0x305   : > { %3336 = vmatpush.msrb.mxu0 %v7979_v37  ;;  %v895_v37 = vld [vmem:[%s12231_s2 + $0x90] sm:$0xff] }
 0x307   : > { %6766 = vmatmul.msk.f32.gmra.mxu3 %vm1085_vm2, %v890_v39  ;;  %v1195_v19 = vpop.f32.mrf.mxu2  ;;  %3337 = vmatpush.msrb.mxu0 %v7989_v21  ;;  %v8024_v39 = vunpack.i.h.bf16 %v9428_v22  ;;  %v8037_v21 = vpop.permute.xlu2 %8036 }
 0x308   : > { %v9402_v18 = vpop.permute.xlu0 %7981  ;;  %6832 = vmatmul.msk.f32.gmra.mxu1 %vm1085_vm2, %v6803_v15  ;;  %v8039_v0 = vunpack.i.h.bf16 %v8037_v21 }
 0x309   : > { %v7984_v54 = vunpack.i.h.bf16 %v9402_v18  ;;  %v7983_v31 = vunpack.i.l.bf16 %v9402_v18 }
 0x30a   : > { %v1272_v13 = vpop.f32.mrf.mxu3  ;;  %v2867_v5 = vpop.permute.xlu1 %2866 }
 0x30b   : > { %v9411_v42 = vadd.f32 %v1272_v13, %v1195_v19  ;;  %2969 = vmatpush.msrb.mxu2 %v7984_v54  ;;  %7003 = vmatpush.msk.msrb.mxu3 %vm644_vm0, %v2867_v5  ;;  %v6804_v54 = vld [vmem:[%s12231_s2 + $0x340] sm:$0xff]  ;;  %v6805_v13 = vld [vmem:[%s12231_s2 + $0x348] sm:$0xff] }
 0x30c   : > { %1401 = vmatmul.f32.gmra.mxu2 %v891_v4  ;;  %v8018_v4 = vunpack.i.l.bf16 %v9384_v47  ;;  %1768 = vmatmul.f32.gmra.mxu0 %v6804_v54 }
 0x30d   : > { %2970 = vmatpush.msrb.mxu2 %v7994_v41  ;;  %3039 = vmatpush.msrb.mxu3 %v7938_v7 }
 0x30f   : > { %6767 = vmatmul.msk.f32.gmra.mxu3 %vm1085_vm2, %v892_v2  ;;  %v1198_v38 = vpop.f32.mrf.mxu2  ;;  %2971 = vmatpush.msrb.mxu2 %v8004_v35  ;;  %v8052_v22 = vpop.permute.xlu2 %8051 }
 0x310   : > { %3040 = vmatpush.msrb.mxu3 %v7943_v12  ;;  %v7997_v1 = vpop.permute.xlu0 %7996  ;;  %6833 = vmatmul.msk.f32.gmra.mxu1 %vm1085_vm2, %v6805_v13 }
 0x311   : > { %v7999_v46 = vunpack.i.h.bf16 %v7997_v1  ;;  %v7998_v57 = vunpack.i.l.bf16 %v7997_v1 }
 0x312   : > { %v1275_v26 = vpop.f32.mrf.mxu3  ;;  %3041 = vmatpush.msrb.mxu3 %v7948_v11  ;;  %v3239_v3 = vpop.permute.xlu1 %3238  ;;  %v898_v11 = vld [vmem:[%s12231_s2 + $0xa8] sm:$0xff] }
 0x313   : > { %v9436_v6 = vadd.f32 %v1275_v26, %v1198_v38  ;;  %3338 = vmatpush.msrb.mxu0 %v7999_v46  ;;  %7064 = vmatpush.msk.msrb.mxu1 %vm644_vm0, %v3239_v3  ;;  %v8038_v38 = vunpack.i.l.bf16 %v8037_v21  ;;  %v6807_v26 = vld [vmem:[%s12231_s2 + $0x358] sm:$0xff] }
 0x314   : > { %3042 = vmatpush.msrb.mxu3 %v7953_v58  ;;  %1404 = vmatmul.f32.gmra.mxu2 %v893_v9  ;;  %v6806_v9 = vld [vmem:[%s12231_s2 + $0x350] sm:$0xff] }
 0x315   : > { %3339 = vmatpush.msrb.mxu0 %v8009_v16  ;;  %3411 = vmatpush.msrb.mxu1 %v7968_v27 }
 0x316   : > { %3043 = vmatpush.msrb.mxu3 %v7963_v8  ;;  %1771 = vmatmul.f32.gmra.mxu0 %v6806_v9 }
 0x317   : > { %6768 = vmatmul.msk.f32.gmra.mxu3 %vm1085_vm2, %v894_v17  ;;  %v1201_v14 = vpop.f32.mrf.mxu2  ;;  %3340 = vmatpush.msrb.mxu0 %v8019_v51  ;;  %v899_v17 = vld [vmem:[%s12231_s2 + $0xb0] sm:$0xff]  ;;  %v8053_v51 = vunpack.i.l.bf16 %v8052_v22 }
 0x318   : > { %3044 = vmatpush.msrb.mxu3 %v7973_v28  ;;  %3412 = vmatpush.msrb.mxu1 %v7978_v48  ;;  %v8012_v45 = vpop.permute.xlu0 %8011  ;;  %v8054_v48 = vunpack.i.h.bf16 %v8052_v22  ;;  %v900_v28 = vld [vmem:[%s12231_s2 + $0xb8] sm:$0xff] }
 0x319   : > { %v8014_v62 = vunpack.i.h.bf16 %v8012_v45  ;;  %v8013_v19 = vunpack.i.l.bf16 %v8012_v45  ;;  %6834 = vmatmul.msk.f32.gmra.mxu1 %vm1085_vm2, %v6807_v26  ;;  %v8062_v45 = vpop.permute.xlu2 %8061 }
 0x31a   : > { %v1278_v20 = vpop.f32.mrf.mxu3  ;;  %3045 = vmatpush.msrb.mxu3 %v7983_v31  ;;  %3413 = vmatpush.msrb.mxu1 %v7988_v60  ;;  %v8032_v43 = vpop.permute.xlu1 %8031  ;;  %v6809_v31 = vld [vmem:[%s12231_s2 + $0x368] sm:$0xff]  ;;  %v8063_v21 = vunpack.i.l.bf16 %v8062_v45 }
 0x31b   : > { %v9460_v59 = vadd.f32 %v1278_v20, %v1201_v14  ;;  %2972 = vmatpush.msrb.mxu2 %v8014_v62  ;;  %v8034_v18 = vunpack.i.h.bf16 %v8032_v43  ;;  %v8033_v2 = vunpack.i.l.bf16 %v8032_v43  ;;  %v6808_v14 = vld [vmem:[%s12231_s2 + $0x360] sm:$0xff] }
 0x31c   : > { %3046 = vmatpush.msrb.mxu3 %v7993_v50  ;;  %3414 = vmatpush.msrb.mxu1 %v7998_v57  ;;  %v901_v43 = vld [vmem:[%s12231_s2 + $0xc0] sm:$0xff] }
 0x31d   : > { %1407 = vmatmul.f32.gmra.mxu2 %v895_v37  ;;  %v8064_v37 = vunpack.i.h.bf16 %v8062_v45  ;;  %v6816_v45 = vld [vmem:[%s12231_s2 + $0x3a0] sm:$0xff] }
 0x31e   : > { %2973 = vmatpush.msrb.mxu2 %v8024_v39  ;;  %3047 = vmatpush.msrb.mxu3 %v8003_v24  ;;  %v902_v24 = vld [vmem:[%s12231_s2 + $0xc8] sm:$0xff] }
 0x31f   : > { %3415 = vmatpush.msrb.mxu1 %v8008_v40  ;;  %6769 = vmatmul.msk.f32.gmra.mxu3 %vm1085_vm2, %v896_v32  ;;  %v1204_v25 = vpop.f32.mrf.mxu2  ;;  %v6810_v32 = vld [vmem:[%s12231_s2 + $0x370] sm:$0xff] }
 0x320   : > { %2974 = vmatpush.msrb.mxu2 %v8034_v18  ;;  %3048 = vmatpush.msrb.mxu3 %v8013_v19  ;;  %v8027_v5 = vpop.permute.xlu0 %8026  ;;  %v6811_v19 = vld [vmem:[%s12231_s2 + $0x378] sm:$0xff] }
 0x321   : > { %3416 = vmatpush.msrb.mxu1 %v8018_v4  ;;  %v8029_v7 = vunpack.i.h.bf16 %v8027_v5  ;;  %v8028_v41 = vunpack.i.l.bf16 %v8027_v5  ;;  %1774 = vmatmul.f32.gmra.mxu0 %v6808_v14  ;;  %v8077_v13 = vpop.permute.xlu2 %8076  ;;  %v903_v5 = vld [vmem:[%s12231_s2 + $0xd0] sm:$0xff] }
 0x322   : > { %v1281_v35 = vpop.f32.mrf.mxu3  ;;  %3049 = vmatpush.msrb.mxu3 %v8023_v61  ;;  %v8047_v47 = vpop.permute.xlu1 %8046  ;;  %6835 = vmatmul.msk.f32.gmra.mxu1 %vm1085_vm2, %v6809_v31 }
 0x323   : > { %v9481_v12 = vadd.f32 %v1281_v35, %v1204_v25  ;;  %3341 = vmatpush.msrb.mxu0 %v8029_v7  ;;  %3417 = vmatpush.msrb.mxu1 %v8028_v41  ;;  %v8049_v1 = vunpack.i.h.bf16 %v8047_v47  ;;  %v8048_v46 = vunpack.i.l.bf16 %v8047_v47  ;;  %v9533_v35 = vpop.f32.mrf.mxu1 }
 0x324   : > { %3050 = vmatpush.msrb.mxu3 %v8033_v2  ;;  %v9531_v2 = vpop.f32.mrf.mxu0 }
 0x325   : > { %1410 = vmatmul.f32.gmra.mxu2 %v897_v55  ;;  %3342 = vmatpush.msrb.mxu0 %v8039_v0  ;;  %v904_v55 = vld [vmem:[%s12231_s2 + $0xd8] sm:$0xff]  ;;  %v8079_v0 = vunpack.i.h.bf16 %v8077_v13 }
 0x326   : > { %3418 = vmatpush.msrb.mxu1 %v8038_v38  ;;  %v8078_v38 = vunpack.i.l.bf16 %v8077_v13 }
 0x327   : > { %6770 = vmatmul.msk.f32.gmra.mxu3 %vm1085_vm2, %v898_v11  ;;  %v1207_v58 = vpop.f32.mrf.mxu2  ;;  %3343 = vmatpush.msrb.mxu0 %v8049_v1  ;;  %v6812_v11 = vld [vmem:[%s12231_s2 + $0x380] sm:$0xff] }
 0x328   : > { %3419 = vmatpush.msrb.mxu1 %v8048_v46  ;;  %v8042_v3 = vpop.permute.xlu0 %8041  ;;  %v6813_v46 = vld [vmem:[%s12231_s2 + $0x388] sm:$0xff] }
 0x329   : > { %v8044_v16 = vunpack.i.h.bf16 %v8042_v3  ;;  %v8043_v27 = vunpack.i.l.bf16 %v8042_v3  ;;  %1777 = vmatmul.f32.gmra.mxu0 %v6810_v32  ;;  %v1243_v32 = vadd.f32 %v9139_v49, %v9132_v29  ;;  %v912_v49 = vld [vmem:[%s12231_s2 + $0x118] sm:$0xff] }
 0x32a   : > { %v1284_v8 = vpop.f32.mrf.mxu3  ;;  %v2837_v15 = vpop.permute.xlu1 %2836  ;;  %6836 = vmatmul.msk.f32.gmra.mxu1 %vm1085_vm2, %v6811_v19 }
 0x32b   : > { %v9497_v53 = vadd.f32 %v1284_v8, %v1207_v58  ;;  %2975 = vmatpush.msrb.mxu2 %v8044_v16  ;;  %3051 = vmatpush.msrb.mxu3 %v8043_v27  ;;  %v905_v58 = vld [vmem:[%s12231_s2 + $0xe0] sm:$0xff]  ;;  %v906_v16 = vld [vmem:[%s12231_s2 + $0xe8] sm:$0xff]  ;;  %v9556_v27 = vpop.f32.mrf.mxu1  ;;  %v6814_v8 = vld [vmem:[%s12231_s2 + $0x390] sm:$0xff] }
 0x32c   : > { %v9551_v3 = vpop.f32.mrf.mxu0 }
 0x32d   : > { %1413 = vmatmul.f32.gmra.mxu2 %v899_v17  ;;  %3052 = vmatpush.msrb.mxu3 %v8053_v51  ;;  %v6815_v51 = vld [vmem:[%s12231_s2 + $0x398] sm:$0xff] }
 0x32e   : > { %2976 = vmatpush.msrb.mxu2 %v8054_v48 }
 0x32f   : > { %6771 = vmatmul.msk.f32.gmra.mxu3 %vm1085_vm2, %v900_v28  ;;  %v1210_v60 = vpop.f32.mrf.mxu2  ;;  %v907_v28 = vld [vmem:[%s12231_s2 + $0xf0] sm:$0xff] }
 0x330   : > { %3053 = vmatpush.msrb.mxu3 %v2837_v15  ;;  %v8057_v62 = vpop.permute.xlu0 %8056 }
 0x331   : > { %v8059_v50 = vunpack.i.h.bf16 %v8057_v62  ;;  %v8058_v57 = vunpack.i.l.bf16 %v8057_v62  ;;  %1780 = vmatmul.f32.gmra.mxu0 %v6812_v11  ;;  %v913_v11 = vld [vmem:[%s12231_s2 + $0x120] sm:$0xff] }
 0x332   : > { %v1287_v20 = vpop.f32.mrf.mxu3  ;;  %v8072_v18 = vpop.permute.xlu1 %8071  ;;  %6837 = vmatmul.msk.f32.gmra.mxu1 %vm1085_vm2, %v6813_v46 }
 0x333   : > { %v9513_v39 = vadd.f32 %v1287_v20, %v1210_v60  ;;  %3344 = vmatpush.msrb.mxu0 %v8059_v50  ;;  %3420 = vmatpush.msrb.mxu1 %v8058_v57  ;;  %v8074_v7 = vunpack.i.h.bf16 %v8072_v18  ;;  %v8073_v47 = vunpack.i.l.bf16 %v8072_v18  ;;  %v908_v60 = vld [vmem:[%s12231_s2 + $0xf8] sm:$0xff]  ;;  %v6817_v50 = vld [vmem:[%s12231_s2 + $0x3a8] sm:$0xff]  ;;  %v909_v20 = vld [vmem:[%s12231_s2 + $0x100] sm:$0xff] }
 0x334   : > { %v9571_v14 = vpop.f32.mrf.mxu0 }
 0x335   : > { %1416 = vmatmul.f32.gmra.mxu2 %v901_v43  ;;  %3345 = vmatpush.msrb.mxu0 %v8064_v37 }
 0x336   : > { %3421 = vmatpush.msrb.mxu1 %v8063_v21  ;;  %v910_v21 = vld [vmem:[%s12231_s2 + $0x108] sm:$0xff] }
 0x337   : > { %6772 = vmatmul.msk.f32.gmra.mxu3 %vm1085_vm2, %v902_v24  ;;  %v1213_v40 = vpop.f32.mrf.mxu2 }
 0x338   : > { %v8067_v54 = vpop.permute.xlu0 %8066  ;;  %v9576_v31 = vpop.f32.mrf.mxu1 }
 0x339   : > { %v8069_v4 = vunpack.i.h.bf16 %v8067_v54  ;;  %v8068_v25 = vunpack.i.l.bf16 %v8067_v54  ;;  %1783 = vmatmul.f32.gmra.mxu0 %v6814_v8  ;;  %v6819_v54 = vld [vmem:[%s12231_s2 + $0x3b8] sm:$0xf] }
 0x33a   : > { %v1290_v61 = vpop.f32.mrf.mxu3  ;;  %6838 = vmatmul.msk.f32.gmra.mxu1 %vm1085_vm2, %v6815_v51 }
 0x33b   : > { %v9529_v41 = vadd.f32 %v1290_v61, %v1213_v40  ;;  %3346 = vmatpush.msrb.mxu0 %v8069_v4  ;;  %3422 = vmatpush.msrb.mxu1 %v8068_v25  ;;  %v6818_v40 = vld [vmem:[%s12231_s2 + $0x3b0] sm:$0xf] }
 0x33c   : > { %v9591_v37 = vpop.f32.mrf.mxu0  ;;  %v911_v25 = vld [vmem:[%s12231_s2 + $0x110] sm:$0xff] }
 0x33d   : > { %1419 = vmatmul.f32.gmra.mxu2 %v903_v5  ;;  %3347 = vmatpush.msrb.mxu0 %v8074_v7  ;;  %v1246_v5 = vadd.f32 %v9171_v44, %v9159_v30  ;;  %v914_v44 = vld [vmem:[%s12231_s2 + $0x128] sm:$0xff] }
 0x33e   : > { %3423 = vmatpush.msrb.mxu1 %v8073_v47  ;;  %v6902_v47 = vld [vmem:[%s12231_s2 + $0x500] sm:$0xff] }
 0x33f   : > { %6773 = vmatmul.msk.f32.gmra.mxu3 %vm1085_vm2, %v904_v55  ;;  %v1216_v1 = vpop.f32.mrf.mxu2  ;;  %3348 = vmatpush.msrb.mxu0 %v8079_v0  ;;  %v6903_v0 = vld [vmem:[%s12231_s2 + $0x508] sm:$0xff] }
 0x340   : > { %3424 = vmatpush.msrb.mxu1 %v8078_v38  ;;  %v3209_v22 = vpop.permute.xlu0 %3208 }
 0x341   : > { %1786 = vmatmul.f32.gmra.mxu0 %v6816_v45  ;;  %v9596_v24 = vpop.f32.mrf.mxu1  ;;  %v6906_v45 = vld [vmem:[%s12231_s2 + $0x520] sm:$0xff] }
 0x342   : > { %v1293_v9 = vpop.f32.mrf.mxu3  ;;  %3425 = vmatpush.msrb.mxu1 %v3209_v22 }
 0x343   : > { %v9548_v26 = vadd.f32 %v1293_v9, %v1216_v1  ;;  %6839 = vmatmul.msk.f32.gmra.mxu1 %vm1085_vm2, %v6817_v50  ;;  %v6904_v9 = vld [vmem:[%s12231_s2 + $0x510] sm:$0xff]  ;;  %v6907_v50 = vld [vmem:[%s12231_s2 + $0x528] sm:$0xff] }
 0x345   : > { %1422 = vmatmul.f32.gmra.mxu2 %v905_v58  ;;  %v9613_v29 = vpop.f32.mrf.mxu0 }
 0x347   : > { %6774 = vmatmul.msk.f32.gmra.mxu3 %vm1085_vm2, %v906_v16  ;;  %v1219_v17 = vpop.f32.mrf.mxu2  ;;  %v6905_v16 = vld [vmem:[%s12231_s2 + $0x518] sm:$0xff] }
 0x349   : > { %1789 = vmatmul.f32.gmra.mxu0 %v6818_v40 }
 0x34a   : > { %v1296_v48 = vpop.f32.mrf.mxu3  ;;  %v9618_v61 = vpop.f32.mrf.mxu1 }
 0x34b   : > { %v9568_v15 = vadd.f32 %v1296_v48, %v1219_v17  ;;  %6840 = vmatmul.msk.f32.gmra.mxu1 %vm1085_vm2, %v6819_v54  ;;  %v915_v17 = vld [vmem:[%s12231_s2 + $0x130] sm:$0xf] }
 0x34d   : > { %1425 = vmatmul.f32.gmra.mxu2 %v907_v28  ;;  %v9635_v30 = vpop.f32.mrf.mxu0 }
 0x34f   : > { %6775 = vmatmul.msk.f32.gmra.mxu3 %vm1085_vm2, %v908_v60  ;;  %v1222_v62 = vpop.f32.mrf.mxu2 }
 0x351   : > { %2605 = vmatmul.f32.vlgmr.msra.gmra.mxu0 %v6902_v47 }
 0x352   : > { %v1299_v57 = vpop.f32.mrf.mxu3 }
 0x353   : > { %v9588_v43 = vadd.f32 %v1299_v57, %v1222_v62  ;;  %6943 = vmatmul.msk.f32.vlgmr.msra.gmra.mxu1 %vm1085_vm2, %v6903_v0  ;;  %v9640_v22 = vpop.f32.mrf.mxu1  ;;  %v6910_v0 = vld [vmem:[%s12231_s2 + $0x540] sm:$0xff] }
 0x355   : > { %1428 = vmatmul.f32.gmra.mxu2 %v909_v20  ;;  %v9656_v48 = vpop.f32.mrf.mxu0  ;;  %v6841_v20 = vld [vmem:[%s12231_s2 + $0x3c0] sm:$0xff] }
 0x357   : > { %6776 = vmatmul.msk.f32.gmra.mxu3 %vm1085_vm2, %v910_v21  ;;  %v1381_v19 = vpop.f32.mrf.mxu2 }
 0x358   : > { %v1382_v18 = vadd.f32 %v1381_v19, %v1243_v32 }
 0x359   : > { %2608 = vmatmul.f32.gmra.mxu0 %v6904_v9 }
 0x35a   : > { %v1458_v4 = vpop.f32.mrf.mxu3 }
 0x35b   : > { %v9610_v13 = vadd.f32 %v1458_v4, %v1382_v18  ;;  %6944 = vmatmul.msk.f32.gmra.mxu1 %vm1085_vm2, %v6905_v16  ;;  %v9661_v28 = vpop.f32.mrf.mxu1  ;;  %v6908_v18 = vld [vmem:[%s12231_s2 + $0x530] sm:$0xff]  ;;  %v6909_v4 = vld [vmem:[%s12231_s2 + $0x538] sm:$0xff] }
 0x35d   : > { %1431 = vmatmul.f32.gmra.mxu2 %v911_v25 }
 0x35e   : > { %v9677_v32 = vpop.f32.mrf.mxu0 }
 0x35f   : > { %6777 = vmatmul.msk.f32.gmra.mxu3 %vm1085_vm2, %v912_v49  ;;  %v1384_v7 = vpop.f32.mrf.mxu2  ;;  %v6843_v49 = vld [vmem:[%s12231_s2 + $0x3d0] sm:$0xff] }
 0x360   : > { %v1385_v55 = vadd.f32 %v1384_v7, %v1246_v5 }
 0x361   : > { %2611 = vmatmul.f32.gmra.mxu0 %v6906_v45 }
 0x362   : > { %v1461_v38 = vpop.f32.mrf.mxu3 }
 0x363   : > { %v9632_v1 = vadd.f32 %v1461_v38, %v1385_v55  ;;  %6945 = vmatmul.msk.f32.gmra.mxu1 %vm1085_vm2, %v6907_v50 }
 0x364   : > { %v9682_v40 = vpop.f32.mrf.mxu1 }
 0x365   : > { %1434 = vmatmul.f32.gmra.mxu2 %v913_v11  ;;  %v6911_v11 = vld [vmem:[%s12231_s2 + $0x548] sm:$0xff] }
 0x366   : > { %v9698_v7 = vpop.f32.mrf.mxu0 }
 0x367   : > { %6778 = vmatmul.msk.f32.gmra.mxu3 %vm1085_vm2, %v914_v44  ;;  %v1387_v46 = vpop.f32.mrf.mxu2 }
 0x368   : > { %v1388_v58 = vadd.f32 %v1387_v46, %v9210_v34  ;;  %v916_v34 = vld [vmem:[%s12231_s2 + $0x138] sm:$0xf]  ;;  %v6845_v46 = vld [vmem:[%s12231_s2 + $0x3e0] sm:$0xff] }
 0x369   : > { %2614 = vmatmul.f32.gmra.mxu0 %v6908_v18 }
 0x36a   : > { %v1464_v8 = vpop.f32.mrf.mxu3 }
 0x36b   : > { %v9653_v51 = vadd.f32 %v1464_v8, %v1388_v58  ;;  %6946 = vmatmul.msk.f32.gmra.mxu1 %vm1085_vm2, %v6909_v4 }
 0x36d   : > { %1437 = vmatmul.f32.gmra.mxu2 %v915_v17  ;;  %v9703_v47 = vpop.f32.mrf.mxu1  ;;  %v6912_v17 = vld [vmem:[%s12231_s2 + $0x550] sm:$0xff] }
 0x36e   : > { %v9719_v58 = vpop.f32.mrf.mxu0 }
 0x36f   : > { %6779 = vmatmul.msk.f32.gmra.mxu3 %vm1085_vm2, %v916_v34  ;;  %v1390_v60 = vpop.f32.mrf.mxu2 }
 0x370   : > { %v1391_v62 = vadd.f32 %v1390_v60, %v9244_v56  ;;  %v6842_v56 = vld [vmem:[%s12231_s2 + $0x3c8] sm:$0xff]  ;;  %v6913_v60 = vld [vmem:[%s12231_s2 + $0x558] sm:$0xff] }
 0x371   : > { %2617 = vmatmul.f32.gmra.mxu0 %v6910_v0 }
 0x372   : > { %v1467_v57 = vpop.f32.mrf.mxu3 }
 0x373   : > { %v9674_v21 = vadd.f32 %v1467_v57, %v1391_v62  ;;  %6947 = vmatmul.msk.f32.gmra.mxu1 %vm1085_vm2, %v6911_v11  ;;  %v6847_v62 = vld [vmem:[%s12231_s2 + $0x3f0] sm:$0xff] }
 0x375   : > { %2104 = vmatmul.f32.vlgmr.msra.gmra.mxu2 %v6841_v20  ;;  %v9724_v16 = vpop.f32.mrf.mxu1 }
 0x376   : > { %v9740_v57 = vpop.f32.mrf.mxu0 }
 0x377   : > { %6882 = vmatmul.msk.f32.vlgmr.msra.gmra.mxu3 %vm1085_vm2, %v6842_v56  ;;  %v1393_v19 = vpop.f32.mrf.mxu2 }
 0x378   : > { %v1394_v54 = vadd.f32 %v1393_v19, %v9270_v10  ;;  %v6844_v10 = vld [vmem:[%s12231_s2 + $0x3d8] sm:$0xff]  ;;  %v6914_v19 = vld [vmem:[%s12231_s2 + $0x560] sm:$0xff] }
 0x379   : > { %2620 = vmatmul.f32.gmra.mxu0 %v6912_v17  ;;  %v6852_v17 = vld [vmem:[%s12231_s2 + $0x418] sm:$0xff] }
 0x37a   : > { %v1470_v25 = vpop.f32.mrf.mxu3 }
 0x37b   : > { %v9695_v5 = vadd.f32 %v1470_v25, %v1394_v54  ;;  %6948 = vmatmul.msk.f32.gmra.mxu1 %vm1085_vm2, %v6913_v60  ;;  %v6915_v54 = vld [vmem:[%s12231_s2 + $0x568] sm:$0xff]  ;;  %v6849_v25 = vld [vmem:[%s12231_s2 + $0x400] sm:$0xff] }
 0x37c   : > { %v6918_v60 = vld [vmem:[%s12231_s2 + $0x580] sm:$0xff] }
 0x37d   : > { %2107 = vmatmul.f32.gmra.mxu2 %v6843_v49  ;;  %v9745_v20 = vpop.f32.mrf.mxu1 }
 0x37f   : > { %6883 = vmatmul.msk.f32.gmra.mxu3 %vm1085_vm2, %v6844_v10  ;;  %v1396_v55 = vpop.f32.mrf.mxu2  ;;  %v6850_v10 = vld [vmem:[%s12231_s2 + $0x408] sm:$0xff] }
 0x380   : > { %v1397_v38 = vadd.f32 %v1396_v55, %v9295_v52  ;;  %v6846_v52 = vld [vmem:[%s12231_s2 + $0x3e8] sm:$0xff]  ;;  %v9764_v55 = vpop.f32.mrf.mxu0 }
 0x381   : > { %2623 = vmatmul.f32.gmra.mxu0 %v6914_v19  ;;  %v6853_v19 = vld [vmem:[%s12231_s2 + $0x420] sm:$0xff] }
 0x382   : > { %v1473_v44 = vpop.f32.mrf.mxu3 }
 0x383   : > { %v9716_v9 = vadd.f32 %v1473_v44, %v1397_v38  ;;  %6949 = vmatmul.msk.f32.gmra.mxu1 %vm1085_vm2, %v6915_v54  ;;  %v6916_v38 = vld [vmem:[%s12231_s2 + $0x570] sm:$0xff]  ;;  %v6917_v44 = vld [vmem:[%s12231_s2 + $0x578] sm:$0xff]  ;;  %v6854_v54 = vld [vmem:[%s12231_s2 + $0x428] sm:$0xff] }
 0x385   : > { %2110 = vmatmul.f32.gmra.mxu2 %v6845_v46 }
 0x387   : > { %6884 = vmatmul.msk.f32.gmra.mxu3 %vm1085_vm2, %v6846_v52  ;;  %v1399_v8 = vpop.f32.mrf.mxu2  ;;  %v6851_v52 = vld [vmem:[%s12231_s2 + $0x410] sm:$0xff] }
 0x388   : > { %v1400_v34 = vadd.f32 %v1399_v8, %v9317_v36  ;;  %v6848_v36 = vld [vmem:[%s12231_s2 + $0x3f8] sm:$0xff] }
 0x389   : > { %2626 = vmatmul.f32.gmra.mxu0 %v6916_v38 }
 0x38a   : > { %v1476_v45 = vpop.f32.mrf.mxu3 }
 0x38b   : > { %v9737_v50 = vadd.f32 %v1476_v45, %v1400_v34  ;;  %6950 = vmatmul.msk.f32.gmra.mxu1 %vm1085_vm2, %v6917_v44  ;;  %v6855_v44 = vld [vmem:[%s12231_s2 + $0x430] sm:$0xff] }
 0x38d   : > { %2113 = vmatmul.f32.gmra.mxu2 %v6847_v62  ;;  %v6919_v62 = vld [vmem:[%s12231_s2 + $0x588] sm:$0xff] }
 0x38f   : > { %6885 = vmatmul.msk.f32.gmra.mxu3 %vm1085_vm2, %v6848_v36  ;;  %v1402_v56 = vpop.f32.mrf.mxu2 }
 0x390   : > { %v1403_v18 = vadd.f32 %v1402_v56, %v9342_v33  ;;  %v9766_v33 = vpop.f32.mrf.mxu1 }
 0x391   : > { %2629 = vmatmul.f32.gmra.mxu0 %v6918_v60  ;;  %v6922_v60 = vld [vmem:[%s12231_s2 + $0x5a0] sm:$0xff] }
 0x392   : > { %v1479_v4 = vpop.f32.mrf.mxu3 }
 0x393   : > { %v9758_v49 = vadd.f32 %v1479_v4, %v1403_v18  ;;  %6951 = vmatmul.msk.f32.gmra.mxu1 %vm1085_vm2, %v6919_v62  ;;  %v6923_v62 = vld [vmem:[%s12231_s2 + $0x5a8] sm:$0xff] }
 0x395   : > { %2116 = vmatmul.f32.gmra.mxu2 %v6849_v25  ;;  %v6920_v25 = vld [vmem:[%s12231_s2 + $0x590] sm:$0xff] }
 0x397   : > { %6886 = vmatmul.msk.f32.gmra.mxu3 %vm1085_vm2, %v6850_v10  ;;  %v1405_v0 = vpop.f32.mrf.mxu2 }
 0x398   : > { %v1406_v11 = vadd.f32 %v1405_v0, %v9363_v63  ;;  %v9785_v63 = vpop.f32.mrf.mxu0  ;;  %v9788_v34 = vpop.f32.mrf.mxu1  ;;  %v6921_v0 = vld [vmem:[%s12231_s2 + $0x598] sm:$0xff] }
 0x399   : > { %2632 = vmatmul.f32.gmra.mxu0 %v6920_v25  ;;  %v6858_v25 = vld [vmem:[%s12231_s2 + $0x448] sm:$0xff] }
 0x39a   : > { %v1482_v46 = vpop.f32.mrf.mxu3 }
 0x39b   : > { %v9779_v8 = vadd.f32 %v1482_v46, %v1406_v11  ;;  %6952 = vmatmul.msk.f32.gmra.mxu1 %vm1085_vm2, %v6921_v0  ;;  %v6924_v0 = vld [vmem:[%s12231_s2 + $0x5b0] sm:$0xff] }
 0x39d   : > { %2119 = vmatmul.f32.gmra.mxu2 %v6851_v52  ;;  %v6856_v52 = vld [vmem:[%s12231_s2 + $0x438] sm:$0xff] }
 0x39f   : > { %6887 = vmatmul.msk.f32.gmra.mxu3 %vm1085_vm2, %v6852_v17 }
 0x3a0   : > { %v1408_v45 = vpop.f32.mrf.mxu2  ;;  %v9806_v4 = vpop.f32.mrf.mxu0 }
 0x3a1   : > { %v1409_v36 = vadd.f32 %v1408_v45, %v9387_v23  ;;  %v9809_v23 = vpop.f32.mrf.mxu1  ;;  %2635 = vmatmul.f32.gmra.mxu0 %v6922_v60  ;;  %v6859_v60 = vld [vmem:[%s12231_s2 + $0x450] sm:$0xff] }
 0x3a2   : > { %v1485_v56 = vpop.f32.mrf.mxu3 }
 0x3a3   : > { %v9800_v18 = vadd.f32 %v1485_v56, %v1409_v36  ;;  %6953 = vmatmul.msk.f32.gmra.mxu1 %vm1085_vm2, %v6923_v62  ;;  %v6860_v62 = vld [vmem:[%s12231_s2 + $0x458] sm:$0xff] }
 0x3a5   : > { %2122 = vmatmul.f32.gmra.mxu2 %v6853_v19  ;;  %v6857_v19 = vld [vmem:[%s12231_s2 + $0x440] sm:$0xff] }
 0x3a7   : > { %6888 = vmatmul.msk.f32.gmra.mxu3 %vm1085_vm2, %v6854_v54 }
 0x3a8   : > { %v1411_v10 = vpop.f32.mrf.mxu2  ;;  %v9827_v17 = vpop.f32.mrf.mxu0 }
 0x3a9   : > { %v1412_v38 = vadd.f32 %v1411_v10, %v9411_v42  ;;  %12331 = vst [vmem:[#allocation17_spill] sm:$0xff] %v9827_v17  ;;  %v9830_v42 = vpop.f32.mrf.mxu1  ;;  %2638 = vmatmul.f32.gmra.mxu0 %v6924_v0 }
 0x3aa   : > { %v1488_v11 = vpop.f32.mrf.mxu3  ;;  %12332 = vst [vmem:[#allocation22_spill] sm:$0xff] %v9830_v42  ;;  %v6868_v42 = vld [vmem:[%s12231_s2 + $0x498] sm:$0xff] }
 0x3ab   : > { %v9821_v46 = vadd.f32 %v1488_v11, %v1412_v38  ;;  %v6925_v11 = vld [vmem:[%s12231_s2 + $0x5b8] sm:$0xff] }
 0x3ac   : > { %6954 = vmatmul.msk.f32.gmra.mxu1 %vm1085_vm2, %v6925_v11  ;;  %v6861_v11 = vld [vmem:[%s12231_s2 + $0x460] sm:$0xff] }
 0x3ad   : > { %2125 = vmatmul.f32.gmra.mxu2 %v6855_v44 }
 0x3af   : > { %6889 = vmatmul.msk.f32.gmra.mxu3 %vm1085_vm2, %v6856_v52 }
 0x3b0   : > { %v1414_v45 = vpop.f32.mrf.mxu2  ;;  %v9848_v10 = vpop.f32.mrf.mxu0 }
 0x3b1   : > { %v1415_v36 = vadd.f32 %v1414_v45, %v9436_v6  ;;  %12333 = vst [vmem:[#allocation10_spill] sm:$0xff] %v9848_v10  ;;  %v9851_v6 = vpop.f32.mrf.mxu1 }
 0x3b2   : > { %v1491_v56 = vpop.f32.mrf.mxu3  ;;  %12334 = vst [vmem:[#allocation8_spill] sm:$0xff] %v9851_v6 }
 0x3b3   : > { %v9842_v54 = vadd.f32 %v1491_v56, %v1415_v36 }
 0x3b5   : > { %2128 = vmatmul.f32.gmra.mxu2 %v6857_v19 }
 0x3b7   : > { %6890 = vmatmul.msk.f32.gmra.mxu3 %vm1085_vm2, %v6858_v25  ;;  %v6927_v25 = vld [vmem:[%s12231_s2 + $0x5c8] sm:$0xff] }
 0x3b8   : > { %v1417_v38 = vpop.f32.mrf.mxu2  ;;  %v1781_v36 = vpop.f32.mrf.mxu0  ;;  %6955 = vmatmul.msk.f32.gmra.mxu1 %vm1085_vm2, %v6927_v25 }
 0x3b9   : > { %v1418_v44 = vadd.f32 %v1417_v38, %v9460_v59  ;;  %v6926_v59 = vld [vmem:[%s12231_s2 + $0x5c0] sm:$0xff]  ;;  %v1858_v19 = vpop.f32.mrf.mxu1 }
 0x3ba   : > { %v1494_v52 = vpop.f32.mrf.mxu3  ;;  %2641 = vmatmul.f32.gmra.mxu0 %v6926_v59 }
 0x3bb   : > { %v9863_v45 = vadd.f32 %v1494_v52, %v1418_v44  ;;  %v6862_v52 = vld [vmem:[%s12231_s2 + $0x468] sm:$0xff] }
 0x3bd   : > { %2131 = vmatmul.f32.gmra.mxu2 %v6859_v60 }
 0x3bf   : > { %6891 = vmatmul.msk.f32.gmra.mxu3 %vm1085_vm2, %v6860_v62 }
 0x3c0   : > { %v1420_v56 = vpop.f32.mrf.mxu2  ;;  %v1784_v60 = vpop.f32.mrf.mxu0 }
 0x3c1   : > { %v1421_v0 = vadd.f32 %v1420_v56, %v9481_v12  ;;  %v6928_v12 = vld [vmem:[%s12231_s2 + $0x5d0] sm:$0xff]  ;;  %v1861_v59 = vpop.f32.mrf.mxu1  ;;  %v6929_v56 = vld [vmem:[%s12231_s2 + $0x5d8] sm:$0xff] }
 0x3c2   : > { %v1497_v38 = vpop.f32.mrf.mxu3  ;;  %2644 = vmatmul.f32.gmra.mxu0 %v6928_v12  ;;  %6956 = vmatmul.msk.f32.gmra.mxu1 %vm1085_vm2, %v6929_v56 }
 0x3c3   : > { %v9880_v44 = vadd.f32 %v1497_v38, %v1421_v0  ;;  %v6863_v38 = vld [vmem:[%s12231_s2 + $0x470] sm:$0xff] }
 0x3c5   : > { %12335 = vst [vmem:[#allocation6_spill] sm:$0xff] %v9880_v44  ;;  %2134 = vmatmul.f32.gmra.mxu2 %v6861_v11 }
 0x3c7   : > { %6892 = vmatmul.msk.f32.gmra.mxu3 %vm1085_vm2, %v6862_v52  ;;  %v6864_v52 = vld [vmem:[%s12231_s2 + $0x478] sm:$0xff] }
 0x3c8   : > { %v1423_v62 = vpop.f32.mrf.mxu2  ;;  %v1787_v6 = vpop.f32.mrf.mxu0 }
 0x3c9   : > { %v1424_v25 = vadd.f32 %v1423_v62, %v9497_v53  ;;  %v6930_v53 = vld [vmem:[%s12231_s2 + $0x5e0] sm:$0xff]  ;;  %v1864_v62 = vpop.f32.mrf.mxu1 }
 0x3ca   : > { %v1500_v0 = vpop.f32.mrf.mxu3  ;;  %2647 = vmatmul.f32.gmra.mxu0 %v6930_v53 }
 0x3cb   : > { %v9897_v11 = vadd.f32 %v1500_v0, %v1424_v25  ;;  %v6931_v25 = vld [vmem:[%s12231_s2 + $0x5e8] sm:$0xff] }
 0x3cc   : > { %6957 = vmatmul.msk.f32.gmra.mxu1 %vm1085_vm2, %v6931_v25 }
 0x3cd   : > { %12336 = vst [vmem:[#allocation12_spill] sm:$0xff] %v9897_v11  ;;  %2137 = vmatmul.f32.gmra.mxu2 %v6863_v38  ;;  %v6865_v38 = vld [vmem:[%s12231_s2 + $0x480] sm:$0xff] }
 0x3cf   : > { %6893 = vmatmul.msk.f32.gmra.mxu3 %vm1085_vm2, %v6864_v52  ;;  %v6866_v52 = vld [vmem:[%s12231_s2 + $0x488] sm:$0xff] }
 0x3d0   : > { %v1426_v12 = vpop.f32.mrf.mxu2  ;;  %v1790_v11 = vpop.f32.mrf.mxu0 }
 0x3d1   : > { %v1427_v56 = vadd.f32 %v1426_v12, %v9513_v39  ;;  %v6932_v39 = vld [vmem:[%s12231_s2 + $0x5f0] sm:$0xff]  ;;  %v1867_v12 = vpop.f32.mrf.mxu1 }
 0x3d2   : > { %v1503_v0 = vpop.f32.mrf.mxu3  ;;  %2650 = vmatmul.f32.gmra.mxu0 %v6932_v39 }
 0x3d3   : > { %v9914_v10 = vadd.f32 %v1503_v0, %v1427_v56  ;;  %v6933_v56 = vld [vmem:[%s12231_s2 + $0x5f8] sm:$0xff]  ;;  %v1859_v0 = vadd.f32 %v1858_v19, %v1781_v36 }
 0x3d4   : > { %6958 = vmatmul.msk.f32.gmra.mxu1 %vm1085_vm2, %v6933_v56 }
 0x3d5   : > { %12337 = vst [vmem:[#allocation4_spill] sm:$0xff] %v9914_v10  ;;  %2140 = vmatmul.f32.gmra.mxu2 %v6865_v38  ;;  %v6867_v38 = vld [vmem:[%s12231_s2 + $0x490] sm:$0xff] }
 0x3d7   : > { %6894 = vmatmul.msk.f32.gmra.mxu3 %vm1085_vm2, %v6866_v52 }
 0x3d8   : > { %v1429_v53 = vpop.f32.mrf.mxu2  ;;  %v9937_v44 = vpop.f32.mrf.mxu0 }
 0x3d9   : > { %v1430_v25 = vadd.f32 %v1429_v53, %v9529_v41  ;;  %v6934_v41 = vld [vmem:[%s12231_s2 + $0x600] sm:$0xff]  ;;  %v9943_v19 = vpop.f32.mrf.mxu1  ;;  %v1862_v53 = vadd.f32 %v1861_v59, %v1784_v60 }
 0x3da   : > { %v1506_v10 = vpop.f32.mrf.mxu3  ;;  %2653 = vmatmul.f32.gmra.mxu0 %v6934_v41  ;;  %v6937_v41 = vld [vmem:[%s12231_s2 + $0x618] sm:$0xff] }
 0x3db   : > { %v1507_v52 = vadd.f32 %v1506_v10, %v1430_v25  ;;  %v6935_v10 = vld [vmem:[%s12231_s2 + $0x608] sm:$0xff] }
 0x3dc   : > { %6959 = vmatmul.msk.f32.gmra.mxu1 %vm1085_vm2, %v6935_v10  ;;  %v1865_v10 = vadd.f32 %v1864_v62, %v1787_v6 }
 0x3dd   : > { %v9935_v17 = vadd.f32 %v1859_v0, %v1507_v52  ;;  %2143 = vmatmul.f32.gmra.mxu2 %v6867_v38  ;;  %v6870_v0 = vld [vmem:[%s12231_s2 + $0x4a8] sm:$0xff] }
 0x3df   : > { %12338 = vst [vmem:[#allocation7_spill] sm:$0xff] %v9935_v17  ;;  %6895 = vmatmul.msk.f32.gmra.mxu3 %vm1085_vm2, %v6868_v42  ;;  %v6869_v42 = vld [vmem:[%s12231_s2 + $0x4a0] sm:$0xff] }
 0x3e0   : > { %v1432_v36 = vpop.f32.mrf.mxu2  ;;  %v9958_v52 = vpop.f32.mrf.mxu0 }
 0x3e1   : > { %v1433_v39 = vadd.f32 %v1432_v36, %v9548_v26  ;;  %v6936_v26 = vld [vmem:[%s12231_s2 + $0x610] sm:$0xff]  ;;  %v9964_v59 = vpop.f32.mrf.mxu1 }
 0x3e2   : > { %v1509_v56 = vpop.f32.mrf.mxu3  ;;  %2656 = vmatmul.f32.gmra.mxu0 %v6936_v26  ;;  %v6939_v26 = vld [vmem:[%s12231_s2 + $0x628] sm:$0xff] }
 0x3e3   : > { %v1510_v25 = vadd.f32 %v1509_v56, %v1433_v39 }
 0x3e4   : > { %6960 = vmatmul.msk.f32.gmra.mxu1 %vm1085_vm2, %v6937_v41  ;;  %v1868_v41 = vadd.f32 %v1867_v12, %v1790_v11  ;;  %v3522_v11 = vld [vmem:[%s12232_s3 + $0x78] sm:$0xff]  ;;  %v3521_v12 = vld [vmem:[%s12232_s3 + $0x70] sm:$0xff] }
 0x3e5   : > { %v9956_v38 = vadd.f32 %v1862_v53, %v1510_v25  ;;  %2146 = vmatmul.f32.gmra.mxu2 %v6869_v42  ;;  %v6871_v53 = vld [vmem:[%s12231_s2 + $0x4b0] sm:$0xff]  ;;  %v6872_v42 = vld [vmem:[%s12231_s2 + $0x4b8] sm:$0xff] }
 0x3e7   : > { %12339 = vst [vmem:[#allocation15_spill] sm:$0xff] %v9956_v38  ;;  %6896 = vmatmul.msk.f32.gmra.mxu3 %vm1085_vm2, %v6870_v0 }
 0x3e8   : > { %v1435_v60 = vpop.f32.mrf.mxu2  ;;  %v9979_v0 = vpop.f32.mrf.mxu0 }
 0x3e9   : > { %v1436_v36 = vadd.f32 %v1435_v60, %v9568_v15  ;;  %v6938_v15 = vld [vmem:[%s12231_s2 + $0x620] sm:$0xff]  ;;  %v9985_v62 = vpop.f32.mrf.mxu1 }
 0x3ea   : > { %v1512_v39 = vpop.f32.mrf.mxu3  ;;  %2659 = vmatmul.f32.gmra.mxu0 %v6938_v15  ;;  %v3520_v15 = vld [vmem:[%s12232_s3 + $0x68] sm:$0xff] }
 0x3eb   : > { %v1513_v56 = vadd.f32 %v1512_v39, %v1436_v36 }
 0x3ec   : > { %6961 = vmatmul.msk.f32.gmra.mxu1 %vm1085_vm2, %v6939_v26  ;;  %v6940_v26 = vld [vmem:[%s12231_s2 + $0x630] sm:$0xf] }
 0x3ed   : > { %v9977_v25 = vadd.f32 %v1865_v10, %v1513_v56  ;;  %2149 = vmatmul.f32.gmra.mxu2 %v6871_v53  ;;  %v6873_v10 = vld [vmem:[%s12231_s2 + $0x4c0] sm:$0xff]  ;;  %v6874_v53 = vld [vmem:[%s12231_s2 + $0x4c8] sm:$0xff] }
 0x3ef   : > { %12340 = vst [vmem:[#allocation3_spill] sm:$0xff] %v9977_v25  ;;  %6897 = vmatmul.msk.f32.gmra.mxu3 %vm1085_vm2, %v6872_v42 }
 0x3f0   : > { %v1438_v6 = vpop.f32.mrf.mxu2  ;;  %v10000_v42 = vpop.f32.mrf.mxu0 }
 0x3f1   : > { %v1439_v60 = vadd.f32 %v1438_v6, %v9588_v43  ;;  %v8157_v43 = vmov 0   ;;  %v1811_v6 = vadd.f32 %v9533_v35, %v9531_v2  ;;  %v6875_v2 = vld [vmem:[%s12231_s2 + $0x4d0] sm:$0xff] }
 0x3f2   : > { %v1515_v36 = vpop.f32.mrf.mxu3  ;;  %8082 = vset.pattern.permute.xlu0 %v8157_v43  ;;  %8081 = vset.pattern.permute.xlu2 %v8157_v43 }
 0x3f3   : > { %v1516_v39 = vadd.f32 %v1515_v36, %v1439_v60  ;;  %8080 = vset.pattern.permute.xlu1 %v8157_v43  ;;  %3599 = vperm.xlu2 %8081, %v3521_v12   ;;  %v6941_v36 = vld [vmem:[%s12231_s2 + $0x638] sm:$0xf]  ;;  %v1870_v35 = vadd.f32 %v1811_v6, %v9610_v13 }
 0x3f4   : > { %3604 = vperm.xlu1 %8080, %v3522_v11   ;;  %3594 = vperm.xlu0 %8082, %v3520_v15   ;;  %v6876_v43 = vld [vmem:[%s12231_s2 + $0x4d8] sm:$0xff]  ;;  %v3519_v15 = vld [vmem:[%s12232_s3 + $0x60] sm:$0xff] }
 0x3f5   : > { %v9998_v56 = vadd.f32 %v1868_v41, %v1516_v39  ;;  %2152 = vmatmul.f32.gmra.mxu2 %v6873_v10  ;;  %v10017_v41 = vpop.f32.mrf.mxu1  ;;  %2662 = vmatmul.f32.gmra.mxu0 %v6940_v26  ;;  %v3518_v13 = vld [vmem:[%s12232_s3 + $0x58] sm:$0xff]  ;;  %v7024_v26 = vld [vmem:[%s12231_s2 + $0x780] sm:$0xff] }
 0x3f6   : > { %6962 = vmatmul.msk.f32.gmra.mxu1 %vm1085_vm2, %v6941_v36 }
 0x3f7   : > { %12341 = vst [vmem:[#allocation14_spill] sm:$0xff] %v9998_v56  ;;  %6898 = vmatmul.msk.f32.gmra.mxu3 %vm1085_vm2, %v6874_v53  ;;  %v2684_v53 = vadd.f32 %v9943_v19, %v9937_v44  ;;  %v3515_v44 = vld [vmem:[%s12232_s3 + $0x40] sm:$0xff]  ;;  %v1814_v19 = vadd.f32 %v9556_v27, %v9551_v3 }
 0x3f8   : > { %v2105_v60 = vpop.f32.mrf.mxu2  ;;  %v10032_v12 = vpop.f32.mrf.mxu0  ;;  %v6877_v27 = vld [vmem:[%s12231_s2 + $0x4e0] sm:$0xff] }
 0x3fa   : > { %v2182_v10 = vpop.f32.mrf.mxu3 }
 0x3fb   : > { %v2183_v39 = vadd.f32 %v2182_v10, %v2105_v60  ;;  %3584 = vperm.xlu2 %8081, %v3518_v13   ;;  %v7025_v10 = vld [vmem:[%s12231_s2 + $0x788] sm:$0xff] }
 0x3fc   : > { %3589 = vperm.xlu1 %8080, %v3519_v15   ;;  %3569 = vperm.xlu0 %8082, %v3515_v44   ;;  %v3517_v15 = vld [vmem:[%s12232_s3 + $0x50] sm:$0xff] }
 0x3fd   : > { %v2242_v11 = vadd.f32 %v2183_v39, %v1870_v35  ;;  %2155 = vmatmul.f32.gmra.mxu2 %v6875_v2  ;;  %v10051_v36 = vpop.f32.mrf.mxu1  ;;  %3349 = vmatmul.f32.vlgmr.msrb.gmra.mxu0 %v7024_v26  ;;  %v1871_v2 = vadd.f32 %v1814_v19, %v9632_v1  ;;  %v2687_v39 = vadd.f32 %v9964_v59, %v9958_v52  ;;  %v3516_v1 = vld [vmem:[%s12232_s3 + $0x48] sm:$0xff]  ;;  %v7026_v44 = vld [vmem:[%s12231_s2 + $0x790] sm:$0xff] }
 0x3fe   : > { %7065 = vmatmul.msk.f32.vlgmr.msrb.gmra.mxu1 %vm1085_vm2, %v7025_v10  ;;  %v3512_v52 = vld [vmem:[%s12232_s3 + $0x28] sm:$0xff]  ;;  %v1817_v59 = vadd.f32 %v9576_v31, %v9571_v14  ;;  %v6879_v31 = vld [vmem:[%s12231_s2 + $0x4f0] sm:$0xf] }
 0x3ff   : > { %v10045_v6 = vadd.f32 %v2684_v53, %v2242_v11  ;;  %6899 = vmatmul.msk.f32.gmra.mxu3 %vm1085_vm2, %v6876_v43  ;;  %v6878_v53 = vld [vmem:[%s12231_s2 + $0x4e8] sm:$0xff] }
 0x400   : > { %v2108_v60 = vpop.f32.mrf.mxu2  ;;  %v10066_v11 = vpop.f32.mrf.mxu0  ;;  %v1872_v10 = vadd.f32 %v1817_v59, %v9653_v51  ;;  %v3513_v51 = vld [vmem:[%s12232_s3 + $0x30] sm:$0xff]  ;;  %v7029_v59 = vld [vmem:[%s12231_s2 + $0x7a8] sm:$0xff] }
 0x401   : > { %12342 = vst [vmem:[#allocation25_spill] sm:$0xff] %v10045_v6 }
 0x402   : > { %v2185_v3 = vpop.f32.mrf.mxu3 }
 0x403   : > { %v2186_v35 = vadd.f32 %v2185_v3, %v2108_v60  ;;  %3574 = vperm.xlu2 %8081, %v3516_v1   ;;  %v7027_v60 = vld [vmem:[%s12231_s2 + $0x798] sm:$0xff] }
 0x404   : > { %3579 = vperm.xlu1 %8080, %v3517_v15   ;;  %3554 = vperm.xlu0 %8082, %v3512_v52   ;;  %v7028_v15 = vld [vmem:[%s12231_s2 + $0x7a0] sm:$0xff] }
 0x405   : > { %v2243_v43 = vadd.f32 %v2186_v35, %v1871_v2  ;;  %2158 = vmatmul.f32.gmra.mxu2 %v6877_v27  ;;  %v10085_v26 = vpop.f32.mrf.mxu1  ;;  %3352 = vmatmul.f32.gmra.mxu0 %v7026_v44  ;;  %v2690_v27 = vadd.f32 %v9985_v62, %v9979_v0  ;;  %v6880_v2 = vld [vmem:[%s12231_s2 + $0x4f8] sm:$0xf]  ;;  %v1820_v62 = vadd.f32 %v9596_v24, %v9591_v37  ;;  %v6963_v24 = vld [vmem:[%s12231_s2 + $0x640] sm:$0xff] }
 0x406   : > { %7066 = vmatmul.msk.f32.gmra.mxu1 %vm1085_vm2, %v7027_v60  ;;  %v3526_v0 = vld [vmem:[%s12232_s3 + $0x98] sm:$0xf]  ;;  %v2693_v60 = vadd.f32 %v10017_v41, %v10000_v42  ;;  %v3508_v42 = vld [vmem:[%s12232_s3 + $0x8] sm:$0xff]  ;;  %v1823_v41 = vadd.f32 %v9618_v61, %v9613_v29  ;;  %v6965_v61 = vld [vmem:[%s12231_s2 + $0x650] sm:$0xff] }
 0x407   : > { %v10079_v13 = vadd.f32 %v2687_v39, %v2243_v43  ;;  %6900 = vmatmul.msk.f32.gmra.mxu3 %vm1085_vm2, %v6878_v53  ;;  %v3514_v53 = vld [vmem:[%s12232_s3 + $0x38] sm:$0xff]  ;;  %v1873_v44 = vadd.f32 %v1820_v62, %v9674_v21 }
 0x408   : > { %v2111_v19 = vpop.f32.mrf.mxu2  ;;  %v10100_v39 = vpop.f32.mrf.mxu0  ;;  %v3510_v21 = vld [vmem:[%s12232_s3 + $0x18] sm:$0xff] }
 0x409   : > { %12343 = vst [vmem:[#allocation11_spill] sm:$0xff] %v10079_v13 }
 0x40a   : > { %v2188_v14 = vpop.f32.mrf.mxu3 }
 0x40b   : > { %v2189_v3 = vadd.f32 %v2188_v14, %v2111_v19  ;;  %3559 = vperm.xlu2 %8081, %v3513_v51   ;;  %v6964_v14 = vld [vmem:[%s12231_s2 + $0x648] sm:$0xff]  ;;  %v7031_v51 = vld [vmem:[%s12231_s2 + $0x7b8] sm:$0xff] }
 0x40c   : > { %3564 = vperm.xlu1 %8080, %v3514_v53   ;;  %3624 = vperm.xlu0 %8082, %v3526_v0   ;;  %v1874_v0 = vadd.f32 %v1823_v41, %v9695_v5  ;;  %v3525_v5 = vld [vmem:[%s12232_s3 + $0x90] sm:$0xff] }
 0x40d   : > { %v2244_v35 = vadd.f32 %v2189_v3, %v1872_v10  ;;  %2161 = vmatmul.f32.gmra.mxu2 %v6879_v31  ;;  %v10119_v52 = vpop.f32.mrf.mxu1  ;;  %3355 = vmatmul.f32.gmra.mxu0 %v7028_v15  ;;  %v3511_v3 = vld [vmem:[%s12232_s3 + $0x20] sm:$0xff]  ;;  %v2696_v15 = vadd.f32 %v10051_v36, %v10032_v12  ;;  %v1826_v12 = vadd.f32 %v9640_v22, %v9635_v30 }
 0x40e   : > { %7067 = vmatmul.msk.f32.gmra.mxu1 %vm1085_vm2, %v7029_v59  ;;  %v6967_v30 = vld [vmem:[%s12231_s2 + $0x660] sm:$0xff] }
 0x40f   : > { %v10113_v43 = vadd.f32 %v2690_v27, %v2244_v35  ;;  %6901 = vmatmul.msk.f32.gmra.mxu3 %vm1085_vm2, %v6880_v2  ;;  %v7030_v2 = vld [vmem:[%s12231_s2 + $0x7b0] sm:$0xff]  ;;  %v1875_v22 = vadd.f32 %v1826_v12, %v9716_v9  ;;  %v1829_v9 = vadd.f32 %v9661_v28, %v9656_v48 }
 0x410   : > { %v2114_v1 = vpop.f32.mrf.mxu2  ;;  %v10134_v10 = vpop.f32.mrf.mxu0  ;;  %v6969_v48 = vld [vmem:[%s12231_s2 + $0x670] sm:$0xff] }
 0x411   : > { %12344 = vst [vmem:[#allocation19_spill] sm:$0xff] %v10113_v43  ;;  %v1876_v28 = vadd.f32 %v1829_v9, %v9737_v50  ;;  %v7036_v50 = vld [vmem:[%s12231_s2 + $0x7e0] sm:$0xff] }
 0x412   : > { %v2191_v37 = vpop.f32.mrf.mxu3 }
 0x413   : > { %v2192_v19 = vadd.f32 %v2191_v37, %v2114_v1  ;;  %3544 = vperm.xlu2 %8081, %v3510_v21   ;;  %v6966_v1 = vld [vmem:[%s12231_s2 + $0x658] sm:$0xff]  ;;  %v2699_v21 = vadd.f32 %v10085_v26, %v10066_v11  ;;  %v7034_v11 = vld [vmem:[%s12231_s2 + $0x7d0] sm:$0xff] }
 0x414   : > { %3549 = vperm.xlu1 %8080, %v3511_v3   ;;  %3534 = vperm.xlu0 %8082, %v3508_v42   ;;  %v6968_v42 = vld [vmem:[%s12231_s2 + $0x668] sm:$0xff] }
 0x415   : > { %v2245_v31 = vadd.f32 %v2192_v19, %v1873_v44  ;;  %2977 = vmatmul.f32.vlgmr.msrb.gmra.mxu2 %v6963_v24  ;;  %v10153_v53 = vpop.f32.mrf.mxu1  ;;  %3358 = vmatmul.f32.gmra.mxu0 %v7030_v2  ;;  %v3509_v24 = vld [vmem:[%s12232_s3 + $0x10] sm:$0xff]  ;;  %v7032_v44 = vld [vmem:[%s12231_s2 + $0x7c0] sm:$0xff] }
 0x416   : > { %7068 = vmatmul.msk.f32.gmra.mxu1 %vm1085_vm2, %v7031_v51 }
 0x417   : > { %v10147_v27 = vadd.f32 %v2693_v60, %v2245_v31  ;;  %7004 = vmatmul.msk.f32.vlgmr.msrb.gmra.mxu3 %vm1085_vm2, %v6964_v14  ;;  %v7033_v14 = vld [vmem:[%s12231_s2 + $0x7c8] sm:$0xff] }
 0x418   : > { %v2117_v35 = vpop.f32.mrf.mxu2  ;;  %v10168_v37 = vpop.f32.mrf.mxu0 }
 0x419   : > { %12345 = vst [vmem:[#allocation21_spill] sm:$0xff] %v10147_v27 }
 0x41a   : > { %v2194_v29 = vpop.f32.mrf.mxu3 }
 0x41b   : > { %v2195_v62 = vadd.f32 %v2194_v29, %v2117_v35  ;;  %3619 = vperm.xlu2 %8081, %v3525_v5   ;;  %v3507_v35 = vld [vmem:[%s12232_s3] sm:$0xff]  ;;  %v1832_v5 = vadd.f32 %v9682_v40, %v9677_v32 }
 0x41c   : > { %3539 = vperm.xlu1 %8080, %v3509_v24   ;;  %v6971_v32 = vld [vmem:[%s12231_s2 + $0x680] sm:$0xff] }
 0x41d   : > { %v2246_v59 = vadd.f32 %v2195_v62, %v1874_v0  ;;  %2980 = vmatmul.f32.gmra.mxu2 %v6965_v61  ;;  %v10184_v60 = vpop.f32.mrf.mxu1  ;;  %3361 = vmatmul.f32.gmra.mxu0 %v7032_v44  ;;  %v7035_v61 = vld [vmem:[%s12231_s2 + $0x7d8] sm:$0xff]  ;;  %v7037_v44 = vld [vmem:[%s12231_s2 + $0x7e8] sm:$0xff]  ;;  %v1877_v40 = vadd.f32 %v1832_v5, %v9758_v49  ;;  %v7038_v49 = vld [vmem:[%s12231_s2 + $0x7f0] sm:$0xff] }
 0x41e   : > { %7069 = vmatmul.msk.f32.gmra.mxu1 %vm1085_vm2, %v7033_v14  ;;  %v6976_v5 = vld [vmem:[%s12231_s2 + $0x6a8] sm:$0xff] }
 0x41f   : > { %v10178_v36 = vadd.f32 %v2696_v15, %v2246_v59  ;;  %7005 = vmatmul.msk.f32.gmra.mxu3 %vm1085_vm2, %v6966_v1  ;;  %v2702_v15 = vadd.f32 %v10119_v52, %v10100_v39  ;;  %v6970_v1 = vld [vmem:[%s12231_s2 + $0x678] sm:$0xff] }
 0x420   : > { %v2120_v19 = vpop.f32.mrf.mxu2  ;;  %v10199_v2 = vpop.f32.mrf.mxu0 }
 0x421   : > { %12346 = vst [vmem:[#allocation28_spill] sm:$0xff] %v10178_v36 }
 0x422   : > { %v2197_v31 = vpop.f32.mrf.mxu3 }
 0x423   : > { %v2198_v3 = vadd.f32 %v2197_v31, %v2120_v19  ;;  %3529 = vperm.xlu2 %8081, %v3507_v35   ;;  %v2705_v31 = vadd.f32 %v10153_v53, %v10134_v10 }
 0x425   : > { %v2247_v41 = vadd.f32 %v2198_v3, %v1875_v22  ;;  %2983 = vmatmul.f32.gmra.mxu2 %v6967_v30  ;;  %v2710_v29 = vpop.f32.mrf.mxu1  ;;  %3364 = vmatmul.f32.gmra.mxu0 %v7034_v11  ;;  %v6972_v30 = vld [vmem:[%s12231_s2 + $0x688] sm:$0xff]  ;;  %v2708_v11 = vadd.f32 %v10184_v60, %v10168_v37 }
 0x426   : > { %7070 = vmatmul.msk.f32.gmra.mxu1 %vm1085_vm2, %v7035_v61 }
 0x427   : > { %v10206_v51 = vadd.f32 %v2699_v21, %v2247_v41  ;;  %7006 = vmatmul.msk.f32.gmra.mxu3 %vm1085_vm2, %v6968_v42  ;;  %v1835_v21 = vadd.f32 %v9703_v47, %v9698_v7  ;;  %v7039_v41 = vld [vmem:[%s12231_s2 + $0x7f8] sm:$0xff]  ;;  %v6973_v7 = vld [vmem:[%s12231_s2 + $0x690] sm:$0xff] }
 0x428   : > { %v2123_v26 = vpop.f32.mrf.mxu2  ;;  %v10225_v24 = vpop.f32.mrf.mxu0 }
 0x429   : > { %12347 = vst [vmem:[#allocation9_spill] sm:$0xff] %v10206_v51  ;;  %v1878_v47 = vadd.f32 %v1835_v21, %v9779_v8  ;;  %v7040_v8 = vld [vmem:[%s12231_s2 + $0x800] sm:$0xff] }
 0x42a   : > { %v2200_v0 = vpop.f32.mrf.mxu3 }
 0x42b   : > { %v2201_v62 = vadd.f32 %v2200_v0, %v2123_v26  ;;  %v6974_v26 = vld [vmem:[%s12231_s2 + $0x698] sm:$0xff] }
 0x42d   : > { %v2248_v59 = vadd.f32 %v2201_v62, %v1876_v28  ;;  %2986 = vmatmul.f32.gmra.mxu2 %v6969_v48  ;;  %v2713_v52 = vpop.f32.mrf.mxu1  ;;  %3367 = vmatmul.f32.gmra.mxu0 %v7036_v50  ;;  %v1838_v48 = vadd.f32 %v9724_v16, %v9719_v58  ;;  %v7041_v62 = vld [vmem:[%s12231_s2 + $0x808] sm:$0xff]  ;;  %v6975_v58 = vld [vmem:[%s12231_s2 + $0x6a0] sm:$0xff] }
 0x42e   : > { %7071 = vmatmul.msk.f32.gmra.mxu1 %vm1085_vm2, %v7037_v44  ;;  %v1841_v44 = vadd.f32 %v9745_v20, %v9740_v57  ;;  %v6977_v57 = vld [vmem:[%s12231_s2 + $0x6b0] sm:$0xff] }
 0x42f   : > { %v10229_v12 = vadd.f32 %v2702_v15, %v2248_v59  ;;  %7007 = vmatmul.msk.f32.gmra.mxu3 %vm1085_vm2, %v6970_v1  ;;  %v1879_v16 = vadd.f32 %v1838_v48, %v9800_v18  ;;  %v2711_v59 = vadd.f32 %v2710_v29, %v10199_v2  ;;  %v7042_v18 = vld [vmem:[%s12231_s2 + $0x810] sm:$0xff] }
 0x430   : > { %v2126_v39 = vpop.f32.mrf.mxu2  ;;  %v10248_v3 = vpop.f32.mrf.mxu0  ;;  %v1880_v20 = vadd.f32 %v1841_v44, %v9821_v46  ;;  %v7044_v46 = vld [vmem:[%s12231_s2 + $0x820] sm:$0xff] }
 0x431   : > { %12348 = vst [vmem:[#allocation5_spill] sm:$0xff] %v10229_v12 }
 0x432   : > { %v2203_v19 = vpop.f32.mrf.mxu3 }
 0x433   : > { %v2204_v14 = vadd.f32 %v2203_v19, %v2126_v39 }
 0x435   : > { %v2249_v22 = vadd.f32 %v2204_v14, %v1877_v40  ;;  %2989 = vmatmul.f32.gmra.mxu2 %v6971_v32  ;;  %v2716_v53 = vpop.f32.mrf.mxu1  ;;  %3370 = vmatmul.f32.gmra.mxu0 %v7038_v49  ;;  %v7043_v32 = vld [vmem:[%s12231_s2 + $0x818] sm:$0xff]  ;;  %v1844_v49 = vadd.f32 %v9766_v33, %v9764_v55  ;;  %v6979_v55 = vld [vmem:[%s12231_s2 + $0x6c0] sm:$0xff] }
 0x436   : > { %7072 = vmatmul.msk.f32.gmra.mxu1 %vm1085_vm2, %v7039_v41  ;;  %v7045_v41 = vld [vmem:[%s12231_s2 + $0x828] sm:$0xff] }
 0x437   : > { %v10252_v42 = vadd.f32 %v2705_v31, %v2249_v22  ;;  %7008 = vmatmul.msk.f32.gmra.mxu3 %vm1085_vm2, %v6972_v30  ;;  %v2714_v31 = vadd.f32 %v2713_v52, %v10225_v24  ;;  %v6978_v30 = vld [vmem:[%s12231_s2 + $0x6b8] sm:$0xff]  ;;  %v1881_v33 = vadd.f32 %v1844_v49, %v9842_v54  ;;  %v7046_v54 = vld [vmem:[%s12231_s2 + $0x830] sm:$0xff] }
 0x438   : > { %v2129_v10 = vpop.f32.mrf.mxu2  ;;  %v10271_v0 = vpop.f32.mrf.mxu0 }
 0x439   : > { %12349 = vst [vmem:[#allocation20_spill] sm:$0xff] %v10252_v42 }
 0x43a   : > { %v2206_v35 = vpop.f32.mrf.mxu3 }
 0x43b   : > { %v2207_v9 = vadd.f32 %v2206_v35, %v2129_v10 }
 0x43d   : > { %v2250_v61 = vadd.f32 %v2207_v9, %v1878_v47  ;;  %2992 = vmatmul.f32.gmra.mxu2 %v6973_v7  ;;  %v2719_v60 = vpop.f32.mrf.mxu1  ;;  %3373 = vmatmul.f32.gmra.mxu0 %v7040_v8  ;;  %v2717_v47 = vadd.f32 %v2716_v53, %v10248_v3  ;;  %v6980_v9 = vld [vmem:[%s12231_s2 + $0x6c8] sm:$0xff]  ;;  %v7047_v8 = vld [vmem:[%s12231_s2 + $0x838] sm:$0xff] }
 0x43e   : > { %7073 = vmatmul.msk.f32.gmra.mxu1 %vm1085_vm2, %v7041_v62 }
 0x43f   : > { %v10275_v28 = vadd.f32 %v2708_v11, %v2250_v61  ;;  %7009 = vmatmul.msk.f32.gmra.mxu3 %vm1085_vm2, %v6974_v26  ;;  %v1847_v61 = vadd.f32 %v9788_v34, %v9785_v63  ;;  %v6981_v63 = vld [vmem:[%s12231_s2 + $0x6d0] sm:$0xff] }
 0x440   : > { %v2132_v37 = vpop.f32.mrf.mxu2  ;;  %v10293_v39 = vpop.f32.mrf.mxu0 }
 0x441   : > { %v1882_v34 = vadd.f32 %v1847_v61, %v9863_v45  ;;  %v7048_v45 = vld [vmem:[%s12231_s2 + $0x840] sm:$0xff] }
 0x442   : > { %v2209_v15 = vpop.f32.mrf.mxu3  ;;  %v12359_v61 = vld [vmem:[#allocation10_spill] sm:$0xff] }
 0x443   : > { %v2210_v1 = vadd.f32 %v2209_v15, %v2132_v37  ;;  %v2720_v15 = vadd.f32 %v2719_v60, %v10271_v0 }
 0x445   : > { %v2251_v50 = vadd.f32 %v2210_v1, %v1879_v16  ;;  %2995 = vmatmul.f32.gmra.mxu2 %v6975_v58  ;;  %v2722_v29 = vpop.f32.mrf.mxu1  ;;  %3376 = vmatmul.f32.gmra.mxu0 %v7042_v18  ;;  %v6982_v58 = vld [vmem:[%s12231_s2 + $0x6d8] sm:$0xff] }
 0x446   : > { %7074 = vmatmul.msk.f32.gmra.mxu1 %vm1085_vm2, %v7043_v32  ;;  %v2723_v32 = vadd.f32 %v2722_v29, %v10293_v39  ;;  %v7050_v39 = vld [vmem:[%s12231_s2 + $0x850] sm:$0xff] }
 0x447   : > { %v10297_v19 = vadd.f32 %v2711_v59, %v2251_v50  ;;  %7010 = vmatmul.msk.f32.gmra.mxu3 %vm1085_vm2, %v6976_v5  ;;  %v1850_v59 = vadd.f32 %v9809_v23, %v9806_v4  ;;  %v7049_v50 = vld [vmem:[%s12231_s2 + $0x848] sm:$0xff]  ;;  %v6983_v4 = vld [vmem:[%s12231_s2 + $0x6e0] sm:$0xff] }
 0x448   : > { %v2135_v2 = vpop.f32.mrf.mxu2  ;;  %v10315_v21 = vpop.f32.mrf.mxu0  ;;  %v12352_v23 = vld [vmem:[#allocation6_spill] sm:$0xff] }
 0x449   : > { %v1883_v18 = vadd.f32 %v1850_v59, %v12352_v23 }
 0x44a   : > { %v2212_v40 = vpop.f32.mrf.mxu3 }
 0x44b   : > { %v2213_v14 = vadd.f32 %v2212_v40, %v2135_v2  ;;  %v6984_v40 = vld [vmem:[%s12231_s2 + $0x6e8] sm:$0xff] }
 0x44d   : > { %v2252_v22 = vadd.f32 %v2213_v14, %v1880_v20  ;;  %2998 = vmatmul.f32.gmra.mxu2 %v6977_v57  ;;  %v2725_v52 = vpop.f32.mrf.mxu1  ;;  %3379 = vmatmul.f32.gmra.mxu0 %v7044_v46  ;;  %v12354_v14 = vld [vmem:[#allocation17_spill] sm:$0xff] }
 0x44e   : > { %7075 = vmatmul.msk.f32.gmra.mxu1 %vm1085_vm2, %v7045_v41  ;;  %v7051_v46 = vld [vmem:[%s12231_s2 + $0x858] sm:$0xff]  ;;  %v6985_v41 = vld [vmem:[%s12231_s2 + $0x6f0] sm:$0xff] }
 0x44f   : > { %v10319_v10 = vadd.f32 %v2714_v31, %v2252_v22  ;;  %7011 = vmatmul.msk.f32.gmra.mxu3 %vm1085_vm2, %v6978_v30  ;;  %v12355_v31 = vld [vmem:[#allocation22_spill] sm:$0xff] }
 0x450   : > { %v2138_v24 = vpop.f32.mrf.mxu2  ;;  %v10337_v26 = vpop.f32.mrf.mxu0  ;;  %v1853_v30 = vadd.f32 %v12355_v31, %v12354_v14  ;;  %v7056_v14 = vld [vmem:[%s12231_s2 + $0x880] sm:$0xff] }
 0x452   : > { %v2215_v35 = vpop.f32.mrf.mxu3 }
 0x453   : > { %v2216_v7 = vadd.f32 %v2215_v35, %v2138_v24  ;;  %v12357_v35 = vld [vmem:[#allocation12_spill] sm:$0xff] }
 0x455   : > { %v2253_v11 = vadd.f32 %v2216_v7, %v1881_v33  ;;  %3001 = vmatmul.f32.gmra.mxu2 %v6979_v55  ;;  %v2728_v53 = vpop.f32.mrf.mxu1  ;;  %3382 = vmatmul.f32.gmra.mxu0 %v7046_v54  ;;  %v1884_v55 = vadd.f32 %v1853_v30, %v12357_v35  ;;  %v2726_v7 = vadd.f32 %v2725_v52, %v10315_v21  ;;  %v12360_v54 = vld [vmem:[#allocation8_spill] sm:$0xff]  ;;  %v7052_v21 = vld [vmem:[%s12231_s2 + $0x860] sm:$0xff] }
 0x456   : > { %7076 = vmatmul.msk.f32.gmra.mxu1 %vm1085_vm2, %v7047_v8  ;;  %v2729_v59 = vadd.f32 %v2728_v53, %v10337_v26  ;;  %v7055_v53 = vld [vmem:[%s12231_s2 + $0x878] sm:$0xff] }
 0x457   : > { %v10341_v48 = vadd.f32 %v2717_v47, %v2253_v11  ;;  %7012 = vmatmul.msk.f32.gmra.mxu3 %vm1085_vm2, %v6980_v9  ;;  %v6986_v47 = vld [vmem:[%s12231_s2 + $0x6f8] sm:$0xff] }
 0x458   : > { %v2141_v3 = vpop.f32.mrf.mxu2  ;;  %v10359_v1 = vpop.f32.mrf.mxu0 }
 0x459   : > { %12350 = vst [vmem:[#allocation26_spill] sm:$0xff] %v10359_v1 }
 0x45a   : > { %v2218_v37 = vpop.f32.mrf.mxu3 }
 0x45b   : > { %v2219_v62 = vadd.f32 %v2218_v37, %v2141_v3  ;;  %v1856_v3 = vadd.f32 %v12360_v54, %v12359_v61  ;;  %v6993_v61 = vld [vmem:[%s12231_s2 + $0x730] sm:$0xff]  ;;  %v6994_v54 = vld [vmem:[%s12231_s2 + $0x738] sm:$0xff] }
 0x45d   : > { %v2254_v16 = vadd.f32 %v2219_v62, %v1882_v34  ;;  %3004 = vmatmul.f32.gmra.mxu2 %v6981_v63  ;;  %v10369_v60 = vpop.f32.mrf.mxu1  ;;  %3385 = vmatmul.f32.gmra.mxu0 %v7048_v45  ;;  %v7053_v63 = vld [vmem:[%s12231_s2 + $0x868] sm:$0xff]  ;;  %v6987_v62 = vld [vmem:[%s12231_s2 + $0x700] sm:$0xff] }
 0x45e   : > { %12351 = vst [vmem:[#allocation24_spill] sm:$0xff] %v10369_v60  ;;  %7077 = vmatmul.msk.f32.gmra.mxu1 %vm1085_vm2, %v7049_v50  ;;  %v6988_v45 = vld [vmem:[%s12231_s2 + $0x708] sm:$0xff] }
 0x45f   : > { %v10363_v5 = vadd.f32 %v2720_v15, %v2254_v16  ;;  %7013 = vmatmul.msk.f32.gmra.mxu3 %vm1085_vm2, %v6982_v58  ;;  %v12362_v15 = vld [vmem:[#allocation4_spill] sm:$0xff] }
 0x460   : > { %v2144_v0 = vpop.f32.mrf.mxu2  ;;  %v10383_v20 = vpop.f32.mrf.mxu0  ;;  %v1885_v58 = vadd.f32 %v1856_v3, %v12362_v15  ;;  %v6995_v15 = vld [vmem:[%s12231_s2 + $0x740] sm:$0xff] }
 0x461   : > { %12353 = vst [vmem:[#allocation18_spill] sm:$0xff] %v10383_v20 }
 0x462   : > { %v2221_v44 = vpop.f32.mrf.mxu3 }
 0x463   : > { %v2222_v2 = vadd.f32 %v2221_v44, %v2144_v0 }
 0x465   : > { %v2255_v57 = vadd.f32 %v2222_v2, %v1883_v18  ;;  %3007 = vmatmul.f32.gmra.mxu2 %v6983_v4  ;;  %v10393_v49 = vpop.f32.mrf.mxu1  ;;  %3388 = vmatmul.f32.gmra.mxu0 %v7050_v39  ;;  %v7054_v4 = vld [vmem:[%s12231_s2 + $0x870] sm:$0xff]  ;;  %v7057_v39 = vld [vmem:[%s12231_s2 + $0x888] sm:$0xff] }
 0x466   : > { %12356 = vst [vmem:[#allocation16_spill] sm:$0xff] %v10393_v49  ;;  %7078 = vmatmul.msk.f32.gmra.mxu1 %vm1085_vm2, %v7051_v46  ;;  %v6989_v2 = vld [vmem:[%s12231_s2 + $0x710] sm:$0xff]  ;;  %v6991_v46 = vld [vmem:[%s12231_s2 + $0x720] sm:$0xff]  ;;  %v3605_v27 = vpop.permute.xlu1 %3604  ;;  %v3595_v49 = vpop.permute.xlu0 %3594 }
 0x467   : > { %v10387_v22 = vadd.f32 %v2723_v32, %v2255_v57  ;;  %7014 = vmatmul.msk.f32.gmra.mxu3 %vm1085_vm2, %v6984_v40  ;;  %v3524_v32 = vld [vmem:[%s12232_s3 + $0x88] sm:$0xff]  ;;  %v6990_v40 = vld [vmem:[%s12231_s2 + $0x718] sm:$0xff] }
 0x468   : > { %v2147_v29 = vpop.f32.mrf.mxu2  ;;  %v10407_v11 = vpop.f32.mrf.mxu0  ;;  %3614 = vperm.xlu1 %8080, %v3524_v32   ;;  %v6998_v32 = vld [vmem:[%s12231_s2 + $0x758] sm:$0xff] }
 0x469   : > { %12358 = vst [vmem:[#allocation27_spill] sm:$0xff] %v10407_v11 }
 0x46a   : > { %v2224_v24 = vpop.f32.mrf.mxu3 }
 0x46b   : > { %v2225_v33 = vadd.f32 %v2224_v24, %v2147_v29  ;;  %v6992_v24 = vld [vmem:[%s12231_s2 + $0x728] sm:$0xff] }
 0x46d   : > { %v2256_v9 = vadd.f32 %v2225_v33, %v1884_v55  ;;  %3010 = vmatmul.f32.gmra.mxu2 %v6985_v41  ;;  %v10417_v37 = vpop.f32.mrf.mxu1  ;;  %3391 = vmatmul.f32.gmra.mxu0 %v7052_v21  ;;  %v3523_v41 = vld [vmem:[%s12232_s3 + $0x80] sm:$0xff]  ;;  %v7058_v55 = vld [vmem:[%s12231_s2 + $0x890] sm:$0xff] }
 0x46e   : > { %12361 = vst [vmem:[#allocation13_spill] sm:$0xff] %v10417_v37  ;;  %7079 = vmatmul.msk.f32.gmra.mxu1 %vm1085_vm2, %v7053_v63  ;;  %3609 = vperm.xlu0 %8082, %v3523_v41   ;;  %v7060_v21 = vld [vmem:[%s12231_s2 + $0x8a0] sm:$0xff]  ;;  %v7000_v41 = vld [vmem:[%s12231_s2 + $0x768] sm:$0xff] }
 0x46f   : > { %v10411_v8 = vadd.f32 %v2726_v7, %v2256_v9  ;;  %7015 = vmatmul.msk.f32.gmra.mxu3 %vm1085_vm2, %v6986_v47  ;;  %v7059_v47 = vld [vmem:[%s12231_s2 + $0x898] sm:$0xff] }
 0x470   : > { %v2150_v52 = vpop.f32.mrf.mxu2 }
 0x472   : > { %v2227_v34 = vpop.f32.mrf.mxu3  ;;  %v10431_v50 = vpop.f32.mrf.mxu0 }
 0x473   : > { %v2228_v16 = vadd.f32 %v2227_v34, %v2150_v52  ;;  %12363 = vst [vmem:[#allocation23_spill] sm:$0xff] %v10431_v50  ;;  %v7061_v34 = vld [vmem:[%s12231_s2 + $0x8a8] sm:$0xff] }
 0x475   : > { %v2257_v0 = vadd.f32 %v2228_v16, %v1885_v58  ;;  %3013 = vmatmul.f32.gmra.mxu2 %v6987_v62  ;;  %v10441_v26 = vpop.f32.mrf.mxu1  ;;  %3394 = vmatmul.f32.gmra.mxu0 %v7054_v4  ;;  %v6996_v58 = vld [vmem:[%s12231_s2 + $0x748] sm:$0xff]  ;;  %v7063_v4 = vld [vmem:[%s12231_s2 + $0x8b8] sm:$0xf] }
 0x476   : > { %12365 = vst [vmem:[#allocation17_spill] sm:$0xff] %v10441_v26  ;;  %7080 = vmatmul.msk.f32.gmra.mxu1 %vm1085_vm2, %v7055_v53 }
 0x477   : > { %v10433_v44 = vadd.f32 %v2729_v59, %v2257_v0  ;;  %7016 = vmatmul.msk.f32.gmra.mxu3 %vm1085_vm2, %v6988_v45  ;;  %v7062_v59 = vld [vmem:[%s12231_s2 + $0x8b0] sm:$0xf] }
 0x478   : > { %v10439_v23 = vpop.f32.mrf.mxu2 }
 0x479   : > { %12364 = vst [vmem:[#allocation6_spill] sm:$0xff] %v10439_v23 }
 0x47a   : > { %v10446_v18 = vpop.f32.mrf.mxu3  ;;  %v10458_v57 = vpop.f32.mrf.mxu0 }
 0x47b   : > { %12366 = vst [vmem:[#allocation22_spill] sm:$0xff] %v10446_v18 }
 0x47c   : > { %12367 = vst [vmem:[#allocation12_spill] sm:$0xff] %v10458_v57 }
 0x47d   : > { %3016 = vmatmul.f32.gmra.mxu2 %v6989_v2  ;;  %v10466_v30 = vpop.f32.mrf.mxu1  ;;  %3397 = vmatmul.f32.gmra.mxu0 %v7056_v14  ;;  %v6997_v2 = vld [vmem:[%s12231_s2 + $0x750] sm:$0xff] }
 0x47e   : > { %12369 = vst [vmem:[#allocation8_spill] sm:$0xff] %v10466_v30  ;;  %7081 = vmatmul.msk.f32.gmra.mxu1 %vm1085_vm2, %v7057_v39 }
 0x47f   : > { %7017 = vmatmul.msk.f32.gmra.mxu3 %vm1085_vm2, %v6990_v40 }
 0x480   : > { %v10464_v31 = vpop.f32.mrf.mxu2 }
 0x481   : > { %12368 = vst [vmem:[#allocation10_spill] sm:$0xff] %v10464_v31 }
 0x482   : > { %v10471_v29 = vpop.f32.mrf.mxu3  ;;  %v10483_v35 = vpop.f32.mrf.mxu0 }
 0x483   : > { %12370 = vst [vmem:[#allocation4_spill] sm:$0xff] %v10471_v29 }
 0x484   : > { %12371 = vst [vmem:[#allocation29_spill] sm:$0xff] %v10483_v35 }
 0x485   : > { %3019 = vmatmul.f32.gmra.mxu2 %v6991_v46  ;;  %v10491_v7 = vpop.f32.mrf.mxu1  ;;  %3400 = vmatmul.f32.gmra.mxu0 %v7058_v55 }
 0x486   : > { %12373 = vst [vmem:[#allocation31_spill] sm:$0xff] %v10491_v7  ;;  %7082 = vmatmul.msk.f32.gmra.mxu1 %vm1085_vm2, %v7059_v47 }
 0x487   : > { %7018 = vmatmul.msk.f32.gmra.mxu3 %vm1085_vm2, %v6992_v24  ;;  %v6999_v24 = vld [vmem:[%s12231_s2 + $0x760] sm:$0xff] }
 0x488   : > { %v10489_v33 = vpop.f32.mrf.mxu2 }
 0x489   : > { %12372 = vst [vmem:[#allocation30_spill] sm:$0xff] %v10489_v33  ;;  %v3590_v33 = vpop.permute.xlu1 %3589 }
 0x48a   : > { %v10496_v9 = vpop.f32.mrf.mxu3  ;;  %v10505_v3 = vpop.f32.mrf.mxu0 }
 0x48b   : > { %12374 = vst [vmem:[#allocation32_spill] sm:$0xff] %v10496_v9 }
 0x48c   : > { %12375 = vst [vmem:[#allocation33_spill] sm:$0xff] %v10505_v3 }
 0x48d   : > { %3022 = vmatmul.f32.gmra.mxu2 %v6993_v61  ;;  %v10513_v63 = vpop.f32.mrf.mxu1  ;;  %3403 = vmatmul.f32.gmra.mxu0 %v7060_v21  ;;  %v7001_v21 = vld [vmem:[%s12231_s2 + $0x770] sm:$0xf] }
 0x48e   : > { %12377 = vst [vmem:[#allocation35_spill] sm:$0xff] %v10513_v63  ;;  %7083 = vmatmul.msk.f32.gmra.mxu1 %vm1085_vm2, %v7061_v34  ;;  %v7002_v34 = vld [vmem:[%s12231_s2 + $0x778] sm:$0xf] }
 0x48f   : > { %7019 = vmatmul.msk.f32.gmra.mxu3 %vm1085_vm2, %v6994_v54 }
 0x490   : > { %v10511_v52 = vpop.f32.mrf.mxu2 }
 0x491   : > { %12376 = vst [vmem:[#allocation34_spill] sm:$0xff] %v10511_v52  ;;  %v10620_v51 = vpop.permute.xlu1 %3579 }
 0x492   : > { %v10518_v62 = vpop.f32.mrf.mxu3  ;;  %v10527_v16 = vpop.f32.mrf.mxu0  ;;  %12399 = vst [vmem:[#allocation57_spill] sm:$0xff] %v10620_v51 }
 0x493   : > { %12378 = vst [vmem:[#allocation36_spill] sm:$0xff] %v10518_v62 }
 0x494   : > { %12379 = vst [vmem:[#allocation37_spill] sm:$0xff] %v10527_v16 }
 0x495   : > { %3025 = vmatmul.f32.gmra.mxu2 %v6995_v15  ;;  %v10535_v0 = vpop.f32.mrf.mxu1  ;;  %3406 = vmatmul.f32.gmra.mxu0 %v7062_v59 }
 0x496   : > { %12381 = vst [vmem:[#allocation39_spill] sm:$0xff] %v10535_v0  ;;  %7084 = vmatmul.msk.f32.gmra.mxu1 %vm1085_vm2, %v7063_v4 }
 0x497   : > { %7020 = vmatmul.msk.f32.gmra.mxu3 %vm1085_vm2, %v6996_v58 }
 0x498   : > { %v10533_v45 = vpop.f32.mrf.mxu2 }
 0x499   : > { %12380 = vst [vmem:[#allocation38_spill] sm:$0xff] %v10533_v45  ;;  %v3600_v45 = vpop.permute.xlu2 %3599 }
 0x49a   : > { %v10540_v53 = vpop.f32.mrf.mxu3  ;;  %v10549_v40 = vpop.f32.mrf.mxu0 }
 0x49b   : > { %12382 = vst [vmem:[#allocation40_spill] sm:$0xff] %v10540_v53 }
 0x49c   : > { %12383 = vst [vmem:[#allocation41_spill] sm:$0xff] %v10549_v40 }
 0x49d   : > { %3028 = vmatmul.f32.gmra.mxu2 %v6997_v2  ;;  %v10554_v39 = vpop.f32.mrf.mxu1 }
 0x49e   : > { %12385 = vst [vmem:[#allocation43_spill] sm:$0xff] %v10554_v39 }
 0x49f   : > { %7021 = vmatmul.msk.f32.gmra.mxu3 %vm1085_vm2, %v6998_v32 }
 0x4a0   : > { %v10552_v14 = vpop.f32.mrf.mxu2 }
 0x4a1   : > { %12384 = vst [vmem:[#allocation42_spill] sm:$0xff] %v10552_v14 }
 0x4a2   : > { %v10556_v46 = vpop.f32.mrf.mxu3  ;;  %v10564_v55 = vpop.f32.mrf.mxu0 }
 0x4a3   : > { %12386 = vst [vmem:[#allocation44_spill] sm:$0xff] %v10556_v46  ;;  %v10616_v46 = vpop.permute.xlu2 %3584 }
 0x4a4   : > { %12387 = vst [vmem:[#allocation45_spill] sm:$0xff] %v10564_v55 }
 0x4a5   : > { %3031 = vmatmul.f32.gmra.mxu2 %v6999_v24  ;;  %v10569_v61 = vpop.f32.mrf.mxu1  ;;  %12397 = vst [vmem:[#allocation55_spill] sm:$0xff] %v10616_v46 }
 0x4a6   : > { %12389 = vst [vmem:[#allocation47_spill] sm:$0xff] %v10569_v61 }
 0x4a7   : > { %7022 = vmatmul.msk.f32.gmra.mxu3 %vm1085_vm2, %v7000_v41 }
 0x4a8   : > { %v10567_v47 = vpop.f32.mrf.mxu2 }
 0x4a9   : > { %12388 = vst [vmem:[#allocation46_spill] sm:$0xff] %v10567_v47 }
 0x4aa   : > { %v10571_v54 = vpop.f32.mrf.mxu3  ;;  %v10579_v15 = vpop.f32.mrf.mxu0 }
 0x4ab   : > { %12390 = vst [vmem:[#allocation48_spill] sm:$0xff] %v10571_v54  ;;  %v10618_v40 = vpop.permute.xlu2 %3574 }
 0x4ac   : > { %12391 = vst [vmem:[#allocation49_spill] sm:$0xff] %v10579_v15 }
 0x4ad   : > { %3034 = vmatmul.f32.gmra.mxu2 %v7001_v21  ;;  %v10584_v59 = vpop.f32.mrf.mxu1  ;;  %12398 = vst [vmem:[#allocation56_spill] sm:$0xff] %v10618_v40 }
 0x4ae   : > { %12393 = vst [vmem:[#allocation51_spill] sm:$0xff] %v10584_v59 }
 0x4af   : > { %7023 = vmatmul.msk.f32.gmra.mxu3 %vm1085_vm2, %v7002_v34 }
 0x4b0   : > { %v10582_v58 = vpop.f32.mrf.mxu2 }
 0x4b1   : > { %12392 = vst [vmem:[#allocation50_spill] sm:$0xff] %v10582_v58 }
 0x4b2   : > { %v10586_v4 = vpop.f32.mrf.mxu3  ;;  %v10588_v2 = vpop.f32.mrf.mxu0 }
 0x4b3   : > { %12394 = vst [vmem:[#allocation52_spill] sm:$0xff] %v10586_v4  ;;  %v10622_v4 = vpop.permute.xlu0 %3569  ;;  %v10629_v42 = vpop.permute.xlu2 %3559 }
 0x4b5   : > { %v10592_v24 = vpop.f32.mrf.mxu1 }
 0x4b8   : > { %v10590_v32 = vpop.f32.mrf.mxu2 }
 0x4b9   : > { %12395 = vst [vmem:[#allocation53_spill] sm:$0xff] %v10590_v32 }
 0x4ba   : > { %v10594_v41 = vpop.f32.mrf.mxu3  ;;  %v10598_v21 = vpop.f32.mrf.mxu0 }
 0x4bb   : > { %12396 = vst [vmem:[#allocation54_spill] sm:$0xff] %v10594_v41 }
 0x4bd   : > { %v10602_v34 = vpop.f32.mrf.mxu1 }
 0x4c0   : > { %v10596_v26 = vpop.f32.mrf.mxu2 }
 0x4c2   : > { %v10600_v50 = vpop.f32.mrf.mxu3  ;;  %v10608_v60 = vpop.f32.mrf.mxu0 }
 0x4c5   : > { %v10610_v1 = vpop.f32.mrf.mxu1 }
 0x4c8   : > { %v10604_v56 = vpop.f32.mrf.mxu2 }
 0x4ca   : > { %v10606_v17 = vpop.f32.mrf.mxu3  ;;  %v3380_v6 = vpop.f32.mrf.mxu0 }
 0x4cd   : > { %v3457_v38 = vpop.f32.mrf.mxu1 }
 0x4d0   : > { %v10612_v30 = vpop.f32.mrf.mxu2 }
 0x4d2   : > { %v10614_v57 = vpop.f32.mrf.mxu3  ;;  %v3383_v35 = vpop.f32.mrf.mxu0 }
 0x4d5   : > { %v3460_v62 = vpop.f32.mrf.mxu1 }
 0x4d8   : > { %v3002_v25 = vpop.f32.mrf.mxu2 }
 0x4da   : > { %v3079_v7 = vpop.f32.mrf.mxu3  ;;  %v3386_v23 = vpop.f32.mrf.mxu0 }
 0x4dd   : > { %v3463_v11 = vpop.f32.mrf.mxu1 }
 0x4e0   : > { %v3005_v13 = vpop.f32.mrf.mxu2 }
 0x4e2   : > { %v3082_v52 = vpop.f32.mrf.mxu3  ;;  %v3389_v43 = vpop.f32.mrf.mxu0 }
 0x4e5   : > { %v3466_v53 = vpop.f32.mrf.mxu1 }
 0x4e6   : > { %v3467_v41 = vadd.f32 %v3466_v53, %v3389_v43 }
 0x4e8   : > { %v3008_v18 = vpop.f32.mrf.mxu2 }
 0x4ea   : > { %v3085_v37 = vpop.f32.mrf.mxu3  ;;  %v3392_v0 = vpop.f32.mrf.mxu0 }
 0x4eb   : > { %v3086_v51 = vadd.f32 %v3085_v37, %v3008_v18 }
 0x4ed   : > { %v3469_v16 = vpop.f32.mrf.mxu1 }
 0x4ee   : > { %v3470_v59 = vadd.f32 %v3469_v16, %v3392_v0  ;;  %v3461_v16 = vadd.f32 %v3460_v62, %v3383_v35  ;;  %v3083_v0 = vadd.f32 %v3082_v52, %v3005_v13  ;;  %v3455_v13 = vadd.f32 %v10610_v1, %v10608_v60  ;;  %v10659_v1 = vpop.permute.xlu2 %3544  ;;  %v12403_v52 = vld [vmem:[#allocation55_spill] sm:$0xff]  ;;  %v12404_v62 = vld [vmem:[#allocation53_spill] sm:$0xff] }
 0x4f0   : > { %v3011_v63 = vpop.f32.mrf.mxu2 }
 0x4f2   : > { %v3088_v3 = vpop.f32.mrf.mxu3  ;;  %v3395_v20 = vpop.f32.mrf.mxu0 }
 0x4f3   : > { %v3089_v40 = vadd.f32 %v3088_v3, %v3011_v63 }
 0x4f5   : > { %v3472_v39 = vpop.f32.mrf.mxu1  ;;  %v3126_v43 = vadd.f32 %v3089_v40, %v10341_v48  ;;  %v12406_v40 = vld [vmem:[#allocation49_spill] sm:$0xff] }
 0x4f8   : > { %v3014_v29 = vpop.f32.mrf.mxu2 }
 0x4fa   : > { %v3091_v31 = vpop.f32.mrf.mxu3  ;;  %v10625_v15 = vpop.f32.mrf.mxu0 }
 0x4fb   : > { %v3092_v58 = vadd.f32 %v3091_v31, %v3014_v29  ;;  %12400 = vst [vmem:[#allocation58_spill] sm:$0xff] %v10625_v15  ;;  %v3458_v15 = vadd.f32 %v3457_v38, %v3380_v6  ;;  %v3124_v38 = vadd.f32 %v3083_v0, %v10297_v19  ;;  %v12416_v0 = vld [vmem:[#allocation46_spill] sm:$0xff] }
 0x4fd   : > { %v10627_v46 = vpop.f32.mrf.mxu1  ;;  %v3127_v31 = vadd.f32 %v3092_v58, %v10363_v5  ;;  %v12409_v58 = vld [vmem:[#allocation57_spill] sm:$0xff] }
 0x4fe   : > { %12401 = vst [vmem:[#allocation59_spill] sm:$0xff] %v10627_v46  ;;  %v3080_v46 = vadd.f32 %v3079_v7, %v3002_v25  ;;  %v3498_v25 = vadd.f32 %v3461_v16, %v3126_v43  ;;  %v3496_v7 = vadd.f32 %v3455_v13, %v3124_v38  ;;  %v12417_v43 = vld [vmem:[#allocation48_spill] sm:$0xff] }
 0x500   : > { %v3017_v14 = vpop.f32.mrf.mxu2  ;;  %v3123_v60 = vadd.f32 %v3080_v46, %v10275_v28  ;;  %v3638_v63 = vadd.f32 %v12403_v52, %v3498_v25  ;;  %v12408_v46 = vld [vmem:[#allocation5_spill] sm:$0xff]  ;;  %v12428_v52 = vld [vmem:[#allocation39_spill] sm:$0xff] }
 0x502   : > { %v3094_v9 = vpop.f32.mrf.mxu3 }
 0x503   : > { %v3095_v61 = vadd.f32 %v3094_v9, %v3017_v14  ;;  %v3473_v9 = vadd.f32 %v3472_v39, %v3395_v20  ;;  %v3464_v14 = vadd.f32 %v3463_v11, %v3386_v23  ;;  %v3125_v20 = vadd.f32 %v3086_v51, %v10319_v10  ;;  %v10651_v51 = vpop.f32.mrf.mxu0  ;;  %v12407_v39 = vld [vmem:[#allocation51_spill] sm:$0xff] }
 0x504   : > { %v3452_v10 = vadd.f32 %v10602_v34, %v10598_v21  ;;  %v12413_v21 = vld [vmem:[#allocation47_spill] sm:$0xff] }
 0x505   : > { %v3499_v11 = vadd.f32 %v3464_v14, %v3127_v31  ;;  %v10657_v18 = vpop.f32.mrf.mxu1 }
 0x508   : > { %v3020_v36 = vpop.f32.mrf.mxu2 }
 0x50a   : > { %v3097_v54 = vpop.f32.mrf.mxu3 }
 0x50b   : > { %v3098_v47 = vadd.f32 %v3097_v54, %v3020_v36  ;;  %v3128_v36 = vadd.f32 %v3095_v61, %v10387_v22  ;;  %v10637_v22 = vpop.permute.xlu1 %3564  ;;  %v3495_v61 = vadd.f32 %v3452_v10, %v3123_v60  ;;  %v12422_v10 = vld [vmem:[#allocation16_spill] sm:$0xff] }
 0x50d   : > { %v3129_v12 = vadd.f32 %v3098_v47, %v10411_v8  ;;  %v3500_v53 = vadd.f32 %v3467_v41, %v3128_v36  ;;  %v12412_v41 = vld [vmem:[#allocation45_spill] sm:$0xff]  ;;  %v3635_v25 = vadd.f32 %v10622_v4, %v3495_v61 }
 0x50e   : > { %v3443_v34 = vadd.f32 %v12413_v21, %v12412_v41  ;;  %v12435_v21 = vld [vmem:[#allocation33_spill] sm:$0xff] }
 0x50f   : > { %v3501_v29 = vadd.f32 %v3470_v59, %v3129_v12  ;;  %v3077_v12 = vadd.f32 %v10614_v57, %v10612_v30  ;;  %v3640_v23 = vadd.f32 %v3595_v49, %v3500_v53  ;;  %v3497_v57 = vadd.f32 %v3458_v15, %v3125_v20  ;;  %v12402_v30 = vld [vmem:[#allocation20_spill] sm:$0xff]  ;;  %v12419_v20 = vld [vmem:[#allocation43_spill] sm:$0xff] }
 0x510   : > { %v3023_v55 = vpop.f32.mrf.mxu2  ;;  %v3639_v49 = vadd.f32 %v3590_v33, %v3499_v11  ;;  %v3062_v53 = vadd.f32 %v12417_v43, %v12416_v0 }
 0x511   : > { %v3641_v5 = vadd.f32 %v3600_v45, %v3501_v29  ;;  %v3122_v35 = vadd.f32 %v3077_v12, %v12402_v30  ;;  %v10673_v28 = vmax.f32 %v3640_v23, 0.0  ;;  %v12405_v45 = vld [vmem:[#allocation54_spill] sm:$0xff]  ;;  %v3637_v59 = vadd.f32 %v12409_v58, %v3497_v57  ;;  %v10712_v23 = vpop.f32.mrf.mxu0  ;;  %v12426_v30 = vld [vmem:[#allocation44_spill] sm:$0xff] }
 0x512   : > { %v3100_v32 = vpop.f32.mrf.mxu3  ;;  %v3068_v33 = vadd.f32 %v12405_v45, %v12404_v62  ;;  %v10685_v15 = vmax.f32 %v3639_v49, 0.0  ;;  %v10697_v29 = vmax.f32 %v3638_v63, 0.0  ;;  %v12423_v57 = vld [vmem:[#allocation30_spill] sm:$0xff]  ;;  %v12424_v49 = vld [vmem:[#allocation32_spill] sm:$0xff]  ;;  %v3481_v62 = vpop.f32.mrf.mxu1 }
 0x513   : > { %v3101_v54 = vadd.f32 %v3100_v32, %v3023_v55  ;;  %v10664_v19 = vmax.f32 %v3641_v5, 0.0  ;;  %v12411_v32 = vld [vmem:[#allocation52_spill] sm:$0xff]  ;;  %v10709_v38 = vmax.f32 %v3637_v59, 0.0  ;;  %v10722_v45 = vpop.permute.xlu2 %3619  ;;  %v12432_v58 = vld [vmem:[#allocation38_spill] sm:$0xff] }
 0x514   : > { %v12420_v5 = vld [vmem:[#allocation28_spill] sm:$0xff] }
 0x515   : > { %v3130_v8 = vadd.f32 %v3101_v54, %v10433_v44  ;;  %v10646_v44 = vpop.permute.xlu0 %3554  ;;  %v3550_v54 = vpop.permute.xlu1 %3549  ;;  %v3119_v12 = vadd.f32 %v3068_v33, %v12420_v5  ;;  %v12429_v33 = vld [vmem:[#allocation21_spill] sm:$0xff]  ;;  %v12433_v59 = vld [vmem:[#allocation40_spill] sm:$0xff] }
 0x516   : > { %v12442_v5 = vld [vmem:[#allocation36_spill] sm:$0xff] }
 0x517   : > { %v3502_v47 = vadd.f32 %v3473_v9, %v3130_v8  ;;  %v12414_v9 = vld [vmem:[#allocation9_spill] sm:$0xff]  ;;  %v12415_v8 = vld [vmem:[#allocation56_spill] sm:$0xff] }
 0x518   : > { %v10635_v3 = vpop.f32.mrf.mxu2  ;;  %v3636_v16 = vadd.f32 %v12415_v8, %v3496_v7  ;;  %v12427_v7 = vld [vmem:[#allocation37_spill] sm:$0xff] }
 0x519   : > { %v3642_v37 = vadd.f32 %v3605_v27, %v3502_v47  ;;  %v3074_v27 = vadd.f32 %v10606_v17, %v10604_v56  ;;  %v3071_v17 = vadd.f32 %v10600_v50, %v10596_v26  ;;  %v3449_v56 = vadd.f32 %v10592_v24, %v10588_v2  ;;  %v12410_v2 = vld [vmem:[#allocation50_spill] sm:$0xff]  ;;  %v12418_v47 = vld [vmem:[#allocation41_spill] sm:$0xff] }
 0x51a   : > { %v10644_v48 = vpop.f32.mrf.mxu3  ;;  %v3446_v50 = vadd.f32 %v12407_v39, %v12406_v40  ;;  %v3065_v24 = vadd.f32 %v12411_v32, %v12410_v2  ;;  %v3440_v11 = vadd.f32 %v12419_v20, %v12418_v47  ;;  %v3437_v63 = vadd.f32 %v12428_v52, %v12427_v7  ;;  %v12434_v32 = vld [vmem:[#allocation19_spill] sm:$0xff]  ;;  %v12438_v8 = vld [vmem:[#allocation13_spill] sm:$0xff]  ;;  %v12440_v47 = vld [vmem:[#allocation22_spill] sm:$0xff] }
 0x51b   : > { %v10649_v6 = vmax.f32 %v3642_v37, 0.0  ;;  %v3121_v55 = vadd.f32 %v3074_v27, %v12408_v46  ;;  %v3120_v14 = vadd.f32 %v3071_v17, %v12414_v9  ;;  %v3494_v31 = vadd.f32 %v3449_v56, %v3122_v35  ;;  %v12421_v27 = vld [vmem:[#allocation18_spill] sm:$0xff]  ;;  %v12436_v9 = vld [vmem:[#allocation35_spill] sm:$0xff] }
 0x51c   : > { %v2735_v60 = vadd.f32 %v12422_v10, %v12421_v27  ;;  %v2237_v17 = vadd.f32 %v12424_v49, %v12423_v57  ;;  %v12425_v56 = vld [vmem:[#allocation42_spill] sm:$0xff]  ;;  %v3118_v40 = vadd.f32 %v3065_v24, %v12429_v33  ;;  %v10727_v39 = vmax.f32 %v3636_v16, 0.0  ;;  %v12443_v10 = vld [vmem:[#allocation11_spill] sm:$0xff]  ;;  %v12444_v49 = vld [vmem:[#allocation29_spill] sm:$0xff] }
 0x51d   : > { %3721 = vmatpush.msra.mxu0 %v10649_v6  ;;  %7509 = vmatpush.msra.mxu2 %v10649_v6  ;;  %v10704_v37 = vpop.permute.xlu0 %3624  ;;  %v3493_v13 = vadd.f32 %v3446_v50, %v3121_v55  ;;  %v3059_v35 = vadd.f32 %v12426_v30, %v12425_v56  ;;  %v3492_v4 = vadd.f32 %v3443_v34, %v3120_v14  ;;  %v12430_v46 = vld [vmem:[#allocation10_spill] sm:$0xff]  ;;  %v12431_v55 = vld [vmem:[#allocation4_spill] sm:$0xff]  ;;  %v12437_v14 = vld [vmem:[#allocation27_spill] sm:$0xff] }
 0x51e   : > { %v3634_v50 = vadd.f32 %v10637_v22, %v3494_v31  ;;  %v2234_v61 = vadd.f32 %v12431_v55, %v12430_v46  ;;  %v3056_v2 = vadd.f32 %v12433_v59, %v12432_v58  ;;  %v3117_v41 = vadd.f32 %v3062_v53, %v12434_v32  ;;  %v12439_v16 = vld [vmem:[#allocation6_spill] sm:$0xff]  ;;  %v12445_v56 = vld [vmem:[#allocation31_spill] sm:$0xff]  ;;  %v12448_v46 = vld [vmem:[#allocation25_spill] sm:$0xff] }
 0x51f   : > { %3722 = vmatpush.msra.mxu0 %v10664_v19  ;;  %7510 = vmatpush.msra.mxu2 %v10664_v19  ;;  %v3434_v24 = vadd.f32 %v12436_v9, %v12435_v21  ;;  %v2738_v0 = vadd.f32 %v12438_v8, %v12437_v14  ;;  %v3491_v43 = vadd.f32 %v3440_v11, %v3119_v12  ;;  %v10741_v22 = vmax.f32 %v3635_v25, 0.0  ;;  %v12441_v53 = vld [vmem:[#allocation34_spill] sm:$0xff]  ;;  %v12446_v12 = vld [vmem:[#allocation3_spill] sm:$0xff]  ;;  %v12450_v58 = vld [vmem:[#allocation8_spill] sm:$0xff] }
 0x520   : > { %v10680_v26 = vpop.f32.mrf.mxu2  ;;  %v3633_v31 = vadd.f32 %v10629_v42, %v3493_v13  ;;  %v2231_v20 = vadd.f32 %v12440_v47, %v12439_v16  ;;  %v2240_v27 = vadd.f32 %v12442_v5, %v12441_v53  ;;  %v3116_v57 = vadd.f32 %v3059_v35, %v12443_v10  ;;  %v12447_v25 = vld [vmem:[#allocation15_spill] sm:$0xff]  ;;  %v12449_v35 = vld [vmem:[#allocation12_spill] sm:$0xff]  ;;  %v12451_v21 = vld [vmem:[#allocation26_spill] sm:$0xff] }
 0x521   : > { %3723 = vmatpush.msra.mxu0 %v10673_v28  ;;  %7511 = vmatpush.msra.mxu2 %v10673_v28  ;;  %v3431_v30 = vadd.f32 %v12445_v56, %v12444_v49  ;;  %v2260_v7 = vadd.f32 %v2237_v17, %v12446_v12  ;;  %v3490_v52 = vadd.f32 %v3437_v63, %v3118_v40  ;;  %v10754_v42 = vmax.f32 %v3634_v50, 0.0  ;;  %v12452_v9 = vld [vmem:[#allocation24_spill] sm:$0xff]  ;;  %v3540_v63 = vpop.permute.xlu1 %3539  ;;  %v12454_v14 = vld [vmem:[#allocation14_spill] sm:$0xff]  ;;  %v12455_v8 = vld [vmem:[#allocation23_spill] sm:$0xff]  ;;  %v3484_v49 = vpop.f32.mrf.mxu1 }
 0x522   : > { %v10692_v36 = vpop.f32.mrf.mxu3  ;;  %v3632_v13 = vadd.f32 %v10646_v44, %v3492_v4  ;;  %v2259_v33 = vadd.f32 %v2234_v61, %v12447_v25  ;;  %v3115_v55 = vadd.f32 %v3056_v2, %v12448_v46  ;;  %v3428_v59 = vadd.f32 %v12450_v58, %v12449_v35  ;;  %v12453_v4 = vld [vmem:[#allocation7_spill] sm:$0xff]  ;;  %v12456_v16 = vld [vmem:[#allocation17_spill] sm:$0xff] }
 0x523   : > { %3724 = vmatpush.msra.mxu0 %v10685_v15  ;;  %7512 = vmatpush.msra.mxu2 %v10685_v15  ;;  %v3489_v32 = vadd.f32 %v3434_v24, %v3117_v41  ;;  %v2732_v17 = vadd.f32 %v12452_v9, %v12451_v21  ;;  %v10765_v50 = vmax.f32 %v3633_v31, 0.0  ;;  %v3631_v44 = vadd.f32 %v3550_v54, %v3491_v43  ;;  %v3407_v54 = vpop.f32.mrf.mxu0 }
 0x524   : > { %v2258_v61 = vadd.f32 %v2231_v20, %v12453_v4  ;;  %v2261_v2 = vadd.f32 %v2240_v27, %v12454_v14  ;;  %v2741_v47 = vadd.f32 %v12456_v16, %v12455_v8  ;;  %v3488_v41 = vadd.f32 %v3431_v30, %v3116_v57  ;;  %v3530_v57 = vpop.permute.xlu2 %3529  ;;  %v3679_v8 = vld [vmem:[%s12233_s4 + $0x60] sm:$0xff]  ;;  %v3680_v16 = vld [vmem:[%s12233_s4 + $0x68] sm:$0xff] }
 0x525   : > { %3725 = vmatpush.msra.mxu0 %v10697_v29  ;;  %7513 = vmatpush.msra.mxu2 %v10697_v29  ;;  %v2761_v24 = vadd.f32 %v2738_v0, %v2260_v7  ;;  %v3535_v53 = vpop.permute.xlu0 %3534  ;;  %v10775_v31 = vmax.f32 %v3632_v13, 0.0  ;;  %v3630_v43 = vadd.f32 %v10659_v1, %v3490_v52  ;;  %v2760_v20 = vadd.f32 %v2735_v60, %v2259_v33  ;;  %v12458_v13 = vld [vmem:[#allocation59_spill] sm:$0xff] }
 0x526   : > { %v3487_v5 = vadd.f32 %v3428_v59, %v3115_v55  ;;  %v3629_v27 = vadd.f32 %v3540_v63, %v3489_v32  ;;  %v3104_v0 = vadd.f32 %v10644_v48, %v10635_v3  ;;  %v2759_v30 = vadd.f32 %v2732_v17, %v2258_v61  ;;  %v3667_v17 = vld [vmem:[%s12233_s4] sm:$0xff] }
 0x527   : > { %3726 = vmatpush.msra.mxu0 %v10709_v38  ;;  %7514 = vmatpush.msra.mxu2 %v10709_v38  ;;  %v2762_v1 = vadd.f32 %v2741_v47, %v2261_v2  ;;  %v3628_v60 = vadd.f32 %v3535_v53, %v3488_v41  ;;  %v3485_v3 = vadd.f32 %v3484_v49, %v3407_v54  ;;  %v10789_v48 = vmax.f32 %v3630_v43, 0.0  ;;  %v3672_v2 = vld [vmem:[%s12233_s4 + $0x28] sm:$0xff]  ;;  %v3681_v47 = vld [vmem:[%s12233_s4 + $0x70] sm:$0xff]  ;;  %v3682_v41 = vld [vmem:[%s12233_s4 + $0x78] sm:$0xff] }
 0x528   : > { %v3032_v34 = vpop.f32.mrf.mxu2  ;;  %v10793_v33 = vmax.f32 %v3629_v27, 0.0  ;;  %v3131_v46 = vadd.f32 %v3104_v0, %v2759_v30  ;;  %v3684_v53 = vld [vmem:[%s12233_s4 + $0x88] sm:$0xff]  ;;  %v7096_v54 = vld [vmem:[%s12233_s4 + $0xa0] sm:$0xff]  ;;  %v7102_v49 = vld [vmem:[%s12233_s4 + $0xd0] sm:$0xff] }
 0x529   : > { %3727 = vmatpush.msra.mxu0 %v10727_v39  ;;  %7515 = vmatpush.msra.mxu2 %v10727_v39  ;;  %v3615_v63 = vpop.permute.xlu1 %3614  ;;  %v7097_v43 = vld [vmem:[%s12233_s4 + $0xa8] sm:$0xff]  ;;  %v7100_v27 = vld [vmem:[%s12233_s4 + $0xc0] sm:$0xff]  ;;  %v3962_v30 = vld [vmem:[%s12234_s5 + $0x10] sm:$0xff] }
 0x52a   : > { %v3109_v11 = vpop.f32.mrf.mxu3  ;;  %v7104_v0 = vld [vmem:[%s12233_s4 + $0xe0] sm:$0xff] }
 0x52b   : > { %3728 = vmatpush.msra.mxu0 %v10741_v22  ;;  %7516 = vmatpush.msra.mxu2 %v10741_v22  ;;  %v3110_v40 = vadd.f32 %v3109_v11, %v3032_v34  ;;  %v3107_v34 = vadd.f32 %v10692_v36, %v10680_v26  ;;  %v3482_v26 = vadd.f32 %v3481_v62, %v10712_v23  ;;  %v10783_v36 = vmax.f32 %v3631_v44, 0.0  ;;  %v12457_v62 = vld [vmem:[#allocation58_spill] sm:$0xff] }
 0x52c   : > { %v3479_v11 = vadd.f32 %v10657_v18, %v10651_v51  ;;  %v3627_v23 = vadd.f32 %v3530_v57, %v3487_v5  ;;  %v3476_v25 = vadd.f32 %v12458_v13, %v12457_v62  ;;  %v10797_v51 = vmax.f32 %v3628_v60, 0.0  ;;  %v7099_v5 = vld [vmem:[%s12233_s4 + $0xb8] sm:$0xff]  ;;  %v7106_v60 = vld [vmem:[%s12233_s4 + $0xf0] sm:$0xff] }
 0x52d   : > { %3729 = vmatpush.msra.mxu0 %v10754_v42  ;;  %7517 = vmatpush.msra.mxu2 %v10754_v42  ;;  %v3133_v56 = vadd.f32 %v3110_v40, %v2761_v24  ;;  %v3132_v7 = vadd.f32 %v3107_v34, %v2760_v20  ;;  %v3610_v4 = vpop.permute.xlu0 %3609  ;;  %v3683_v24 = vld [vmem:[%s12233_s4 + $0x80] sm:$0xff]  ;;  %v3685_v34 = vld [vmem:[%s12233_s4 + $0x90] sm:$0x3f]  ;;  %v7103_v57 = vld [vmem:[%s12233_s4 + $0xd8] sm:$0xff] }
 0x52e   : > { %v10801_v59 = vmax.f32 %v3627_v23, 0.0  ;;  %v3503_v32 = vadd.f32 %v3476_v25, %v3131_v46  ;;  %v7098_v20 = vld [vmem:[%s12233_s4 + $0xb0] sm:$0xff]  ;;  %v7109_v23 = vld [vmem:[%s12233_s4 + $0x108] sm:$0xff]  ;;  %v7111_v13 = vld [vmem:[%s12233_s4 + $0x118] sm:$0xff] }
 0x52f   : > { %3730 = vmatpush.msra.mxu0 %v10765_v50  ;;  %7518 = vmatpush.msra.mxu2 %v10765_v50  ;;  %v3505_v55 = vadd.f32 %v3482_v26, %v3133_v56  ;;  %v3504_v18 = vadd.f32 %v3479_v11, %v3132_v7  ;;  %v7105_v56 = vld [vmem:[%s12233_s4 + $0xe8] sm:$0xff]  ;;  %v3963_v26 = vld [vmem:[%s12234_s5 + $0x18] sm:$0x3]  ;;  %v7110_v62 = vld [vmem:[%s12233_s4 + $0x110] sm:$0xff] }
 0x530   : > { %v3035_v10 = vpop.f32.mrf.mxu2  ;;  %v7107_v11 = vld [vmem:[%s12233_s4 + $0xf8] sm:$0xff]  ;;  %v7139_v7 = vld [vmem:[%s12234_s5 + $0x28] sm:$0xff] }
 0x531   : > { %3731 = vmatpush.msra.mxu0 %v10775_v31  ;;  %7519 = vmatpush.msra.mxu2 %v10775_v31  ;;  %v3645_v9 = vadd.f32 %v10722_v45, %v3505_v55  ;;  %v3644_v40 = vadd.f32 %v3615_v63, %v3504_v18  ;;  %v7113_v46 = vld [vmem:[%s12233_s4 + $0x128] sm:$0xff]  ;;  %v7114_v18 = vld [vmem:[%s12233_s4 + $0x130] sm:$0x3f] }
 0x532   : > { %v3112_v12 = vpop.f32.mrf.mxu3 }
 0x533   : > { %v3113_v52 = vadd.f32 %v3112_v12, %v3035_v10  ;;  %3732 = vmatpush.msra.mxu0 %v10783_v36  ;;  %7520 = vmatpush.msra.mxu2 %v10783_v36  ;;  %v3665_v45 = vmax.f32 %v3645_v9, 0.0  ;;  %v3664_v61 = vmax.f32 %v3644_v40, 0.0  ;;  %v7101_v10 = vld [vmem:[%s12233_s4 + $0xc8] sm:$0xff] }
 0x534   : > { %v3961_v12 = vld [vmem:[%s12234_s5 + $0x8] sm:$0xff] }
 0x535   : > { %v3134_v35 = vadd.f32 %v3113_v52, %v2762_v1  ;;  %3733 = vmatpush.msra.mxu0 %v10789_v48  ;;  %7521 = vmatpush.msra.mxu2 %v10789_v48  ;;  %v7140_v1 = vld [vmem:[%s12234_s5 + $0x30] sm:$0xff]  ;;  %v3960_v52 = vld [vmem:[%s12234_s5] sm:$0xff] }
 0x537   : > { %v3506_v58 = vadd.f32 %v3485_v3, %v3134_v35  ;;  %3734 = vmatpush.msra.mxu0 %v10793_v33  ;;  %7522 = vmatpush.msra.mxu2 %v10793_v33  ;;  %v7138_v3 = vld [vmem:[%s12234_s5 + $0x20] sm:$0xff] }
 0x539   : > { %v3646_v21 = vadd.f32 %v10704_v37, %v3506_v58  ;;  %3735 = vmatpush.msra.mxu0 %v10797_v51  ;;  %7523 = vmatpush.msra.mxu2 %v10797_v51  ;;  %v3643_v37 = vadd.f32 %v3610_v4, %v3503_v32  ;;  %v7115_v58 = vld [vmem:[%s12233_s4 + $0x138] sm:$0x3f] }
 0x53b   : > { %v3666_v44 = vmax.f32 %v3646_v21, 0.0  ;;  %3736 = vmatpush.msra.mxu0 %v10801_v59  ;;  %7524 = vmatpush.msra.mxu2 %v10801_v59  ;;  %v3663_v14 = vmax.f32 %v3643_v37, 0.0 }
 0x53c   : > { %3737 = vmatmul.f32.vlgmr.msra.gmra.mxu0 %v3667_v17 }
 0x53d   : > { %3866 = vmatpush.msrb.mxu2 %v10649_v6  ;;  %7085 = vmatpush.msk.msrb.mxu0 %vm644_vm0, %v3666_v44  ;;  %v3671_v6 = vld [vmem:[%s12233_s4 + $0x20] sm:$0xff] }
 0x53e   : > { %7525 = vmatpush.msk.msra.mxu3 %vm644_vm0, %v3666_v44  ;;  %3743 = vmatmul.f32.vlgmr.msra.gmra.mxu2 %v3671_v6 }
 0x53f   : > { %3867 = vmatpush.msrb.mxu2 %v10664_v19  ;;  %3781 = vmatpush.msrb.mxu0 %v3665_v45  ;;  %v3669_v19 = vld [vmem:[%s12233_s4 + $0x10] sm:$0xff] }
 0x540   : > { %7526 = vmatpush.msra.mxu3 %v3665_v45 }
 0x541   : > { %3868 = vmatpush.msrb.mxu2 %v10673_v28  ;;  %3782 = vmatpush.msrb.mxu0 %v3664_v61  ;;  %v3673_v28 = vld [vmem:[%s12233_s4 + $0x30] sm:$0xff] }
 0x542   : > { %7527 = vmatpush.msra.mxu3 %v3664_v61 }
 0x543   : > { %3869 = vmatpush.msrb.mxu2 %v10685_v15  ;;  %3783 = vmatpush.msrb.mxu0 %v3663_v14  ;;  %v3674_v15 = vld [vmem:[%s12233_s4 + $0x38] sm:$0xff] }
 0x544   : > { %7528 = vmatpush.msra.mxu3 %v3663_v14  ;;  %3740 = vmatmul.f32.gmra.mxu0 %v3669_v19 }
 0x545   : > { %7088 = vmatmul.msk.f32.vlgmr.msra.gmra.mxu3 %vm3687_vm4, %v3672_v2  ;;  %3870 = vmatpush.msrb.mxu2 %v10697_v29  ;;  %v3668_v29 = vld [vmem:[%s12233_s4 + $0x8] sm:$0xff] }
 0x546   : > { %7116 = vmatpush.msk.msrb.mxu3 %vm644_vm0, %v3666_v44  ;;  %3746 = vmatmul.f32.gmra.mxu2 %v3673_v28 }
 0x547   : > { %3871 = vmatpush.msrb.mxu2 %v10709_v38  ;;  %v3675_v38 = vld [vmem:[%s12233_s4 + $0x40] sm:$0xff]  ;;  %7127 = vmatpush.msk.msra.mxu0 %vm3995_vm5, %v3963_v26 }
 0x548   : > { %3926 = vmatpush.msrb.mxu3 %v3665_v45 }
 0x549   : > { %3872 = vmatpush.msrb.mxu2 %v10727_v39  ;;  %v3676_v39 = vld [vmem:[%s12233_s4 + $0x48] sm:$0xff]  ;;  %4012 = vmatpush.msra.mxu0 %v3962_v30 }
 0x54a   : > { %3927 = vmatpush.msrb.mxu3 %v3664_v61 }
 0x54b   : > { %3873 = vmatpush.msrb.mxu2 %v10741_v22  ;;  %v3670_v22 = vld [vmem:[%s12233_s4 + $0x18] sm:$0xff]  ;;  %4013 = vmatpush.msra.mxu0 %v3961_v12 }
 0x54c   : > { %3928 = vmatpush.msrb.mxu3 %v3663_v14  ;;  %7086 = vmatmul.msk.f32.vlgmr.msrb.gmra.mxu0 %vm3687_vm4, %v3668_v29 }
 0x54d   : > { %7089 = vmatmul.msk.f32.gmra.mxu3 %vm3687_vm4, %v3674_v15  ;;  %3874 = vmatpush.msrb.mxu2 %v10754_v42  ;;  %v3677_v42 = vld [vmem:[%s12233_s4 + $0x50] sm:$0xff] }
 0x54e   : > { %3749 = vmatmul.f32.gmra.mxu2 %v3675_v38  ;;  %4014 = vmatpush.msra.mxu0 %v3960_v52 }
 0x54f   : > { %3875 = vmatpush.msrb.mxu2 %v10765_v50  ;;  %v3678_v50 = vld [vmem:[%s12233_s4 + $0x58] sm:$0xff] }
 0x551   : > { %3876 = vmatpush.msrb.mxu2 %v10775_v31  ;;  %v3686_v31 = vld [vmem:[%s12233_s4 + $0x98] sm:$0x3f] }
 0x553   : > { %3877 = vmatpush.msrb.mxu2 %v10783_v36  ;;  %v7141_v36 = vld [vmem:[%s12234_s5 + $0x38] sm:$0x3] }
 0x554   : > { %7087 = vmatmul.msk.f32.gmra.mxu0 %vm3687_vm4, %v3670_v22  ;;  %7142 = vmatpush.msk.msra.mxu1 %vm3995_vm5, %v7141_v36 }
 0x555   : > { %7090 = vmatmul.msk.f32.gmra.mxu3 %vm3687_vm4, %v3676_v39  ;;  %3878 = vmatpush.msrb.mxu2 %v10789_v48  ;;  %v7108_v48 = vld [vmem:[%s12233_s4 + $0x100] sm:$0xff] }
 0x556   : > { %3752 = vmatmul.f32.gmra.mxu2 %v3677_v42  ;;  %7164 = vmatpush.msk.msra.mxu3 %vm3995_vm5, %v7141_v36 }
 0x557   : > { %3879 = vmatpush.msrb.mxu2 %v10793_v33  ;;  %4067 = vmatpush.msra.mxu1 %v7140_v1  ;;  %v7112_v33 = vld [vmem:[%s12233_s4 + $0x120] sm:$0xff] }
 0x558   : > { %4201 = vmatpush.msra.mxu3 %v7140_v1 }
 0x559   : > { %3880 = vmatpush.msrb.mxu2 %v10797_v51  ;;  %4068 = vmatpush.msra.mxu1 %v7139_v7 }
 0x55a   : > { %4202 = vmatpush.msra.mxu3 %v7139_v7 }
 0x55b   : > { %3881 = vmatpush.msrb.mxu2 %v10801_v59  ;;  %4069 = vmatpush.msra.mxu1 %v7138_v3 }
 0x55c   : > { %4203 = vmatpush.msra.mxu3 %v7138_v3 }
 0x55d   : > { %7091 = vmatmul.msk.f32.gmra.mxu3 %vm3687_vm4, %v3678_v50  ;;  %7153 = vmatpush.msk.msra.mxu2 %vm3995_vm5, %v3963_v26 }
 0x55e   : > { %3755 = vmatmul.f32.gmra.mxu2 %v3679_v8 }
 0x55f   : > { %4154 = vmatpush.msra.mxu2 %v3962_v30 }
 0x561   : > { %4155 = vmatpush.msra.mxu2 %v3961_v12 }
 0x563   : > { %4156 = vmatpush.msra.mxu2 %v3960_v52 }
 0x565   : > { %7092 = vmatmul.msk.f32.gmra.mxu3 %vm3687_vm4, %v3680_v16 }
 0x566   : > { %3758 = vmatmul.f32.gmra.mxu2 %v3681_v47 }
 0x56d   : > { %7093 = vmatmul.msk.f32.gmra.mxu3 %vm3687_vm4, %v3682_v41 }
 0x56e   : > { %3761 = vmatmul.f32.gmra.mxu2 %v3683_v24 }
 0x575   : > { %7094 = vmatmul.msk.f32.gmra.mxu3 %vm3687_vm4, %v3684_v53 }
 0x576   : > { %3764 = vmatmul.f32.gmra.mxu2 %v3685_v34 }
 0x57d   : > { %7095 = vmatmul.msk.f32.gmra.mxu3 %vm3687_vm4, %v3686_v31 }
 0x57e   : > { %3882 = vmatmul.f32.vlgmr.msrb.gmra.mxu2 %v7096_v54 }
 0x585   : > { %7117 = vmatmul.msk.f32.vlgmr.msrb.gmra.mxu3 %vm3687_vm4, %v7097_v43 }
 0x586   : > { %3885 = vmatmul.f32.gmra.mxu2 %v7098_v20 }
 0x58d   : > { %7118 = vmatmul.msk.f32.gmra.mxu3 %vm3687_vm4, %v7099_v5 }
 0x58e   : > { %3888 = vmatmul.f32.gmra.mxu2 %v7100_v27 }
 0x595   : > { %7119 = vmatmul.msk.f32.gmra.mxu3 %vm3687_vm4, %v7101_v10 }
 0x596   : > { %3891 = vmatmul.f32.gmra.mxu2 %v7102_v49 }
 0x59d   : > { %7120 = vmatmul.msk.f32.gmra.mxu3 %vm3687_vm4, %v7103_v57 }
 0x59e   : > { %3894 = vmatmul.f32.gmra.mxu2 %v7104_v0 }
 0x5a5   : > { %7121 = vmatmul.msk.f32.gmra.mxu3 %vm3687_vm4, %v7105_v56 }
 0x5a6   : > { %3897 = vmatmul.f32.gmra.mxu2 %v7106_v60 }
 0x5ad   : > { %7122 = vmatmul.msk.f32.gmra.mxu3 %vm3687_vm4, %v7107_v11 }
 0x5ae   : > { %3900 = vmatmul.f32.gmra.mxu2 %v7108_v48 }
 0x5b5   : > { %7123 = vmatmul.msk.f32.gmra.mxu3 %vm3687_vm4, %v7109_v23 }
 0x5b6   : > { %3903 = vmatmul.f32.gmra.mxu2 %v7110_v62 }
 0x5b9   : > { %v3738_v25 = vpop.f32.mrf.mxu0 }
 0x5bd   : > { %7124 = vmatmul.msk.f32.gmra.mxu3 %vm3687_vm4, %v7111_v13 }
 0x5be   : > { %3906 = vmatmul.f32.gmra.mxu2 %v7112_v33  ;;  %v4255_v33 = vld [vmem:[%s12235_s6] sm:$0xff] }
 0x5c1   : > { %v3741_v55 = vpop.f32.mrf.mxu0  ;;  %v3744_v35 = vpop.f32.mrf.mxu2 }
 0x5c5   : > { %7125 = vmatmul.msk.f32.gmra.mxu3 %vm3687_vm4, %v7113_v46 }
 0x5c6   : > { %3909 = vmatmul.f32.gmra.mxu2 %v7114_v18 }
 0x5c8   : > { %v3791_v51 = vpop.f32.mrf.mxu3 }
 0x5c9   : > { %v3785_v59 = vpop.f32.mrf.mxu0  ;;  %v3747_v21 = vpop.f32.mrf.mxu2  ;;  %v3792_v4 = vadd.f32 %v3791_v51, %v3744_v35 }
 0x5ca   : > { %v3786_v32 = vadd.f32 %v3785_v59, %v3738_v25  ;;  %v4256_v25 = vld [vmem:[%s12235_s6 + $0x8] sm:$0x1f] }
 0x5cb   : > { %7175 = vmatpush.msk.msrb.mxu0 %vm4288_vm7, %v4256_v25 }
 0x5cc   : > { %7128 = vmatmul.msk.f32.vlgmr.msra.gmra.mxu0 %vm3964_vm6, %v3786_v32  ;;  %7143 = vmatmul.msk.f32.vlgmr.msra.gmra.mxu1 %vm3964_vm6, %v3786_v32 }
 0x5cd   : > { %7126 = vmatmul.msk.f32.gmra.mxu3 %vm3687_vm4, %v7115_v58  ;;  %4307 = vmatpush.msrb.mxu0 %v4255_v33 }
 0x5d0   : > { %v3794_v9 = vpop.f32.mrf.mxu3 }
 0x5d1   : > { %v3788_v17 = vpop.f32.mrf.mxu0  ;;  %v3750_v40 = vpop.f32.mrf.mxu2  ;;  %v3795_v61 = vadd.f32 %v3794_v9, %v3747_v21 }
 0x5d2   : > { %v3789_v63 = vadd.f32 %v3788_v17, %v3741_v55 }
 0x5d4   : > { %7129 = vmatmul.msk.f32.gmra.mxu0 %vm3964_vm6, %v3789_v63  ;;  %7144 = vmatmul.msk.f32.gmra.mxu1 %vm3964_vm6, %v3789_v63 }
 0x5d8   : > { %v3797_v44 = vpop.f32.mrf.mxu3 }
 0x5d9   : > { %v3753_v37 = vpop.f32.mrf.mxu2  ;;  %v3798_v2 = vadd.f32 %v3797_v44, %v3750_v40 }
 0x5dc   : > { %7130 = vmatmul.msk.f32.gmra.mxu0 %vm3964_vm6, %v3792_v4  ;;  %7145 = vmatmul.msk.f32.gmra.mxu1 %vm3964_vm6, %v3792_v4 }
 0x5e0   : > { %v3800_v45 = vpop.f32.mrf.mxu3 }
 0x5e1   : > { %v3756_v14 = vpop.f32.mrf.mxu2  ;;  %v3801_v15 = vadd.f32 %v3800_v45, %v3753_v37 }
 0x5e4   : > { %7131 = vmatmul.msk.f32.gmra.mxu0 %vm3964_vm6, %v3795_v61  ;;  %7146 = vmatmul.msk.f32.gmra.mxu1 %vm3964_vm6, %v3795_v61 }
 0x5e8   : > { %v3803_v6 = vpop.f32.mrf.mxu3 }
 0x5e9   : > { %v3759_v19 = vpop.f32.mrf.mxu2  ;;  %v3804_v39 = vadd.f32 %v3803_v6, %v3756_v14 }
 0x5ec   : > { %7132 = vmatmul.msk.f32.gmra.mxu0 %vm3964_vm6, %v3798_v2  ;;  %7147 = vmatmul.msk.f32.gmra.mxu1 %vm3964_vm6, %v3798_v2 }
 0x5f0   : > { %v3806_v28 = vpop.f32.mrf.mxu3 }
 0x5f1   : > { %v3762_v29 = vpop.f32.mrf.mxu2  ;;  %v3807_v50 = vadd.f32 %v3806_v28, %v3759_v19 }
 0x5f4   : > { %7133 = vmatmul.msk.f32.gmra.mxu0 %vm3964_vm6, %v3801_v15  ;;  %7148 = vmatmul.msk.f32.gmra.mxu1 %vm3964_vm6, %v3801_v15 }
 0x5f8   : > { %v3809_v38 = vpop.f32.mrf.mxu3 }
 0x5f9   : > { %v3765_v22 = vpop.f32.mrf.mxu2  ;;  %v3810_v41 = vadd.f32 %v3809_v38, %v3762_v29 }
 0x5fc   : > { %7134 = vmatmul.msk.f32.gmra.mxu0 %vm3964_vm6, %v3804_v39  ;;  %7149 = vmatmul.msk.f32.gmra.mxu1 %vm3964_vm6, %v3804_v39 }
 0x600   : > { %v3812_v42 = vpop.f32.mrf.mxu3 }
 0x601   : > { %v3883_v8 = vpop.f32.mrf.mxu2  ;;  %v3813_v31 = vadd.f32 %v3812_v42, %v3765_v22 }
 0x604   : > { %7135 = vmatmul.msk.f32.gmra.mxu0 %vm3964_vm6, %v3807_v50  ;;  %7150 = vmatmul.msk.f32.gmra.mxu1 %vm3964_vm6, %v3807_v50 }
 0x608   : > { %v3930_v16 = vpop.f32.mrf.mxu3 }
 0x609   : > { %v3931_v47 = vadd.f32 %v3930_v16, %v3883_v8  ;;  %v3886_v24 = vpop.f32.mrf.mxu2 }
 0x60b   : > { %7154 = vmatmul.msk.f32.vlgmr.msra.gmra.mxu2 %vm3964_vm6, %v3931_v47  ;;  %7165 = vmatmul.msk.f32.vlgmr.msra.gmra.mxu3 %vm3964_vm6, %v3931_v47 }
 0x60c   : > { %7136 = vmatmul.msk.f32.gmra.mxu0 %vm3964_vm6, %v3810_v41  ;;  %7151 = vmatmul.msk.f32.gmra.mxu1 %vm3964_vm6, %v3810_v41 }
 0x610   : > { %v3933_v53 = vpop.f32.mrf.mxu3 }
 0x611   : > { %v3934_v34 = vadd.f32 %v3933_v53, %v3886_v24  ;;  %v3889_v54 = vpop.f32.mrf.mxu2 }
 0x613   : > { %7155 = vmatmul.msk.f32.gmra.mxu2 %vm3964_vm6, %v3934_v34  ;;  %7166 = vmatmul.msk.f32.gmra.mxu3 %vm3964_vm6, %v3934_v34 }
 0x614   : > { %7137 = vmatmul.msk.f32.gmra.mxu0 %vm3964_vm6, %v3813_v31  ;;  %7152 = vmatmul.msk.f32.gmra.mxu1 %vm3964_vm6, %v3813_v31 }
 0x618   : > { %v3936_v43 = vpop.f32.mrf.mxu3 }
 0x619   : > { %v3937_v20 = vadd.f32 %v3936_v43, %v3889_v54  ;;  %v3892_v5 = vpop.f32.mrf.mxu2 }
 0x61b   : > { %7156 = vmatmul.msk.f32.gmra.mxu2 %vm3964_vm6, %v3937_v20  ;;  %7167 = vmatmul.msk.f32.gmra.mxu3 %vm3964_vm6, %v3937_v20 }
 0x620   : > { %v3939_v27 = vpop.f32.mrf.mxu3 }
 0x621   : > { %v3940_v10 = vadd.f32 %v3939_v27, %v3892_v5  ;;  %v3895_v49 = vpop.f32.mrf.mxu2 }
 0x623   : > { %7157 = vmatmul.msk.f32.gmra.mxu2 %vm3964_vm6, %v3940_v10  ;;  %7168 = vmatmul.msk.f32.gmra.mxu3 %vm3964_vm6, %v3940_v10 }
 0x628   : > { %v3942_v57 = vpop.f32.mrf.mxu3 }
 0x629   : > { %v3943_v0 = vadd.f32 %v3942_v57, %v3895_v49  ;;  %v3898_v56 = vpop.f32.mrf.mxu2 }
 0x62b   : > { %7158 = vmatmul.msk.f32.gmra.mxu2 %vm3964_vm6, %v3943_v0  ;;  %7169 = vmatmul.msk.f32.gmra.mxu3 %vm3964_vm6, %v3943_v0 }
 0x630   : > { %v3945_v26 = vpop.f32.mrf.mxu3 }
 0x631   : > { %v3946_v36 = vadd.f32 %v3945_v26, %v3898_v56  ;;  %v3901_v30 = vpop.f32.mrf.mxu2 }
 0x633   : > { %7159 = vmatmul.msk.f32.gmra.mxu2 %vm3964_vm6, %v3946_v36  ;;  %7170 = vmatmul.msk.f32.gmra.mxu3 %vm3964_vm6, %v3946_v36 }
 0x638   : > { %v3948_v1 = vpop.f32.mrf.mxu3 }
 0x639   : > { %v3949_v60 = vadd.f32 %v3948_v1, %v3901_v30  ;;  %v3904_v11 = vpop.f32.mrf.mxu2 }
 0x63b   : > { %7160 = vmatmul.msk.f32.gmra.mxu2 %vm3964_vm6, %v3949_v60  ;;  %7171 = vmatmul.msk.f32.gmra.mxu3 %vm3964_vm6, %v3949_v60 }
 0x640   : > { %v3951_v12 = vpop.f32.mrf.mxu3 }
 0x641   : > { %v3952_v7 = vadd.f32 %v3951_v12, %v3904_v11  ;;  %v3907_v52 = vpop.f32.mrf.mxu2 }
 0x643   : > { %7161 = vmatmul.msk.f32.gmra.mxu2 %vm3964_vm6, %v3952_v7  ;;  %7172 = vmatmul.msk.f32.gmra.mxu3 %vm3964_vm6, %v3952_v7 }
 0x648   : > { %v3954_v3 = vpop.f32.mrf.mxu3 }
 0x649   : > { %v3955_v48 = vadd.f32 %v3954_v3, %v3907_v52  ;;  %v3910_v23 = vpop.f32.mrf.mxu2  ;;  %v4016_v46 = vpop.f32.mrf.mxu0 }
 0x64a   : > { %v4071_v55 = vpop.f32.mrf.mxu1 }
 0x64b   : > { %7162 = vmatmul.msk.f32.gmra.mxu2 %vm3964_vm6, %v3955_v48  ;;  %7173 = vmatmul.msk.f32.gmra.mxu3 %vm3964_vm6, %v3955_v48  ;;  %v4101_v21 = vmax.f32 %v4016_v46, %v4071_v55 }
 0x650   : > { %v3957_v62 = vpop.f32.mrf.mxu3 }
 0x651   : > { %v3958_v13 = vadd.f32 %v3957_v62, %v3910_v23  ;;  %v4019_v35 = vpop.f32.mrf.mxu0 }
 0x652   : > { %v4074_v51 = vpop.f32.mrf.mxu1 }
 0x653   : > { %7163 = vmatmul.msk.f32.gmra.mxu2 %vm3964_vm6, %v3958_v13  ;;  %7174 = vmatmul.msk.f32.gmra.mxu3 %vm3964_vm6, %v3958_v13  ;;  %v4102_v44 = vmax.f32 %v4019_v35, %v4074_v51 }
 0x659   : > { %v4022_v18 = vpop.f32.mrf.mxu0 }
 0x65a   : > { %v4077_v58 = vpop.f32.mrf.mxu1 }
 0x65b   : > { %v4103_v2 = vmax.f32 %v4022_v18, %v4077_v58 }
 0x661   : > { %v4025_v4 = vpop.f32.mrf.mxu0 }
 0x662   : > { %v4080_v37 = vpop.f32.mrf.mxu1 }
 0x663   : > { %v4104_v22 = vmax.f32 %v4025_v4, %v4080_v37 }
 0x669   : > { %v4028_v28 = vpop.f32.mrf.mxu0 }
 0x66a   : > { %v4083_v15 = vpop.f32.mrf.mxu1 }
 0x66b   : > { %v4105_v24 = vmax.f32 %v4028_v28, %v4083_v15  ;;  %v4977_v28 = vld [vmem:[%s12237_s8 + $0x50] sm:$0xff]  ;;  %v4979_v15 = vld [vmem:[%s12237_s8 + $0x60] sm:$0xff] }
 0x671   : > { %v4031_v8 = vpop.f32.mrf.mxu0 }
 0x672   : > { %v4086_v16 = vpop.f32.mrf.mxu1 }
 0x673   : > { %v4106_v5 = vmax.f32 %v4031_v8, %v4086_v16  ;;  %v4972_v8 = vld [vmem:[%s12237_s8 + $0x28] sm:$0xff] }
 0x674   : > { %v4968_v16 = vld [vmem:[%s12237_s8 + $0x8] sm:$0xff] }
 0x679   : > { %v4034_v31 = vpop.f32.mrf.mxu0 }
 0x67a   : > { %v4089_v54 = vpop.f32.mrf.mxu1 }
 0x67b   : > { %v4107_v0 = vmax.f32 %v4034_v31, %v4089_v54 }
 0x681   : > { %v4037_v26 = vpop.f32.mrf.mxu0 }
 0x682   : > { %v4092_v36 = vpop.f32.mrf.mxu1 }
 0x683   : > { %v4108_v11 = vmax.f32 %v4037_v26, %v4092_v36 }
 0x689   : > { %v4040_v52 = vpop.f32.mrf.mxu0 }
 0x68a   : > { %v4095_v3 = vpop.f32.mrf.mxu1 }
 0x68b   : > { %v4109_v62 = vmax.f32 %v4040_v52, %v4095_v3 }
 0x68e   : > { %v4158_v59 = vpop.f32.mrf.mxu2  ;;  %v4205_v32 = vpop.f32.mrf.mxu3 }
 0x68f   : > { %v4235_v9 = vmax.f32 %v4158_v59, %v4205_v32 }
 0x691   : > { %v4245_v17 = vmax.f32 %v4101_v21, %v4235_v9  ;;  %v4043_v33 = vpop.f32.mrf.mxu0 }
 0x692   : > { %v4098_v46 = vpop.f32.mrf.mxu1 }
 0x693   : > { %7176 = vmatmul.msk.f32.vlgmr.msrb.gmra.mxu0 %vm4257_vm8, %v4245_v17  ;;  %v4110_v51 = vmax.f32 %v4043_v33, %v4098_v46 }
 0x696   : > { %v4161_v63 = vpop.f32.mrf.mxu2  ;;  %v4208_v40 = vpop.f32.mrf.mxu3 }
 0x697   : > { %v4236_v45 = vmax.f32 %v4161_v63, %v4208_v40 }
 0x699   : > { %v4246_v61 = vmax.f32 %v4102_v44, %v4236_v45 }
 0x69b   : > { %7177 = vmatmul.msk.f32.gmra.mxu0 %vm4257_vm8, %v4246_v61 }
 0x69e   : > { %v4164_v14 = vpop.f32.mrf.mxu2  ;;  %v4211_v6 = vpop.f32.mrf.mxu3 }
 0x69f   : > { %v4237_v19 = vmax.f32 %v4164_v14, %v4211_v6 }
 0x6a1   : > { %v4247_v29 = vmax.f32 %v4103_v2, %v4237_v19  ;;  %v4980_v2 = vld [vmem:[%s12237_s8 + $0x68] sm:$0xff]  ;;  %v4981_v19 = vld [vmem:[%s12237_s8 + $0x70] sm:$0xff] }
 0x6a3   : > { %7178 = vmatmul.msk.f32.gmra.mxu0 %vm4257_vm8, %v4247_v29  ;;  %v4978_v29 = vld [vmem:[%s12237_s8 + $0x58] sm:$0xff] }
 0x6a6   : > { %v4167_v38 = vpop.f32.mrf.mxu2  ;;  %v4214_v39 = vpop.f32.mrf.mxu3 }
 0x6a7   : > { %v4238_v42 = vmax.f32 %v4167_v38, %v4214_v39  ;;  %v4974_v38 = vld [vmem:[%s12237_s8 + $0x38] sm:$0xff]  ;;  %v4976_v39 = vld [vmem:[%s12237_s8 + $0x48] sm:$0xff] }
 0x6a9   : > { %v4248_v50 = vmax.f32 %v4104_v22, %v4238_v42  ;;  %v4975_v22 = vld [vmem:[%s12237_s8 + $0x40] sm:$0xff] }
 0x6aa   : > { %v4971_v42 = vld [vmem:[%s12237_s8 + $0x20] sm:$0xff] }
 0x6ab   : > { %7179 = vmatmul.msk.f32.gmra.mxu0 %vm4257_vm8, %v4248_v50  ;;  %v4973_v50 = vld [vmem:[%s12237_s8 + $0x30] sm:$0xff] }
 0x6ae   : > { %v4170_v47 = vpop.f32.mrf.mxu2  ;;  %v4217_v41 = vpop.f32.mrf.mxu3 }
 0x6af   : > { %v4239_v53 = vmax.f32 %v4170_v47, %v4217_v41  ;;  %v4970_v47 = vld [vmem:[%s12237_s8 + $0x18] sm:$0xff]  ;;  %v4969_v41 = vld [vmem:[%s12237_s8 + $0x10] sm:$0xff] }
 0x6b1   : > { %v4249_v34 = vmax.f32 %v4105_v24, %v4239_v53  ;;  %v4967_v24 = vld [vmem:[%s12237_s8] sm:$0xff] }
 0x6b3   : > { %7180 = vmatmul.msk.f32.gmra.mxu0 %vm4257_vm8, %v4249_v34 }
 0x6b6   : > { %v4173_v43 = vpop.f32.mrf.mxu2  ;;  %v4220_v20 = vpop.f32.mrf.mxu3 }
 0x6b7   : > { %v4240_v27 = vmax.f32 %v4173_v43, %v4220_v20  ;;  %v4339_v20 = vld [vmem:[%s12236_s7] sm:$0xff] }
 0x6b9   : > { %v4250_v10 = vmax.f32 %v4106_v5, %v4240_v27 }
 0x6bb   : > { %7181 = vmatmul.msk.f32.gmra.mxu0 %vm4257_vm8, %v4250_v10 }
 0x6be   : > { %v4176_v49 = vpop.f32.mrf.mxu2  ;;  %v4223_v57 = vpop.f32.mrf.mxu3 }
 0x6bf   : > { %v4241_v56 = vmax.f32 %v4176_v49, %v4223_v57 }
 0x6c1   : > { %v4251_v30 = vmax.f32 %v4107_v0, %v4241_v56  ;;  %v4340_v0 = vld [vmem:[%s12236_s7 + $0x8] sm:$0xff] }
 0x6c3   : > { %7182 = vmatmul.msk.f32.gmra.mxu0 %vm4257_vm8, %v4251_v30 }
 0x6c6   : > { %v4179_v1 = vpop.f32.mrf.mxu2  ;;  %v4226_v60 = vpop.f32.mrf.mxu3 }
 0x6c7   : > { %v4242_v12 = vmax.f32 %v4179_v1, %v4226_v60 }
 0x6c9   : > { %v4252_v7 = vmax.f32 %v4108_v11, %v4242_v12 }
 0x6cb   : > { %7183 = vmatmul.msk.f32.gmra.mxu0 %vm4257_vm8, %v4252_v7 }
 0x6ce   : > { %v4182_v48 = vpop.f32.mrf.mxu2  ;;  %v4229_v23 = vpop.f32.mrf.mxu3 }
 0x6cf   : > { %v4243_v13 = vmax.f32 %v4182_v48, %v4229_v23  ;;  %v4341_v48 = vld [vmem:[%s12236_s7 + $0x10] sm:$0xff] }
 0x6d1   : > { %v4253_v25 = vmax.f32 %v4109_v62, %v4243_v13 }
 0x6d3   : > { %7184 = vmatmul.msk.f32.gmra.mxu0 %vm4257_vm8, %v4253_v25 }
 0x6d6   : > { %v4185_v55 = vpop.f32.mrf.mxu2  ;;  %v4232_v35 = vpop.f32.mrf.mxu3 }
 0x6d7   : > { %v4244_v18 = vmax.f32 %v4185_v55, %v4232_v35 }
 0x6d9   : > { %v4254_v58 = vmax.f32 %v4110_v51, %v4244_v18 }
 0x6db   : > { %7185 = vmatmul.msk.f32.gmra.mxu0 %vm4257_vm8, %v4254_v58 }
 0x710   : > { %v4309_v59 = vpop.f32.mrf.mxu0 }
 0x718   : > { %v4312_v32 = vpop.f32.mrf.mxu0 }
 0x720   : > { %v4315_v21 = vpop.f32.mrf.mxu0 }
 0x721   : > { %v8118_v6 = vpack.i.bf16 %v4312_v32, %v4315_v21 }
 0x728   : > { %v4318_v9 = vpop.f32.mrf.mxu0 }
 0x730   : > { %v4321_v17 = vpop.f32.mrf.mxu0 }
 0x731   : > { %v8083_v63 = vpack.i.bf16 %v4318_v9, %v4321_v17 }
 0x733   : > { %8084 = vrot.lane.b32.xlu2 %v8083_v63, %s8158_s23 }
 0x738   : > { %v4324_v40 = vpop.f32.mrf.mxu0 }
 0x740   : > { %v4327_v44 = vpop.f32.mrf.mxu0 }
 0x741   : > { %v8093_v4 = vpack.i.bf16 %v4324_v40, %v4327_v44 }
 0x743   : > { %8094 = vrot.lane.b32.xlu1 %v8093_v4, %s8159_s14  ;;  %8089 = vrot.lane.b32.xlu2 %v8093_v4, %s8158_s23 }
 0x748   : > { %v4330_v37 = vpop.f32.mrf.mxu0 }
 0x750   : > { %v4333_v45 = vpop.f32.mrf.mxu0 }
 0x751   : > { %v8108_v61 = vpack.i.bf16 %v4330_v37, %v4333_v45 }
 0x753   : > { %8109 = vrot.lane.b32.xlu0 %v8108_v61, %s8160_s24  ;;  %8104 = vrot.lane.b32.xlu1 %v8108_v61, %s8159_s14 }
 0x754   : > { %8099 = vrot.lane.b32.xlu2 %v8108_v61, %s8158_s23 }
 0x758   : > { %v4336_v14 = vpop.f32.mrf.mxu0 }
 0x759   : > { %7217 = vmatpush.msk.msrb.mxu2 %vm4455_vm9, %v4336_v14 }
 0x75b   : > { %4398 = vrot.lane.b32.xlu0 %v4336_v14, %s8159_s14  ;;  %4663 = vrot.lane.b32.xlu1 %v4336_v14, %s8158_s23 }
 0x75c   : > { %8119 = vrot.lane.b32.xlu2 %v8118_v6, %s8158_s23  ;;  %4574 = vmatpush.msrb.mxu2 %v4333_v45  ;;  %v4343_v45 = vld [vmem:[%s12236_s7 + $0x20] sm:$0xff] }
 0x75e   : > { %4575 = vmatpush.msrb.mxu2 %v4330_v37 }
 0x760   : > { %4576 = vmatpush.msrb.mxu2 %v4327_v44 }
 0x762   : > { %4577 = vmatpush.msrb.mxu2 %v4324_v40 }
 0x763   : > { %4832 = vrot.lane.b32.xlu0 %v4336_v14, %s8160_s24  ;;  %8114 = vrot.lane.b32.xlu1 %v8083_v63, %s8159_s14 }
 0x764   : > { %4645 = vrot.lane.b32.xlu2 %v4309_v59, %s8158_s23  ;;  %4578 = vmatpush.msrb.mxu2 %v4321_v17  ;;  %v7186_v17 = vld [vmem:[%s12236_s7 + $0x78] sm:$0xff] }
 0x766   : > { %4579 = vmatpush.msrb.mxu2 %v4318_v9 }
 0x768   : > { %4580 = vmatpush.msrb.mxu2 %v4315_v21 }
 0x76a   : > { %4581 = vmatpush.msrb.mxu2 %v4312_v32  ;;  %v4342_v32 = vld [vmem:[%s12236_s7 + $0x18] sm:$0xff] }
 0x76b   : > { %8124 = vrot.lane.b32.xlu0 %v8093_v4, %s8160_s24  ;;  %8129 = vrot.lane.b32.xlu1 %v8118_v6, %s8159_s14  ;;  %v7234_v4 = vld [vmem:[%s12236_s7 + $0xf8] sm:$0xff] }
 0x76c   : > { %8139 = vrot.lane.b32.xlu2 %v8118_v6, %s8160_s24  ;;  %4582 = vmatpush.msrb.mxu2 %v4309_v59 }
 0x76d   : > { %7218 = vmatmul.msk.f32.vlgmr.msrb.gmra.mxu2 %vm4409_vm10, %v4339_v20  ;;  %v4348_v20 = vld [vmem:[%s12236_s7 + $0x48] sm:$0xff] }
 0x773   : > { %8134 = vrot.lane.b32.xlu0 %v8083_v63, %s8160_s24  ;;  %4380 = vrot.lane.b32.xlu1 %v4309_v59, %s8159_s14 }
 0x774   : > { %5049 = vperm.xlu2 %8081, %v4980_v2   ;;  %v7187_v2 = vld [vmem:[%s12236_s7 + $0x80] sm:$0xff] }
 0x775   : > { %7219 = vmatmul.msk.f32.gmra.mxu2 %vm4409_vm10, %v4340_v0  ;;  %v7270_v0 = vld [vmem:[%s12236_s7 + $0x198] sm:$0xff] }
 0x77b   : > { %4814 = vrot.lane.b32.xlu0 %v4309_v59, %s8160_s24  ;;  %5054 = vperm.xlu1 %8080, %v4981_v19   ;;  %v7233_v59 = vld [vmem:[%s12236_s7 + $0xf0] sm:$0xff]  ;;  %v7264_v19 = vld [vmem:[%s12236_s7 + $0x168] sm:$0xff] }
 0x77c   : > { %5034 = vperm.xlu2 %8081, %v4977_v28   ;;  %v7235_v28 = vld [vmem:[%s12236_s7 + $0x100] sm:$0xff] }
 0x77d   : > { %7220 = vmatmul.msk.f32.gmra.mxu2 %vm4409_vm10, %v4341_v48  ;;  %v7273_v48 = vld [vmem:[%s12236_s7 + $0x1b0] sm:$0xff] }
 0x783   : > { %5044 = vperm.xlu0 %8082, %v4979_v15   ;;  %5039 = vperm.xlu1 %8080, %v4978_v29   ;;  %v4344_v29 = vld [vmem:[%s12236_s7 + $0x28] sm:$0xff] }
 0x784   : > { %5019 = vperm.xlu2 %8081, %v4974_v38   ;;  %v7188_v38 = vld [vmem:[%s12236_s7 + $0x88] sm:$0xff] }
 0x785   : > { %7221 = vmatmul.msk.f32.gmra.mxu2 %vm4409_vm10, %v4342_v32  ;;  %v7200_v32 = vld [vmem:[%s12236_s7 + $0xe8] sm:$0xff] }
 0x78b   : > { %5029 = vperm.xlu0 %8082, %v4976_v39   ;;  %5024 = vperm.xlu1 %8080, %v4975_v22   ;;  %v7265_v39 = vld [vmem:[%s12236_s7 + $0x170] sm:$0xff]  ;;  %v7236_v22 = vld [vmem:[%s12236_s7 + $0x108] sm:$0xff] }
 0x78c   : > { %5004 = vperm.xlu2 %8081, %v4971_v42   ;;  %v4345_v42 = vld [vmem:[%s12236_s7 + $0x30] sm:$0xff] }
 0x78d   : > { %v8085_v53 = vpop.permute.xlu2 %8084  ;;  %7222 = vmatmul.msk.f32.gmra.mxu2 %vm4409_vm10, %v4343_v45 }
 0x78e   : > { %v8086_v52 = vunpack.i.l.bf16 %v8085_v53  ;;  %v8087_v62 = vunpack.i.h.bf16 %v8085_v53  ;;  %v7238_v53 = vld [vmem:[%s12236_s7 + $0x118] sm:$0xff] }
 0x793   : > { %5014 = vperm.xlu0 %8082, %v4973_v50   ;;  %5009 = vperm.xlu1 %8080, %v4972_v8   ;;  %v7189_v50 = vld [vmem:[%s12236_s7 + $0x90] sm:$0xff]  ;;  %v7266_v8 = vld [vmem:[%s12236_s7 + $0x178] sm:$0xff] }
 0x794   : > { %4989 = vperm.xlu2 %8081, %v4968_v16   ;;  %v7237_v16 = vld [vmem:[%s12236_s7 + $0x110] sm:$0xff] }
 0x795   : > { %7223 = vmatmul.msk.f32.gmra.mxu2 %vm4409_vm10, %v4344_v29 }
 0x79b   : > { %4999 = vperm.xlu0 %8082, %v4970_v47   ;;  %4994 = vperm.xlu1 %8080, %v4969_v41   ;;  %v4346_v47 = vld [vmem:[%s12236_s7 + $0x38] sm:$0xff] }
 0x79c   : > { %v7190_v41 = vld [vmem:[%s12236_s7 + $0x98] sm:$0xff] }
 0x79d   : > { %v8090_v31 = vpop.permute.xlu2 %8089  ;;  %7224 = vmatmul.msk.f32.gmra.mxu2 %vm4409_vm10, %v4345_v42 }
 0x79e   : > { %v8091_v36 = vunpack.i.l.bf16 %v8090_v31  ;;  %v8092_v60 = vunpack.i.h.bf16 %v8090_v31  ;;  %v7191_v31 = vld [vmem:[%s12236_s7 + $0xa0] sm:$0xff] }
 0x7a3   : > { %4984 = vperm.xlu0 %8082, %v4967_v24   ;;  %v7267_v24 = vld [vmem:[%s12236_s7 + $0x180] sm:$0xff] }
 0x7a5   : > { %7225 = vmatmul.msk.f32.gmra.mxu2 %vm4409_vm10, %v4346_v47 }
 0x7ae   : > { %v8100_v5 = vpop.permute.xlu2 %8099 }
 0x7af   : > { %v8101_v49 = vunpack.i.l.bf16 %v8100_v5  ;;  %v8102_v56 = vunpack.i.h.bf16 %v8100_v5  ;;  %v7192_v5 = vld [vmem:[%s12236_s7 + $0xa8] sm:$0xff] }
 0x7b5   : > { %v8095_v34 = vpop.permute.xlu1 %8094 }
 0x7b6   : > { %v8096_v30 = vunpack.i.l.bf16 %v8095_v34  ;;  %v8120_v1 = vpop.permute.xlu2 %8119  ;;  %v8097_v11 = vunpack.i.h.bf16 %v8095_v34  ;;  %v4347_v34 = vld [vmem:[%s12236_s7 + $0x40] sm:$0xff] }
 0x7b7   : > { %v8121_v33 = vunpack.i.l.bf16 %v8120_v1  ;;  %v8122_v46 = vunpack.i.h.bf16 %v8120_v1  ;;  %7226 = vmatmul.msk.f32.gmra.mxu2 %vm4409_vm10, %v4347_v34  ;;  %v7242_v1 = vld [vmem:[%s12236_s7 + $0x138] sm:$0xff] }
 0x7be   : > { %v4646_v55 = vpop.permute.xlu2 %4645 }
 0x7bf   : > { %7227 = vmatmul.msk.f32.gmra.mxu2 %vm4409_vm10, %v4348_v20 }
 0x7c5   : > { %v8110_v54 = vpop.permute.xlu0 %8109  ;;  %v8105_v43 = vpop.permute.xlu1 %8104 }
 0x7c6   : > { %v8106_v57 = vunpack.i.l.bf16 %v8105_v43  ;;  %v8107_v26 = vunpack.i.h.bf16 %v8105_v43  ;;  %v8111_v23 = vunpack.i.l.bf16 %v8110_v54  ;;  %v8112_v25 = vunpack.i.h.bf16 %v8110_v54  ;;  %v8140_v37 = vpop.permute.xlu2 %8139  ;;  %v7268_v54 = vld [vmem:[%s12236_s7 + $0x188] sm:$0xff]  ;;  %v7239_v43 = vld [vmem:[%s12236_s7 + $0x120] sm:$0xff] }
 0x7c7   : > { %v8141_v14 = vunpack.i.l.bf16 %v8140_v37  ;;  %v8142_v6 = vunpack.i.h.bf16 %v8140_v37 }
 0x7cd   : > { %v4399_v27 = vpop.permute.xlu0 %4398  ;;  %v4664_v10 = vpop.permute.xlu1 %4663 }
 0x7ce   : > { %7201 = vmatpush.msk.msrb.mxu1 %vm4455_vm9, %v4399_v27  ;;  %7248 = vmatpush.msk.msrb.mxu3 %vm4455_vm9, %v4664_v10  ;;  %v7269_v27 = vld [vmem:[%s12236_s7 + $0x190] sm:$0xff]  ;;  %v7240_v10 = vld [vmem:[%s12236_s7 + $0x128] sm:$0xff] }
 0x7d0   : > { %4465 = vmatpush.msrb.mxu1 %v8106_v57  ;;  %4728 = vmatpush.msrb.mxu3 %v8101_v49  ;;  %v4349_v49 = vld [vmem:[%s12236_s7 + $0x50] sm:$0xff] }
 0x7d1   : > { %7228 = vmatmul.msk.f32.gmra.mxu2 %vm4409_vm10, %v4349_v49  ;;  %v7193_v57 = vld [vmem:[%s12236_s7 + $0xb0] sm:$0xff] }
 0x7d2   : > { %4466 = vmatpush.msrb.mxu1 %v8107_v26  ;;  %4729 = vmatpush.msrb.mxu3 %v8102_v56  ;;  %v7241_v56 = vld [vmem:[%s12236_s7 + $0x130] sm:$0xff]  ;;  %v4350_v26 = vld [vmem:[%s12236_s7 + $0x58] sm:$0xff] }
 0x7d4   : > { %4467 = vmatpush.msrb.mxu1 %v8096_v30  ;;  %4730 = vmatpush.msrb.mxu3 %v8091_v36  ;;  %v7194_v36 = vld [vmem:[%s12236_s7 + $0xb8] sm:$0xff]  ;;  %v7271_v30 = vld [vmem:[%s12236_s7 + $0x1a0] sm:$0xff] }
 0x7d5   : > { %v4833_v12 = vpop.permute.xlu0 %4832  ;;  %v8115_v7 = vpop.permute.xlu1 %8114 }
 0x7d6   : > { %v8116_v3 = vunpack.i.l.bf16 %v8115_v7  ;;  %4468 = vmatpush.msrb.mxu1 %v8097_v11  ;;  %4731 = vmatpush.msrb.mxu3 %v8092_v60  ;;  %v8117_v13 = vunpack.i.h.bf16 %v8115_v7  ;;  %v4351_v60 = vld [vmem:[%s12236_s7 + $0x60] sm:$0xff] }
 0x7d7   : > { %7279 = vmatpush.msk.msra.mxu0 %vm4455_vm9, %v4833_v12  ;;  %v7195_v11 = vld [vmem:[%s12236_s7 + $0xc0] sm:$0xff]  ;;  %v7272_v12 = vld [vmem:[%s12236_s7 + $0x1a8] sm:$0xff] }
 0x7d8   : > { %4469 = vmatpush.msrb.mxu1 %v8116_v3  ;;  %4732 = vmatpush.msrb.mxu3 %v8086_v52  ;;  %v7243_v7 = vld [vmem:[%s12236_s7 + $0x140] sm:$0xff]  ;;  %v4352_v52 = vld [vmem:[%s12236_s7 + $0x68] sm:$0xff] }
 0x7d9   : > { %4897 = vmatpush.msra.mxu0 %v8111_v23  ;;  %7229 = vmatmul.msk.f32.gmra.mxu2 %vm4409_vm10, %v4350_v26  ;;  %v7196_v3 = vld [vmem:[%s12236_s7 + $0xc8] sm:$0xff] }
 0x7da   : > { %4470 = vmatpush.msrb.mxu1 %v8117_v13  ;;  %4733 = vmatpush.msrb.mxu3 %v8087_v62  ;;  %v7244_v23 = vld [vmem:[%s12236_s7 + $0x148] sm:$0xff]  ;;  %v4353_v62 = vld [vmem:[%s12236_s7 + $0x70] sm:$0xff] }
 0x7db   : > { %4898 = vmatpush.msra.mxu0 %v8112_v25  ;;  %v7197_v13 = vld [vmem:[%s12236_s7 + $0xd0] sm:$0xff]  ;;  %v7274_v25 = vld [vmem:[%s12236_s7 + $0x1b8] sm:$0xff] }
 0x7dc   : > { %4734 = vmatpush.msrb.mxu3 %v8121_v33  ;;  %v7245_v33 = vld [vmem:[%s12236_s7 + $0x150] sm:$0xff] }
 0x7dd   : > { %v8125_v35 = vpop.permute.xlu0 %8124  ;;  %v8130_v51 = vpop.permute.xlu1 %8129 }
 0x7de   : > { %v8126_v18 = vunpack.i.l.bf16 %v8125_v35  ;;  %v8131_v58 = vunpack.i.l.bf16 %v8130_v51  ;;  %4735 = vmatpush.msrb.mxu3 %v8122_v46  ;;  %v8132_v21 = vunpack.i.h.bf16 %v8130_v51  ;;  %v8127_v9 = vunpack.i.h.bf16 %v8125_v35  ;;  %v7198_v46 = vld [vmem:[%s12236_s7 + $0xd8] sm:$0xff] }
 0x7df   : > { %v7246_v35 = vld [vmem:[%s12236_s7 + $0x158] sm:$0xff] }
 0x7e0   : > { %4471 = vmatpush.msrb.mxu1 %v8131_v58  ;;  %4736 = vmatpush.msrb.mxu3 %v4646_v55  ;;  %v7275_v55 = vld [vmem:[%s12236_s7 + $0x1c0] sm:$0xff]  ;;  %v7276_v58 = vld [vmem:[%s12236_s7 + $0x1c8] sm:$0xff] }
 0x7e1   : > { %4899 = vmatpush.msra.mxu0 %v8126_v18  ;;  %7249 = vmatmul.msk.f32.vlgmr.msrb.gmra.mxu3 %vm4409_vm10, %v7233_v59  ;;  %v7199_v18 = vld [vmem:[%s12236_s7 + $0xe0] sm:$0xff] }
 0x7e2   : > { %4472 = vmatpush.msrb.mxu1 %v8132_v21  ;;  %7230 = vmatmul.msk.f32.gmra.mxu2 %vm4409_vm10, %v4351_v60  ;;  %v7247_v59 = vld [vmem:[%s12236_s7 + $0x160] sm:$0xff] }
 0x7e3   : > { %4900 = vmatpush.msra.mxu0 %v8127_v9  ;;  %v7277_v9 = vld [vmem:[%s12236_s7 + $0x1d0] sm:$0xff] }
 0x7e5   : > { %v8135_v63 = vpop.permute.xlu0 %8134  ;;  %v4381_v40 = vpop.permute.xlu1 %4380 }
 0x7e6   : > { %v8136_v44 = vunpack.i.l.bf16 %v8135_v63  ;;  %4473 = vmatpush.msrb.mxu1 %v4381_v40  ;;  %v8137_v61 = vunpack.i.h.bf16 %v8135_v63  ;;  %v7278_v63 = vld [vmem:[%s12236_s7 + $0x1d8] sm:$0xff] }
 0x7e7   : > { %7202 = vmatmul.msk.f32.vlgmr.msrb.gmra.mxu1 %vm4409_vm10, %v7186_v17 }
 0x7e8   : > { %4901 = vmatpush.msra.mxu0 %v8136_v44 }
 0x7e9   : > { %7250 = vmatmul.msk.f32.gmra.mxu3 %vm4409_vm10, %v7234_v4 }
 0x7ea   : > { %4902 = vmatpush.msra.mxu0 %v8137_v61  ;;  %7231 = vmatmul.msk.f32.gmra.mxu2 %vm4409_vm10, %v4352_v52 }
 0x7ec   : > { %4903 = vmatpush.msra.mxu0 %v8141_v14 }
 0x7ed   : > { %v4815_v15 = vpop.permute.xlu0 %4814 }
 0x7ee   : > { %4904 = vmatpush.msra.mxu0 %v8142_v6 }
 0x7ef   : > { %7203 = vmatmul.msk.f32.gmra.mxu1 %vm4409_vm10, %v7187_v2 }
 0x7f0   : > { %4905 = vmatpush.msra.mxu0 %v4815_v15  ;;  %v11329_v51 = vpop.f32.mrf.mxu2 }
 0x7f1   : > { %7280 = vmatmul.msk.f32.vlgmr.msra.gmra.mxu0 %vm4409_vm10, %v7264_v19  ;;  %7251 = vmatmul.msk.f32.gmra.mxu3 %vm4409_vm10, %v7235_v28  ;;  %12459 = vst [vmem:[#allocation20_spill] sm:$0xff] %v11329_v51 }
 0x7f2   : > { %7232 = vmatmul.msk.f32.gmra.mxu2 %vm4409_vm10, %v4353_v62 }
 0x7f7   : > { %7204 = vmatmul.msk.f32.gmra.mxu1 %vm4409_vm10, %v7188_v38 }
 0x7f8   : > { %v11346_v21 = vpop.f32.mrf.mxu2 }
 0x7f9   : > { %7281 = vmatmul.msk.f32.gmra.mxu0 %vm4409_vm10, %v7265_v39  ;;  %7252 = vmatmul.msk.f32.gmra.mxu3 %vm4409_vm10, %v7236_v22  ;;  %12460 = vst [vmem:[#allocation55_spill] sm:$0xff] %v11346_v21 }
 0x7ff   : > { %7205 = vmatmul.msk.f32.gmra.mxu1 %vm4409_vm10, %v7189_v50 }
 0x800   : > { %v11353_v17 = vpop.f32.mrf.mxu2 }
 0x801   : > { %7282 = vmatmul.msk.f32.gmra.mxu0 %vm4409_vm10, %v7266_v8  ;;  %7253 = vmatmul.msk.f32.gmra.mxu3 %vm4409_vm10, %v7237_v16 }
 0x807   : > { %7206 = vmatmul.msk.f32.gmra.mxu1 %vm4409_vm10, %v7190_v41 }
 0x808   : > { %v11363_v4 = vpop.f32.mrf.mxu2 }
 0x809   : > { %7283 = vmatmul.msk.f32.gmra.mxu0 %vm4409_vm10, %v7267_v24  ;;  %7254 = vmatmul.msk.f32.gmra.mxu3 %vm4409_vm10, %v7238_v53 }
 0x80f   : > { %7207 = vmatmul.msk.f32.gmra.mxu1 %vm4409_vm10, %v7191_v31 }
 0x810   : > { %v11371_v14 = vpop.f32.mrf.mxu2 }
 0x811   : > { %7284 = vmatmul.msk.f32.gmra.mxu0 %vm4409_vm10, %v7268_v54  ;;  %7255 = vmatmul.msk.f32.gmra.mxu3 %vm4409_vm10, %v7239_v43 }
 0x817   : > { %7208 = vmatmul.msk.f32.gmra.mxu1 %vm4409_vm10, %v7192_v5 }
 0x818   : > { %v11379_v28 = vpop.f32.mrf.mxu2 }
 0x819   : > { %7285 = vmatmul.msk.f32.gmra.mxu0 %vm4409_vm10, %v7269_v27  ;;  %7256 = vmatmul.msk.f32.gmra.mxu3 %vm4409_vm10, %v7240_v10 }
 0x81f   : > { %7209 = vmatmul.msk.f32.gmra.mxu1 %vm4409_vm10, %v7193_v57 }
 0x820   : > { %v11387_v39 = vpop.f32.mrf.mxu2 }
 0x821   : > { %7286 = vmatmul.msk.f32.gmra.mxu0 %vm4409_vm10, %v7270_v0  ;;  %7257 = vmatmul.msk.f32.gmra.mxu3 %vm4409_vm10, %v7241_v56 }
 0x827   : > { %7210 = vmatmul.msk.f32.gmra.mxu1 %vm4409_vm10, %v7194_v36 }
 0x828   : > { %v4605_v47 = vpop.f32.mrf.mxu2 }
 0x829   : > { %7287 = vmatmul.msk.f32.gmra.mxu0 %vm4409_vm10, %v7271_v30  ;;  %7258 = vmatmul.msk.f32.gmra.mxu3 %vm4409_vm10, %v7242_v1 }
 0x82f   : > { %7211 = vmatmul.msk.f32.gmra.mxu1 %vm4409_vm10, %v7195_v11 }
 0x831   : > { %7288 = vmatmul.msk.f32.gmra.mxu0 %vm4409_vm10, %v7272_v12  ;;  %7259 = vmatmul.msk.f32.gmra.mxu3 %vm4409_vm10, %v7243_v7 }
 0x837   : > { %7212 = vmatmul.msk.f32.gmra.mxu1 %vm4409_vm10, %v7196_v3 }
 0x839   : > { %7289 = vmatmul.msk.f32.gmra.mxu0 %vm4409_vm10, %v7273_v48  ;;  %7260 = vmatmul.msk.f32.gmra.mxu3 %vm4409_vm10, %v7244_v23 }
 0x83a   : > { %v4608_v31 = vpop.f32.mrf.mxu2 }
 0x83f   : > { %7213 = vmatmul.msk.f32.gmra.mxu1 %vm4409_vm10, %v7197_v13 }
 0x841   : > { %7290 = vmatmul.msk.f32.gmra.mxu0 %vm4409_vm10, %v7274_v25  ;;  %7261 = vmatmul.msk.f32.gmra.mxu3 %vm4409_vm10, %v7245_v33  ;;  %v5055_v25 = vpop.permute.xlu1 %5054 }
 0x842   : > { %v4611_v5 = vpop.f32.mrf.mxu2 }
 0x847   : > { %7214 = vmatmul.msk.f32.gmra.mxu1 %vm4409_vm10, %v7198_v46 }
 0x849   : > { %7291 = vmatmul.msk.f32.gmra.mxu0 %vm4409_vm10, %v7275_v55  ;;  %7262 = vmatmul.msk.f32.gmra.mxu3 %vm4409_vm10, %v7246_v35  ;;  %v5050_v55 = vpop.permute.xlu2 %5049  ;;  %v5045_v35 = vpop.permute.xlu0 %5044 }
 0x84f   : > { %7215 = vmatmul.msk.f32.gmra.mxu1 %vm4409_vm10, %v7199_v18 }
 0x851   : > { %7292 = vmatmul.msk.f32.gmra.mxu0 %vm4409_vm10, %v7276_v58  ;;  %7263 = vmatmul.msk.f32.gmra.mxu3 %vm4409_vm10, %v7247_v59  ;;  %v5030_v51 = vpop.permute.xlu0 %5029 }
 0x854   : > { %v4614_v57 = vpop.f32.mrf.mxu2 }
 0x857   : > { %7216 = vmatmul.msk.f32.gmra.mxu1 %vm4409_vm10, %v7200_v32 }
 0x859   : > { %7293 = vmatmul.msk.f32.gmra.mxu0 %vm4409_vm10, %v7277_v9 }
 0x85c   : > { %v4617_v60 = vpop.f32.mrf.mxu2 }
 0x861   : > { %7294 = vmatmul.msk.f32.gmra.mxu0 %vm4409_vm10, %v7278_v63 }
 0x864   : > { %v11359_v40 = vpop.f32.mrf.mxu1  ;;  %v11361_v44 = vpop.f32.mrf.mxu3 }
 0x865   : > { %12461 = vst [vmem:[#allocation53_spill] sm:$0xff] %v11359_v40  ;;  %v4620_v52 = vpop.f32.mrf.mxu2 }
 0x866   : > { %12462 = vst [vmem:[#allocation54_spill] sm:$0xff] %v11361_v44 }
 0x86c   : > { %v11365_v37 = vpop.f32.mrf.mxu1  ;;  %v11367_v45 = vpop.f32.mrf.mxu3 }
 0x86d   : > { %12463 = vst [vmem:[#allocation49_spill] sm:$0xff] %v11365_v37  ;;  %v4623_v62 = vpop.f32.mrf.mxu2 }
 0x86e   : > { %12464 = vst [vmem:[#allocation51_spill] sm:$0xff] %v11367_v45  ;;  %v11369_v61 = vpop.f32.mrf.mxu0 }
 0x86f   : > { %12465 = vst [vmem:[#allocation5_spill] sm:$0xff] %v11369_v61  ;;  %v5040_v61 = vpop.permute.xlu1 %5039 }
 0x874   : > { %v11373_v6 = vpop.f32.mrf.mxu1  ;;  %v11375_v2 = vpop.f32.mrf.mxu3 }
 0x875   : > { %12466 = vst [vmem:[#allocation57_spill] sm:$0xff] %v11375_v2  ;;  %v4626_v58 = vpop.f32.mrf.mxu2 }
 0x876   : > { %v11377_v19 = vpop.f32.mrf.mxu0 }
 0x877   : > { %12467 = vst [vmem:[#allocation50_spill] sm:$0xff] %v11377_v19 }
 0x87c   : > { %v11381_v15 = vpop.f32.mrf.mxu1  ;;  %v11383_v29 = vpop.f32.mrf.mxu3 }
 0x87d   : > { %12468 = vst [vmem:[#allocation52_spill] sm:$0xff] %v11383_v29 }
 0x87e   : > { %v11385_v38 = vpop.f32.mrf.mxu0 }
 0x87f   : > { %12469 = vst [vmem:[#allocation45_spill] sm:$0xff] %v11385_v38 }
 0x884   : > { %v11389_v22 = vpop.f32.mrf.mxu1  ;;  %v11391_v42 = vpop.f32.mrf.mxu3 }
 0x885   : > { %12470 = vst [vmem:[#allocation47_spill] sm:$0xff] %v11391_v42 }
 0x886   : > { %v11393_v50 = vpop.f32.mrf.mxu0 }
 0x887   : > { %12471 = vst [vmem:[#allocation9_spill] sm:$0xff] %v11393_v50  ;;  %v5035_v50 = vpop.permute.xlu2 %5034 }
 0x88c   : > { %v11395_v8 = vpop.f32.mrf.mxu1  ;;  %v11397_v16 = vpop.f32.mrf.mxu3 }
 0x88e   : > { %v11399_v41 = vpop.f32.mrf.mxu0 }
 0x88f   : > { %12472 = vst [vmem:[#allocation56_spill] sm:$0xff] %v11399_v41 }
 0x894   : > { %v4493_v24 = vpop.f32.mrf.mxu1  ;;  %v11401_v53 = vpop.f32.mrf.mxu3 }
 0x896   : > { %v11403_v34 = vpop.f32.mrf.mxu0 }
 0x897   : > { %12473 = vst [vmem:[#allocation46_spill] sm:$0xff] %v11403_v34 }
 0x89c   : > { %v4496_v54 = vpop.f32.mrf.mxu1  ;;  %v11405_v43 = vpop.f32.mrf.mxu3 }
 0x89e   : > { %v11407_v20 = vpop.f32.mrf.mxu0 }
 0x89f   : > { %12474 = vst [vmem:[#allocation48_spill] sm:$0xff] %v11407_v20 }
 0x8a4   : > { %v4499_v27 = vpop.f32.mrf.mxu1  ;;  %v4762_v10 = vpop.f32.mrf.mxu3 }
 0x8a5   : > { %v4609_v37 = vadd.f32 %v4608_v31, %v4499_v27  ;;  %v12479_v27 = vld [vmem:[#allocation52_spill] sm:$0xff] }
 0x8a6   : > { %v11409_v49 = vpop.f32.mrf.mxu0  ;;  %v12476_v31 = vld [vmem:[#allocation48_spill] sm:$0xff] }
 0x8ac   : > { %v4502_v0 = vpop.f32.mrf.mxu1  ;;  %v4765_v56 = vpop.f32.mrf.mxu3 }
 0x8ad   : > { %v4612_v40 = vadd.f32 %v4611_v5, %v4502_v0 }
 0x8ae   : > { %v11411_v26 = vpop.f32.mrf.mxu0 }
 0x8b4   : > { %v4505_v36 = vpop.f32.mrf.mxu1  ;;  %v4768_v30 = vpop.f32.mrf.mxu3 }
 0x8b5   : > { %v4615_v45 = vadd.f32 %v4614_v57, %v4505_v36  ;;  %v4603_v57 = vadd.f32 %v11387_v39, %v4493_v24  ;;  %v4597_v39 = vadd.f32 %v11371_v14, %v11389_v22  ;;  %v4591_v22 = vadd.f32 %v11353_v17, %v11373_v6 }
 0x8b6   : > { %v4934_v1 = vpop.f32.mrf.mxu0 }
 0x8b7   : > { %v4793_v20 = vadd.f32 %v4768_v30, %v4615_v45  ;;  %v12482_v30 = vld [vmem:[#allocation20_spill] sm:$0xff] }
 0x8bc   : > { %v4508_v11 = vpop.f32.mrf.mxu1  ;;  %v4771_v12 = vpop.f32.mrf.mxu3 }
 0x8bd   : > { %v4618_v38 = vadd.f32 %v4617_v60, %v4508_v11  ;;  %v5025_v11 = vpop.permute.xlu1 %5024 }
 0x8be   : > { %v4937_v7 = vpop.f32.mrf.mxu0 }
 0x8bf   : > { %v4794_v34 = vadd.f32 %v4771_v12, %v4618_v38  ;;  %v4962_v36 = vadd.f32 %v4937_v7, %v4793_v20  ;;  %v5020_v38 = vpop.permute.xlu2 %5019  ;;  %v12483_v12 = vld [vmem:[#allocation57_spill] sm:$0xff] }
 0x8c0   : > { %v4785_v7 = vadd.f32 %v12483_v12, %v4591_v22  ;;  %v5087_v22 = vld [vmem:[%s12238_s9] sm:$0xff] }
 0x8c4   : > { %v4511_v3 = vpop.f32.mrf.mxu1  ;;  %v4774_v48 = vpop.f32.mrf.mxu3 }
 0x8c5   : > { %v4621_v9 = vadd.f32 %v4620_v52, %v4511_v3  ;;  %v4792_v52 = vadd.f32 %v4765_v56, %v4612_v40 }
 0x8c6   : > { %v4940_v23 = vpop.f32.mrf.mxu0 }
 0x8c7   : > { %v4795_v41 = vadd.f32 %v4774_v48, %v4621_v9  ;;  %v4963_v3 = vadd.f32 %v4940_v23, %v4794_v34  ;;  %v4961_v45 = vadd.f32 %v4934_v1, %v4792_v52  ;;  %v5005_v6 = vpop.permute.xlu2 %5004  ;;  %v12484_v48 = vld [vmem:[#allocation56_spill] sm:$0xff] }
 0x8c9   : > { %v11442_v34 = vadd.f32 %v5030_v51, %v4961_v45  ;;  %v12478_v51 = vld [vmem:[#allocation55_spill] sm:$0xff] }
 0x8cb   : > { %v5081_v17 = vmax.f32 %v11442_v34, 0.0 }
 0x8cc   : > { %v4514_v13 = vpop.f32.mrf.mxu1  ;;  %v4777_v46 = vpop.f32.mrf.mxu3 }
 0x8cd   : > { %v4624_v59 = vadd.f32 %v4623_v62, %v4514_v13  ;;  %v4606_v13 = vadd.f32 %v4605_v47, %v4496_v54 }
 0x8ce   : > { %v4943_v33 = vpop.f32.mrf.mxu0 }
 0x8cf   : > { %v4796_v44 = vadd.f32 %v4777_v46, %v4624_v59  ;;  %v4964_v42 = vadd.f32 %v4943_v33, %v4795_v41  ;;  %v4790_v40 = vadd.f32 %v11405_v43, %v4606_v13  ;;  %v11433_v41 = vadd.f32 %v5035_v50, %v4962_v36  ;;  %v12475_v50 = vld [vmem:[#allocation47_spill] sm:$0xff]  ;;  %v12488_v13 = vld [vmem:[#allocation45_spill] sm:$0xff] }
 0x8d0   : > { %v4954_v52 = vadd.f32 %v12488_v13, %v4785_v7 }
 0x8d1   : > { %v11418_v5 = vadd.f32 %v5045_v35, %v4964_v42  ;;  %v4789_v42 = vadd.f32 %v11401_v53, %v4603_v57  ;;  %v4959_v24 = vadd.f32 %v11409_v49, %v4790_v40  ;;  %v4787_v53 = vadd.f32 %v12475_v50, %v4597_v39  ;;  %v12480_v49 = vld [vmem:[#allocation46_spill] sm:$0xff]  ;;  %v12490_v40 = vld [vmem:[#allocation5_spill] sm:$0xff]  ;;  %v4990_v39 = vpop.permute.xlu2 %4989  ;;  %v5088_v50 = vld [vmem:[%s12238_s9 + $0x8] sm:$0xff] }
 0x8d2   : > { %v12489_v57 = vld [vmem:[#allocation50_spill] sm:$0xff] }
 0x8d3   : > { %v4958_v54 = vadd.f32 %v12476_v31, %v4789_v42  ;;  %v5064_v56 = vadd.f32 %v5020_v38, %v4959_v24  ;;  %v4956_v23 = vadd.f32 %v12484_v48, %v4787_v53  ;;  %v7304_v53 = vld [vmem:[%s12238_s9 + $0x48] sm:$0xff]  ;;  %v7305_v31 = vld [vmem:[%s12238_s9 + $0x50] sm:$0xff] }
 0x8d4   : > { %v4517_v18 = vpop.f32.mrf.mxu1  ;;  %v4780_v19 = vpop.f32.mrf.mxu3 }
 0x8d5   : > { %v4627_v63 = vadd.f32 %v4626_v58, %v4517_v18  ;;  %v12486_v58 = vld [vmem:[#allocation9_spill] sm:$0xff]  ;;  %v5079_v9 = vmax.f32 %v5064_v56, 0.0 }
 0x8d6   : > { %v4946_v32 = vpop.f32.mrf.mxu0  ;;  %v7329_v56 = vld [vmem:[%s12239_s10 + $0x18] sm:$0x3] }
 0x8d7   : > { %v4797_v2 = vadd.f32 %v4780_v19, %v4627_v63  ;;  %v4965_v29 = vadd.f32 %v4946_v32, %v4796_v44  ;;  %v4791_v19 = vadd.f32 %v4762_v10, %v4609_v37  ;;  %v5015_v37 = vpop.permute.xlu0 %5014  ;;  %v12487_v63 = vld [vmem:[#allocation54_spill] sm:$0xff] }
 0x8d9   : > { %v11413_v18 = vadd.f32 %v5050_v55, %v4965_v29  ;;  %v4960_v47 = vadd.f32 %v11411_v26, %v4791_v19  ;;  %v12481_v26 = vld [vmem:[#allocation53_spill] sm:$0xff]  ;;  %v12485_v55 = vld [vmem:[#allocation51_spill] sm:$0xff] }
 0x8da   : > { %v4585_v1 = vadd.f32 %v12482_v30, %v12481_v26 }
 0x8db   : > { %v5085_v29 = vmax.f32 %v11413_v18, 0.0  ;;  %v5065_v43 = vadd.f32 %v5025_v11, %v4960_v47  ;;  %v5090_v18 = vld [vmem:[%s12238_s9 + $0x18] sm:$0xff] }
 0x8dd   : > { %v5080_v33 = vmax.f32 %v5065_v43, 0.0  ;;  %v7306_v43 = vld [vmem:[%s12238_s9 + $0x58] sm:$0xff] }
 0x8de   : > { %v4949_v21 = vpop.f32.mrf.mxu0 }
 0x8df   : > { %v4966_v62 = vadd.f32 %v4949_v21, %v4797_v2  ;;  %v4600_v21 = vadd.f32 %v11379_v28, %v11395_v8  ;;  %v11424_v2 = vadd.f32 %v5040_v61, %v4963_v3  ;;  %v5084_v61 = vmax.f32 %v11418_v5, 0.0  ;;  %v5000_v46 = vpop.permute.xlu0 %4999  ;;  %v5091_v5 = vld [vmem:[%s12238_s9 + $0x20] sm:$0xff] }
 0x8e0   : > { %v4594_v28 = vadd.f32 %v11363_v4, %v11381_v15  ;;  %v5082_v4 = vmax.f32 %v11433_v41, 0.0  ;;  %v5010_v15 = vpop.permute.xlu1 %5009  ;;  %v5061_v3 = vadd.f32 %v5005_v6, %v4956_v23 }
 0x8e1   : > { %v11415_v60 = vadd.f32 %v5055_v25, %v4966_v62  ;;  %v4788_v8 = vadd.f32 %v11397_v16, %v4600_v21  ;;  %v5083_v14 = vmax.f32 %v11424_v2, 0.0  ;;  %v12477_v16 = vld [vmem:[#allocation49_spill] sm:$0xff]  ;;  %v5063_v25 = vadd.f32 %v5015_v37, %v4958_v54  ;;  %v5236_v54 = vld [vmem:[%s12239_s10 + $0x8] sm:$0x3] }
 0x8e2   : > { %v4588_v20 = vadd.f32 %v12478_v51, %v12477_v16  ;;  %v4786_v10 = vadd.f32 %v12479_v27, %v4594_v28  ;;  %v4783_v62 = vadd.f32 %v12487_v63, %v4585_v1  ;;  %v5076_v37 = vmax.f32 %v5061_v3, 0.0  ;;  %7319 = vmatpush.msk.msra.mxu3 %vm3995_vm5, %v5236_v54  ;;  %7339 = vmatpush.msk.msrb.mxu0 %vm3995_vm5, %v5236_v54  ;;  %v7308_v16 = vld [vmem:[%s12238_s9 + $0x68] sm:$0xff]  ;;  %v7309_v51 = vld [vmem:[%s12238_s9 + $0x70] sm:$0xff] }
 0x8e3   : > { %v5086_v44 = vmax.f32 %v11415_v60, 0.0  ;;  %v4957_v0 = vadd.f32 %v12480_v49, %v4788_v8  ;;  %v5078_v11 = vmax.f32 %v5063_v25, 0.0  ;;  %v5089_v60 = vld [vmem:[%s12238_s9 + $0x10] sm:$0xff] }
 0x8e4   : > { %v4784_v35 = vadd.f32 %v12485_v55, %v4588_v20  ;;  %v4955_v59 = vadd.f32 %v12486_v58, %v4786_v10  ;;  %v4952_v45 = vadd.f32 %v12490_v40, %v4783_v62  ;;  %v7310_v20 = vld [vmem:[%s12238_s9 + $0x78] sm:$0xf] }
 0x8e5   : > { %5121 = vmatpush.msra.mxu1 %v5086_v44  ;;  %v5062_v32 = vadd.f32 %v5010_v15, %v4957_v0  ;;  %v5235_v15 = vld [vmem:[%s12239_s10] sm:$0xff] }
 0x8e6   : > { %v4953_v19 = vadd.f32 %v12489_v57, %v4784_v35  ;;  %v5060_v36 = vadd.f32 %v5000_v46, %v4955_v59  ;;  %5280 = vmatpush.msra.mxu3 %v5235_v15  ;;  %5400 = vmatpush.msrb.mxu0 %v5235_v15 }
 0x8e7   : > { %5122 = vmatpush.msra.mxu1 %v5085_v29  ;;  %v5077_v38 = vmax.f32 %v5062_v32, 0.0  ;;  %v4985_v41 = vpop.permute.xlu0 %4984 }
 0x8e8   : > { %v4995_v21 = vpop.permute.xlu1 %4994  ;;  %v5058_v42 = vadd.f32 %v4990_v39, %v4953_v19  ;;  %v5075_v47 = vmax.f32 %v5060_v36, 0.0  ;;  %v5057_v28 = vadd.f32 %v4985_v41, %v4952_v45  ;;  %7330 = vmatpush.msk.msrb.mxu3 %vm3995_vm5, %v7329_v56 }
 0x8e9   : > { %5123 = vmatpush.msra.mxu1 %v5084_v61  ;;  %v5059_v2 = vadd.f32 %v4995_v21, %v4954_v52 }
 0x8ea   : > { %v5073_v24 = vmax.f32 %v5058_v42, 0.0  ;;  %v5072_v34 = vmax.f32 %v5057_v28, 0.0 }
 0x8eb   : > { %5124 = vmatpush.msra.mxu1 %v5083_v14  ;;  %v5074_v8 = vmax.f32 %v5059_v2, 0.0 }
 0x8ed   : > { %5125 = vmatpush.msra.mxu1 %v5082_v4 }
 0x8ef   : > { %5126 = vmatpush.msra.mxu1 %v5081_v17 }
 0x8f1   : > { %5127 = vmatpush.msra.mxu1 %v5080_v33 }
 0x8f3   : > { %5128 = vmatpush.msra.mxu1 %v5079_v9 }
 0x8f5   : > { %5129 = vmatpush.msra.mxu1 %v5078_v11 }
 0x8f7   : > { %5130 = vmatpush.msra.mxu1 %v5077_v38 }
 0x8f9   : > { %5131 = vmatpush.msra.mxu1 %v5076_v37 }
 0x8fb   : > { %5132 = vmatpush.msra.mxu1 %v5075_v47 }
 0x8fd   : > { %5133 = vmatpush.msra.mxu1 %v5074_v8 }
 0x8ff   : > { %5134 = vmatpush.msra.mxu1 %v5073_v24 }
 0x901   : > { %5135 = vmatpush.msra.mxu1 %v5072_v34 }
 0x902   : > { %7295 = vmatmul.msk.f32.vlgmr.msra.gmra.mxu1 %vm5095_vm11, %v5087_v22 }
 0x903   : > { %5195 = vmatpush.msrb.mxu1 %v5086_v44  ;;  %v5092_v44 = vld [vmem:[%s12238_s9 + $0x28] sm:$0xff] }
 0x905   : > { %5196 = vmatpush.msrb.mxu1 %v5085_v29  ;;  %v5093_v29 = vld [vmem:[%s12238_s9 + $0x30] sm:$0xff] }
 0x907   : > { %5197 = vmatpush.msrb.mxu1 %v5084_v61  ;;  %v5094_v61 = vld [vmem:[%s12238_s9 + $0x38] sm:$0xf] }
 0x909   : > { %5198 = vmatpush.msrb.mxu1 %v5083_v14  ;;  %v7303_v14 = vld [vmem:[%s12238_s9 + $0x40] sm:$0xff] }
 0x90a   : > { %7296 = vmatmul.msk.f32.gmra.mxu1 %vm5095_vm11, %v5088_v50 }
 0x90b   : > { %5199 = vmatpush.msrb.mxu1 %v5082_v4  ;;  %v7307_v4 = vld [vmem:[%s12238_s9 + $0x60] sm:$0xff] }
 0x90d   : > { %5200 = vmatpush.msrb.mxu1 %v5081_v17  ;;  %v7328_v17 = vld [vmem:[%s12239_s10 + $0x10] sm:$0xff] }
 0x90e   : > { %5327 = vmatpush.msrb.mxu3 %v7328_v17 }
 0x90f   : > { %5201 = vmatpush.msrb.mxu1 %v5080_v33 }
 0x911   : > { %5202 = vmatpush.msrb.mxu1 %v5079_v9 }
 0x912   : > { %7297 = vmatmul.msk.f32.gmra.mxu1 %vm5095_vm11, %v5089_v60 }
 0x913   : > { %5203 = vmatpush.msrb.mxu1 %v5078_v11 }
 0x915   : > { %5204 = vmatpush.msrb.mxu1 %v5077_v38 }
 0x917   : > { %5205 = vmatpush.msrb.mxu1 %v5076_v37 }
 0x919   : > { %5206 = vmatpush.msrb.mxu1 %v5075_v47 }
 0x91a   : > { %7298 = vmatmul.msk.f32.gmra.mxu1 %vm5095_vm11, %v5090_v18 }
 0x91b   : > { %5207 = vmatpush.msrb.mxu1 %v5074_v8 }
 0x91d   : > { %5208 = vmatpush.msrb.mxu1 %v5073_v24 }
 0x91f   : > { %5209 = vmatpush.msrb.mxu1 %v5072_v34 }
 0x921   : > { %7348 = vmatpush.msk.msra.mxu1 %vm3995_vm5, %v7329_v56 }
 0x922   : > { %7299 = vmatmul.msk.f32.gmra.mxu1 %vm5095_vm11, %v5091_v5 }
 0x923   : > { %5441 = vmatpush.msra.mxu1 %v7328_v17 }
 0x92a   : > { %7300 = vmatmul.msk.f32.gmra.mxu1 %vm5095_vm11, %v5092_v44 }
 0x932   : > { %7301 = vmatmul.msk.f32.gmra.mxu1 %vm5095_vm11, %v5093_v29 }
 0x93a   : > { %7302 = vmatmul.msk.f32.gmra.mxu1 %vm5095_vm11, %v5094_v61 }
 0x942   : > { %7311 = vmatmul.msk.f32.vlgmr.msrb.gmra.mxu1 %vm5095_vm11, %v7303_v14 }
 0x94a   : > { %7312 = vmatmul.msk.f32.gmra.mxu1 %vm5095_vm11, %v7304_v53 }
 0x952   : > { %7313 = vmatmul.msk.f32.gmra.mxu1 %vm5095_vm11, %v7305_v31 }
 0x95a   : > { %7314 = vmatmul.msk.f32.gmra.mxu1 %vm5095_vm11, %v7306_v43 }
 0x962   : > { %7315 = vmatmul.msk.f32.gmra.mxu1 %vm5095_vm11, %v7307_v4 }
 0x96a   : > { %7316 = vmatmul.msk.f32.gmra.mxu1 %vm5095_vm11, %v7308_v16 }
 0x972   : > { %7317 = vmatmul.msk.f32.gmra.mxu1 %vm5095_vm11, %v7309_v51 }
 0x97a   : > { %7318 = vmatmul.msk.f32.gmra.mxu1 %vm5095_vm11, %v7310_v20 }
 0x97f   : > { %v5137_v27 = vpop.f32.mrf.mxu1 }
 0x980   : > { %7320 = vmatmul.msk.f32.vlgmr.msra.gmra.mxu3 %vm5237_vm12, %v5137_v27 }
 0x987   : > { %v5140_v10 = vpop.f32.mrf.mxu1 }
 0x988   : > { %7321 = vmatmul.msk.f32.gmra.mxu3 %vm5237_vm12, %v5140_v10 }
 0x98f   : > { %v5143_v49 = vpop.f32.mrf.mxu1 }
 0x990   : > { %7322 = vmatmul.msk.f32.gmra.mxu3 %vm5237_vm12, %v5143_v49 }
 0x997   : > { %v5146_v0 = vpop.f32.mrf.mxu1 }
 0x998   : > { %7323 = vmatmul.msk.f32.gmra.mxu3 %vm5237_vm12, %v5146_v0 }
 0x99f   : > { %v5149_v6 = vpop.f32.mrf.mxu1 }
 0x9a0   : > { %7324 = vmatmul.msk.f32.gmra.mxu3 %vm5237_vm12, %v5149_v6 }
 0x9a7   : > { %v5152_v26 = vpop.f32.mrf.mxu1 }
 0x9a8   : > { %7325 = vmatmul.msk.f32.gmra.mxu3 %vm5237_vm12, %v5152_v26 }
 0x9af   : > { %v5155_v30 = vpop.f32.mrf.mxu1 }
 0x9b0   : > { %7326 = vmatmul.msk.f32.gmra.mxu3 %vm5237_vm12, %v5155_v30 }
 0x9b7   : > { %v5158_v1 = vpop.f32.mrf.mxu1 }
 0x9b8   : > { %7327 = vmatmul.msk.f32.gmra.mxu3 %vm5237_vm12, %v5158_v1 }
 0x9bf   : > { %v5211_v12 = vpop.f32.mrf.mxu1 }
 0x9c0   : > { %7331 = vmatmul.msk.f32.vlgmr.msrb.gmra.mxu3 %vm5237_vm12, %v5137_v27  ;;  %7340 = vmatmul.msk.f32.vlgmr.msrb.gmra.mxu0 %vm5237_vm12, %v5211_v12 }
 0x9c1   : > { %7349 = vmatmul.msk.f32.vlgmr.msra.gmra.mxu1 %vm5237_vm12, %v5211_v12  ;;  %v5499_v12 = vld [vmem:[%s12240_s11] sm:$0xff] }
 0x9c7   : > { %v5214_v7 = vpop.f32.mrf.mxu1 }
 0x9c8   : > { %7332 = vmatmul.msk.f32.gmra.mxu3 %vm5237_vm12, %v5140_v10  ;;  %7341 = vmatmul.msk.f32.gmra.mxu0 %vm5237_vm12, %v5214_v7 }
 0x9c9   : > { %7350 = vmatmul.msk.f32.gmra.mxu1 %vm5237_vm12, %v5214_v7  ;;  %v7407_v7 = vld [vmem:[%s12240_s11 + $0x100] sm:$0xff] }
 0x9cf   : > { %v5217_v48 = vpop.f32.mrf.mxu1 }
 0x9d0   : > { %7333 = vmatmul.msk.f32.gmra.mxu3 %vm5237_vm12, %v5143_v49  ;;  %7342 = vmatmul.msk.f32.gmra.mxu0 %vm5237_vm12, %v5217_v48 }
 0x9d1   : > { %7351 = vmatmul.msk.f32.gmra.mxu1 %vm5237_vm12, %v5217_v48  ;;  %v7440_v48 = vld [vmem:[%s12240_s11 + $0x180] sm:$0xff] }
 0x9d7   : > { %v5220_v23 = vpop.f32.mrf.mxu1 }
 0x9d8   : > { %7334 = vmatmul.msk.f32.gmra.mxu3 %vm5237_vm12, %v5146_v0  ;;  %7343 = vmatmul.msk.f32.gmra.mxu0 %vm5237_vm12, %v5220_v23 }
 0x9d9   : > { %7352 = vmatmul.msk.f32.gmra.mxu1 %vm5237_vm12, %v5220_v23  ;;  %v7374_v23 = vld [vmem:[%s12240_s11 + $0x80] sm:$0xff] }
 0x9df   : > { %v5223_v25 = vpop.f32.mrf.mxu1 }
 0x9e0   : > { %7335 = vmatmul.msk.f32.gmra.mxu3 %vm5237_vm12, %v5149_v6  ;;  %7344 = vmatmul.msk.f32.gmra.mxu0 %vm5237_vm12, %v5223_v25 }
 0x9e1   : > { %7353 = vmatmul.msk.f32.gmra.mxu1 %vm5237_vm12, %v5223_v25  ;;  %v5500_v25 = vld [vmem:[%s12240_s11 + $0x8] sm:$0xff] }
 0x9e7   : > { %v5226_v33 = vpop.f32.mrf.mxu1 }
 0x9e8   : > { %7336 = vmatmul.msk.f32.gmra.mxu3 %vm5237_vm12, %v5152_v26  ;;  %7345 = vmatmul.msk.f32.gmra.mxu0 %vm5237_vm12, %v5226_v33 }
 0x9e9   : > { %7354 = vmatmul.msk.f32.gmra.mxu1 %vm5237_vm12, %v5226_v33  ;;  %v7408_v33 = vld [vmem:[%s12240_s11 + $0x108] sm:$0xff] }
 0x9ef   : > { %v5229_v46 = vpop.f32.mrf.mxu1 }
 0x9f0   : > { %7337 = vmatmul.msk.f32.gmra.mxu3 %vm5237_vm12, %v5155_v30  ;;  %7346 = vmatmul.msk.f32.gmra.mxu0 %vm5237_vm12, %v5229_v46 }
 0x9f1   : > { %7355 = vmatmul.msk.f32.gmra.mxu1 %vm5237_vm12, %v5229_v46  ;;  %v7441_v46 = vld [vmem:[%s12240_s11 + $0x188] sm:$0xff] }
 0x9f7   : > { %v5232_v55 = vpop.f32.mrf.mxu1 }
 0x9f8   : > { %7338 = vmatmul.msk.f32.gmra.mxu3 %vm5237_vm12, %v5158_v1  ;;  %7347 = vmatmul.msk.f32.gmra.mxu0 %vm5237_vm12, %v5232_v55 }
 0x9f9   : > { %7356 = vmatmul.msk.f32.gmra.mxu1 %vm5237_vm12, %v5232_v55  ;;  %v7375_v55 = vld [vmem:[%s12240_s11 + $0x88] sm:$0xff] }
 0xa03   : > { %v5282_v35 = vpop.f32.mrf.mxu3 }
 0xa0b   : > { %v11585_v58 = vpop.f32.mrf.mxu3 }
 0xa13   : > { %v11587_v59 = vpop.f32.mrf.mxu3 }
 0xa1b   : > { %v11589_v32 = vpop.f32.mrf.mxu3 }
 0xa23   : > { %v5294_v9 = vpop.f32.mrf.mxu3 }
 0xa2b   : > { %v5297_v63 = vpop.f32.mrf.mxu3 }
 0xa33   : > { %v5300_v62 = vpop.f32.mrf.mxu3 }
 0xa3b   : > { %v5303_v13 = vpop.f32.mrf.mxu3 }
 0xa3d   : > { %v5402_v52 = vpop.f32.mrf.mxu0 }
 0xa3e   : > { %v5443_v3 = vpop.f32.mrf.mxu1 }
 0xa3f   : > { %v5467_v11 = vmax.f32 %v5402_v52, %v5443_v3  ;;  %v5503_v52 = vld [vmem:[%s12240_s11 + $0x20] sm:$0xff] }
 0xa40   : > { %v7411_v3 = vld [vmem:[%s12240_s11 + $0x120] sm:$0xff] }
 0xa43   : > { %v5329_v57 = vpop.f32.mrf.mxu3 }
 0xa44   : > { %v5353_v19 = vmax.f32 %v5282_v35, %v5329_v57  ;;  %v5501_v35 = vld [vmem:[%s12240_s11 + $0x10] sm:$0xff]  ;;  %v7378_v57 = vld [vmem:[%s12240_s11 + $0xa0] sm:$0xff] }
 0xa45   : > { %v11591_v36 = vpop.f32.mrf.mxu0 }
 0xa46   : > { %v11593_v38 = vmax.f32 %v5353_v19, %v5467_v11  ;;  %v5446_v21 = vpop.f32.mrf.mxu1  ;;  %v7444_v11 = vld [vmem:[%s12240_s11 + $0x1a0] sm:$0xff]  ;;  %v5504_v19 = vld [vmem:[%s12240_s11 + $0x28] sm:$0xff] }
 0xa47   : > { %v5468_v6 = vmax.f32 %v11591_v36, %v5446_v21  ;;  %v7412_v36 = vld [vmem:[%s12240_s11 + $0x128] sm:$0xff] }
 0xa48   : > { %v7379_v21 = vld [vmem:[%s12240_s11 + $0xa8] sm:$0xff] }
 0xa4b   : > { %v5332_v40 = vpop.f32.mrf.mxu3 }
 0xa4c   : > { %v5354_v17 = vmax.f32 %v11585_v58, %v5332_v40  ;;  %v7409_v58 = vld [vmem:[%s12240_s11 + $0x110] sm:$0xff] }
 0xa4d   : > { %v5408_v45 = vpop.f32.mrf.mxu0  ;;  %v5505_v40 = vld [vmem:[%s12240_s11 + $0x30] sm:$0xff] }
 0xa4e   : > { %v5449_v2 = vpop.f32.mrf.mxu1  ;;  %v5476_v1 = vmax.f32 %v5354_v17, %v5468_v6  ;;  %v7388_v17 = vld [vmem:[%s12240_s11 + $0xf0] sm:$0xff]  ;;  %v5514_v6 = vld [vmem:[%s12240_s11 + $0x78] sm:$0xff] }
 0xa4f   : > { %v5469_v0 = vmax.f32 %v5408_v45, %v5449_v2  ;;  %v7413_v45 = vld [vmem:[%s12240_s11 + $0x130] sm:$0xff] }
 0xa50   : > { %v7446_v2 = vld [vmem:[%s12240_s11 + $0x1b0] sm:$0xff] }
 0xa53   : > { %v5335_v37 = vpop.f32.mrf.mxu3 }
 0xa54   : > { %v5355_v49 = vmax.f32 %v11587_v59, %v5335_v37  ;;  %v7442_v59 = vld [vmem:[%s12240_s11 + $0x190] sm:$0xff] }
 0xa55   : > { %v5411_v39 = vpop.f32.mrf.mxu0  ;;  %v7380_v37 = vld [vmem:[%s12240_s11 + $0xb0] sm:$0xff] }
 0xa56   : > { %v5452_v42 = vpop.f32.mrf.mxu1  ;;  %v5477_v30 = vmax.f32 %v5355_v49, %v5469_v0  ;;  %v5513_v49 = vld [vmem:[%s12240_s11 + $0x70] sm:$0xff] }
 0xa57   : > { %v5470_v27 = vmax.f32 %v5411_v39, %v5452_v42  ;;  %v5506_v39 = vld [vmem:[%s12240_s11 + $0x38] sm:$0xff]  ;;  %v7421_v0 = vld [vmem:[%s12240_s11 + $0x170] sm:$0xff] }
 0xa58   : > { %v7414_v42 = vld [vmem:[%s12240_s11 + $0x138] sm:$0xff] }
 0xa5b   : > { %v5338_v47 = vpop.f32.mrf.mxu3 }
 0xa5c   : > { %v5356_v20 = vmax.f32 %v11589_v32, %v5338_v47  ;;  %v7376_v32 = vld [vmem:[%s12240_s11 + $0x90] sm:$0xff]  ;;  %v7447_v47 = vld [vmem:[%s12240_s11 + $0x1b8] sm:$0xff] }
 0xa5d   : > { %v5414_v41 = vpop.f32.mrf.mxu0 }
 0xa5e   : > { %v5455_v28 = vpop.f32.mrf.mxu1  ;;  %v5478_v26 = vmax.f32 %v5356_v20, %v5470_v27  ;;  %v7420_v20 = vld [vmem:[%s12240_s11 + $0x168] sm:$0xff] }
 0xa5f   : > { %v5471_v16 = vmax.f32 %v5414_v41, %v5455_v28  ;;  %v7381_v41 = vld [vmem:[%s12240_s11 + $0xb8] sm:$0xff]  ;;  %v5507_v28 = vld [vmem:[%s12240_s11 + $0x40] sm:$0xff]  ;;  %v7453_v27 = vld [vmem:[%s12240_s11 + $0x1e8] sm:$0xff] }
 0xa63   : > { %v5341_v8 = vpop.f32.mrf.mxu3 }
 0xa64   : > { %v5357_v15 = vmax.f32 %v5294_v9, %v5341_v8  ;;  %v5502_v9 = vld [vmem:[%s12240_s11 + $0x18] sm:$0xff]  ;;  %v7415_v8 = vld [vmem:[%s12240_s11 + $0x140] sm:$0xff] }
 0xa65   : > { %v5417_v24 = vpop.f32.mrf.mxu0 }
 0xa66   : > { %v5458_v34 = vpop.f32.mrf.mxu1  ;;  %v5479_v56 = vmax.f32 %v5357_v15, %v5471_v16  ;;  %v7452_v15 = vld [vmem:[%s12240_s11 + $0x1e0] sm:$0xff] }
 0xa67   : > { %v5472_v43 = vmax.f32 %v5417_v24, %v5458_v34  ;;  %v7448_v24 = vld [vmem:[%s12240_s11 + $0x1c0] sm:$0xff] }
 0xa68   : > { %v7382_v34 = vld [vmem:[%s12240_s11 + $0xc0] sm:$0xff] }
 0xa69   : > { %v7386_v16 = vld [vmem:[%s12240_s11 + $0xe0] sm:$0xff] }
 0xa6b   : > { %v5344_v22 = vpop.f32.mrf.mxu3 }
 0xa6c   : > { %v5358_v54 = vmax.f32 %v5297_v63, %v5344_v22  ;;  %v7410_v63 = vld [vmem:[%s12240_s11 + $0x118] sm:$0xff]  ;;  %v5508_v22 = vld [vmem:[%s12240_s11 + $0x48] sm:$0xff] }
 0xa6d   : > { %v5420_v50 = vpop.f32.mrf.mxu0 }
 0xa6e   : > { %v5461_v60 = vpop.f32.mrf.mxu1  ;;  %v5480_v10 = vmax.f32 %v5358_v54, %v5472_v43  ;;  %v7385_v54 = vld [vmem:[%s12240_s11 + $0xd8] sm:$0xff]  ;;  %v5511_v43 = vld [vmem:[%s12240_s11 + $0x60] sm:$0xff] }
 0xa6f   : > { %v5473_v53 = vmax.f32 %v5420_v50, %v5461_v60  ;;  %v7416_v50 = vld [vmem:[%s12240_s11 + $0x148] sm:$0xff] }
 0xa70   : > { %v7449_v60 = vld [vmem:[%s12240_s11 + $0x1c8] sm:$0xff] }
 0xa73   : > { %v5347_v18 = vpop.f32.mrf.mxu3 }
 0xa74   : > { %v5359_v14 = vmax.f32 %v5300_v62, %v5347_v18  ;;  %v7443_v62 = vld [vmem:[%s12240_s11 + $0x198] sm:$0xff]  ;;  %v7383_v18 = vld [vmem:[%s12240_s11 + $0xc8] sm:$0xff] }
 0xa75   : > { %v5423_v5 = vpop.f32.mrf.mxu0 }
 0xa76   : > { %v5464_v44 = vpop.f32.mrf.mxu1  ;;  %v5481_v51 = vmax.f32 %v5359_v14, %v5473_v53  ;;  %v5510_v14 = vld [vmem:[%s12240_s11 + $0x58] sm:$0xff] }
 0xa77   : > { %v5474_v29 = vmax.f32 %v5423_v5, %v5464_v44  ;;  %v5509_v5 = vld [vmem:[%s12240_s11 + $0x50] sm:$0xff]  ;;  %v7418_v53 = vld [vmem:[%s12240_s11 + $0x158] sm:$0xff] }
 0xa78   : > { %v7417_v44 = vld [vmem:[%s12240_s11 + $0x150] sm:$0xff] }
 0xa7b   : > { %v5350_v61 = vpop.f32.mrf.mxu3 }
 0xa7c   : > { %v5360_v31 = vmax.f32 %v5303_v13, %v5350_v61  ;;  %v7377_v13 = vld [vmem:[%s12240_s11 + $0x98] sm:$0xff]  ;;  %v7384_v61 = vld [vmem:[%s12240_s11 + $0xd0] sm:$0xff] }
 0xa7e   : > { %v5482_v4 = vmax.f32 %v5360_v31, %v5474_v29  ;;  %v7450_v29 = vld [vmem:[%s12240_s11 + $0x1d0] sm:$0xff]  ;;  %v7451_v31 = vld [vmem:[%s12240_s11 + $0x1d8] sm:$0xff] }
 0xa80   : > { %7357 = vmatpush.msk.msra.mxu2 %vm644_vm0, %v5482_v4  ;;  %7390 = vmatpush.msk.msra.mxu3 %vm644_vm0, %v5482_v4 }
 0xa81   : > { %7423 = vmatpush.msk.msra.mxu0 %vm644_vm0, %v5482_v4  ;;  %7456 = vmatpush.msk.msrb.mxu1 %vm644_vm0, %v5482_v4 }
 0xa82   : > { %5576 = vmatpush.msra.mxu2 %v5481_v51  ;;  %5722 = vmatpush.msra.mxu3 %v5481_v51 }
 0xa83   : > { %5932 = vmatpush.msra.mxu0 %v5481_v51  ;;  %6142 = vmatpush.msrb.mxu1 %v5481_v51 }
 0xa84   : > { %5577 = vmatpush.msra.mxu2 %v5480_v10  ;;  %5723 = vmatpush.msra.mxu3 %v5480_v10 }
 0xa85   : > { %5933 = vmatpush.msra.mxu0 %v5480_v10  ;;  %6143 = vmatpush.msrb.mxu1 %v5480_v10 }
 0xa86   : > { %5578 = vmatpush.msra.mxu2 %v5479_v56  ;;  %5724 = vmatpush.msra.mxu3 %v5479_v56 }
 0xa87   : > { %5934 = vmatpush.msra.mxu0 %v5479_v56  ;;  %6144 = vmatpush.msrb.mxu1 %v5479_v56 }
 0xa88   : > { %5579 = vmatpush.msra.mxu2 %v5478_v26  ;;  %5725 = vmatpush.msra.mxu3 %v5478_v26 }
 0xa89   : > { %5935 = vmatpush.msra.mxu0 %v5478_v26  ;;  %6145 = vmatpush.msrb.mxu1 %v5478_v26 }
 0xa8a   : > { %5580 = vmatpush.msra.mxu2 %v5477_v30  ;;  %5726 = vmatpush.msra.mxu3 %v5477_v30 }
 0xa8b   : > { %5936 = vmatpush.msra.mxu0 %v5477_v30  ;;  %6146 = vmatpush.msrb.mxu1 %v5477_v30 }
 0xa8c   : > { %5581 = vmatpush.msra.mxu2 %v5476_v1  ;;  %5727 = vmatpush.msra.mxu3 %v5476_v1 }
 0xa8d   : > { %5937 = vmatpush.msra.mxu0 %v5476_v1  ;;  %6147 = vmatpush.msrb.mxu1 %v5476_v1 }
 0xa8e   : > { %5582 = vmatpush.msra.mxu2 %v11593_v38  ;;  %5728 = vmatpush.msra.mxu3 %v11593_v38 }
 0xa8f   : > { %5938 = vmatpush.msra.mxu0 %v11593_v38  ;;  %6148 = vmatpush.msrb.mxu1 %v11593_v38 }
 0xa90   : > { %7358 = vmatmul.msk.f32.vlgmr.msra.gmra.mxu2 %vm5515_vm13, %v5499_v12  ;;  %7424 = vmatmul.msk.f32.vlgmr.msra.gmra.mxu0 %vm5515_vm13, %v7407_v7 }
 0xa91   : > { %7489 = vmatpush.msk.msrb.mxu2 %vm644_vm0, %v5482_v4  ;;  %7457 = vmatmul.msk.f32.vlgmr.msrb.gmra.mxu1 %vm5515_vm13, %v7440_v48  ;;  %v7419_v4 = vld [vmem:[%s12240_s11 + $0x160] sm:$0xff] }
 0xa92   : > { %7391 = vmatmul.msk.f32.vlgmr.msra.gmra.mxu3 %vm5515_vm13, %v7374_v23  ;;  %v7474_v23 = vld [vmem:[%s12240_s11 + $0x208] sm:$0xff] }
 0xa93   : > { %6352 = vmatpush.msrb.mxu2 %v5481_v51  ;;  %v5512_v51 = vld [vmem:[%s12240_s11 + $0x68] sm:$0xff] }
 0xa95   : > { %6353 = vmatpush.msrb.mxu2 %v5480_v10  ;;  %v7387_v10 = vld [vmem:[%s12240_s11 + $0xe8] sm:$0xff] }
 0xa97   : > { %6354 = vmatpush.msrb.mxu2 %v5479_v56  ;;  %v7454_v56 = vld [vmem:[%s12240_s11 + $0x1f0] sm:$0xff] }
 0xa98   : > { %7359 = vmatmul.msk.f32.gmra.mxu2 %vm5515_vm13, %v5500_v25  ;;  %7425 = vmatmul.msk.f32.gmra.mxu0 %vm5515_vm13, %v7408_v33 }
 0xa99   : > { %6355 = vmatpush.msrb.mxu2 %v5478_v26  ;;  %7458 = vmatmul.msk.f32.gmra.mxu1 %vm5515_vm13, %v7441_v46  ;;  %v7422_v26 = vld [vmem:[%s12240_s11 + $0x178] sm:$0xff] }
 0xa9a   : > { %7392 = vmatmul.msk.f32.gmra.mxu3 %vm5515_vm13, %v7375_v55 }
 0xa9b   : > { %6356 = vmatpush.msrb.mxu2 %v5477_v30  ;;  %v7389_v30 = vld [vmem:[%s12240_s11 + $0xf8] sm:$0xff] }
 0xa9d   : > { %6357 = vmatpush.msrb.mxu2 %v5476_v1  ;;  %v7473_v1 = vld [vmem:[%s12240_s11 + $0x200] sm:$0xff] }
 0xa9f   : > { %6358 = vmatpush.msrb.mxu2 %v11593_v38  ;;  %v7445_v38 = vld [vmem:[%s12240_s11 + $0x1a8] sm:$0xff] }
 0xaa0   : > { %7360 = vmatmul.msk.f32.gmra.mxu2 %vm5515_vm13, %v5501_v35  ;;  %7426 = vmatmul.msk.f32.gmra.mxu0 %vm5515_vm13, %v7409_v58  ;;  %v7475_v35 = vld [vmem:[%s12240_s11 + $0x210] sm:$0xff] }
 0xaa1   : > { %7459 = vmatmul.msk.f32.gmra.mxu1 %vm5515_vm13, %v7442_v59 }
 0xaa2   : > { %7393 = vmatmul.msk.f32.gmra.mxu3 %vm5515_vm13, %v7376_v32 }
 0xaa8   : > { %7361 = vmatmul.msk.f32.gmra.mxu2 %vm5515_vm13, %v5502_v9  ;;  %7427 = vmatmul.msk.f32.gmra.mxu0 %vm5515_vm13, %v7410_v63  ;;  %v7476_v63 = vld [vmem:[%s12240_s11 + $0x218] sm:$0xff] }
 0xaa9   : > { %7460 = vmatmul.msk.f32.gmra.mxu1 %vm5515_vm13, %v7443_v62 }
 0xaaa   : > { %7394 = vmatmul.msk.f32.gmra.mxu3 %vm5515_vm13, %v7377_v13 }
 0xab0   : > { %7362 = vmatmul.msk.f32.gmra.mxu2 %vm5515_vm13, %v5503_v52  ;;  %7428 = vmatmul.msk.f32.gmra.mxu0 %vm5515_vm13, %v7411_v3 }
 0xab1   : > { %7461 = vmatmul.msk.f32.gmra.mxu1 %vm5515_vm13, %v7444_v11  ;;  %v7477_v11 = vld [vmem:[%s12240_s11 + $0x220] sm:$0xff] }
 0xab2   : > { %7395 = vmatmul.msk.f32.gmra.mxu3 %vm5515_vm13, %v7378_v57 }
 0xab8   : > { %7363 = vmatmul.msk.f32.gmra.mxu2 %vm5515_vm13, %v5504_v19  ;;  %7429 = vmatmul.msk.f32.gmra.mxu0 %vm5515_vm13, %v7412_v36 }
 0xab9   : > { %7462 = vmatmul.msk.f32.gmra.mxu1 %vm5515_vm13, %v7445_v38 }
 0xaba   : > { %7396 = vmatmul.msk.f32.gmra.mxu3 %vm5515_vm13, %v7379_v21  ;;  %v7478_v21 = vld [vmem:[%s12240_s11 + $0x228] sm:$0xff] }
 0xac0   : > { %7364 = vmatmul.msk.f32.gmra.mxu2 %vm5515_vm13, %v5505_v40  ;;  %7430 = vmatmul.msk.f32.gmra.mxu0 %vm5515_vm13, %v7413_v45 }
 0xac1   : > { %7463 = vmatmul.msk.f32.gmra.mxu1 %vm5515_vm13, %v7446_v2 }
 0xac2   : > { %7397 = vmatmul.msk.f32.gmra.mxu3 %vm5515_vm13, %v7380_v37 }
 0xac8   : > { %7365 = vmatmul.msk.f32.gmra.mxu2 %vm5515_vm13, %v5506_v39  ;;  %7431 = vmatmul.msk.f32.gmra.mxu0 %vm5515_vm13, %v7414_v42  ;;  %v7479_v39 = vld [vmem:[%s12240_s11 + $0x230] sm:$0xff] }
 0xac9   : > { %7464 = vmatmul.msk.f32.gmra.mxu1 %vm5515_vm13, %v7447_v47 }
 0xaca   : > { %7398 = vmatmul.msk.f32.gmra.mxu3 %vm5515_vm13, %v7381_v41 }
 0xad0   : > { %7366 = vmatmul.msk.f32.gmra.mxu2 %vm5515_vm13, %v5507_v28  ;;  %7432 = vmatmul.msk.f32.gmra.mxu0 %vm5515_vm13, %v7415_v8  ;;  %v7480_v8 = vld [vmem:[%s12240_s11 + $0x238] sm:$0xff] }
 0xad1   : > { %7465 = vmatmul.msk.f32.gmra.mxu1 %vm5515_vm13, %v7448_v24 }
 0xad2   : > { %7399 = vmatmul.msk.f32.gmra.mxu3 %vm5515_vm13, %v7382_v34 }
 0xad8   : > { %7367 = vmatmul.msk.f32.gmra.mxu2 %vm5515_vm13, %v5508_v22  ;;  %7433 = vmatmul.msk.f32.gmra.mxu0 %vm5515_vm13, %v7416_v50 }
 0xad9   : > { %7466 = vmatmul.msk.f32.gmra.mxu1 %vm5515_vm13, %v7449_v60  ;;  %v7481_v60 = vld [vmem:[%s12240_s11 + $0x240] sm:$0xff] }
 0xada   : > { %7400 = vmatmul.msk.f32.gmra.mxu3 %vm5515_vm13, %v7383_v18 }
 0xae0   : > { %7368 = vmatmul.msk.f32.gmra.mxu2 %vm5515_vm13, %v5509_v5  ;;  %7434 = vmatmul.msk.f32.gmra.mxu0 %vm5515_vm13, %v7417_v44 }
 0xae1   : > { %7467 = vmatmul.msk.f32.gmra.mxu1 %vm5515_vm13, %v7450_v29 }
 0xae2   : > { %7401 = vmatmul.msk.f32.gmra.mxu3 %vm5515_vm13, %v7384_v61  ;;  %v7482_v61 = vld [vmem:[%s12240_s11 + $0x248] sm:$0xff] }
 0xae8   : > { %7369 = vmatmul.msk.f32.gmra.mxu2 %vm5515_vm13, %v5510_v14  ;;  %7435 = vmatmul.msk.f32.gmra.mxu0 %vm5515_vm13, %v7418_v53 }
 0xae9   : > { %7468 = vmatmul.msk.f32.gmra.mxu1 %vm5515_vm13, %v7451_v31 }
 0xaea   : > { %7402 = vmatmul.msk.f32.gmra.mxu3 %vm5515_vm13, %v7385_v54 }
 0xaf0   : > { %7370 = vmatmul.msk.f32.gmra.mxu2 %vm5515_vm13, %v5511_v43  ;;  %7436 = vmatmul.msk.f32.gmra.mxu0 %vm5515_vm13, %v7419_v4  ;;  %v7455_v43 = vld [vmem:[%s12240_s11 + $0x1f8] sm:$0xff]  ;;  %v7483_v4 = vld [vmem:[%s12240_s11 + $0x250] sm:$0xff] }
 0xaf1   : > { %7469 = vmatmul.msk.f32.gmra.mxu1 %vm5515_vm13, %v7452_v15 }
 0xaf2   : > { %7403 = vmatmul.msk.f32.gmra.mxu3 %vm5515_vm13, %v7386_v16 }
 0xaf8   : > { %7371 = vmatmul.msk.f32.gmra.mxu2 %vm5515_vm13, %v5512_v51  ;;  %7437 = vmatmul.msk.f32.gmra.mxu0 %vm5515_vm13, %v7420_v20 }
 0xaf9   : > { %7470 = vmatmul.msk.f32.gmra.mxu1 %vm5515_vm13, %v7453_v27  ;;  %v7484_v27 = vld [vmem:[%s12240_s11 + $0x258] sm:$0xff] }
 0xafa   : > { %7404 = vmatmul.msk.f32.gmra.mxu3 %vm5515_vm13, %v7387_v10 }
 0xb00   : > { %7372 = vmatmul.msk.f32.gmra.mxu2 %vm5515_vm13, %v5513_v49  ;;  %7438 = vmatmul.msk.f32.gmra.mxu0 %vm5515_vm13, %v7421_v0 }
 0xb01   : > { %7471 = vmatmul.msk.f32.gmra.mxu1 %vm5515_vm13, %v7454_v56 }
 0xb02   : > { %7405 = vmatmul.msk.f32.gmra.mxu3 %vm5515_vm13, %v7388_v17  ;;  %v7485_v17 = vld [vmem:[%s12240_s11 + $0x260] sm:$0xff] }
 0xb08   : > { %7373 = vmatmul.msk.f32.gmra.mxu2 %vm5515_vm13, %v5514_v6  ;;  %7439 = vmatmul.msk.f32.gmra.mxu0 %vm5515_vm13, %v7422_v26 }
 0xb09   : > { %7472 = vmatmul.msk.f32.gmra.mxu1 %vm5515_vm13, %v7455_v43 }
 0xb0a   : > { %7406 = vmatmul.msk.f32.gmra.mxu3 %vm5515_vm13, %v7389_v30 }
 0xb0d   : > { %v5940_v12 = vpop.f32.mrf.mxu0 }
 0xb0e   : > { %v6150_v7 = vpop.f32.mrf.mxu1  ;;  %6004 = vrot.lane.b32.xlu2 %v5940_v12, %s8155_s16 }
 0xb0f   : > { %6214 = vrot.lane.b32.xlu0 %v6150_v7, %s8161_s18  ;;  %v5484_v7 = vld [vmem:[%s12241_s12 + $0x8] sm:$0xff] }
 0xb10   : > { %7490 = vmatmul.msk.f32.vlgmr.msrb.gmra.mxu2 %vm5515_vm13, %v7473_v1 }
 0xb13   : > { %v11867_v48 = vpop.f32.mrf.mxu2 }
 0xb15   : > { %v5730_v25 = vpop.f32.mrf.mxu3  ;;  %v5943_v33 = vpop.f32.mrf.mxu0 }
 0xb16   : > { %v6153_v46 = vpop.f32.mrf.mxu1  ;;  %5794 = vrot.lane.b32.xlu1 %v5730_v25, %s8162_s22 }
 0xb17   : > { %6006 = vrot.lane.b32.xlu0 %v5943_v33, %s8155_s16 }
 0xb18   : > { %7491 = vmatmul.msk.f32.gmra.mxu2 %vm5515_vm13, %v7474_v23  ;;  %v7486_v23 = vld [vmem:[%s12240_s11 + $0x268] sm:$0xff] }
 0xb1b   : > { %v11875_v55 = vpop.f32.mrf.mxu2 }
 0xb1d   : > { %v5733_v58 = vpop.f32.mrf.mxu3  ;;  %v5946_v59 = vpop.f32.mrf.mxu0 }
 0xb1e   : > { %v6156_v32 = vpop.f32.mrf.mxu1  ;;  %6216 = vrot.lane.b32.xlu1 %v6153_v46, %s8161_s18  ;;  %5796 = vrot.lane.b32.xlu2 %v5733_v58, %s8162_s22 }
 0xb20   : > { %7492 = vmatmul.msk.f32.gmra.mxu2 %vm5515_vm13, %v7475_v35  ;;  %v5633_v35 = vadd.f32 %v11875_v55, %v5484_v7 }
 0xb23   : > { %v11883_v9 = vpop.f32.mrf.mxu2 }
 0xb25   : > { %v5736_v62 = vpop.f32.mrf.mxu3  ;;  %v5949_v13 = vpop.f32.mrf.mxu0 }
 0xb26   : > { %v6159_v52 = vpop.f32.mrf.mxu1  ;;  %6008 = vrot.lane.b32.xlu1 %v5946_v59, %s8155_s16  ;;  %5798 = vrot.lane.b32.xlu0 %v5736_v62, %s8162_s22 }
 0xb27   : > { %6218 = vrot.lane.b32.xlu2 %v6156_v32, %s8161_s18 }
 0xb28   : > { %7493 = vmatmul.msk.f32.gmra.mxu2 %vm5515_vm13, %v7476_v63  ;;  %v7487_v63 = vld [vmem:[%s12240_s11 + $0x270] sm:$0xff] }
 0xb2b   : > { %v11892_v3 = vpop.f32.mrf.mxu2 }
 0xb2d   : > { %v5739_v57 = vpop.f32.mrf.mxu3  ;;  %v5952_v19 = vpop.f32.mrf.mxu0 }
 0xb2e   : > { %v6162_v36 = vpop.f32.mrf.mxu1  ;;  %6012 = vrot.lane.b32.xlu0 %v5952_v19, %s8155_s16  ;;  %5800 = vrot.lane.b32.xlu1 %v5739_v57, %s8162_s22  ;;  %v5483_v19 = vld [vmem:[%s12241_s12] sm:$0xff] }
 0xb2f   : > { %6010 = vrot.lane.b32.xlu2 %v5949_v13, %s8155_s16 }
 0xb30   : > { %7494 = vmatmul.msk.f32.gmra.mxu2 %vm5515_vm13, %v7477_v11 }
 0xb33   : > { %v11901_v38 = vpop.f32.mrf.mxu2 }
 0xb35   : > { %v5742_v40 = vpop.f32.mrf.mxu3  ;;  %v5955_v45 = vpop.f32.mrf.mxu0 }
 0xb36   : > { %v6165_v2 = vpop.f32.mrf.mxu1  ;;  %6222 = vrot.lane.b32.xlu1 %v6162_v36, %s8161_s18  ;;  %v7488_v36 = vld [vmem:[%s12240_s11 + $0x278] sm:$0xff] }
 0xb37   : > { %6224 = vrot.lane.b32.xlu0 %v6165_v2, %s8161_s18  ;;  %6220 = vrot.lane.b32.xlu2 %v6159_v52, %s8161_s18 }
 0xb38   : > { %7495 = vmatmul.msk.f32.gmra.mxu2 %vm5515_vm13, %v7478_v21 }
 0xb3b   : > { %v11910_v37 = vpop.f32.mrf.mxu2 }
 0xb3d   : > { %v5745_v42 = vpop.f32.mrf.mxu3  ;;  %v5958_v47 = vpop.f32.mrf.mxu0 }
 0xb3e   : > { %v6168_v41 = vpop.f32.mrf.mxu1  ;;  %6014 = vrot.lane.b32.xlu1 %v5955_v45, %s8155_s16 }
 0xb3f   : > { %5804 = vrot.lane.b32.xlu0 %v5745_v42, %s8162_s22  ;;  %5802 = vrot.lane.b32.xlu2 %v5742_v40, %s8162_s22  ;;  %v5632_v40 = vadd.f32 %v11867_v48, %v5483_v19 }
 0xb40   : > { %7496 = vmatmul.msk.f32.gmra.mxu2 %vm5515_vm13, %v7479_v39 }
 0xb43   : > { %v11919_v28 = vpop.f32.mrf.mxu2 }
 0xb45   : > { %v5748_v24 = vpop.f32.mrf.mxu3  ;;  %v5961_v34 = vpop.f32.mrf.mxu0 }
 0xb46   : > { %v6171_v22 = vpop.f32.mrf.mxu1  ;;  %5806 = vrot.lane.b32.xlu1 %v5748_v24, %s8162_s22 }
 0xb47   : > { %6018 = vrot.lane.b32.xlu0 %v5961_v34, %s8155_s16  ;;  %6016 = vrot.lane.b32.xlu2 %v5958_v47, %s8155_s16 }
 0xb48   : > { %7497 = vmatmul.msk.f32.gmra.mxu2 %vm5515_vm13, %v7480_v8 }
 0xb4b   : > { %v11928_v50 = vpop.f32.mrf.mxu2 }
 0xb4d   : > { %v5751_v18 = vpop.f32.mrf.mxu3  ;;  %v5964_v5 = vpop.f32.mrf.mxu0 }
 0xb4e   : > { %v6174_v44 = vpop.f32.mrf.mxu1  ;;  %6228 = vrot.lane.b32.xlu1 %v6171_v22, %s8161_s18 }
 0xb4f   : > { %6230 = vrot.lane.b32.xlu0 %v6174_v44, %s8161_s18  ;;  %6226 = vrot.lane.b32.xlu2 %v6168_v41, %s8161_s18  ;;  %v5485_v44 = vld [vmem:[%s12241_s12 + $0x10] sm:$0xff] }
 0xb50   : > { %7498 = vmatmul.msk.f32.gmra.mxu2 %vm5515_vm13, %v7481_v60 }
 0xb53   : > { %v11937_v29 = vpop.f32.mrf.mxu2 }
 0xb55   : > { %v5754_v14 = vpop.f32.mrf.mxu3  ;;  %v5967_v53 = vpop.f32.mrf.mxu0 }
 0xb56   : > { %v6177_v31 = vpop.f32.mrf.mxu1  ;;  %6020 = vrot.lane.b32.xlu1 %v5964_v5, %s8155_s16 }
 0xb57   : > { %5810 = vrot.lane.b32.xlu0 %v5754_v14, %s8162_s22  ;;  %5808 = vrot.lane.b32.xlu2 %v5751_v18, %s8162_s22  ;;  %v5634_v14 = vadd.f32 %v11883_v9, %v5485_v44 }
 0xb58   : > { %7499 = vmatmul.msk.f32.gmra.mxu2 %vm5515_vm13, %v7482_v61  ;;  %v5487_v61 = vld [vmem:[%s12241_s12 + $0x20] sm:$0xff] }
 0xb5b   : > { %v11946_v54 = vpop.f32.mrf.mxu2 }
 0xb5d   : > { %v5757_v15 = vpop.f32.mrf.mxu3  ;;  %v5970_v16 = vpop.f32.mrf.mxu0 }
 0xb5e   : > { %v6180_v51 = vpop.f32.mrf.mxu1  ;;  %5812 = vrot.lane.b32.xlu1 %v5757_v15, %s8162_s22 }
 0xb5f   : > { %6024 = vrot.lane.b32.xlu0 %v5970_v16, %s8155_s16  ;;  %6022 = vrot.lane.b32.xlu2 %v5967_v53, %s8155_s16  ;;  %v5636_v53 = vadd.f32 %v11901_v38, %v5487_v61 }
 0xb60   : > { %7500 = vmatmul.msk.f32.gmra.mxu2 %vm5515_vm13, %v7483_v4 }
 0xb63   : > { %v11959_v20 = vpop.f32.mrf.mxu2 }
 0xb65   : > { %v5760_v10 = vpop.f32.mrf.mxu3  ;;  %v5973_v49 = vpop.f32.mrf.mxu0 }
 0xb66   : > { %v6183_v0 = vpop.f32.mrf.mxu1  ;;  %6234 = vrot.lane.b32.xlu1 %v6180_v51, %s8161_s18 }
 0xb67   : > { %6236 = vrot.lane.b32.xlu0 %v6183_v0, %s8161_s18  ;;  %6232 = vrot.lane.b32.xlu2 %v6177_v31, %s8161_s18 }
 0xb68   : > { %7501 = vmatmul.msk.f32.gmra.mxu2 %vm5515_vm13, %v7484_v27  ;;  %v6005_v1 = vpop.permute.xlu2 %6004 }
 0xb6b   : > { %v11968_v56 = vpop.f32.mrf.mxu2 }
 0xb6d   : > { %v5763_v6 = vpop.f32.mrf.mxu3  ;;  %v5976_v26 = vpop.f32.mrf.mxu0 }
 0xb6e   : > { %v6186_v30 = vpop.f32.mrf.mxu1  ;;  %6026 = vrot.lane.b32.xlu1 %v5973_v49, %s8155_s16 }
 0xb6f   : > { %5816 = vrot.lane.b32.xlu0 %v5763_v6, %s8162_s22  ;;  %5814 = vrot.lane.b32.xlu2 %v5760_v10, %s8162_s22  ;;  %v5486_v10 = vld [vmem:[%s12241_s12 + $0x18] sm:$0xff] }
 0xb70   : > { %7502 = vmatmul.msk.f32.gmra.mxu2 %vm5515_vm13, %v7485_v17  ;;  %v5635_v0 = vadd.f32 %v11892_v3, %v5486_v10  ;;  %v5488_v3 = vld [vmem:[%s12241_s12 + $0x28] sm:$0xff] }
 0xb73   : > { %v11977_v12 = vpop.f32.mrf.mxu2 }
 0xb75   : > { %v5766_v25 = vpop.f32.mrf.mxu3  ;;  %v5979_v33 = vpop.f32.mrf.mxu0 }
 0xb76   : > { %v6189_v46 = vpop.f32.mrf.mxu1  ;;  %5818 = vrot.lane.b32.xlu1 %v5766_v25, %s8162_s22 }
 0xb77   : > { %6030 = vrot.lane.b32.xlu0 %v5979_v33, %s8155_s16  ;;  %6028 = vrot.lane.b32.xlu2 %v5976_v26, %s8155_s16 }
 0xb78   : > { %7503 = vmatmul.msk.f32.gmra.mxu2 %vm5515_vm13, %v7486_v23  ;;  %v5797_v58 = vpop.permute.xlu2 %5796 }
 0xb79   : > { %v5843_v59 = vadd.f32 %v5797_v58, %v5633_v35  ;;  %v5490_v58 = vld [vmem:[%s12241_s12 + $0x38] sm:$0xff] }
 0xb7b   : > { %v11990_v32 = vpop.f32.mrf.mxu2 }
 0xb7d   : > { %v5769_v62 = vpop.f32.mrf.mxu3  ;;  %v5982_v57 = vpop.f32.mrf.mxu0 }
 0xb7e   : > { %v6192_v13 = vpop.f32.mrf.mxu1  ;;  %6240 = vrot.lane.b32.xlu1 %v6189_v46, %s8161_s18 }
 0xb7f   : > { %6242 = vrot.lane.b32.xlu0 %v6192_v13, %s8161_s18  ;;  %6238 = vrot.lane.b32.xlu2 %v6186_v30, %s8161_s18 }
 0xb80   : > { %7504 = vmatmul.msk.f32.gmra.mxu2 %vm5515_vm13, %v7487_v63  ;;  %v5639_v63 = vadd.f32 %v11928_v50, %v5490_v58 }
 0xb81   : > { %v6215_v55 = vpop.permute.xlu0 %6214  ;;  %v6219_v52 = vpop.permute.xlu2 %6218 }
 0xb83   : > { %v11999_v11 = vpop.f32.mrf.mxu2 }
 0xb85   : > { %v5772_v21 = vpop.f32.mrf.mxu3  ;;  %v5985_v24 = vpop.f32.mrf.mxu0 }
 0xb86   : > { %6032 = vrot.lane.b32.xlu1 %v5982_v57, %s8155_s16 }
 0xb87   : > { %5822 = vrot.lane.b32.xlu0 %v5772_v21, %s8162_s22  ;;  %5820 = vrot.lane.b32.xlu2 %v5769_v62, %s8162_s22 }
 0xb88   : > { %7505 = vmatmul.msk.f32.gmra.mxu2 %vm5515_vm13, %v7488_v36  ;;  %v5795_v45 = vpop.permute.xlu1 %5794  ;;  %v5489_v36 = vld [vmem:[%s12241_s12 + $0x30] sm:$0xff] }
 0xb89   : > { %v5842_v2 = vadd.f32 %v5795_v45, %v5632_v40  ;;  %v6007_v39 = vpop.permute.xlu0 %6006  ;;  %v6011_v42 = vpop.permute.xlu2 %6010  ;;  %v5638_v45 = vadd.f32 %v11919_v28, %v5489_v36  ;;  %v5491_v28 = vld [vmem:[%s12241_s12 + $0x40] sm:$0xff] }
 0xb8a   : > { %v6053_v47 = vadd.f32 %v6007_v39, %v5843_v59  ;;  %v5637_v59 = vadd.f32 %v11910_v37, %v5488_v3  ;;  %v5640_v61 = vadd.f32 %v11937_v29, %v5491_v28 }
 0xb8b   : > { %v12012_v41 = vpop.f32.mrf.mxu2  ;;  %v6052_v8 = vadd.f32 %v6005_v1, %v5842_v2 }
 0xb8d   : > { %v5775_v34 = vpop.f32.mrf.mxu3  ;;  %v12014_v22 = vadd.f32 %v6215_v55, %v6052_v8 }
 0xb8e   : > { %5824 = vrot.lane.b32.xlu1 %v5775_v34, %s8162_s22 }
 0xb8f   : > { %6034 = vrot.lane.b32.xlu2 %v5985_v24, %s8155_s16 }
 0xb90   : > { %v6217_v48 = vpop.permute.xlu1 %6216 }
 0xb91   : > { %v12018_v60 = vadd.f32 %v6217_v48, %v6053_v47  ;;  %v6221_v18 = vpop.permute.xlu2 %6220 }
 0xb93   : > { %v6360_v5 = vpop.f32.mrf.mxu2 }
 0xb94   : > { %6424 = vrot.lane.b32.xlu0 %v6360_v5, %s8163_s30 }
 0xb98   : > { %v6009_v31 = vpop.permute.xlu1 %6008  ;;  %v5799_v43 = vpop.permute.xlu0 %5798 }
 0xb99   : > { %v5844_v4 = vadd.f32 %v5799_v43, %v5634_v14  ;;  %v5803_v15 = vpop.permute.xlu2 %5802  ;;  %v5493_v43 = vld [vmem:[%s12241_s12 + $0x50] sm:$0xff] }
 0xb9a   : > { %v5846_v16 = vadd.f32 %v5803_v15, %v5636_v53  ;;  %v5492_v15 = vld [vmem:[%s12241_s12 + $0x48] sm:$0xff] }
 0xb9b   : > { %v6363_v51 = vpop.f32.mrf.mxu2  ;;  %v6054_v27 = vadd.f32 %v6009_v31, %v5844_v4  ;;  %v5641_v29 = vadd.f32 %v11946_v54, %v5492_v15  ;;  %v5494_v54 = vld [vmem:[%s12241_s12 + $0x58] sm:$0xff] }
 0xb9c   : > { %6426 = vrot.lane.b32.xlu1 %v6363_v51, %s8163_s30 }
 0xb9d   : > { %v12033_v49 = vadd.f32 %v6219_v52, %v6054_v27  ;;  %v5642_v27 = vadd.f32 %v11959_v20, %v5493_v43  ;;  %v6505_v43 = vld [vmem:[%s12242_s13 + $0x8] sm:$0xff] }
 0xba0   : > { %v6013_v9 = vpop.permute.xlu0 %6012  ;;  %v5801_v17 = vpop.permute.xlu1 %5800 }
 0xba1   : > { %v5845_v38 = vadd.f32 %v5801_v17, %v5635_v0  ;;  %v6056_v6 = vadd.f32 %v6013_v9, %v5846_v16  ;;  %v6017_v26 = vpop.permute.xlu2 %6016 }
 0xba3   : > { %v6366_v30 = vpop.f32.mrf.mxu2  ;;  %v6055_v1 = vadd.f32 %v6011_v42, %v5845_v38 }
 0xba4   : > { %6428 = vrot.lane.b32.xlu0 %v6366_v30, %s8163_s30 }
 0xba5   : > { %v12037_v7 = vadd.f32 %v6221_v18, %v6055_v1 }
 0xba8   : > { %v6223_v23 = vpop.permute.xlu1 %6222 }
 0xba9   : > { %v6225_v25 = vpop.permute.xlu0 %6224  ;;  %v6227_v33 = vpop.permute.xlu2 %6226  ;;  %v12039_v46 = vadd.f32 %v6223_v23, %v6056_v6 }
 0xbab   : > { %v6369_v35 = vpop.f32.mrf.mxu2 }
 0xbac   : > { %6430 = vrot.lane.b32.xlu2 %v6369_v35, %s8163_s30  ;;  %v5643_v35 = vadd.f32 %v11968_v56, %v5494_v54 }
 0xbb0   : > { %v6015_v62 = vpop.permute.xlu1 %6014 }
 0xbb1   : > { %v5805_v13 = vpop.permute.xlu0 %5804  ;;  %v5809_v55 = vpop.permute.xlu2 %5808 }
 0xbb2   : > { %v5847_v52 = vadd.f32 %v5805_v13, %v5637_v59  ;;  %v5849_v57 = vadd.f32 %v5809_v55, %v5639_v63 }
 0xbb3   : > { %v6372_v19 = vpop.f32.mrf.mxu2 }
 0xbb4   : > { %6432 = vrot.lane.b32.xlu1 %v6372_v19, %s8163_s30  ;;  %v6057_v21 = vadd.f32 %v6015_v62, %v5847_v52 }
 0xbb6   : > { %v12054_v40 = vadd.f32 %v6225_v25, %v6057_v21 }
 0xbb8   : > { %v5807_v37 = vpop.permute.xlu1 %5806 }
 0xbb9   : > { %v6019_v2 = vpop.permute.xlu0 %6018  ;;  %v5848_v50 = vadd.f32 %v5807_v37, %v5638_v45  ;;  %v6023_v39 = vpop.permute.xlu2 %6022 }
 0xbba   : > { %v6059_v42 = vadd.f32 %v6019_v2, %v5849_v57  ;;  %v6195_v37 = vpop.f32.mrf.mxu1 }
 0xbbb   : > { %v6375_v47 = vpop.f32.mrf.mxu2  ;;  %v6058_v8 = vadd.f32 %v6017_v26, %v5848_v50 }
 0xbbc   : > { %6434 = vrot.lane.b32.xlu0 %v6375_v47, %s8163_s30 }
 0xbbd   : > { %v12058_v24 = vadd.f32 %v6227_v33, %v6058_v8 }
 0xbc0   : > { %v6229_v34 = vpop.permute.xlu1 %6228 }
 0xbc1   : > { %v6231_v48 = vpop.permute.xlu0 %6230  ;;  %v12060_v18 = vadd.f32 %v6229_v34, %v6059_v42  ;;  %v6233_v44 = vpop.permute.xlu2 %6232 }
 0xbc3   : > { %v6378_v5 = vpop.f32.mrf.mxu2 }
 0xbc4   : > { %6436 = vrot.lane.b32.xlu2 %v6378_v5, %s8163_s30 }
 0xbc8   : > { %v6021_v14 = vpop.permute.xlu1 %6020 }
 0xbc9   : > { %v5811_v53 = vpop.permute.xlu0 %5810  ;;  %v5815_v51 = vpop.permute.xlu2 %5814 }
 0xbca   : > { %v5850_v31 = vadd.f32 %v5811_v53, %v5640_v61  ;;  %v5852_v9 = vadd.f32 %v5815_v51, %v5642_v27  ;;  %v6504_v61 = vld [vmem:[%s12242_s13] sm:$0xff] }
 0xbcb   : > { %v6381_v4 = vpop.f32.mrf.mxu2 }
 0xbcc   : > { %6438 = vrot.lane.b32.xlu1 %v6381_v4, %s8163_s30  ;;  %v6060_v16 = vadd.f32 %v6021_v14, %v5850_v31 }
 0xbce   : > { %v12075_v10 = vadd.f32 %v6231_v48, %v6060_v16 }
 0xbd0   : > { %v5813_v0 = vpop.permute.xlu1 %5812 }
 0xbd1   : > { %v6025_v17 = vpop.permute.xlu0 %6024  ;;  %v5851_v38 = vadd.f32 %v5813_v0, %v5641_v29  ;;  %v12093_v52 = vpop.permute.xlu2 %6028 }
 0xbd2   : > { %v6062_v6 = vadd.f32 %v6025_v17, %v5852_v9  ;;  %v6507_v17 = vld [vmem:[%s12242_s13 + $0x18] sm:$0xff] }
 0xbd3   : > { %v6384_v26 = vpop.f32.mrf.mxu2  ;;  %v6061_v30 = vadd.f32 %v6023_v39, %v5851_v38  ;;  %v6506_v38 = vld [vmem:[%s12242_s13 + $0x10] sm:$0xff] }
 0xbd4   : > { %6440 = vrot.lane.b32.xlu0 %v6384_v26, %s8163_s30 }
 0xbd5   : > { %v12079_v1 = vadd.f32 %v6233_v44, %v6061_v30 }
 0xbd8   : > { %v6235_v23 = vpop.permute.xlu1 %6234 }
 0xbd9   : > { %v6237_v25 = vpop.permute.xlu0 %6236  ;;  %v12081_v33 = vadd.f32 %v6235_v23, %v6062_v6  ;;  %v12100_v56 = vpop.permute.xlu2 %6238 }
 0xbdb   : > { %v6387_v20 = vpop.f32.mrf.mxu2 }
 0xbdc   : > { %6442 = vrot.lane.b32.xlu2 %v6387_v20, %s8163_s30 }
 0xbe0   : > { %v6027_v3 = vpop.permute.xlu1 %6026 }
 0xbe1   : > { %v5817_v58 = vpop.permute.xlu0 %5816  ;;  %v12109_v39 = vpop.permute.xlu2 %5820 }
 0xbe2   : > { %v5853_v59 = vadd.f32 %v5817_v58, %v5643_v35 }
 0xbe3   : > { %v6390_v63 = vpop.f32.mrf.mxu2 }
 0xbe4   : > { %6444 = vrot.lane.b32.xlu1 %v6390_v63, %s8163_s30  ;;  %v6063_v62 = vadd.f32 %v6027_v3, %v5853_v59  ;;  %v6508_v3 = vld [vmem:[%s12242_s13 + $0x20] sm:$0xff] }
 0xbe6   : > { %v12089_v13 = vadd.f32 %v6237_v25, %v6063_v62 }
 0xbe8   : > { %v12091_v55 = vpop.permute.xlu1 %5818 }
 0xbe9   : > { %v12095_v57 = vpop.permute.xlu0 %6030  ;;  %v12114_v8 = vpop.permute.xlu2 %6034 }
 0xbeb   : > { %v6393_v19 = vpop.f32.mrf.mxu2 }
 0xbec   : > { %6446 = vrot.lane.b32.xlu0 %v6393_v19, %s8163_s30 }
 0xbf0   : > { %v12098_v36 = vpop.permute.xlu1 %6240 }
 0xbf1   : > { %v12103_v45 = vpop.permute.xlu0 %6242 }
 0xbf3   : > { %v6396_v21 = vpop.f32.mrf.mxu2 }
 0xbf4   : > { %6448 = vrot.lane.b32.xlu2 %v6396_v21, %s8163_s30 }
 0xbf8   : > { %v12107_v50 = vpop.permute.xlu1 %6032 }
 0xbf9   : > { %v12111_v42 = vpop.permute.xlu0 %5822 }
 0xbfb   : > { %v6399_v2 = vpop.f32.mrf.mxu2 }
 0xbfc   : > { %6244 = vrot.lane.b32.xlu2 %v6195_v37, %s8161_s18  ;;  %6450 = vrot.lane.b32.xlu1 %v6399_v2, %s8163_s30  ;;  %s492_s18 = scalar_lea.vmem %s12244_s15, %s12492_s21 }
 0xc00   : > { %v12116_v34 = vpop.permute.xlu1 %5824 }
 0xc03   : > { %v6402_v47 = vpop.f32.mrf.mxu2 }
 0xc04   : > { %6452 = vrot.lane.b32.xlu0 %v6402_v47, %s8163_s30  ;;  %v6509_v47 = vld [vmem:[%s12242_s13 + $0x28] sm:$0xff] }
 0xc06   : > { %v6425_v48 = vpop.permute.xlu0 %6424  ;;  %v6431_v31 = vpop.permute.xlu2 %6430 }
 0xc07   : > { %v6472_v5 = vadd.f32 %v6425_v48, %v12014_v22  ;;  %v6475_v22 = vadd.f32 %v6431_v31, %v12037_v7 }
 0xc09   : > { %v6488_v28 = vmax.f32 %v6472_v5, 0.0  ;;  %v6491_v9 = vmax.f32 %v6475_v22, 0.0 }
 0xc0b   : > { %v6405_v44 = vpop.f32.mrf.mxu2  ;;  %v6520_v4 = vmul.f32 %v6504_v61, %v6488_v28  ;;  %v6523_v7 = vmul.f32 %v6507_v17, %v6491_v9  ;;  %v6512_v9 = vld [vmem:[%s12242_s13 + $0x40] sm:$0xff] }
 0xc0c   : > { %6454 = vrot.lane.b32.xlu1 %v6405_v44, %s8163_s30 }
 0xc0d   : > { %v6537_v51 = vsel %vm6536_vm14, %v6520_v4, 0.0  ;;  %v6542_v25 = vsel %vm6536_vm14, %v6523_v7, 0.0 }
 0xc0e   : > { %v6427_v14 = vpop.permute.xlu1 %6426 }
 0xc0f   : > { %v6473_v53 = vadd.f32 %v6427_v14, %v12018_v60 }
 0xc11   : > { %v6489_v15 = vmax.f32 %v6473_v53, 0.0 }
 0xc13   : > { %v6521_v16 = vmul.f32 %v6505_v43, %v6489_v15  ;;  %v6511_v43 = vld [vmem:[%s12242_s13 + $0x38] sm:$0xff] }
 0xc15   : > { %v6538_v27 = vsel %vm6536_vm14, %v6521_v16, 0.0 }
 0xc16   : > { %v6539_v29 = vadd.f32 %v6538_v27, %v6537_v51  ;;  %v6429_v0 = vpop.permute.xlu0 %6428 }
 0xc17   : > { %v6474_v60 = vadd.f32 %v6429_v0, %v12033_v49 }
 0xc19   : > { %v6490_v6 = vmax.f32 %v6474_v60, 0.0 }
 0xc1b   : > { %v6522_v26 = vmul.f32 %v6506_v38, %v6490_v6 }
 0xc1d   : > { %v6540_v30 = vsel %vm6536_vm14, %v6522_v26, 0.0 }
 0xc1e   : > { %v6541_v23 = vadd.f32 %v6540_v30, %v6539_v29  ;;  %v6437_v35 = vpop.permute.xlu2 %6436 }
 0xc1f   : > { %v6478_v59 = vadd.f32 %v6437_v35, %v12058_v24  ;;  %v6514_v35 = vld [vmem:[%s12242_s13 + $0x50] sm:$0xff] }
 0xc20   : > { %v6543_v20 = vadd.f32 %v6542_v25, %v6541_v23 }
 0xc21   : > { %v6494_v37 = vmax.f32 %v6478_v59, 0.0 }
 0xc26   : > { %v6433_v54 = vpop.permute.xlu1 %6432 }
 0xc27   : > { %v6476_v49 = vadd.f32 %v6433_v54, %v12039_v46  ;;  %v6510_v46 = vld [vmem:[%s12242_s13 + $0x30] sm:$0xff] }
 0xc28   : > { %v6526_v5 = vmul.f32 %v6510_v46, %v6494_v37  ;;  %v5496_v46 = vld [vmem:[%s12241_s12 + $0x68] sm:$0xff] }
 0xc29   : > { %v6492_v58 = vmax.f32 %v6476_v49, 0.0 }
 0xc2a   : > { %v6548_v61 = vsel %vm6536_vm14, %v6526_v5, 0.0 }
 0xc2b   : > { %v6524_v63 = vmul.f32 %v6508_v3, %v6492_v58 }
 0xc2d   : > { %v6544_v62 = vsel %vm6536_vm14, %v6524_v63, 0.0 }
 0xc2e   : > { %v6545_v19 = vadd.f32 %v6544_v62, %v6543_v20  ;;  %v6435_v21 = vpop.permute.xlu0 %6434 }
 0xc2f   : > { %v6477_v2 = vadd.f32 %v6435_v21, %v12054_v40  ;;  %v6515_v21 = vld [vmem:[%s12242_s13 + $0x58] sm:$0xff] }
 0xc31   : > { %v6493_v48 = vmax.f32 %v6477_v2, 0.0 }
 0xc33   : > { %v6525_v44 = vmul.f32 %v6509_v47, %v6493_v48 }
 0xc35   : > { %v6546_v24 = vsel %vm6536_vm14, %v6525_v44, 0.0  ;;  %v5497_v44 = vld [vmem:[%s12241_s12 + $0x70] sm:$0xff] }
 0xc36   : > { %v6547_v28 = vadd.f32 %v6546_v24, %v6545_v19  ;;  %v6443_v31 = vpop.permute.xlu2 %6442 }
 0xc37   : > { %v6481_v15 = vadd.f32 %v6443_v31, %v12079_v1  ;;  %v5495_v1 = vld [vmem:[%s12241_s12 + $0x60] sm:$0xff] }
 0xc38   : > { %v6549_v14 = vadd.f32 %v6548_v61, %v6547_v28  ;;  %v5646_v61 = vadd.f32 %v11999_v11, %v5497_v44 }
 0xc39   : > { %v6497_v29 = vmax.f32 %v6481_v15, 0.0 }
 0xc3e   : > { %v6439_v53 = vpop.permute.xlu1 %6438 }
 0xc3f   : > { %v6479_v40 = vadd.f32 %v6439_v53, %v12060_v18  ;;  %v6513_v18 = vld [vmem:[%s12242_s13 + $0x48] sm:$0xff]  ;;  %v5856_v53 = vadd.f32 %v12111_v42, %v5646_v61 }
 0xc40   : > { %v6529_v17 = vmul.f32 %v6513_v18, %v6497_v29 }
 0xc41   : > { %v6495_v4 = vmax.f32 %v6479_v40, 0.0 }
 0xc42   : > { %v6554_v26 = vsel %vm6536_vm14, %v6529_v17, 0.0 }
 0xc43   : > { %v6527_v22 = vmul.f32 %v6511_v43, %v6495_v4  ;;  %v6066_v4 = vadd.f32 %v12107_v50, %v5856_v53  ;;  %v6518_v50 = vld [vmem:[%s12242_s13 + $0x70] sm:$0xff] }
 0xc45   : > { %v6550_v16 = vsel %vm6536_vm14, %v6527_v22, 0.0 }
 0xc46   : > { %v6551_v51 = vadd.f32 %v6550_v16, %v6549_v14  ;;  %v6441_v27 = vpop.permute.xlu0 %6440 }
 0xc47   : > { %v6480_v0 = vadd.f32 %v6441_v27, %v12075_v10  ;;  %v5644_v10 = vadd.f32 %v11977_v12, %v5495_v1 }
 0xc49   : > { %v6496_v60 = vmax.f32 %v6480_v0, 0.0  ;;  %v5854_v23 = vadd.f32 %v12091_v55, %v5644_v10 }
 0xc4b   : > { %v6528_v38 = vmul.f32 %v6512_v9, %v6496_v60  ;;  %v6064_v25 = vadd.f32 %v12093_v52, %v5854_v23 }
 0xc4d   : > { %v6552_v6 = vsel %vm6536_vm14, %v6528_v38, 0.0  ;;  %v6274_v3 = vadd.f32 %v12100_v56, %v6064_v25 }
 0xc4e   : > { %v6553_v7 = vadd.f32 %v6552_v6, %v6551_v51  ;;  %v6449_v49 = vpop.permute.xlu2 %6448 }
 0xc4f   : > { %v6484_v59 = vadd.f32 %v6449_v49, %v6274_v3 }
 0xc50   : > { %v6555_v30 = vadd.f32 %v6554_v26, %v6553_v7 }
 0xc51   : > { %v6500_v55 = vmax.f32 %v6484_v59, 0.0 }
 0xc56   : > { %v6445_v20 = vpop.permute.xlu1 %6444  ;;  %v6245_v0 = vpop.permute.xlu2 %6244 }
 0xc57   : > { %v6482_v54 = vadd.f32 %v6445_v20, %v12081_v33  ;;  %v6516_v33 = vld [vmem:[%s12242_s13 + $0x60] sm:$0xff] }
 0xc58   : > { %v6532_v56 = vmul.f32 %v6516_v33, %v6500_v55  ;;  %v6574_v20 = vld [vmem:[#allocation2] sm:$0x1] }
 0xc59   : > { %v6498_v58 = vmax.f32 %v6482_v54, 0.0 }
 0xc5a   : > { %v6560_v5 = vsel %vm6536_vm14, %v6532_v56, 0.0 }
 0xc5b   : > { %v6530_v12 = vmul.f32 %v6514_v35, %v6498_v58 }
 0xc5d   : > { %v6556_v63 = vsel %vm6536_vm14, %v6530_v12, 0.0 }
 0xc5e   : > { %v6557_v62 = vadd.f32 %v6556_v63, %v6555_v30  ;;  %v6447_v19 = vpop.permute.xlu0 %6446 }
 0xc5f   : > { %v6483_v52 = vadd.f32 %v6447_v19, %v12089_v13  ;;  %v5645_v13 = vadd.f32 %v11990_v32, %v5496_v46  ;;  %v6517_v32 = vld [vmem:[%s12242_s13 + $0x68] sm:$0xff] }
 0xc61   : > { %v6499_v37 = vmax.f32 %v6483_v52, 0.0  ;;  %v5855_v28 = vadd.f32 %v12109_v39, %v5645_v13  ;;  %v5498_v39 = vld [vmem:[%s12241_s12 + $0x78] sm:$0xff] }
 0xc63   : > { %v6531_v2 = vmul.f32 %v6515_v21, %v6499_v37  ;;  %v6065_v14 = vadd.f32 %v12095_v57, %v5855_v28  ;;  %v5647_v57 = vadd.f32 %v12012_v41, %v5498_v39 }
 0xc65   : > { %v6558_v47 = vsel %vm6536_vm14, %v6531_v2, 0.0  ;;  %v6275_v40 = vadd.f32 %v12098_v36, %v6065_v14  ;;  %v6276_v36 = vadd.f32 %v12103_v45, %v6066_v4  ;;  %v5857_v51 = vadd.f32 %v12116_v34, %v5647_v57  ;;  %v6519_v34 = vld [vmem:[%s12242_s13 + $0x78] sm:$0xff] }
 0xc66   : > { %v6559_v48 = vadd.f32 %v6558_v47, %v6557_v62 }
 0xc67   : > { %v6067_v18 = vadd.f32 %v12114_v8, %v5857_v51 }
 0xc68   : > { %v6561_v24 = vadd.f32 %v6560_v5, %v6559_v48 }
 0xc69   : > { %v6277_v60 = vadd.f32 %v6245_v0, %v6067_v18 }
 0xc6e   : > { %v6451_v31 = vpop.permute.xlu1 %6450 }
 0xc6f   : > { %v6485_v43 = vadd.f32 %v6451_v31, %v6275_v40 }
 0xc71   : > { %v6501_v15 = vmax.f32 %v6485_v43, 0.0 }
 0xc73   : > { %v6533_v11 = vmul.f32 %v6517_v32, %v6501_v15 }
 0xc75   : > { %v6562_v42 = vsel %vm6536_vm14, %v6533_v11, 0.0 }
 0xc76   : > { %v6563_v22 = vadd.f32 %v6562_v42, %v6561_v24  ;;  %v6453_v16 = vpop.permute.xlu0 %6452 }
 0xc77   : > { %v6486_v27 = vadd.f32 %v6453_v16, %v6276_v36 }
 0xc79   : > { %v6502_v29 = vmax.f32 %v6486_v27, 0.0 }
 0xc7b   : > { %v6534_v9 = vmul.f32 %v6518_v50, %v6502_v29 }
 0xc7d   : > { %v6564_v41 = vsel %vm6536_vm14, %v6534_v9, 0.0 }
 0xc7e   : > { %v6565_v17 = vadd.f32 %v6564_v41, %v6563_v22  ;;  %v6455_v45 = vpop.permute.xlu1 %6454 }
 0xc7f   : > { %v6487_v38 = vadd.f32 %v6455_v45, %v6277_v60 }
 0xc81   : > { %v6503_v1 = vmax.f32 %v6487_v38, 0.0 }
 0xc83   : > { %v6535_v6 = vmul.f32 %v6519_v34, %v6503_v1 }
 0xc85   : > { %v6566_v7 = vsel %vm6536_vm14, %v6535_v6, 0.0 }
 0xc86   : > { %v6567_v10 = vadd.f32 %v6566_v7, %v6565_v17 }
 0xc88   : > { %v6568_v26 = vrot.slane %v6567_v10, 4 }
 0xc8a   : > { %v6569_v30 = vadd.f32 %v6568_v26, %v6567_v10 }
 0xc8c   : > { %v6570_v8 = vrot.slane %v6569_v30, 2 }
 0xc8e   : > { %v6571_v23 = vadd.f32 %v6570_v8, %v6569_v30 }
 0xc90   : > { %v6572_v25 = vrot.slane %v6571_v23, 1 }
 0xc92   : > { %v6573_v54 = vadd.f32 %v6572_v25, %v6571_v23 }
 0xc94   : > { %v6575_v49 = vadd.f32 %v6574_v20, %v6573_v54 }
 0xc96   : > { %6577 = vst.msk [vmem:[%s492_s18] sm:$0x1] %vm6576_vm15, %v6575_v49 }
 0xc97 PF: > { %s27_s20 = sadd.s32 1, %s8149_s20  }
 0xc98   : > { %p24_p4 = scmp.ge.s32.totalorder %s27_s20, 4  }
 0xc9a   :  { %26 = sbr.rel (!%p24_p4) target bundleno = 3 (0x3), region = 127 }

</bundles_post_ra>
